<compile_context>
chip_gen: v7x
topology: tpu7x:2x2x1
jax: 0.10.0
libtpu: 0.0.40
codegen_flags: <defaults>
</compile_context>

<pallas_src>
import numpy as np

import jax
import jax.numpy as jnp
from jax.experimental import pallas as pl
from jax.experimental.pallas import tpu as pltpu


# Set True on builds where BlockSpec(pipeline_mode=pl.Buffered(1)) is honoured
# for the top-level pallas_call pipeline (saves ~1x the weight set of VMEM on
# v7x since the weight blocks never change across the grid).
_SINGLE_BUFFER_WEIGHTS = False


# ----------------------------------------------------------------------------
# math helpers (kernel-side)
# ----------------------------------------------------------------------------
def _erf(x):
    # Abramowitz & Stegun 7.1.26 polynomial approximation, |err| < 1.5e-7.
    a1, a2, a3, a4, a5 = 0.254829592, -0.284496736, 1.421413741, -1.453152027, 1.061405429
    p = 0.3275911
    sgn = jnp.where(x >= 0.0, 1.0, -1.0)
    ax = jnp.abs(x)
    # divide -> EUP reciprocal slot instead of the crowded VALU slot
    t = pl.reciprocal(1.0 + p * ax, approx=True)
    poly = ((((a5 * t + a4) * t + a3) * t + a2) * t + a1) * t
    return sgn * (1.0 - poly * jnp.exp(-ax * ax))


def _gelu(x):
    # matches torch.nn.GELU() (erf form) to ~1e-4
    return 0.5 * x * (1.0 + _erf(x * 0.7071067811865476))


# ----------------------------------------------------------------------------
# fused kernel: LesionAttentionModule + pooled feature + all four heads
# ----------------------------------------------------------------------------
def _make_fused_kernel(c_real, c_pad, seg1):
    """seg1 = (classifier_L1, grade_L1, ordinal_L1, domain_L1) hidden widths."""
    n_cls1, n_gp1, n_oe1, _n_dom1 = seg1
    n12 = n_cls1 + n_gp1          # 1536 : input width of the fused middle layer
    g_cols = n12 + n_oe1          # 1792 : GELU-activated columns of layer 1
    f32, bf16 = jnp.float32, jnp.bfloat16

    def kernel(x_ref,                       # (bb, S, Cp)  bf16, S = H*W
               aw1_ref, aw2_ref,            # channel-attention MLP (f32)
               tsp_ref,                     # (2S, S) f32  7x7 conv as Toeplitz
               w1_ref, b1_ref,              # fused head layer 1  (Cp, 2048)
               w2_ref, b2_ref,              # fused head layer 2  (1536, 768)
               w3_ref, b3_ref,              # fused final layer   (1280, OUT)
               out_ref):                    # (bb, OUT) f32 lane-dense slab
        bb, S, Cp = x_ref.shape
        inv_s = 1.0 / float(S)
        inv_c = 1.0 / float(c_real)

        x = x_ref[...].astype(f32)                                  # (bb, S, Cp)

        # ---- channel attention: avg & max stats through one shared MLP -----
        avg_p = jnp.sum(x, axis=1) * inv_s                          # (bb, Cp)
        max_p = jnp.max(x, axis=1)                                  # (bb, Cp)
        stats = jnp.concatenate([avg_p, max_p], axis=0)             # (2bb, Cp)
        hid = jnp.maximum(
            jnp.dot(stats, aw1_ref[...], preferred_element_type=f32), 0.0)
        mlp = jnp.dot(hid, aw2_ref[...], preferred_element_type=f32)
        ch_att = jax.nn.sigmoid(mlp[:bb] + mlp[bb:])                # (bb, Cp)

        xc = x * ch_att[:, None, :]                                 # (bb, S, Cp)

        # ---- spatial attention: 7x7 conv == one Toeplitz matmul -------------
        avg_sp = jnp.sum(xc, axis=-1) * inv_c                       # (bb, S)
        if c_pad == c_real:
            max_sp = jnp.max(xc, axis=-1)                           # (bb, S)
        else:
            cmask = jax.lax.broadcasted_iota(jnp.int32, (1, 1, c_pad), 2) < c_real
            max_sp = jnp.max(jnp.where(cmask, xc, jnp.float32(-3.0e38)), axis=-1)
        sp_in = jnp.concatenate([avg_sp, max_sp], axis=-1)          # (bb, 2S)
        sp_att = jax.nn.sigmoid(
            jnp.dot(sp_in, tsp_ref[...], preferred_element_type=f32))   # (bb, S)

        # ---- h = spatial mean of (x_channel * spatial_att) ------------------
        h = jnp.sum(xc * sp_att[:, :, None], axis=1) * inv_s        # (bb, Cp)
        hb = h.astype(bf16)

        # ---- fused heads (BN folded; Dropout = identity at inference) -------
        # layer 1: [cls 1024 | gp 512 | oe 256 | dom 256]
        z1 = jnp.dot(hb, w1_ref[...], preferred_element_type=f32) + b1_ref[...]
        a_gelu = _gelu(z1[:, :g_cols])                   # cls | gp | oe  (GELU)
        a_relu = jnp.maximum(z1[:, g_cols:], 0.0)        # dom            (ReLU)

        # layer 2 (block-diag): cls 1024->512, gp 512->256
        z2 = jnp.dot(a_gelu[:, :n12].astype(bf16), w2_ref[...],
                     preferred_element_type=f32) + b2_ref[...]
        a2 = _gelu(z2)                                   # (bb, 768)

        # final layer (block-diag) -> lane-dense output slab
        fin = jnp.concatenate([a2, a_gelu[:, n12:], a_relu], axis=-1).astype(bf16)
        out_ref[...] = jnp.dot(fin, w3_ref[...],
                               preferred_element_type=f32) + b3_ref[...]

    return kernel


# ----------------------------------------------------------------------------
# parameter preparation helpers (host side, done once)
# ----------------------------------------------------------------------------
def _build_spatial_toeplitz(w_avg, w_max, H, W):
    """7x7 'SAME' cross-correlation as a (2*H*W, H*W) matmul matrix.

    Rows [0, H*W) act on the avg-over-channels map, rows [H*W, 2*H*W) on the
    max map; column o = oy*W + ox is the conv output at (oy, ox).
    """
    k = w_avg.shape[-1]
    r = k // 2
    HW = H * W
    T = np.zeros((2 * HW, HW), np.float32)
    for oy in range(H):
        for ox in range(W):
            o = oy * W + ox
            for ky in range(k):
                for kx in range(k):
                    iy, ix = oy + ky - r, ox + kx - r
                    if 0 <= iy < H and 0 <= ix < W:
                        i = iy * W + ix
                        T[i, o] += w_avg[ky, kx]
                        T[HW + i, o] += w_max[ky, kx]
    return jnp.asarray(T)


def _pick_batch_tile(batch, spatial, c_pad):
    """(batch_tile, padded_batch): sublane aligned, VMEM-aware, >=2 steps if possible."""
    b8 = -(-batch // 8) * 8
    bytes_per_row = spatial * c_pad * 4 * 4      # ~4 live f32 copies of the tile
    cap = min(128, max(8, (24 * 1024 * 1024 // max(1, bytes_per_row)) // 8 * 8))
    if b8 <= 8:
        return 8, 8
    half = -(-(b8 // 2) // 8) * 8                # prefer >=2 grid steps (v7x 2 TCs)
    bb = max(8, min(cap, half))
    b_pad = -(-b8 // bb) * bb
    return bb, b_pad


def init_raw_params(key, feature_dim=32, num_classes=5, reduction=8):
    """Per-layer f32 parameters mirroring the PyTorch module (BN pre-folded)."""
    keys = iter(jax.random.split(key, 64))
    f32 = jnp.float32

    def lin(fan_in, fan_out):
        k = next(keys)
        w = (jax.random.normal(k, (fan_in, fan_out)) * (2.0 / fan_in) ** 0.5).astype(f32)
        b = (0.01 * jax.random.normal(jax.random.fold_in(k, 1), (fan_out,))).astype(f32)
        return w, b

    def bn(n):
        k = next(keys)
        gamma = 1.0 + 0.1 * jax.random.normal(k, (n,))
        beta = 0.05 * jax.random.normal(jax.random.fold_in(k, 1), (n,))
        mean = 0.01 * jax.random.normal(jax.random.fold_in(k, 2), (n,))
        var = 1.0 + 0.1 * jax.random.uniform(jax.random.fold_in(k, 3), (n,))
        scale = gamma / jnp.sqrt(var + 1e-5)
        shift = beta - mean * scale
        return scale.astype(f32), shift.astype(f32)

    def lin_bn(fan_in, fan_out):
        # Linear -> BatchNorm1d (inference) folded exactly: W' = W*s, b' = b*s + t
        w, b = lin(fan_in, fan_out)
        s, t = bn(fan_out)
        return w * s[None, :], b * s + t

    p = {'feature_dim': feature_dim, 'num_classes': num_classes}
    cr = max(1, feature_dim // reduction)
    p['att_w1'] = (jax.random.normal(next(keys), (feature_dim, cr))
                   * (2.0 / feature_dim) ** 0.5).astype(f32)
    p['att_w2'] = (jax.random.normal(next(keys), (cr, feature_dim))
                   * (2.0 / cr) ** 0.5).astype(f32)
    # spatial 7x7 conv weight, channel 0 = avg map, channel 1 = max map, no bias
    p['att_spconv'] = (0.1 * jax.random.normal(next(keys), (2, 7, 7))).astype(f32)

    p['cls_w1'], p['cls_b1'] = lin_bn(feature_dim, 1024)
    p['cls_w2'], p['cls_b2'] = lin_bn(1024, 512)
    p['cls_w3'], p['cls_b3'] = lin(512, num_classes)

    p['gp_w1'], p['gp_b1'] = lin_bn(feature_dim, 512)
    p['gp_w2'], p['gp_b2'] = lin_bn(512, 256)
    p['gp_w3'], p['gp_b3'] = lin(256, num_classes)

    p['oe_w1'], p['oe_b1'] = lin(feature_dim, 256)
    p['oe_w2'], p['oe_b2'] = lin(256, num_classes - 1)

    p['dom_w1'], p['dom_b1'] = lin(feature_dim, 256)
    p['dom_w2'], p['dom_b2'] = lin(256, 5)
    return p


def prepare_params(raw, H, W):
    """Pad channels to a lane multiple, fuse the head weights, build Toeplitz."""
    f32, bf16 = jnp.float32, jnp.bfloat16
    C, nc = raw['feature_dim'], raw['num_classes']
    Cp = 128 * ((C + 127) // 128)

    def pad_rows(w):
        return jnp.pad(w, ((0, Cp - w.shape[0]), (0, 0)))

    att_w1 = pad_rows(raw['att_w1']).astype(f32)                         # (Cp, cr)
    att_w2 = jnp.pad(raw['att_w2'], ((0, 0), (0, Cp - C))).astype(f32)   # (cr, Cp)

    spc = np.asarray(raw['att_spconv'])
    tsp = _build_spatial_toeplitz(spc[0], spc[1], H, W).astype(f32)      # (2HW, HW)

    # fused head layer 1: [cls 1024 | gp 512 | oe 256 | dom 256]
    w1 = jnp.concatenate([pad_rows(raw['cls_w1']), pad_rows(raw['gp_w1']),
                          pad_rows(raw['oe_w1']), pad_rows(raw['dom_w1'])], axis=1)
    b1 = jnp.concatenate([raw['cls_b1'], raw['gp_b1'],
                          raw['oe_b1'], raw['dom_b1']])[None, :]

    # fused head layer 2 (block diagonal): cls 1024->512, gp 512->256
    n_c1, n_g1 = raw['cls_w2'].shape[0], raw['gp_w2'].shape[0]
    n_c2, n_g2 = raw['cls_w2'].shape[1], raw['gp_w2'].shape[1]
    w2 = jnp.zeros((n_c1 + n_g1, n_c2 + n_g2), f32)
    w2 = w2.at[:n_c1, :n_c2].set(raw['cls_w2'])
    w2 = w2.at[n_c1:, n_c2:].set(raw['gp_w2'])
    b2 = jnp.concatenate([raw['cls_b2'], raw['gp_b2']])[None, :]

    # fused final layer (block diagonal) -> lane-dense output slab
    finals = ((raw['cls_w3'], raw['cls_b3']), (raw['gp_w3'], raw['gp_b3']),
              (raw['oe_w2'], raw['oe_b2']), (raw['dom_w2'], raw['dom_b2']))
    n_dom = raw['dom_w2'].shape[1]
    cols = nc + nc + (nc - 1) + n_dom
    out_pad = 128 * ((cols + 127) // 128)
    k_tot = sum(w.shape[0] for w, _ in finals)
    w3 = jnp.zeros((k_tot, out_pad), f32)
    b3 = jnp.zeros((1, out_pad), f32)
    off_k = off_n = 0
    for w_, b_ in finals:
        kk, nn = w_.shape
        w3 = w3.at[off_k:off_k + kk, off_n:off_n + nn].set(w_)
        b3 = b3.at[0, off_n:off_n + nn].set(b_)
        off_k += kk
        off_n += nn

    prepared = dict(att_w1=att_w1, att_w2=att_w2, tsp=tsp,
                    w1=w1.astype(bf16), b1=b1.astype(f32),
                    w2=w2.astype(bf16), b2=b2.astype(f32),
                    w3=w3.astype(bf16), b3=b3.astype(f32))
    meta = dict(C=C, Cp=Cp, nc=nc, n_dom=n_dom, out_pad=out_pad, H=H, W=W,
                seg1=(raw['cls_w1'].shape[1], raw['gp_w1'].shape[1],
                      raw['oe_w1'].shape[1], raw['dom_w1'].shape[1]))
    return prepared, meta


# ----------------------------------------------------------------------------
# wrapper
# ----------------------------------------------------------------------------
def enhanced_dr_forward(prepared, meta, feats_nhwc, alpha=0.0):
    """Forward pass on backbone features supplied channels-last (B, H, W, C)."""
    B, H, W, C = feats_nhwc.shape
    assert (H, W, C) == (meta['H'], meta['W'], meta['C'])
    Cp, nc, n_dom, out_pad = meta['Cp'], meta['nc'], meta['n_dom'], meta['out_pad']
    S = H * W

    bb, b_pad = _pick_batch_tile(B, S, Cp)

    # flatten spatial (row-major, layout no-op) and zero-pad batch / channels
    x = feats_nhwc.reshape(B, S, C).astype(jnp.bfloat16)
    if b_pad != B or Cp != C:
        x = jnp.pad(x, ((0, b_pad - B), (0, 0), (0, Cp - C)))

    weight_names = ['att_w1', 'att_w2', 'tsp', 'w1', 'b1', 'w2', 'b2', 'w3', 'b3']
    weights = [prepared[n] for n in weight_names]

    def wspec(arr):
        kw = {}
        if _SINGLE_BUFFER_WEIGHTS:
            kw['pipeline_mode'] = pl.Buffered(1)   # grid-constant: no double buffer
        return pl.BlockSpec(arr.shape, lambda i, _nd=arr.ndim: (0,) * _nd, **kw)

    in_specs = ([pl.BlockSpec((bb, S, Cp), lambda i: (i, 0, 0))]
                + [wspec(w) for w in weights])
    out_spec = pl.BlockSpec((bb, out_pad), lambda i: (i, 0))

    kernel = _make_fused_kernel(C, Cp, meta['seg1'])
    slab = pl.pallas_call(
        kernel,
        out_shape=jax.ShapeDtypeStruct((b_pad, out_pad), jnp.float32),
        grid=(b_pad // bb,),
        in_specs=in_specs,
        out_specs=out_spec,
        compiler_params=pltpu.CompilerParams(
            dimension_semantics=("parallel",)),   # batch sharded across v7x TCs
    )(x, *weights)

    logits = slab[:B, 0:nc]
    grade_logits = slab[:B, nc:2 * nc]
    ordinal = slab[:B, 2 * nc:3 * nc - 1]
    # Original module evaluates the domain head only when alpha > 0; the fused
    # kernel always computes it (negligible) but it is only returned then.
    domain_logits = slab[:B, 3 * nc - 1:3 * nc - 1 + n_dom] if alpha > 0 else None
    return logits, (grade_logits, ordinal), domain_logits


# ----------------------------------------------------------------------------
# pure-JAX reference (f32, unfused) for tolerance checking
# ----------------------------------------------------------------------------
def _reference_forward(raw, feats_nhwc, alpha=0.0):
    f32 = jnp.float32
    x = feats_nhwc.astype(f32)
    avg_p = jnp.mean(x, axis=(1, 2))
    max_p = jnp.max(x, axis=(1, 2))

    def mlp(v):
        return jnp.maximum(v @ raw['att_w1'], 0.0) @ raw['att_w2']

    ch_att = jax.nn.sigmoid(mlp(avg_p) + mlp(max_p))
    xc = x * ch_att[:, None, None, :]
    avg_sp = jnp.mean(xc, axis=-1)
    max_sp = jnp.max(xc, axis=-1)
    sp_in = jnp.stack([avg_sp, max_sp], axis=1)                  # (B,2,H,W)
    conv = jax.lax.conv_general_dilated(
        sp_in, raw['att_spconv'][None], (1, 1), 'SAME',
        dimension_numbers=('NCHW', 'OIHW', 'NCHW'))
    sp_att = jax.nn.sigmoid(conv[:, 0])
    h = jnp.mean(xc * sp_att[:, :, :, None], axis=(1, 2))

    gelu = lambda v: 0.5 * v * (1.0 + jax.scipy.special.erf(v * 0.7071067811865476))
    c = gelu(h @ raw['cls_w1'] + raw['cls_b1'])
    c = gelu(c @ raw['cls_w2'] + raw['cls_b2'])
    logits = c @ raw['cls_w3'] + raw['cls_b3']
    g = gelu(h @ raw['gp_w1'] + raw['gp_b1'])
    g = gelu(g @ raw['gp_w2'] + raw['gp_b2'])
    grade = g @ raw['gp_w3'] + raw['gp_b3']
    o = gelu(h @ raw['oe_w1'] + raw['oe_b1'])
    ordinal = o @ raw['oe_w2'] + raw['oe_b2']
    d = jnp.maximum(h @ raw['dom_w1'] + raw['dom_b1'], 0.0)
    dom = d @ raw['dom_w2'] + raw['dom_b2']
    return logits, (grade, ordinal), (dom if alpha > 0 else None)


# ----------------------------------------------------------------------------
if __name__ == "__main__":
    key = jax.random.PRNGKey(0)
    B, H, W, C = 2, 8, 8, 32          # small synthetic "backbone feature" shape
    num_classes = 5

    raw = init_raw_params(key, feature_dim=C, num_classes=num_classes, reduction=8)
    prepared, meta = prepare_params(raw, H, W)
    feats = jax.random.normal(jax.random.fold_in(key, 999), (B, H, W, C), jnp.float32)

    # default path (alpha=0.0 -> domain_logits is None)
    logits, (grade_logits, ordinal), domain_logits = enhanced_dr_forward(
        prepared, meta, feats, alpha=0.0)
    jax.block_until_ready((logits, grade_logits, ordinal))
    assert logits.shape == (B, num_classes)
    assert grade_logits.shape == (B, num_classes)
    assert ordinal.shape == (B, num_classes - 1)
    assert domain_logits is None

    # domain-classifier path (alpha > 0)
    _, _, dom = enhanced_dr_forward(prepared, meta, feats, alpha=0.5)
    jax.block_until_ready(dom)
    assert dom.shape == (B, 5)

    # tolerance-asserted pure-JAX reference (bf16 weights -> loose tolerance)
    r_logits, (r_grade, r_ord), r_dom = _reference_forward(raw, feats, alpha=0.5)
    for got, ref in ((logits, r_logits), (grade_logits, r_grade),
                     (ordinal, r_ord), (dom, r_dom)):
        np.testing.assert_allclose(np.asarray(got), np.asarray(ref),
                                   rtol=5e-2, atol=5e-2)

    print("KERNEL_OK")
</pallas_src>

<mosaic_0001>
module attributes {stable_mosaic.version = 11 : i64} {
  func.func @kernel(%arg0: i32, %arg1: memref<8x64x128xbf16, #tpu.memory_space<vmem>>, %arg2: memref<128x4xf32, #tpu.memory_space<vmem>>, %arg3: memref<4x128xf32, #tpu.memory_space<vmem>>, %arg4: memref<128x64xf32, #tpu.memory_space<vmem>>, %arg5: memref<128x2048xbf16, #tpu.memory_space<vmem>>, %arg6: memref<1x2048xf32, #tpu.memory_space<vmem>>, %arg7: memref<1536x768xbf16, #tpu.memory_space<vmem>>, %arg8: memref<1x768xf32, #tpu.memory_space<vmem>>, %arg9: memref<1280x128xbf16, #tpu.memory_space<vmem>>, %arg10: memref<1x128xf32, #tpu.memory_space<vmem>>, %arg11: memref<8x128xf32, #tpu.memory_space<vmem>>) attributes {dimension_semantics = [#tpu.dimension_semantics<parallel>], iteration_bounds = array<i64: 1>, scalar_prefetch = 0 : i64, scratch_operands = 0 : i64, tpu.core_type = #tpu.core_type<tc>, window_params = [{transform_indices = @transform_0, window_bounds = array<i64: 8, 64, 128>}, {pipeline_mode = #tpu.pipeline_mode<synchronous>, transform_indices = @transform_1, window_bounds = array<i64: 128, 4>}, {pipeline_mode = #tpu.pipeline_mode<synchronous>, transform_indices = @transform_2, window_bounds = array<i64: 4, 128>}, {pipeline_mode = #tpu.pipeline_mode<synchronous>, transform_indices = @transform_3, window_bounds = array<i64: 128, 64>}, {pipeline_mode = #tpu.pipeline_mode<synchronous>, transform_indices = @transform_4, window_bounds = array<i64: 128, 2048>}, {pipeline_mode = #tpu.pipeline_mode<synchronous>, transform_indices = @transform_5, window_bounds = array<i64: 1, 2048>}, {pipeline_mode = #tpu.pipeline_mode<synchronous>, transform_indices = @transform_6, window_bounds = array<i64: 1536, 768>}, {pipeline_mode = #tpu.pipeline_mode<synchronous>, transform_indices = @transform_7, window_bounds = array<i64: 1, 768>}, {pipeline_mode = #tpu.pipeline_mode<synchronous>, transform_indices = @transform_8, window_bounds = array<i64: 1280, 128>}, {pipeline_mode = #tpu.pipeline_mode<synchronous>, transform_indices = @transform_9, window_bounds = array<i64: 1, 128>}, {transform_indices = @transform_10, window_bounds = array<i64: 8, 128>}]} {
    %c0 = arith.constant 0 : index
    %c0_0 = arith.constant 0 : index
    %c0_1 = arith.constant 0 : index
    %0 = vector.load %arg1[%c0, %c0_0, %c0_1] : memref<8x64x128xbf16, #tpu.memory_space<vmem>>, vector<8x64x128xbf16>
    %1 = arith.extf %0 : vector<8x64x128xbf16> to vector<8x64x128xf32>
    %cst = arith.constant dense<0.000000e+00> : vector<8x128xf32>
    %2 = vector.multi_reduction <add>, %1, %cst [1] : vector<8x64x128xf32> to vector<8x128xf32>
    %cst_2 = arith.constant 1.562500e-02 : f32
    %3 = vector.broadcast %cst_2 : f32 to vector<8x128xf32>
    %4 = arith.mulf %2, %3 : vector<8x128xf32>
    %cst_3 = arith.constant dense<0xFF800000> : vector<8x128xf32>
    %5 = vector.multi_reduction <maximumf>, %1, %cst_3 [1] : vector<8x64x128xf32> to vector<8x128xf32>
    %6 = tpu.concatenate %4, %5 in 0 : vector<8x128xf32>, vector<8x128xf32> -> vector<16x128xf32>
    %c0_4 = arith.constant 0 : index
    %c0_5 = arith.constant 0 : index
    %7 = vector.load %arg2[%c0_4, %c0_5] : memref<128x4xf32, #tpu.memory_space<vmem>>, vector<128x4xf32>
    %cst_6 = arith.constant dense<0.000000e+00> : vector<16x4xf32>
    %8 = tpu.matmul %6, %7, %cst_6 {dimension_numbers = #tpu.dot_dimension_numbers<[1], [0], [0], [1], [0, 0, 1, 1], [], []>} : vector<16x128xf32>, vector<128x4xf32>, vector<16x4xf32> -> vector<16x4xf32>
    %cst_7 = arith.constant 0.000000e+00 : f32
    %9 = vector.broadcast %cst_7 : f32 to vector<16x4xf32>
    %10 = arith.maximumf %8, %9 : vector<16x4xf32>
    %c0_8 = arith.constant 0 : index
    %c0_9 = arith.constant 0 : index
    %11 = vector.load %arg3[%c0_8, %c0_9] : memref<4x128xf32, #tpu.memory_space<vmem>>, vector<4x128xf32>
    %cst_10 = arith.constant dense<0.000000e+00> : vector<16x128xf32>
    %12 = tpu.matmul %10, %11, %cst_10 {dimension_numbers = #tpu.dot_dimension_numbers<[1], [0], [0], [1], [0, 0, 1, 1], [], []>} : vector<16x4xf32>, vector<4x128xf32>, vector<16x128xf32> -> vector<16x128xf32>
    %13 = vector.extract_strided_slice %12 {offsets = [0, 0], sizes = [8, 128], strides = [1, 1]} : vector<16x128xf32> to vector<8x128xf32>
    %14 = vector.extract_strided_slice %12 {offsets = [8, 0], sizes = [8, 128], strides = [1, 1]} : vector<16x128xf32> to vector<8x128xf32>
    %15 = arith.addf %13, %14 : vector<8x128xf32>
    %16 = arith.negf %15 : vector<8x128xf32>
    %17 = math.exp %16 : vector<8x128xf32>
    %cst_11 = arith.constant 1.000000e+00 : f32
    %18 = vector.broadcast %cst_11 : f32 to vector<8x128xf32>
    %19 = arith.addf %18, %17 : vector<8x128xf32>
    %20 = arith.divf %18, %19 : vector<8x128xf32>
    %21 = vector.shape_cast %20 : vector<8x128xf32> to vector<8x1x128xf32>
    %22 = vector.broadcast %21 : vector<8x1x128xf32> to vector<8x64x128xf32>
    %23 = arith.mulf %1, %22 : vector<8x64x128xf32>
    %cst_12 = arith.constant dense<0.000000e+00> : vector<8x64xf32>
    %24 = vector.multi_reduction <add>, %23, %cst_12 [2] : vector<8x64x128xf32> to vector<8x64xf32>
    %cst_13 = arith.constant 3.125000e-02 : f32
    %25 = vector.broadcast %cst_13 : f32 to vector<8x64xf32>
    %26 = arith.mulf %24, %25 : vector<8x64xf32>
    %27 = tpu.iota {dimensions = array<i32: 2>} : vector<1x1x128xi32>
    %c32_i32 = arith.constant 32 : i32
    %28 = vector.broadcast %c32_i32 : i32 to vector<1x1x128xi32>
    %29 = arith.cmpi slt, %27, %28 : vector<1x1x128xi32>
    %cst_14 = arith.constant -3.000000e+38 : f32
    %30 = vector.shape_cast %29 : vector<1x1x128xi1> to vector<1x1x128xi1>
    %31 = vector.broadcast %30 : vector<1x1x128xi1> to vector<8x64x128xi1>
    %32 = vector.broadcast %cst_14 : f32 to vector<8x64x128xf32>
    %33 = arith.select %31, %23, %32 : vector<8x64x128xi1>, vector<8x64x128xf32>
    %cst_15 = arith.constant dense<0xFF800000> : vector<8x64xf32>
    %34 = vector.multi_reduction <maximumf>, %33, %cst_15 [2] : vector<8x64x128xf32> to vector<8x64xf32>
    %35 = tpu.concatenate %26, %34 in 1 : vector<8x64xf32>, vector<8x64xf32> -> vector<8x128xf32>
    %c0_16 = arith.constant 0 : index
    %c0_17 = arith.constant 0 : index
    %36 = vector.load %arg4[%c0_16, %c0_17] : memref<128x64xf32, #tpu.memory_space<vmem>>, vector<128x64xf32>
    %cst_18 = arith.constant dense<0.000000e+00> : vector<8x64xf32>
    %37 = tpu.matmul %35, %36, %cst_18 {dimension_numbers = #tpu.dot_dimension_numbers<[1], [0], [0], [1], [0, 0, 1, 1], [], []>} : vector<8x128xf32>, vector<128x64xf32>, vector<8x64xf32> -> vector<8x64xf32>
    %38 = arith.negf %37 : vector<8x64xf32>
    %39 = math.exp %38 : vector<8x64xf32>
    %cst_19 = arith.constant 1.000000e+00 : f32
    %40 = vector.broadcast %cst_19 : f32 to vector<8x64xf32>
    %41 = arith.addf %40, %39 : vector<8x64xf32>
    %42 = arith.divf %40, %41 : vector<8x64xf32>
    %43 = vector.shape_cast %42 : vector<8x64xf32> to vector<8x64x1xf32>
    %44 = vector.broadcast %43 : vector<8x64x1xf32> to vector<8x64x128xf32>
    %45 = arith.mulf %23, %44 : vector<8x64x128xf32>
    %cst_20 = arith.constant dense<0.000000e+00> : vector<8x128xf32>
    %46 = vector.multi_reduction <add>, %45, %cst_20 [1] : vector<8x64x128xf32> to vector<8x128xf32>
    %cst_21 = arith.constant 1.562500e-02 : f32
    %47 = vector.broadcast %cst_21 : f32 to vector<8x128xf32>
    %48 = arith.mulf %46, %47 : vector<8x128xf32>
    %49 = arith.truncf %48 : vector<8x128xf32> to vector<8x128xbf16>
    %c0_22 = arith.constant 0 : index
    %c0_23 = arith.constant 0 : index
    %50 = vector.load %arg5[%c0_22, %c0_23] : memref<128x2048xbf16, #tpu.memory_space<vmem>>, vector<128x2048xbf16>
    %cst_24 = arith.constant dense<0.000000e+00> : vector<8x2048xf32>
    %51 = tpu.matmul %49, %50, %cst_24 {dimension_numbers = #tpu.dot_dimension_numbers<[1], [0], [0], [1], [0, 0, 1, 1], [], []>} : vector<8x128xbf16>, vector<128x2048xbf16>, vector<8x2048xf32> -> vector<8x2048xf32>
    %c0_25 = arith.constant 0 : index
    %c0_26 = arith.constant 0 : index
    %52 = vector.load %arg6[%c0_25, %c0_26] : memref<1x2048xf32, #tpu.memory_space<vmem>>, vector<1x2048xf32>
    %53 = vector.broadcast %52 : vector<1x2048xf32> to vector<8x2048xf32>
    %54 = arith.addf %51, %53 : vector<8x2048xf32>
    %55 = vector.extract_strided_slice %54 {offsets = [0, 0], sizes = [8, 1792], strides = [1, 1]} : vector<8x2048xf32> to vector<8x1792xf32>
    %cst_27 = arith.constant 5.000000e-01 : f32
    %56 = vector.broadcast %cst_27 : f32 to vector<8x1792xf32>
    %57 = arith.mulf %56, %55 : vector<8x1792xf32>
    %cst_28 = arith.constant 0.707106769 : f32
    %58 = vector.broadcast %cst_28 : f32 to vector<8x1792xf32>
    %59 = arith.mulf %55, %58 : vector<8x1792xf32>
    %cst_29 = arith.constant 0.000000e+00 : f32
    %60 = vector.broadcast %cst_29 : f32 to vector<8x1792xf32>
    %61 = arith.cmpf oge, %59, %60 : vector<8x1792xf32>
    %cst_30 = arith.constant 1.000000e+00 : f32
    %cst_31 = arith.constant -1.000000e+00 : f32
    %62 = vector.broadcast %cst_30 : f32 to vector<8x1792xf32>
    %63 = vector.broadcast %cst_31 : f32 to vector<8x1792xf32>
    %64 = arith.select %61, %62, %63 : vector<8x1792xi1>, vector<8x1792xf32>
    %65 = math.absf %59 : vector<8x1792xf32>
    %cst_32 = arith.constant 0.327591091 : f32
    %66 = vector.broadcast %cst_32 : f32 to vector<8x1792xf32>
    %67 = arith.mulf %66, %65 : vector<8x1792xf32>
    %cst_33 = arith.constant 1.000000e+00 : f32
    %68 = vector.broadcast %cst_33 : f32 to vector<8x1792xf32>
    %69 = arith.addf %68, %67 : vector<8x1792xf32>
    %70 = tpu.reciprocal %69 {approx = true} : vector<8x1792xf32> -> vector<8x1792xf32>
    %cst_34 = arith.constant 1.06140542 : f32
    %71 = vector.broadcast %cst_34 : f32 to vector<8x1792xf32>
    %72 = arith.mulf %71, %70 : vector<8x1792xf32>
    %cst_35 = arith.constant -1.45315206 : f32
    %73 = vector.broadcast %cst_35 : f32 to vector<8x1792xf32>
    %74 = arith.addf %72, %73 : vector<8x1792xf32>
    %75 = arith.mulf %74, %70 : vector<8x1792xf32>
    %cst_36 = arith.constant 1.42141378 : f32
    %76 = vector.broadcast %cst_36 : f32 to vector<8x1792xf32>
    %77 = arith.addf %75, %76 : vector<8x1792xf32>
    %78 = arith.mulf %77, %70 : vector<8x1792xf32>
    %cst_37 = arith.constant -0.284496725 : f32
    %79 = vector.broadcast %cst_37 : f32 to vector<8x1792xf32>
    %80 = arith.addf %78, %79 : vector<8x1792xf32>
    %81 = arith.mulf %80, %70 : vector<8x1792xf32>
    %cst_38 = arith.constant 0.254829586 : f32
    %82 = vector.broadcast %cst_38 : f32 to vector<8x1792xf32>
    %83 = arith.addf %81, %82 : vector<8x1792xf32>
    %84 = arith.mulf %83, %70 : vector<8x1792xf32>
    %cst_39 = arith.constant 0.000000e+00 : f32
    %85 = vector.broadcast %cst_39 : f32 to vector<8x1792xf32>
    %86 = arith.subf %85, %65 : vector<8x1792xf32>
    %87 = arith.mulf %86, %65 : vector<8x1792xf32>
    %88 = math.exp %87 : vector<8x1792xf32>
    %89 = arith.mulf %84, %88 : vector<8x1792xf32>
    %cst_40 = arith.constant 1.000000e+00 : f32
    %90 = vector.broadcast %cst_40 : f32 to vector<8x1792xf32>
    %91 = arith.subf %90, %89 : vector<8x1792xf32>
    %92 = arith.mulf %64, %91 : vector<8x1792xf32>
    %cst_41 = arith.constant 1.000000e+00 : f32
    %93 = vector.broadcast %cst_41 : f32 to vector<8x1792xf32>
    %94 = arith.addf %93, %92 : vector<8x1792xf32>
    %95 = arith.mulf %57, %94 : vector<8x1792xf32>
    %96 = vector.extract_strided_slice %54 {offsets = [0, 1792], sizes = [8, 256], strides = [1, 1]} : vector<8x2048xf32> to vector<8x256xf32>
    %cst_42 = arith.constant 0.000000e+00 : f32
    %97 = vector.broadcast %cst_42 : f32 to vector<8x256xf32>
    %98 = arith.maximumf %96, %97 : vector<8x256xf32>
    %99 = vector.extract_strided_slice %95 {offsets = [0, 0], sizes = [8, 1536], strides = [1, 1]} : vector<8x1792xf32> to vector<8x1536xf32>
    %100 = arith.truncf %99 : vector<8x1536xf32> to vector<8x1536xbf16>
    %c0_43 = arith.constant 0 : index
    %c0_44 = arith.constant 0 : index
    %101 = vector.load %arg7[%c0_43, %c0_44] : memref<1536x768xbf16, #tpu.memory_space<vmem>>, vector<1536x768xbf16>
    %cst_45 = arith.constant dense<0.000000e+00> : vector<8x768xf32>
    %102 = tpu.matmul %100, %101, %cst_45 {dimension_numbers = #tpu.dot_dimension_numbers<[1], [0], [0], [1], [0, 0, 1, 1], [], []>} : vector<8x1536xbf16>, vector<1536x768xbf16>, vector<8x768xf32> -> vector<8x768xf32>
    %c0_46 = arith.constant 0 : index
    %c0_47 = arith.constant 0 : index
    %103 = vector.load %arg8[%c0_46, %c0_47] : memref<1x768xf32, #tpu.memory_space<vmem>>, vector<1x768xf32>
    %104 = vector.broadcast %103 : vector<1x768xf32> to vector<8x768xf32>
    %105 = arith.addf %102, %104 : vector<8x768xf32>
    %cst_48 = arith.constant 5.000000e-01 : f32
    %106 = vector.broadcast %cst_48 : f32 to vector<8x768xf32>
    %107 = arith.mulf %106, %105 : vector<8x768xf32>
    %cst_49 = arith.constant 0.707106769 : f32
    %108 = vector.broadcast %cst_49 : f32 to vector<8x768xf32>
    %109 = arith.mulf %105, %108 : vector<8x768xf32>
    %cst_50 = arith.constant 0.000000e+00 : f32
    %110 = vector.broadcast %cst_50 : f32 to vector<8x768xf32>
    %111 = arith.cmpf oge, %109, %110 : vector<8x768xf32>
    %cst_51 = arith.constant 1.000000e+00 : f32
    %cst_52 = arith.constant -1.000000e+00 : f32
    %112 = vector.broadcast %cst_51 : f32 to vector<8x768xf32>
    %113 = vector.broadcast %cst_52 : f32 to vector<8x768xf32>
    %114 = arith.select %111, %112, %113 : vector<8x768xi1>, vector<8x768xf32>
    %115 = math.absf %109 : vector<8x768xf32>
    %cst_53 = arith.constant 0.327591091 : f32
    %116 = vector.broadcast %cst_53 : f32 to vector<8x768xf32>
    %117 = arith.mulf %116, %115 : vector<8x768xf32>
    %cst_54 = arith.constant 1.000000e+00 : f32
    %118 = vector.broadcast %cst_54 : f32 to vector<8x768xf32>
    %119 = arith.addf %118, %117 : vector<8x768xf32>
    %120 = tpu.reciprocal %119 {approx = true} : vector<8x768xf32> -> vector<8x768xf32>
    %cst_55 = arith.constant 1.06140542 : f32
    %121 = vector.broadcast %cst_55 : f32 to vector<8x768xf32>
    %122 = arith.mulf %121, %120 : vector<8x768xf32>
    %cst_56 = arith.constant -1.45315206 : f32
    %123 = vector.broadcast %cst_56 : f32 to vector<8x768xf32>
    %124 = arith.addf %122, %123 : vector<8x768xf32>
    %125 = arith.mulf %124, %120 : vector<8x768xf32>
    %cst_57 = arith.constant 1.42141378 : f32
    %126 = vector.broadcast %cst_57 : f32 to vector<8x768xf32>
    %127 = arith.addf %125, %126 : vector<8x768xf32>
    %128 = arith.mulf %127, %120 : vector<8x768xf32>
    %cst_58 = arith.constant -0.284496725 : f32
    %129 = vector.broadcast %cst_58 : f32 to vector<8x768xf32>
    %130 = arith.addf %128, %129 : vector<8x768xf32>
    %131 = arith.mulf %130, %120 : vector<8x768xf32>
    %cst_59 = arith.constant 0.254829586 : f32
    %132 = vector.broadcast %cst_59 : f32 to vector<8x768xf32>
    %133 = arith.addf %131, %132 : vector<8x768xf32>
    %134 = arith.mulf %133, %120 : vector<8x768xf32>
    %cst_60 = arith.constant 0.000000e+00 : f32
    %135 = vector.broadcast %cst_60 : f32 to vector<8x768xf32>
    %136 = arith.subf %135, %115 : vector<8x768xf32>
    %137 = arith.mulf %136, %115 : vector<8x768xf32>
    %138 = math.exp %137 : vector<8x768xf32>
    %139 = arith.mulf %134, %138 : vector<8x768xf32>
    %cst_61 = arith.constant 1.000000e+00 : f32
    %140 = vector.broadcast %cst_61 : f32 to vector<8x768xf32>
    %141 = arith.subf %140, %139 : vector<8x768xf32>
    %142 = arith.mulf %114, %141 : vector<8x768xf32>
    %cst_62 = arith.constant 1.000000e+00 : f32
    %143 = vector.broadcast %cst_62 : f32 to vector<8x768xf32>
    %144 = arith.addf %143, %142 : vector<8x768xf32>
    %145 = arith.mulf %107, %144 : vector<8x768xf32>
    %146 = vector.extract_strided_slice %95 {offsets = [0, 1536], sizes = [8, 256], strides = [1, 1]} : vector<8x1792xf32> to vector<8x256xf32>
    %147 = tpu.concatenate %145, %146, %98 in 1 : vector<8x768xf32>, vector<8x256xf32>, vector<8x256xf32> -> vector<8x1280xf32>
    %148 = arith.truncf %147 : vector<8x1280xf32> to vector<8x1280xbf16>
    %c0_63 = arith.constant 0 : index
    %c0_64 = arith.constant 0 : index
    %149 = vector.load %arg9[%c0_63, %c0_64] : memref<1280x128xbf16, #tpu.memory_space<vmem>>, vector<1280x128xbf16>
    %cst_65 = arith.constant dense<0.000000e+00> : vector<8x128xf32>
    %150 = tpu.matmul %148, %149, %cst_65 {dimension_numbers = #tpu.dot_dimension_numbers<[1], [0], [0], [1], [0, 0, 1, 1], [], []>} : vector<8x1280xbf16>, vector<1280x128xbf16>, vector<8x128xf32> -> vector<8x128xf32>
    %c0_66 = arith.constant 0 : index
    %c0_67 = arith.constant 0 : index
    %151 = vector.load %arg10[%c0_66, %c0_67] : memref<1x128xf32, #tpu.memory_space<vmem>>, vector<1x128xf32>
    %152 = vector.broadcast %151 : vector<1x128xf32> to vector<8x128xf32>
    %153 = arith.addf %150, %152 : vector<8x128xf32>
    %c0_68 = arith.constant 0 : index
    %c0_69 = arith.constant 0 : index
    %154 = vector.load %arg11[%c0_68, %c0_69] : memref<8x128xf32, #tpu.memory_space<vmem>>, vector<8x128xf32>
    tpu.vector_store %arg11[%c0_68, %c0_69], %153 {strides = array<i32>} : memref<8x128xf32, #tpu.memory_space<vmem>>, vector<8x128xf32>,
    return
  }
  func.func @transform_0(%arg0: i32) -> (i32, i32, i32) {
    %c0_i32 = arith.constant 0 : i32
    %c0_i32_0 = arith.constant 0 : i32
    %c0_i32_1 = arith.constant 0 : i32
    return %arg0, %c0_i32, %c0_i32_0 : i32, i32, i32
  }
  func.func @transform_1(%arg0: i32) -> (i32, i32) {
    %c0_i32 = arith.constant 0 : i32
    %c0_i32_0 = arith.constant 0 : i32
    %c0_i32_1 = arith.constant 0 : i32
    return %c0_i32, %c0_i32_0 : i32, i32
  }
  func.func @transform_2(%arg0: i32) -> (i32, i32) {
    %c0_i32 = arith.constant 0 : i32
    %c0_i32_0 = arith.constant 0 : i32
    %c0_i32_1 = arith.constant 0 : i32
    return %c0_i32, %c0_i32_0 : i32, i32
  }
  func.func @transform_3(%arg0: i32) -> (i32, i32) {
    %c0_i32 = arith.constant 0 : i32
    %c0_i32_0 = arith.constant 0 : i32
    %c0_i32_1 = arith.constant 0 : i32
    return %c0_i32, %c0_i32_0 : i32, i32
  }
  func.func @transform_4(%arg0: i32) -> (i32, i32) {
    %c0_i32 = arith.constant 0 : i32
    %c0_i32_0 = arith.constant 0 : i32
    %c0_i32_1 = arith.constant 0 : i32
    return %c0_i32, %c0_i32_0 : i32, i32
  }
  func.func @transform_5(%arg0: i32) -> (i32, i32) {
    %c0_i32 = arith.constant 0 : i32
    %c0_i32_0 = arith.constant 0 : i32
    %c0_i32_1 = arith.constant 0 : i32
    return %c0_i32, %c0_i32_0 : i32, i32
  }
  func.func @transform_6(%arg0: i32) -> (i32, i32) {
    %c0_i32 = arith.constant 0 : i32
    %c0_i32_0 = arith.constant 0 : i32
    %c0_i32_1 = arith.constant 0 : i32
    return %c0_i32, %c0_i32_0 : i32, i32
  }
  func.func @transform_7(%arg0: i32) -> (i32, i32) {
    %c0_i32 = arith.constant 0 : i32
    %c0_i32_0 = arith.constant 0 : i32
    %c0_i32_1 = arith.constant 0 : i32
    return %c0_i32, %c0_i32_0 : i32, i32
  }
  func.func @transform_8(%arg0: i32) -> (i32, i32) {
    %c0_i32 = arith.constant 0 : i32
    %c0_i32_0 = arith.constant 0 : i32
    %c0_i32_1 = arith.constant 0 : i32
    return %c0_i32, %c0_i32_0 : i32, i32
  }
  func.func @transform_9(%arg0: i32) -> (i32, i32) {
    %c0_i32 = arith.constant 0 : i32
    %c0_i32_0 = arith.constant 0 : i32
    %c0_i32_1 = arith.constant 0 : i32
    return %c0_i32, %c0_i32_0 : i32, i32
  }
  func.func @transform_10(%arg0: i32) -> (i32, i32) {
    %c0_i32 = arith.constant 0 : i32
    %c0_i32_0 = arith.constant 0 : i32
    return %arg0, %c0_i32 : i32, i32
  }
}

</mosaic_0001>

<bundles_post_ra>
// kernel: tpu_custom_call.1
= control target key start
LH: loop header
LB: loop body
LE: loop exit
PB: predicated region body
PF: predicated region fallthrough
CT: control target
= control target key end

     0   :  { %15 = vsyncpa [#allocation3], 0  ;;  %s14287_s0 = inlined_call_operand.hbm [shape: bf16[8,64,128], index: 0, kind: input, shape index: {}]   ;;  %s14288_s1 = inlined_call_operand.vmem [shape: f32[128,4], index: 1, kind: input, shape index: {}]   ;;  %s14289_s2 = inlined_call_operand.hbm [shape: f32[4,128], index: 2, kind: input, shape index: {}]   ;;  %s14290_s3 = inlined_call_operand.vmem [shape: f32[128,64], index: 3, kind: input, shape index: {}]   ;;  %s14291_s4 = inlined_call_operand.hbm [shape: bf16[128,2048], index: 4, kind: input, shape index: {}]   ;;  %s14292_s5 = inlined_call_operand.hbm [shape: f32[1,2048], index: 5, kind: input, shape index: {}]   ;;  %s14293_s6 = inlined_call_operand.hbm [shape: bf16[1536,768], index: 6, kind: input, shape index: {}]   ;;  %s14294_s7 = inlined_call_operand.hbm [shape: f32[1,768], index: 7, kind: input, shape index: {}]   ;;  %s14295_s8 = inlined_call_operand.hbm [shape: bf16[1280,128], index: 8, kind: input, shape index: {}]   ;;  %s14296_s9 = inlined_call_operand.hbm [shape: f32[1,128], index: 9, kind: input, shape index: {}]   ;;  %s14297_s10 = inlined_call_operand.hbm [shape: f32[8,128], index: 10, kind: output, shape index: {}]  }
   0x1   :  { %16 = vsyncpa [#allocation6], 0 }
   0x2   :  { %17 = vsyncpa [#allocation9], 0 }
   0x3   :  { %18 = vsyncpa [#allocation12], 0 }
   0x4   :  { %19 = vsyncpa [#allocation15], 0 }
   0x5   :  { %20 = vsyncpa [#allocation4], 0  ;;  %s12002_s13 = smov [#allocation5]   ;;  %s12003_s15 = smov [#allocation8]  }
   0x6   :  { %s41_s14 = sshll.u32 %s12002_s13, 4  ;;  %s65_s16 = sshll.u32 %s12003_s15, 4  ;;  %s42_s14 = int_to_ptr.vmem [resolvable:$true] %s41_s14  ;;  %s66_s16 = int_to_ptr.vmem [resolvable:$true] %s65_s16 }
   0x7   :  { %s11792_s19 = scalar_lea.hbm %s14289_s2, 64 }
   0x8   :  { %p11793_p0 = scmp.ne.s32.totalorder %s14289_s2, %s11792_s19  ;;  %p11796_p1 = scmp.lt.u32.totalorder %s11792_s19, %s14289_s2 }
   0xa   :  { %p11798_p2 = pnand %p11796_p1, %p11793_p0 }
   0xc   :  { %11801 = shalt.err (!%p11798_p2)
}
   0xd   :  { %s11802_s24 = scalar_lea.vmem %s42_s14, 64  ;;  %p11807_p4 = scmp.lt.s32.totalorder %s42_s14, %s42_s14 }
   0xe   :  { %p11803_p3 = scmp.ne.s32.totalorder %s42_s14, %s11802_s24  ;;  %p11808_p5 = scmp.lt.s32.totalorder %s11802_s24, %s11802_s24 }
  0x10   :  { %p11809_p6 = por %p11808_p5, %p11807_p4 }
  0x12   :  { %p11810_p7 = pnand %p11809_p6, %p11803_p3 }
  0x14   :  { %11813 = shalt.err (!%p11810_p7)
}
  0x15   :  { %44 = dma.hbm_to_vmem [thread:$0]  %s14289_s2, 64, %s42_s14, [#allocation6]  }
  0x16   :  { %s11814_s29 = scalar_lea.hbm %s14292_s5, 256 }
  0x17   :  { %p11815_p8 = scmp.ne.s32.totalorder %s14292_s5, %s11814_s29  ;;  %p11818_p9 = scmp.lt.u32.totalorder %s11814_s29, %s14292_s5 }
  0x19   :  { %p11820_p10 = pnand %p11818_p9, %p11815_p8 }
  0x1b   :  { %11823 = shalt.err (!%p11820_p10)
}
  0x1c   :  { %s11824_s15 = scalar_lea.vmem %s66_s16, 256  ;;  %p11829_p12 = scmp.lt.s32.totalorder %s66_s16, %s66_s16 }
  0x1d   :  { %p11825_p11 = scmp.ne.s32.totalorder %s66_s16, %s11824_s15  ;;  %p11830_p13 = scmp.lt.s32.totalorder %s11824_s15, %s11824_s15 }
  0x1f   :  { %p11831_p0 = por %p11830_p13, %p11829_p12 }
  0x21   :  { %p11832_p1 = pnand %p11831_p0, %p11825_p11 }
  0x23   :  { %11835 = shalt.err (!%p11832_p1)
}
  0x24   :  { %68 = dma.hbm_to_vmem [thread:$0]  %s14292_s5, 256, %s66_s16, [#allocation9]  }
  0x25   :  { %s12004_s17 = smov [#allocation11]   ;;  %s12005_s19 = smov [#allocation2]  }
  0x26   :  { %s87_s18 = sshll.u32 %s12004_s17, 4  ;;  %s26_s20 = sshll.u32 %s12005_s19, 4  ;;  %s88_s18 = int_to_ptr.vmem [resolvable:$true] %s87_s18  ;;  %s12101_s20 = int_to_ptr.vmem [resolvable:$true] %s26_s20 }
  0x27   :  { %s11836_s23 = scalar_lea.hbm %s14294_s7, 96 }
  0x28   :  { %p11837_p2 = scmp.ne.s32.totalorder %s14294_s7, %s11836_s23  ;;  %p11840_p3 = scmp.lt.u32.totalorder %s11836_s23, %s14294_s7 }
  0x2a   :  { %p11842_p4 = pnand %p11840_p3, %p11837_p2 }
  0x2c   :  { %11845 = shalt.err (!%p11842_p4)
}
  0x2d   :  { %s11846_s5 = scalar_lea.vmem %s88_s18, 96  ;;  %p11851_p6 = scmp.lt.s32.totalorder %s88_s18, %s88_s18 }
  0x2e   :  { %p11847_p5 = scmp.ne.s32.totalorder %s88_s18, %s11846_s5  ;;  %p11852_p7 = scmp.lt.s32.totalorder %s11846_s5, %s11846_s5 }
  0x30   :  { %p11853_p8 = por %p11852_p7, %p11851_p6 }
  0x32   :  { %p11854_p9 = pnand %p11853_p8, %p11847_p5 }
  0x34   :  { %11857 = shalt.err (!%p11854_p9)
}
  0x35   :  { %90 = dma.hbm_to_vmem [thread:$0]  %s14294_s7, 96, %s88_s18, [#allocation12]  }
  0x36   :  { %s11858_s11 = scalar_lea.hbm %s14287_s0, 4096 }
  0x37   :  { %p11859_p10 = scmp.ne.s32.totalorder %s14287_s0, %s11858_s11  ;;  %p11862_p11 = scmp.lt.u32.totalorder %s11858_s11, %s14287_s0 }
  0x39   :  { %p11864_p12 = pnand %p11862_p11, %p11859_p10 }
  0x3b   :  { %11867 = shalt.err (!%p11864_p12)
}
  0x3c   :  { %s11868_s14 = scalar_lea.vmem %s12101_s20, 4096  ;;  %p11873_p0 = scmp.lt.s32.totalorder %s12101_s20, %s12101_s20 }
  0x3d   :  { %p11869_p13 = scmp.ne.s32.totalorder %s12101_s20, %s11868_s14  ;;  %p11874_p1 = scmp.lt.s32.totalorder %s11868_s14, %s11868_s14 }
  0x3f   :  { %p11875_p2 = por %p11874_p1, %p11873_p0 }
  0x41   :  { %p11876_p3 = pnand %p11875_p2, %p11869_p13 }
  0x43   :  { %11879 = shalt.err (!%p11876_p3)
}
  0x44   :  { %s12006_s7 = smov 64   ;;  %s12007_s17 = smov 4  }
  0x45   :  { %32 = dma.hbm_to_vmem [thread:$0]  %s14287_s0, 4096, %s12101_s20, [#allocation3], %s12006_s7, %s12006_s7, %s12007_s17  }
  0x46   :  { %s12008_s21 = smov [#allocation7]   ;;  %s12009_s23 = smov [#allocation10]  }
  0x47   :  { %s52_s22 = sshll.u32 %s12008_s21, 4  ;;  %s74_s24 = sshll.u32 %s12009_s23, 4  ;;  %s53_s22 = int_to_ptr.vmem [resolvable:$true] %s52_s22  ;;  %s75_s24 = int_to_ptr.vmem [resolvable:$true] %s74_s24 }
  0x48   :  { %s11880_s27 = scalar_lea.hbm %s14291_s4, 16384 }
  0x49   :  { %p11881_p4 = scmp.ne.s32.totalorder %s14291_s4, %s11880_s27  ;;  %p11884_p5 = scmp.lt.u32.totalorder %s11880_s27, %s14291_s4 }
  0x4b   :  { %p11886_p6 = pnand %p11884_p5, %p11881_p4 }
  0x4d   :  { %11889 = shalt.err (!%p11886_p6)
}
  0x4e   :  { %s11890_s0 = scalar_lea.vmem %s53_s22, 16384  ;;  %p11895_p8 = scmp.lt.s32.totalorder %s53_s22, %s53_s22 }
  0x4f   :  { %p11891_p7 = scmp.ne.s32.totalorder %s53_s22, %s11890_s0  ;;  %p11896_p9 = scmp.lt.s32.totalorder %s11890_s0, %s11890_s0 }
  0x51   :  { %p11897_p10 = por %p11896_p9, %p11895_p8 }
  0x53   :  { %p11898_p11 = pnand %p11897_p10, %p11891_p7 }
  0x55   :  { %11901 = shalt.err (!%p11898_p11)
}
  0x56   :  { %s12010_s20 = smov 1024   ;;  %s11902_s15 = scalar_lea.hbm %s14293_s6, 73728 }
  0x57   :  { %58 = dma.hbm_to_vmem [thread:$0]  %s14291_s4, 16384, %s53_s22, [#allocation6], %s12010_s20, %s12010_s20, %s12006_s7  }
  0x58   :  { %p11903_p12 = scmp.ne.s32.totalorder %s14293_s6, %s11902_s15  ;;  %p11906_p13 = scmp.lt.u32.totalorder %s11902_s15, %s14293_s6 }
  0x5a   :  { %p11908_p0 = pnand %p11906_p13, %p11903_p12 }
  0x5c   :  { %11911 = shalt.err (!%p11908_p0)
}
  0x5d   :  { %s11912_s21 = scalar_lea.vmem %s75_s24, 73728  ;;  %p11917_p2 = scmp.lt.s32.totalorder %s75_s24, %s75_s24 }
  0x5e   :  { %p11913_p1 = scmp.ne.s32.totalorder %s75_s24, %s11912_s21  ;;  %p11918_p3 = scmp.lt.s32.totalorder %s11912_s21, %s11912_s21 }
  0x60   :  { %p11919_p4 = por %p11918_p3, %p11917_p2 }
  0x62   :  { %p11920_p5 = pnand %p11919_p4, %p11913_p1 }
  0x64   :  { %11923 = shalt.err (!%p11920_p5)
}
  0x65   :  { %s12011_s4 = smov 384   ;;  %s12012_s22 = smov 24  }
  0x66   :  { %80 = dma.hbm_to_vmem [thread:$0]  %s14293_s6, 73728, %s75_s24, [#allocation9], %s12011_s4, %s12011_s4, %s12012_s22  }
  0x67   :  { %s12013_s26 = smov [#allocation13]   ;;  %s12014_s5 = smov [#allocation14]  }
  0x68   :  { %s96_s27 = sshll.u32 %s12013_s26, 4  ;;  %s109_s16 = sshll.u32 %s12014_s5, 4  ;;  %s97_s27 = int_to_ptr.vmem [resolvable:$true] %s96_s27  ;;  %s110_s16 = int_to_ptr.vmem [resolvable:$true] %s109_s16 }
  0x69   :  { %s11924_s0 = scalar_lea.hbm %s14295_s8, 10240 }
  0x6a   :  { %p11925_p6 = scmp.ne.s32.totalorder %s14295_s8, %s11924_s0  ;;  %p11928_p7 = scmp.lt.u32.totalorder %s11924_s0, %s14295_s8 }
  0x6c   :  { %p11930_p8 = pnand %p11928_p7, %p11925_p6 }
  0x6e   :  { %11933 = shalt.err (!%p11930_p8)
}
  0x6f   :  { %s11934_s6 = scalar_lea.vmem %s97_s27, 10240  ;;  %p11939_p10 = scmp.lt.s32.totalorder %s97_s27, %s97_s27 }
  0x70   :  { %p11935_p9 = scmp.ne.s32.totalorder %s97_s27, %s11934_s6  ;;  %p11940_p11 = scmp.lt.s32.totalorder %s11934_s6, %s11934_s6 }
  0x72   :  { %p11941_p12 = por %p11940_p11, %p11939_p10 }
  0x74   :  { %p11942_p13 = pnand %p11941_p12, %p11935_p9 }
  0x76   :  { %11945 = shalt.err (!%p11942_p13)
}
  0x77   :  { %102 = dma.hbm_to_vmem [thread:$0]  %s14295_s8, 10240, %s97_s27, [#allocation12], %s12006_s7, %s12006_s7, %s12007_s17  }
  0x78   :  { %s11946_s14 = scalar_lea.hbm %s14296_s9, 16 }
  0x79   :  { %p11947_p0 = scmp.ne.s32.totalorder %s14296_s9, %s11946_s14  ;;  %p11950_p1 = scmp.lt.u32.totalorder %s11946_s14, %s14296_s9 }
  0x7b   :  { %p11952_p2 = pnand %p11950_p1, %p11947_p0 }
  0x7d   :  { %11955 = shalt.err (!%p11952_p2)
}
  0x7e   :  { %s11956_s22 = scalar_lea.vmem %s110_s16, 16  ;;  %s11960_s23 = scalar_lea.vmem %s110_s16, 32 }
  0x7f   :  { %p11957_p3 = scmp.ne.s32.totalorder %s110_s16, %s11956_s22  ;;  %p11961_p4 = scmp.lt.s32.totalorder %s110_s16, %s110_s16 }
  0x80   :  { %p11962_p5 = scmp.lt.s32.totalorder %s11960_s23, %s11956_s22 }
  0x82   :  { %p11963_p6 = por %p11962_p5, %p11961_p4 }
  0x84   :  { %p11964_p7 = pnand %p11963_p6, %p11957_p3 }
  0x86   :  { %11967 = shalt.err (!%p11964_p7)
}
  0x87   :  { %112 = dma.hbm_to_vmem [thread:$0]  %s14296_s9, 16, %s110_s16, [#allocation15]  }
  0x88   :  { %11990 = dma.done.wait [#allocation3], 4096  }
  0x89   :  { %11991 = vsyncadd [#allocation3], 4294963200 }
  0x8a   :  { %11992 = dma.done.wait [#allocation6], 16448  }
  0x8b   :  { %11993 = vsyncadd [#allocation6], 4294950848 }
  0x8c   :  { %11994 = dma.done.wait [#allocation9], 73984  }
  0x8d   :  { %11995 = vsyncadd [#allocation9], 4294893312 }
  0x8e   :  { %11996 = dma.done.wait [#allocation12], 10336  }
  0x8f   :  { %11997 = vsyncadd [#allocation12], 4294956960 }
  0x90   :  { %11998 = dma.done.wait [#allocation15], 16  }
  0x91   :  { %11999 = vsyncadd [#allocation15], 4294967280  ;;  %v521_v0 = vld [vmem:[%s14288_s1] sm:$0xff]  ;;  %v522_v1 = vld [vmem:[%s14288_s1 + $0x8] sm:$0xff]  ;;  %vm490_vm0 = vcmask 1041409   ;;  %vm492_vm1 = vcmask 1042434  }
  0x92   :  { %v523_v2 = vld [vmem:[%s14288_s1 + $0x10] sm:$0xff]  ;;  %v10620_v3 = vpack.c.bf16 %v522_v1, %v521_v0  ;;  %v524_v4 = vld [vmem:[%s14288_s1 + $0x18] sm:$0xff]  ;;  %v525_v5 = vld [vmem:[%s14288_s1 + $0x20] sm:$0xff]  ;;  %vm14443_vm2 = vcmask 1043459   ;;  %vm14441_vm3 = vcmask 1044484   ;;  %vm14394_vm4 = vcmask 1045509  }
  0x93   :  { %v526_v6 = vld [vmem:[%s14288_s1 + $0x28] sm:$0xff]  ;;  %v10624_v7 = vpack.c.bf16 %v524_v4, %v523_v2  ;;  %v527_v8 = vld [vmem:[%s14288_s1 + $0x30] sm:$0xff]  ;;  %v528_v9 = vld [vmem:[%s14288_s1 + $0x38] sm:$0xff]  ;;  %vm14393_vm5 = vcmask 1046534   ;;  %vm14392_vm6 = vcmask 1047559   ;;  %vm622_vm7 = vcmask 1043456  }
  0x94   :  { %v529_v10 = vld [vmem:[%s14288_s1 + $0x40] sm:$0xff]  ;;  %10621 = vmatprep.subr.bf16.mxu1 %v10620_v3  ;;  %v530_v11 = vld [vmem:[%s14288_s1 + $0x48] sm:$0xff]  ;;  %v531_v12 = vld [vmem:[%s14288_s1 + $0x50] sm:$0xff]  ;;  %v10628_v14 = vpack.c.bf16 %v526_v6, %v525_v5  ;;  %v12232_v18 = vpack.c.bf16 %v528_v9, %v527_v8  ;;  %vm615_vm8 = vcmask 31744   ;;  %vm1324_vm10 = vcmask 130112  }
  0x95   :  { %v532_v13 = vld [vmem:[%s14288_s1 + $0x58] sm:$0xff]  ;;  %10623 = vmatpush3.bf16.msra.mxu1 %v10620_v3  ;;  %v533_v15 = vld [vmem:[%s14288_s1 + $0x60] sm:$0xff]  ;;  %v534_v16 = vld [vmem:[%s14288_s1 + $0x68] sm:$0xff]  ;;  %v12234_v19 = vpack.c.bf16 %v530_v11, %v529_v10  ;;  %vm1331_vm11 = vcmask 195712   ;;  %vm1338_vm12 = vcmask 261312   ;;  %vm1345_vm13 = vcmask 326912  }
  0x96   :  { %v535_v17 = vld [vmem:[%s14288_s1 + $0x70] sm:$0xff]  ;;  %10625 = vmatprep.subr.bf16.mxu1 %v10624_v7  ;;  %v12236_v20 = vpack.c.bf16 %v532_v13, %v531_v12  ;;  %v12238_v21 = vpack.c.bf16 %v534_v16, %v533_v15  ;;  %v536_v22 = vld [vmem:[%s14288_s1 + $0x78] sm:$0xff]  ;;  %v10239_v23 = vld [vmem:[#allocation2] sm:$0xff]   ;;  %vm1352_vm14 = vcmask 392512   ;;  %vm14397_vm15 = vcmask 654912  }
  0x97   :  { %v10366_v24 = vld [vmem:[#allocation2 + $0x8] sm:$0xff]   ;;  %v12243_v25 = vpack.c.bf16 %v536_v22, %v535_v17  ;;  %v12245_v26 = vunpack.c.l.bf16 %v10239_v23  ;;  %v12247_v27 = vunpack.c.h.bf16 %v10239_v23  ;;  %v10367_v29 = vld [vmem:[#allocation2 + $0x10] sm:$0xff]   ;;  %v10368_v30 = vld [vmem:[#allocation2 + $0x18] sm:$0xff]  }
  0x98   :  { %v12249_v28 = vunpack.c.l.bf16 %v10366_v24  ;;  %v10369_v31 = vld [vmem:[#allocation2 + $0x20] sm:$0xff]   ;;  %v12251_v32 = vunpack.c.h.bf16 %v10366_v24  ;;  %v12253_v33 = vunpack.c.l.bf16 %v10367_v29  ;;  %v12255_v34 = vunpack.c.h.bf16 %v10367_v29  ;;  %v10370_v36 = vld [vmem:[#allocation2 + $0x28] sm:$0xff]   ;;  %v10371_v37 = vld [vmem:[#allocation2 + $0x30] sm:$0xff]  }
  0x99   :  { %14444 = vst [vmem:[#allocation23_spill] sm:$0xff] %v12245_v26  ;;  %v12257_v35 = vunpack.c.l.bf16 %v10368_v30  ;;  %v10372_v38 = vld [vmem:[#allocation2 + $0x38] sm:$0xff]   ;;  %10627 = vmatpush3.bf16.msra.mxu1 %v10624_v7  ;;  %v12259_v39 = vunpack.c.h.bf16 %v10368_v30  ;;  %v12261_v40 = vunpack.c.l.bf16 %v10369_v31  ;;  %v12263_v41 = vunpack.c.h.bf16 %v10369_v31  ;;  %v10373_v43 = vld [vmem:[#allocation2 + $0x40] sm:$0xff]   ;;  %v10374_v44 = vld [vmem:[#allocation2 + $0x48] sm:$0xff]  }
  0x9a   :  { %v12265_v42 = vunpack.c.l.bf16 %v10370_v36  ;;  %v10375_v45 = vld [vmem:[#allocation2 + $0x50] sm:$0xff]   ;;  %10629 = vmatprep.subr.bf16.mxu1 %v10628_v14  ;;  %v12267_v46 = vunpack.c.h.bf16 %v10370_v36  ;;  %v12269_v47 = vunpack.c.l.bf16 %v10371_v37  ;;  %v12271_v48 = vunpack.c.h.bf16 %v10371_v37  ;;  %v10376_v50 = vld [vmem:[#allocation2 + $0x58] sm:$0xff]   ;;  %v10377_v51 = vld [vmem:[#allocation2 + $0x60] sm:$0xff]  }
  0x9b   :  { %14445 = vst [vmem:[#allocation24_spill] sm:$0xff] %v12259_v39  ;;  %14446 = vst [vmem:[#allocation25_spill] sm:$0xff] %v12261_v40  ;;  %v12273_v49 = vunpack.c.l.bf16 %v10372_v38  ;;  %v10378_v52 = vld [vmem:[#allocation2 + $0x68] sm:$0xff]   ;;  %v12275_v53 = vunpack.c.h.bf16 %v10372_v38  ;;  %v12277_v54 = vunpack.c.l.bf16 %v10373_v43  ;;  %v12279_v55 = vunpack.c.h.bf16 %v10373_v43  ;;  %v10379_v57 = vld [vmem:[#allocation2 + $0x70] sm:$0xff]  }
  0x9c   :  { %v12281_v56 = vunpack.c.l.bf16 %v10374_v44  ;;  %v10380_v58 = vld [vmem:[#allocation2 + $0x78] sm:$0xff]   ;;  %v12283_v59 = vunpack.c.h.bf16 %v10374_v44  ;;  %v12285_v60 = vunpack.c.l.bf16 %v10375_v45  ;;  %v12287_v61 = vunpack.c.h.bf16 %v10375_v45  ;;  %v10381_v63 = vld [vmem:[#allocation2 + $0x80] sm:$0xff]   ;;  %v10382_v0 = vld [vmem:[#allocation2 + $0x88] sm:$0xff]  }
  0x9d   :  { %14447 = vst [vmem:[#allocation26_spill] sm:$0xff] %v12273_v49  ;;  %14448 = vst [vmem:[#allocation27_spill] sm:$0xff] %v12275_v53  ;;  %v12289_v62 = vunpack.c.l.bf16 %v10376_v50  ;;  %10631 = vmatpush3.bf16.msra.mxu1 %v10628_v14  ;;  %v12291_v1 = vunpack.c.h.bf16 %v10376_v50  ;;  %v12293_v2 = vunpack.c.l.bf16 %v10377_v51  ;;  %v12295_v3 = vunpack.c.h.bf16 %v10377_v51  ;;  %v10383_v5 = vld [vmem:[#allocation2 + $0x90] sm:$0xff]   ;;  %v10384_v6 = vld [vmem:[#allocation2 + $0x98] sm:$0xff]  }
  0x9e   :  { %14449 = vst [vmem:[#allocation28_spill] sm:$0xff] %v12277_v54  ;;  %v12297_v4 = vunpack.c.l.bf16 %v10378_v52  ;;  %v10385_v7 = vld [vmem:[#allocation2 + $0xa0] sm:$0xff]   ;;  %10633 = vmatprep.subr.bf16.mxu1 %v12232_v18  ;;  %v12300_v8 = vunpack.c.h.bf16 %v10378_v52  ;;  %v12302_v9 = vunpack.c.l.bf16 %v10379_v57  ;;  %v12304_v10 = vunpack.c.h.bf16 %v10379_v57  ;;  %v10386_v12 = vld [vmem:[#allocation2 + $0xa8] sm:$0xff]   ;;  %v10387_v13 = vld [vmem:[#allocation2 + $0xb0] sm:$0xff]  }
  0x9f   :  { %14450 = vst [vmem:[#allocation29_spill] sm:$0xff] %v12289_v62  ;;  %14451 = vst [vmem:[#allocation30_spill] sm:$0xff] %v12291_v1  ;;  %v12306_v11 = vunpack.c.l.bf16 %v10380_v58  ;;  %v10388_v14 = vld [vmem:[#allocation2 + $0xb8] sm:$0xff]   ;;  %v12308_v15 = vunpack.c.h.bf16 %v10380_v58  ;;  %v12310_v16 = vunpack.c.l.bf16 %v10381_v63  ;;  %v12312_v17 = vunpack.c.h.bf16 %v10381_v63  ;;  %v10389_v23 = vld [vmem:[#allocation2 + $0xc0] sm:$0xff]  }
  0xa0   :  { %14452 = vst [vmem:[#allocation31_spill] sm:$0xff] %v12293_v2  ;;  %14453 = vst [vmem:[#allocation32_spill] sm:$0xff] %v12295_v3  ;;  %v12314_v22 = vunpack.c.l.bf16 %v10382_v0  ;;  %v10390_v24 = vld [vmem:[#allocation2 + $0xc8] sm:$0xff]   ;;  %v10391_v29 = vld [vmem:[#allocation2 + $0xd0] sm:$0xff]   ;;  %v12316_v30 = vunpack.c.h.bf16 %v10382_v0  ;;  %v12318_v31 = vunpack.c.l.bf16 %v10383_v5  ;;  %v12320_v36 = vunpack.c.h.bf16 %v10383_v5 }
  0xa1   :  { %14454 = vst [vmem:[#allocation33_spill] sm:$0xff] %v12297_v4  ;;  %14455 = vst [vmem:[#allocation34_spill] sm:$0xff] %v12300_v8  ;;  %v12322_v37 = vunpack.c.l.bf16 %v10384_v6  ;;  %v10392_v38 = vld [vmem:[#allocation2 + $0xd8] sm:$0xff]   ;;  %v10393_v43 = vld [vmem:[#allocation2 + $0xe0] sm:$0xff]   ;;  %10635 = vmatpush3.bf16.msra.mxu1 %v12232_v18  ;;  %v12325_v45 = vunpack.c.h.bf16 %v10384_v6  ;;  %v12327_v50 = vunpack.c.l.bf16 %v10385_v7  ;;  %v12329_v51 = vunpack.c.h.bf16 %v10385_v7 }
  0xa2   :  { %14456 = vst [vmem:[#allocation35_spill] sm:$0xff] %v12302_v9  ;;  %14457 = vst [vmem:[#allocation36_spill] sm:$0xff] %v12304_v10  ;;  %v10394_v44 = vld [vmem:[#allocation2 + $0xe8] sm:$0xff]   ;;  %v12331_v52 = vunpack.c.l.bf16 %v10386_v12  ;;  %v10395_v57 = vld [vmem:[#allocation2 + $0xf0] sm:$0xff]   ;;  %10637 = vmatprep.subr.bf16.mxu1 %v12234_v19  ;;  %v12334_v63 = vunpack.c.h.bf16 %v10386_v12  ;;  %v12336_v0 = vunpack.c.l.bf16 %v10387_v13  ;;  %v12338_v5 = vunpack.c.h.bf16 %v10387_v13 }
  0xa3   :  { %14458 = vst [vmem:[#allocation37_spill] sm:$0xff] %v12306_v11  ;;  %14459 = vst [vmem:[#allocation38_spill] sm:$0xff] %v12308_v15  ;;  %v10396_v58 = vld [vmem:[#allocation2 + $0xf8] sm:$0xff]   ;;  %v12340_v15 = vunpack.c.l.bf16 %v10388_v14  ;;  %v12342_v18 = vunpack.c.h.bf16 %v10388_v14  ;;  %v12344_v6 = vunpack.c.l.bf16 %v10389_v23  ;;  %v12346_v7 = vunpack.c.h.bf16 %v10389_v23 }
  0xa4   :  { %14460 = vst [vmem:[#allocation39_spill] sm:$0xff] %v12310_v16  ;;  %14461 = vst [vmem:[#allocation40_spill] sm:$0xff] %v12320_v36  ;;  %v12350_v1 = vunpack.c.h.bf16 %v10390_v24  ;;  %v12352_v53 = vunpack.c.l.bf16 %v10391_v29  ;;  %v12354_v12 = vunpack.c.h.bf16 %v10391_v29  ;;  %v12356_v39 = vunpack.c.l.bf16 %v10392_v38 }
  0xa5   :  { %14462 = vst [vmem:[#allocation41_spill] sm:$0xff] %v12322_v37  ;;  %14463 = vst [vmem:[#allocation42_spill] sm:$0xff] %v12325_v45  ;;  %v12348_v45 = vunpack.c.l.bf16 %v10390_v24  ;;  %10639 = vmatpush3.bf16.msra.mxu1 %v12234_v19  ;;  %v12359_v13 = vunpack.c.h.bf16 %v10392_v38  ;;  %v12361_v14 = vunpack.c.l.bf16 %v10393_v43  ;;  %v12365_v23 = vunpack.c.l.bf16 %v10394_v44 }
  0xa6   :  { %14464 = vst [vmem:[#allocation43_spill] sm:$0xff] %v12327_v50  ;;  %14465 = vst [vmem:[#allocation44_spill] sm:$0xff] %v12329_v51  ;;  %10641 = vmatprep.subr.bf16.mxu1 %v12236_v20  ;;  %v12368_v24 = vunpack.c.h.bf16 %v10394_v44  ;;  %v12372_v29 = vunpack.c.h.bf16 %v10395_v57  ;;  %v12374_v37 = vunpack.c.l.bf16 %v10396_v58  ;;  %v266_v19 = vadd.f32 %v12247_v27, %v12245_v26 }
  0xa7   :  { %14466 = vst [vmem:[#allocation45_spill] sm:$0xff] %v12331_v52  ;;  %14467 = vst [vmem:[#allocation46_spill] sm:$0xff] %v12334_v63  ;;  %v279_v38 = vadd.f32 %v12263_v41, %v12261_v40  ;;  %v305_v44 = vadd.f32 %v12295_v3, %v12293_v2 }
  0xa8   :  { %14468 = vst [vmem:[#allocation47_spill] sm:$0xff] %v12336_v0  ;;  %14469 = vst [vmem:[#allocation48_spill] sm:$0xff] %v12338_v5  ;;  %v267_v26 = vadd.f32 %v12249_v28, %v266_v19 }
  0xa9   :  { %14470 = vst [vmem:[#allocation49_spill] sm:$0xff] %v12340_v15  ;;  %14471 = vst [vmem:[#allocation50_spill] sm:$0xff] %v12342_v18  ;;  %v12363_v18 = vunpack.c.h.bf16 %v10393_v43  ;;  %v12370_v15 = vunpack.c.l.bf16 %v10395_v57  ;;  %v292_v43 = vadd.f32 %v12279_v55, %v12277_v54  ;;  %v318_v57 = vadd.f32 %v12312_v17, %v12310_v16  ;;  %10643 = vmatpush3.bf16.msra.mxu1 %v12236_v20 }
  0xaa   :  { %14472 = vst [vmem:[#allocation51_spill] sm:$0xff] %v12344_v6  ;;  %14473 = vst [vmem:[#allocation52_spill] sm:$0xff] %v12346_v7  ;;  %v280_v40 = vadd.f32 %v12265_v42, %v279_v38  ;;  %10645 = vmatprep.subr.bf16.mxu1 %v12238_v21  ;;  %v306_v16 = vadd.f32 %v12297_v4, %v305_v44  ;;  %v268_v20 = vadd.f32 %v12251_v32, %v267_v26 }
  0xab   :  { %14474 = vst [vmem:[#allocation53_spill] sm:$0xff] %v12348_v45  ;;  %14475 = vst [vmem:[#allocation54_spill] sm:$0xff] %v12350_v1  ;;  %v293_v54 = vadd.f32 %v12281_v56, %v292_v43  ;;  %v357_v2 = vadd.f32 %v12363_v18, %v12361_v14 }
  0xac   :  { %14476 = vst [vmem:[#allocation55_spill] sm:$0xff] %v12352_v53  ;;  %14477 = vst [vmem:[#allocation56_spill] sm:$0xff] %v12354_v12  ;;  %v281_v19 = vadd.f32 %v12267_v46, %v280_v40 }
  0xad   :  { %14478 = vst [vmem:[#allocation57_spill] sm:$0xff] %v12356_v39  ;;  %14479 = vst [vmem:[#allocation58_spill] sm:$0xff] %v12359_v13  ;;  %v12376_v39 = vunpack.c.h.bf16 %v10396_v58  ;;  %v331_v13 = vadd.f32 %v12329_v51, %v12327_v50  ;;  %v344_v58 = vadd.f32 %v12346_v7, %v12344_v6  ;;  %v319_v50 = vadd.f32 %v12314_v22, %v318_v57 }
  0xae   :  { %14480 = vst [vmem:[#allocation59_spill] sm:$0xff] %v12361_v14  ;;  %14481 = vst [vmem:[#allocation60_spill] sm:$0xff] %v12363_v18  ;;  %v294_v38 = vadd.f32 %v12283_v59, %v293_v54  ;;  %v358_v43 = vadd.f32 %v12365_v23, %v357_v2  ;;  %v307_v14 = vadd.f32 %v12300_v8, %v306_v16  ;;  %10647 = vmatpush3.bf16.msra.mxu1 %v12238_v21 }
  0xaf   :  { %14482 = vst [vmem:[#allocation61_spill] sm:$0xff] %v12365_v23  ;;  %14483 = vst [vmem:[#allocation62_spill] sm:$0xff] %v12368_v24  ;;  %v332_v51 = vadd.f32 %v12331_v52, %v331_v13  ;;  %v345_v6 = vadd.f32 %v12348_v45, %v344_v58  ;;  %v320_v18 = vadd.f32 %v12316_v30, %v319_v50  ;;  %10649 = vmatprep.subr.bf16.mxu1 %v12243_v25 }
  0xb0   :  { %14484 = vst [vmem:[#allocation63_spill] sm:$0xff] %v12370_v15  ;;  %14485 = vst [vmem:[#allocation64_spill] sm:$0xff] %v12372_v29  ;;  %v269_v13 = vadd.f32 %v12253_v33, %v268_v20  ;;  %v282_v26 = vadd.f32 %v12269_v47, %v281_v19  ;;  %v295_v40 = vadd.f32 %v12285_v60, %v294_v38 }
  0xb1   :  { %14486 = vst [vmem:[#allocation65_spill] sm:$0xff] %v12374_v37  ;;  %14487 = vst [vmem:[#allocation66_spill] sm:$0xff] %v12376_v39  ;;  %v333_v44 = vadd.f32 %v12334_v63, %v332_v51  ;;  %v346_v57 = vadd.f32 %v12350_v1, %v345_v6  ;;  %v359_v54 = vadd.f32 %v12368_v24, %v358_v43  ;;  %v14493_v24 = vld [vmem:[#allocation30_spill] sm:$0xff] }
  0xb2   :  { %v308_v2 = vadd.f32 %v12302_v9, %v307_v14  ;;  %v321_v16 = vadd.f32 %v12318_v31, %v320_v18  ;;  %v270_v21 = vadd.f32 %v12255_v34, %v269_v13  ;;  %v283_v6 = vadd.f32 %v12271_v48, %v282_v26  ;;  %10651 = vmatpush3.bf16.msra.mxu1 %v12243_v25  ;;  %v14494_v1 = vld [vmem:[#allocation38_spill] sm:$0xff] }
  0xb3   :  { %v334_v50 = vadd.f32 %v12336_v0, %v333_v44  ;;  %v347_v51 = vadd.f32 %v12352_v53, %v346_v57  ;;  %v296_v58 = vadd.f32 %v12287_v61, %v295_v40  ;;  %v360_v20 = vadd.f32 %v12370_v15, %v359_v54  ;;  %v14488_v40 = vld [vmem:[#allocation41_spill] sm:$0xff]  ;;  %v14491_v53 = vld [vmem:[#allocation24_spill] sm:$0xff] }
  0xb4   :  { %v309_v19 = vadd.f32 %v12304_v10, %v308_v2  ;;  %v322_v38 = vadd.f32 %v12320_v36, %v321_v16  ;;  %v271_v43 = vadd.f32 %v12257_v35, %v270_v21  ;;  %v284_v44 = vadd.f32 %v12273_v49, %v283_v6  ;;  %v14489_v2 = vld [vmem:[#allocation49_spill] sm:$0xff] }
  0xb5   :  { %v335_v14 = vadd.f32 %v12338_v5, %v334_v50  ;;  %v348_v18 = vadd.f32 %v12354_v12, %v347_v51  ;;  %v297_v57 = vadd.f32 %v12289_v62, %v296_v58  ;;  %v361_v13 = vadd.f32 %v12372_v29, %v360_v20  ;;  %v14490_v15 = vld [vmem:[#allocation57_spill] sm:$0xff]  ;;  %v14492_v12 = vld [vmem:[#allocation27_spill] sm:$0xff]  ;;  %v14495_v62 = vld [vmem:[#allocation42_spill] sm:$0xff] }
  0xb6   :  { %v310_v26 = vadd.f32 %v12306_v11, %v309_v19  ;;  %v323_v54 = vadd.f32 %v14488_v40, %v322_v38  ;;  %v272_v51 = vadd.f32 %v14491_v53, %v271_v43  ;;  %v285_v25 = vadd.f32 %v14492_v12, %v284_v44  ;;  %v14496_v29 = vld [vmem:[#allocation50_spill] sm:$0xff] }
  0xb7   :  { %v336_v16 = vadd.f32 %v14489_v2, %v335_v14  ;;  %v349_v50 = vadd.f32 %v14490_v15, %v348_v18  ;;  %v298_v21 = vadd.f32 %v14493_v24, %v297_v57  ;;  %v362_v6 = vadd.f32 %v12374_v37, %v361_v13  ;;  %v14497_v11 = vld [vmem:[#allocation58_spill] sm:$0xff] }
  0xb8   :  { %v311_v58 = vadd.f32 %v14494_v1, %v310_v26  ;;  %v324_v20 = vadd.f32 %v14495_v62, %v323_v54  ;;  %v273_v40 = vrot.slane %v272_v51, 4  ;;  %v286_v14 = vrot.slane %v285_v25, 4 }
  0xb9   :  { %v337_v19 = vadd.f32 %v14496_v29, %v336_v16  ;;  %v350_v38 = vadd.f32 %v14497_v11, %v349_v50  ;;  %v299_v2 = vrot.slane %v298_v21, 4  ;;  %v363_v18 = vadd.f32 %v12376_v39, %v362_v6 }
  0xba   :  { %v312_v43 = vrot.slane %v311_v58, 4  ;;  %v325_v15 = vrot.slane %v324_v20, 4  ;;  %v274_v57 = vadd.f32 %v273_v40, %v272_v51  ;;  %v287_v24 = vadd.f32 %v286_v14, %v285_v25 }
  0xbb   :  { %v338_v44 = vrot.slane %v337_v19, 4  ;;  %v351_v12 = vrot.slane %v350_v38, 4  ;;  %v300_v13 = vadd.f32 %v299_v2, %v298_v21  ;;  %v364_v37 = vrot.slane %v363_v18, 4 }
  0xbc   :  { %v313_v26 = vadd.f32 %v312_v43, %v311_v58  ;;  %v326_v1 = vadd.f32 %v325_v15, %v324_v20  ;;  %v275_v16 = vrot.slane %v274_v57, 2  ;;  %v288_v50 = vrot.slane %v287_v24, 2 }
  0xbd   :  { %v339_v54 = vadd.f32 %v338_v44, %v337_v19  ;;  %v352_v62 = vadd.f32 %v351_v12, %v350_v38  ;;  %v301_v11 = vrot.slane %v300_v13, 2  ;;  %v365_v29 = vadd.f32 %v364_v37, %v363_v18 }
  0xbe   :  { %v314_v53 = vrot.slane %v313_v26, 2  ;;  %v327_v6 = vrot.slane %v326_v1, 2  ;;  %v276_v5 = vadd.f32 %v275_v16, %v274_v57  ;;  %v289_v40 = vadd.f32 %v288_v50, %v287_v24 }
  0xbf   :  { %v340_v39 = vrot.slane %v339_v54, 2  ;;  %v353_v23 = vrot.slane %v352_v62, 2  ;;  %v302_v51 = vadd.f32 %v301_v11, %v300_v13  ;;  %v366_v2 = vrot.slane %v365_v29, 2 }
  0xc0   :  { %v315_v25 = vadd.f32 %v314_v53, %v313_v26  ;;  %v328_v15 = vadd.f32 %v327_v6, %v326_v1  ;;  %v277_v58 = vrot.slane %v276_v5, 1  ;;  %v290_v20 = vrot.slane %v289_v40, 1 }
  0xc1   :  { %v341_v21 = vadd.f32 %v340_v39, %v339_v54  ;;  %v354_v12 = vadd.f32 %v353_v23, %v352_v62  ;;  %v303_v19 = vrot.slane %v302_v51, 1  ;;  %v367_v37 = vadd.f32 %v366_v2, %v365_v29 }
  0xc2   :  { %v316_v38 = vrot.slane %v315_v25, 1  ;;  %v329_v14 = vrot.slane %v328_v15, 1  ;;  %v278_v44 = vadd.f32 %v277_v58, %v276_v5  ;;  %v291_v24 = vadd.f32 %v290_v20, %v289_v40  ;;  %v14498_v5 = vld [vmem:[#allocation23_spill] sm:$0xff] }
  0xc3   :  { %v342_v18 = vrot.slane %v341_v21, 1  ;;  %v355_v43 = vrot.slane %v354_v12, 1  ;;  %v304_v11 = vadd.f32 %v303_v19, %v302_v51  ;;  %v368_v57 = vrot.slane %v367_v37, 1  ;;  %v14499_v51 = vld [vmem:[#allocation25_spill] sm:$0xff]  ;;  %v14501_v58 = vld [vmem:[#allocation31_spill] sm:$0xff] }
  0xc4   :  { %v317_v13 = vadd.f32 %v316_v38, %v315_v25  ;;  %v330_v53 = vadd.f32 %v329_v14, %v328_v15  ;;  %v370_v23 = vmul.f32 0.015625, %v278_v44  ;;  %v371_v26 = vmul.f32 0.015625, %v291_v24  ;;  %v14502_v19 = vld [vmem:[#allocation39_spill] sm:$0xff] }
  0xc5   :  { %v343_v1 = vadd.f32 %v342_v18, %v341_v21  ;;  %v356_v39 = vadd.f32 %v355_v43, %v354_v12  ;;  %v369_v62 = vadd.f32 %v368_v57, %v367_v37  ;;  %v372_v54 = vmul.f32 0.015625, %v304_v11  ;;  %v14500_v21 = vld [vmem:[#allocation28_spill] sm:$0xff]  ;;  %v14504_v44 = vld [vmem:[#allocation43_spill] sm:$0xff] }
  0xc6   :  { %v373_v16 = vmul.f32 0.015625, %v317_v13  ;;  %v374_v29 = vmul.f32 0.015625, %v330_v53  ;;  %v491_v49 = vsel %vm490_vm0, %v371_v26, %v370_v23  ;;  %v378_v40 = vmax.f32 %v14498_v5, %v12247_v27  ;;  %v14503_v43 = vld [vmem:[#allocation44_spill] sm:$0xff] }
  0xc7   :  { %v375_v50 = vmul.f32 0.015625, %v343_v1  ;;  %v376_v6 = vmul.f32 0.015625, %v356_v39  ;;  %v377_v2 = vmul.f32 0.015625, %v369_v62  ;;  %v391_v25 = vmax.f32 %v14499_v51, %v12263_v41 }
  0xc8   :  { %v493_v15 = vsel %vm492_vm1, %v372_v54, %v491_v49  ;;  %v404_v12 = vmax.f32 %v14500_v21, %v12279_v55  ;;  %v417_v20 = vmax.f32 %v14501_v58, %v12295_v3  ;;  %v430_v37 = vmax.f32 %v14502_v19, %v12312_v17  ;;  %v14519_v58 = vld [vmem:[#allocation30_spill] sm:$0xff] }
  0xc9   :  { %v495_v38 = vsel %vm14443_vm2, %v373_v16, %v493_v15  ;;  %v379_v14 = vmax.f32 %v378_v40, %v12249_v28  ;;  %v392_v18 = vmax.f32 %v391_v25, %v12265_v42  ;;  %v443_v24 = vmax.f32 %v14504_v44, %v14503_v43  ;;  %v14516_v43 = vld [vmem:[#allocation27_spill] sm:$0xff] }
  0xca   :  { %v497_v49 = vsel %vm14441_vm3, %v374_v29, %v495_v38  ;;  %v405_v11 = vmax.f32 %v404_v12, %v12281_v56  ;;  %v418_v57 = vmax.f32 %v417_v20, %v12297_v4  ;;  %v431_v13 = vmax.f32 %v430_v37, %v12314_v22  ;;  %v14505_v20 = vld [vmem:[#allocation51_spill] sm:$0xff] }
  0xcb   :  { %v499_v53 = vsel %vm14394_vm4, %v375_v50, %v497_v49  ;;  %v380_v1 = vmax.f32 %v379_v14, %v12251_v32  ;;  %v393_v39 = vmax.f32 %v392_v18, %v12267_v46  ;;  %v444_v62 = vmax.f32 %v443_v24, %v12331_v52  ;;  %v14506_v18 = vld [vmem:[#allocation60_spill] sm:$0xff]  ;;  %v14507_v24 = vld [vmem:[#allocation59_spill] sm:$0xff] }
  0xcc   :  { %v501_v23 = vsel %vm14393_vm5, %v376_v6, %v499_v53  ;;  %v406_v26 = vmax.f32 %v405_v11, %v12283_v59  ;;  %v419_v54 = vmax.f32 %v418_v57, %v12300_v8  ;;  %v432_v16 = vmax.f32 %v431_v13, %v12316_v30 }
  0xcd   :  { %v503_v29 = vsel %vm14392_vm6, %v377_v2, %v501_v23  ;;  %v381_v40 = vmax.f32 %v380_v1, %v12253_v33  ;;  %v394_v50 = vmax.f32 %v393_v39, %v12269_v47  ;;  %v445_v25 = vmax.f32 %v444_v62, %v12334_v63  ;;  %v14508_v39 = vld [vmem:[#allocation26_spill] sm:$0xff]  ;;  %v14509_v23 = vld [vmem:[#allocation48_spill] sm:$0xff]  ;;  %v14522_v63 = vld [vmem:[#allocation55_spill] sm:$0xff] }
  0xce   :  { %10577 = vmatprep.mubr.f32.mxu1 %v503_v29  ;;  %v407_v15 = vmax.f32 %v406_v26, %v12285_v60  ;;  %v420_v12 = vmax.f32 %v419_v54, %v12302_v9  ;;  %v433_v6 = vmax.f32 %v432_v16, %v12318_v31  ;;  %v456_v37 = vmax.f32 %v14505_v20, %v12346_v7  ;;  %v14510_v54 = vld [vmem:[#allocation61_spill] sm:$0xff]  ;;  %v14515_v20 = vld [vmem:[#allocation24_spill] sm:$0xff] }
  0xcf   :  { %v382_v38 = vmax.f32 %v381_v40, %v12255_v34  ;;  %v395_v2 = vmax.f32 %v394_v50, %v12271_v48  ;;  %v446_v14 = vmax.f32 %v445_v25, %v12336_v0  ;;  %v469_v49 = vmax.f32 %v14507_v24, %v14506_v18  ;;  %v14511_v29 = vld [vmem:[#allocation29_spill] sm:$0xff]  ;;  %v14514_v24 = vld [vmem:[#allocation54_spill] sm:$0xff]  ;;  %v14526_v9 = vld [vmem:[#allocation64_spill] sm:$0xff] }
  0xd0   :  { %v408_v11 = vmax.f32 %v407_v15, %v12287_v61  ;;  %v421_v57 = vmax.f32 %v420_v12, %v12304_v10  ;;  %v434_v13 = vmax.f32 %v433_v6, %v12320_v36  ;;  %v457_v53 = vmax.f32 %v456_v37, %v12348_v45  ;;  %v14512_v50 = vld [vmem:[#allocation37_spill] sm:$0xff]  ;;  %v14518_v0 = vld [vmem:[#allocation62_spill] sm:$0xff] }
  0xd1   :  { %v383_v1 = vmax.f32 %v382_v38, %v12257_v35  ;;  %v396_v62 = vmax.f32 %v395_v2, %v14508_v39  ;;  %v447_v26 = vmax.f32 %v446_v14, %v14509_v23  ;;  %v470_v16 = vmax.f32 %v469_v49, %v14510_v54  ;;  %v14513_v18 = vld [vmem:[#allocation41_spill] sm:$0xff]  ;;  %v14520_v23 = vld [vmem:[#allocation38_spill] sm:$0xff] }
  0xd2   :  { %v409_v40 = vmax.f32 %v408_v11, %v14511_v29  ;;  %v422_v25 = vmax.f32 %v421_v57, %v14512_v50  ;;  %v435_v15 = vmax.f32 %v434_v13, %v14513_v18  ;;  %v458_v12 = vmax.f32 %v457_v53, %v14514_v24  ;;  %v14517_v45 = vld [vmem:[#allocation49_spill] sm:$0xff]  ;;  %v14521_v54 = vld [vmem:[#allocation42_spill] sm:$0xff]  ;;  %v14524_v24 = vld [vmem:[#allocation63_spill] sm:$0xff] }
  0xd3   :  { %v384_v6 = vmax.f32 %v383_v1, %v14515_v20  ;;  %v397_v37 = vmax.f32 %v396_v62, %v14516_v43  ;;  %v448_v38 = vmax.f32 %v447_v26, %v14517_v45  ;;  %v471_v2 = vmax.f32 %v470_v16, %v14518_v0  ;;  %v14523_v10 = vld [vmem:[#allocation50_spill] sm:$0xff]  ;;  %v14525_v26 = vld [vmem:[#allocation56_spill] sm:$0xff] }
  0xd4   :  { %v410_v14 = vmax.f32 %v409_v40, %v14519_v58  ;;  %v423_v49 = vmax.f32 %v422_v25, %v14520_v23  ;;  %v436_v11 = vmax.f32 %v435_v15, %v14521_v54  ;;  %v459_v57 = vmax.f32 %v458_v12, %v14522_v63  ;;  %v14527_v12 = vld [vmem:[#allocation57_spill] sm:$0xff]  ;;  %v14529_v36 = vld [vmem:[#allocation58_spill] sm:$0xff] }
  0xd5   :  { %v385_v50 = vrot.slane %v384_v6, 4  ;;  %v398_v13 = vrot.slane %v397_v37, 4  ;;  %v449_v53 = vmax.f32 %v448_v38, %v14523_v10  ;;  %v472_v1 = vmax.f32 %v471_v2, %v14524_v24  ;;  %v14528_v10 = vld [vmem:[#allocation65_spill] sm:$0xff] }
  0xd6   :  { %v411_v7 = vrot.slane %v410_v14, 4  ;;  %v424_v62 = vrot.slane %v423_v49, 4  ;;  %v437_v52 = vrot.slane %v436_v11, 4  ;;  %v460_v45 = vmax.f32 %v459_v57, %v14525_v26 }
  0xd7   :  { %v386_v16 = vmax.f32 %v384_v6, %v385_v50  ;;  %v399_v0 = vmax.f32 %v397_v37, %v398_v13  ;;  %v450_v40 = vrot.slane %v449_v53, 4  ;;  %v473_v25 = vmax.f32 %v472_v1, %v14526_v9  ;;  %v14530_v13 = vld [vmem:[#allocation66_spill] sm:$0xff] }
  0xd8   :  { %v412_v23 = vmax.f32 %v410_v14, %v411_v7  ;;  %v425_v15 = vmax.f32 %v423_v49, %v424_v62  ;;  %v438_v44 = vmax.f32 %v436_v11, %v437_v52  ;;  %v461_v63 = vmax.f32 %v460_v45, %v14527_v12 }
  0xd9   :  { %v387_v8 = vrot.slane %v386_v16, 2  ;;  %v400_v4 = vrot.slane %v399_v0, 2  ;;  %v451_v38 = vmax.f32 %v449_v53, %v450_v40  ;;  %v474_v2 = vmax.f32 %v473_v25, %v14528_v10 }
  0xda   :  { %v413_v24 = vrot.slane %v412_v23, 2  ;;  %v426_v3 = vrot.slane %v425_v15, 2  ;;  %v439_v54 = vrot.slane %v438_v44, 2  ;;  %v462_v57 = vmax.f32 %v461_v63, %v14529_v36 }
  0xdb   :  { %v388_v50 = vmax.f32 %v386_v16, %v387_v8  ;;  %v401_v6 = vmax.f32 %v399_v0, %v400_v4  ;;  %v452_v37 = vrot.slane %v451_v38, 2  ;;  %v475_v1 = vmax.f32 %v474_v2, %v14530_v13 }
  0xdc   :  { %v414_v7 = vmax.f32 %v412_v23, %v413_v24  ;;  %v427_v14 = vmax.f32 %v425_v15, %v426_v3  ;;  %v440_v52 = vmax.f32 %v438_v44, %v439_v54  ;;  %v463_v49 = vrot.slane %v462_v57, 4 }
  0xdd   :  { %v389_v45 = vrot.slane %v388_v50, 1  ;;  %v402_v11 = vrot.slane %v401_v6, 1  ;;  %v453_v62 = vmax.f32 %v451_v38, %v452_v37  ;;  %v476_v53 = vrot.slane %v475_v1, 4 }
  0xde   :  { %v415_v40 = vrot.slane %v414_v7, 1  ;;  %v428_v25 = vrot.slane %v427_v14, 1  ;;  %v441_v9 = vrot.slane %v440_v52, 1  ;;  %v464_v10 = vmax.f32 %v462_v57, %v463_v49 }
  0xdf   :  { %v390_v26 = vmax.f32 %v388_v50, %v389_v45  ;;  %v403_v12 = vmax.f32 %v401_v6, %v402_v11  ;;  %v454_v63 = vrot.slane %v453_v62, 1  ;;  %v477_v8 = vmax.f32 %v475_v1, %v476_v53 }
  0xe0   :  { %v416_v4 = vmax.f32 %v414_v7, %v415_v40  ;;  %v429_v0 = vmax.f32 %v427_v14, %v428_v25  ;;  %v442_v16 = vmax.f32 %v440_v52, %v441_v9  ;;  %v465_v2 = vrot.slane %v464_v10, 2 }
  0xe1   :  { %v455_v24 = vmax.f32 %v453_v62, %v454_v63  ;;  %v478_v3 = vrot.slane %v477_v8, 2  ;;  %v513_v44 = vsel %vm490_vm0, %v403_v12, %v390_v26  ;;  %v614_v26 = vld [vmem:[#allocation5] sm:$0xf]  ;;  %v12015_v63 = vmov 1966171168  }
  0xe2   :  { %v466_v23 = vmax.f32 %v464_v10, %v465_v2  ;;  %v514_v54 = vsel %vm492_vm1, %v416_v4, %v513_v44  ;;  %10580 = vmatprep.subr.msk.mxu1 %vm622_vm7, %v614_v26  ;;  %v713_v4 = vlaneseq }
  0xe3   :  { %v479_v15 = vmax.f32 %v477_v8, %v478_v3  ;;  %v515_v38 = vsel %vm14443_vm2, %v429_v0, %v514_v54  ;;  %v711_v8 = vunpack.c.l.s4 %v12015_v63 }
  0xe4   :  { %v467_v37 = vrot.slane %v466_v23, 1  ;;  %v516_v57 = vsel %vm14441_vm3, %v442_v16, %v515_v38  ;;  %v12525_v16 = vshrl.u32 %v713_v4, 7 }
  0xe5   :  { %v480_v50 = vrot.slane %v479_v15, 1  ;;  %v517_v6 = vsel %vm14394_vm4, %v455_v24, %v516_v57  ;;  %v712_v0 = vunpack.c.0.s8 %v711_v8  ;;  %vm1744_vm4 = vcmask 851712  }
  0xe6   :  { %v468_v1 = vmax.f32 %v466_v23, %v467_v37  ;;  %14531 = vst [vmem:[#allocation23_spill] sm:$0xff] %v12525_v16  ;;  %v12529_v23 = vsub.s32 0, %v12525_v16 }
  0xe7   :  { %v481_v7 = vmax.f32 %v479_v15, %v480_v50  ;;  %v715_v2 = vsub.s32 %v712_v0, %v12525_v16 }
  0xe8   :  { %v518_v9 = vsel %vm14393_vm5, %v468_v1, %v517_v6  ;;  %14532 = vst [vmem:[#allocation25_spill] sm:$0xff] %v12529_v23  ;;  %vm14396_vm5 = vcmask 786112  }
  0xe9   :  { %v519_v14 = vsel %vm14392_vm6, %v481_v7, %v518_v9  ;;  %v12556_v9 = vand.u32 127, %v713_v4  ;;  %vm14395_vm6 = vcmask 720512  }
  0xea   :  { %10578 = vmatmul.mubr.f32.vlgmr.msra.gmra.mrb[0].mxu1 %v519_v14 }
  0xeb   :  { %10581 = vmatpush3.msk.msra.mxu1 %vm622_vm7, %v614_v26  ;;  %vm1056_vm9 = vcmp.lt.s32.totalorder %v12556_v9, 32  ;;  %vm1359_vm7 = vcmask 458112  }
 0x1bd   :  { %v10579_v10 = vpop.f32.mrb[0].mxu1 }
 0x1be   :  { %v603_v12 = vpop.f32.mrb[1].mxu1  ;;  %v613_v49 = vmax.f32 %v10579_v10, 0.0 }
 0x1bf   :  { %v612_v52 = vmax.f32 %v603_v12, 0.0 }
 0x1c1   :  { %10582 = vmatprep.mubr.msk.f32.mxu1 %vm615_vm8, %v612_v52 }
 0x1c2   :  { %10583 = vmatmul.mubr.msk.f32.vlgmr.msra.gmra.mrb[2].mxu1 %vm615_vm8, %v613_v49  ;;  %vm14442_vm8 = vcmask 523712  }
 0x295   :  { %v10584_v45 = vpop.f32.mrb[2].mxu1 }
 0x296   :  { %v692_v11 = vpop.f32.mrb[3].mxu1 }
 0x297   :  { %v701_v62 = vadd.f32 %v10584_v45, %v692_v11 }
 0x299   :  { %v9451_v53 = vmul.f32 -1.442695, %v701_v62 }
 0x29b   :  { %11704 = vpow2.f32 %v9451_v53 }
 0x2a5   :  { %v11705_v40 = vpop.eup %11704 }
 0x2a6   :  { %v705_v25 = vadd.f32 1.0, %v11705_v40 }
 0x2a8   :  { %11706 = vrcp.f32 %v705_v25 }
 0x2b2   :  { %v11707_v24 = vpop.eup %11706 }
 0x2b3   :  { %v709_v3 = vcombine.high %v11707_v24, %v11707_v24  ;;  %v716_v44 = vrot.slane %v11707_v24, %v715_v2 }
 0x2b5   :  { %v723_v54 = vrot.slane %v709_v3, %v715_v2  ;;  %v732_v15 = vrot.slane %v716_v44, %v715_v2 }
 0x2b7   :  { %v725_v38 = vcombine.high %v723_v54, %v723_v54  ;;  %v761_v37 = vrot.slane %v732_v15, %v12529_v23  ;;  %v754_v10 = vcombine.high %v732_v15, %v732_v15  ;;  %v12606_v25 = vrot.slane %v723_v54, %v715_v2  ;;  %v14565_v15 = vld [vmem:[#allocation42_spill] sm:$0xff] }
 0x2b9   :  { %v12532_v57 = vrot.slane %v725_v38, %v715_v2  ;;  %v12535_v50 = vmul.f32 %v12253_v33, %v761_v37  ;;  %v12538_v6 = vmul.f32 %v14498_v5, %v761_v37  ;;  %v12543_v1 = vmul.f32 %v12255_v34, %v761_v37 }
 0x2ba   :  { %v12546_v7 = vmul.f32 %v12247_v27, %v761_v37  ;;  %v12551_v33 = vmul.f32 %v12257_v35, %v761_v37  ;;  %v12554_v5 = vmul.f32 %v12249_v28, %v761_v37  ;;  %v12561_v34 = vmul.f32 %v14515_v20, %v761_v37 }
 0x2bb   :  { %14533 = vst [vmem:[#allocation28_spill] sm:$0xff] %v12535_v50  ;;  %14534 = vst [vmem:[#allocation39_spill] sm:$0xff] %v12538_v6  ;;  %870 = vadd.xlane.f32.xlu1 %v12535_v50  ;;  %862 = vadd.xlane.f32.xlu0 %v12538_v6  ;;  %v12564_v27 = vmul.f32 %v12251_v32, %v761_v37  ;;  %v1059_v35 = vsel %vm1056_vm9, %v12538_v6, -3e+38  ;;  %v724_v20 = vcombine.high %v716_v44, %v716_v44  ;;  %v14563_v44 = vld [vmem:[#allocation40_spill] sm:$0xff] }
 0x2bc   :  { %14535 = vst [vmem:[#allocation26_spill] sm:$0xff] %v12543_v1  ;;  %14536 = vst [vmem:[#allocation29_spill] sm:$0xff] %v12546_v7  ;;  %v1060_v28 = vsel %vm1056_vm9, %v12546_v7, -3e+38  ;;  %v1061_v14 = vsel %vm1056_vm9, %v12554_v5, -3e+38  ;;  %v769_v45 = vrot.slane %v754_v10, %v12529_v23 }
 0x2bd   :  { %14537 = vst [vmem:[#allocation41_spill] sm:$0xff] %v12551_v33  ;;  %14538 = vst [vmem:[#allocation24_spill] sm:$0xff] %v12554_v5  ;;  %v1062_v32 = vsel %vm1056_vm9, %v12564_v27, -3e+38  ;;  %v12581_v26 = vrot.slane %v724_v20, %v715_v2  ;;  %v1064_v12 = vsel %vm1056_vm9, %v12543_v1, -3e+38 }
 0x2be   :  { %14539 = vst [vmem:[#allocation27_spill] sm:$0xff] %v12561_v34  ;;  %14540 = vst [vmem:[#allocation30_spill] sm:$0xff] %v12564_v27  ;;  %v1063_v52 = vsel %vm1056_vm9, %v12535_v50, -3e+38  ;;  %v1066_v11 = vsel %vm1056_vm9, %v12561_v34, -3e+38  ;;  %v12599_v53 = vmul.f32 %v14500_v21, %v769_v45  ;;  %v12609_v63 = vmul.f32 %v12281_v56, %v769_v45 }
 0x2bf   :  { %872 = vadd.xlane.f32.xlu1 %v12543_v1  ;;  %864 = vadd.xlane.f32.xlu0 %v12546_v7  ;;  %v765_v49 = vrot.slane %v12581_v26, %v12529_v23  ;;  %v1065_v62 = vsel %vm1056_vm9, %v12551_v33, -3e+38 }
 0x2c0   :  { %14541 = vst [vmem:[#allocation58_spill] sm:$0xff] %v12599_v53  ;;  %14543 = vst [vmem:[#allocation67_spill] sm:$0xff] %v12609_v63  ;;  %v1077_v2 = vsel %vm1056_vm9, %v12609_v63, -3e+38 }
 0x2c1   :  { %v12602_v40 = vmul.f32 %v14499_v51, %v765_v49  ;;  %v12612_v8 = vmul.f32 %v12263_v41, %v765_v49  ;;  %v777_v51 = vrot.slane %v12606_v25, %v12529_v23  ;;  %v12619_v21 = vmul.f32 %v12269_v47, %v765_v49 }
 0x2c2   :  { %v12622_v4 = vmul.f32 %v12265_v42, %v765_v49  ;;  %v12627_v41 = vmul.f32 %v12279_v55, %v769_v45  ;;  %v12635_v47 = vmul.f32 %v12267_v46, %v765_v49  ;;  %v12638_v42 = vmul.f32 %v12271_v48, %v765_v49 }
 0x2c3   :  { %874 = vadd.xlane.f32.xlu1 %v12551_v33  ;;  %866 = vadd.xlane.f32.xlu0 %v12554_v5  ;;  %14542 = vst [vmem:[#allocation66_spill] sm:$0xff] %v12602_v40  ;;  %14544 = vst [vmem:[#allocation68_spill] sm:$0xff] %v12612_v8  ;;  %v12630_v56 = vmul.f32 %v12312_v17, %v777_v51  ;;  %v12643_v55 = vmul.f32 %v12283_v59, %v769_v45  ;;  %v1071_v24 = vsel %vm1056_vm9, %v12619_v21, -3e+38 }
 0x2c4   :  { %14545 = vst [vmem:[#allocation69_spill] sm:$0xff] %v12619_v21  ;;  %14546 = vst [vmem:[#allocation70_spill] sm:$0xff] %v12622_v4  ;;  %v12646_v17 = vmul.f32 %v14508_v39, %v765_v49  ;;  %v12651_v46 = vmul.f32 %v14516_v43, %v765_v49  ;;  %v12654_v48 = vmul.f32 %v14502_v19, %v777_v51  ;;  %v1068_v19 = vsel %vm1056_vm9, %v12612_v8, -3e+38 }
 0x2c5   :  { %14547 = vst [vmem:[#allocation71_spill] sm:$0xff] %v12627_v41  ;;  %14548 = vst [vmem:[#allocation72_spill] sm:$0xff] %v12630_v56  ;;  %v12659_v59 = vmul.f32 %v14513_v18, %v777_v51  ;;  %v12662_v39 = vmul.f32 %v12285_v60, %v769_v45  ;;  %v12667_v43 = vmul.f32 %v12314_v22, %v777_v51  ;;  %v1069_v60 = vsel %vm1056_vm9, %v12622_v4, -3e+38 }
 0x2c6   :  { %14549 = vst [vmem:[#allocation73_spill] sm:$0xff] %v12635_v47  ;;  %14550 = vst [vmem:[#allocation74_spill] sm:$0xff] %v12638_v42  ;;  %v12674_v18 = vmul.f32 %v12287_v61, %v769_v45  ;;  %v12681_v22 = vmul.f32 %v12316_v30, %v777_v51  ;;  %v1076_v0 = vsel %vm1056_vm9, %v12627_v41, -3e+38  ;;  %v12688_v61 = vmul.f32 %v14511_v29, %v769_v45 }
 0x2c7   :  { %876 = vadd.xlane.f32.xlu1 %v12561_v34  ;;  %868 = vadd.xlane.f32.xlu0 %v12564_v27  ;;  %14551 = vst [vmem:[#allocation75_spill] sm:$0xff] %v12643_v55  ;;  %14552 = vst [vmem:[#allocation76_spill] sm:$0xff] %v12646_v17  ;;  %v12695_v30 = vmul.f32 %v12318_v31, %v777_v51  ;;  %v12702_v29 = vmul.f32 %v14519_v58, %v769_v45  ;;  %v1092_v3 = vsel %vm1056_vm9, %v12630_v56, -3e+38  ;;  %v14569_v45 = vld [vmem:[#allocation33_spill] sm:$0xff] }
 0x2c8   :  { %14553 = vst [vmem:[#allocation77_spill] sm:$0xff] %v12651_v46  ;;  %14554 = vst [vmem:[#allocation78_spill] sm:$0xff] %v12654_v48  ;;  %v12709_v31 = vmul.f32 %v14563_v44, %v777_v51  ;;  %v1079_v54 = vsel %vm1056_vm9, %v12662_v39, -3e+38  ;;  %v12716_v58 = vmul.f32 %v14565_v15, %v777_v51  ;;  %v1093_v38 = vsel %vm1056_vm9, %v12667_v43, -3e+38 }
 0x2c9   :  { %14555 = vst [vmem:[#allocation79_spill] sm:$0xff] %v12659_v59  ;;  %14556 = vst [vmem:[#allocation80_spill] sm:$0xff] %v12662_v39  ;;  %v1073_v37 = vsel %vm1056_vm9, %v12646_v17, -3e+38  ;;  %v1081_v20 = vsel %vm1056_vm9, %v12688_v61, -3e+38  ;;  %v12763_v51 = vrot.slane %v12532_v57, %v12529_v23  ;;  %v755_v44 = vcombine.high %v12606_v25, %v12606_v25 }
 0x2ca   :  { %14557 = vst [vmem:[#allocation81_spill] sm:$0xff] %v12667_v43  ;;  %14558 = vst [vmem:[#allocation82_spill] sm:$0xff] %v12674_v18  ;;  %v1095_v10 = vsel %vm1056_vm9, %v12695_v30, -3e+38  ;;  %v1078_v49 = vsel %vm1056_vm9, %v12643_v55, -3e+38 }
 0x2cb   :  { %1125 = vmax.xlane.f32.xlu0 %v1060_v28  ;;  %1123 = vmax.xlane.f32.xlu1 %v1059_v35  ;;  %14559 = vst [vmem:[#allocation83_spill] sm:$0xff] %v12681_v22  ;;  %14560 = vst [vmem:[#allocation84_spill] sm:$0xff] %v12688_v61  ;;  %v1067_v28 = vsel %vm1056_vm9, %v12602_v40, -3e+38  ;;  %v756_v35 = vcombine.high %v12581_v26, %v12581_v26  ;;  %v1070_v26 = vsel %vm1056_vm9, %v12635_v47, -3e+38 }
 0x2cc   :  { %14561 = vst [vmem:[#allocation85_spill] sm:$0xff] %v12695_v30  ;;  %14562 = vst [vmem:[#allocation86_spill] sm:$0xff] %v12702_v29  ;;  %v1074_v25 = vsel %vm1056_vm9, %v12651_v46, -3e+38  ;;  %v1718_v33 = vadd.s32 4294967224, %v12556_v9 }
 0x2cd   :  { %14564 = vst [vmem:[#allocation40_spill] sm:$0xff] %v12709_v31  ;;  %14566 = vst [vmem:[#allocation42_spill] sm:$0xff] %v12716_v58 }
 0x2cf   :  { %1129 = vmax.xlane.f32.xlu0 %v1062_v32  ;;  %1127 = vmax.xlane.f32.xlu1 %v1061_v14  ;;  %v1075_v32 = vsel %vm1056_vm9, %v12599_v53, -3e+38  ;;  %v12737_v14 = vrot.slane %v756_v35, %v12529_v23 }
 0x2d3   :  { %1133 = vmax.xlane.f32.xlu0 %v1064_v12  ;;  %1131 = vmax.xlane.f32.xlu1 %v1063_v52  ;;  %v14567_v12 = vld [vmem:[#allocation32_spill] sm:$0xff] }
 0x2d4   :  { %v12747_v52 = vmul.f32 %v14567_v12, %v12737_v14 }
 0x2d6   :  { %14568 = vst [vmem:[#allocation32_spill] sm:$0xff] %v12747_v52 }
 0x2d7   :  { %1137 = vmax.xlane.f32.xlu0 %v1066_v11  ;;  %1135 = vmax.xlane.f32.xlu1 %v1065_v62  ;;  %v12755_v11 = vmul.f32 %v14569_v45, %v12737_v14  ;;  %v1091_v62 = vsel %vm1056_vm9, %v12654_v48, -3e+38  ;;  %v14583_v45 = vld [vmem:[#allocation46_spill] sm:$0xff] }
 0x2d9   :  { %14570 = vst [vmem:[#allocation33_spill] sm:$0xff] %v12755_v11 }
 0x2db   :  { %894 = vadd.xlane.f32.xlu0 %v12599_v53  ;;  %878 = vadd.xlane.f32.xlu1 %v12602_v40 }
 0x2df   :  { %898 = vadd.xlane.f32.xlu0 %v12609_v63  ;;  %880 = vadd.xlane.f32.xlu1 %v12612_v8  ;;  %v12018_v8 = vmov 0.0  }
 0x2e3   :  { %886 = vadd.xlane.f32.xlu0 %v12619_v21  ;;  %882 = vadd.xlane.f32.xlu1 %v12622_v4 }
 0x2e7   :  { %896 = vadd.xlane.f32.xlu1 %v12627_v41  ;;  %928 = vadd.xlane.f32.xlu0 %v12630_v56 }
 0x2eb   :  { %884 = vadd.xlane.f32.xlu1 %v12635_v47  ;;  %888 = vadd.xlane.f32.xlu0 %v12638_v42 }
 0x2ef   :  { %900 = vadd.xlane.f32.xlu1 %v12643_v55  ;;  %890 = vadd.xlane.f32.xlu0 %v12646_v17  ;;  %v1713_v17 = vadd.s32 4294967232, %v12556_v9 }
 0x2f3   :  { %892 = vadd.xlane.f32.xlu0 %v12651_v46  ;;  %926 = vadd.xlane.f32.xlu1 %v12654_v48 }
 0x2f7   :  { %938 = vadd.xlane.f32.xlu0 %v12659_v59  ;;  %902 = vadd.xlane.f32.xlu1 %v12662_v39 }
 0x2fb   :  { %1141 = vmax.xlane.f32.xlu0 %v1068_v19  ;;  %930 = vadd.xlane.f32.xlu1 %v12667_v43  ;;  %v14571_v19 = vld [vmem:[#allocation34_spill] sm:$0xff] }
 0x2ff   :  { %1143 = vmax.xlane.f32.xlu0 %v1069_v60  ;;  %904 = vadd.xlane.f32.xlu1 %v12674_v18  ;;  %v12767_v60 = vmul.f32 %v14571_v19, %v12737_v14  ;;  %v1097_v19 = vsel %vm1056_vm9, %v12659_v59, -3e+38  ;;  %v14587_v59 = vld [vmem:[#allocation31_spill] sm:$0xff] }
 0x301   :  { %14572 = vst [vmem:[#allocation34_spill] sm:$0xff] %v12767_v60 }
 0x303   :  { %1157 = vmax.xlane.f32.xlu0 %v1076_v0  ;;  %932 = vadd.xlane.f32.xlu1 %v12681_v22  ;;  %v1072_v0 = vsel %vm1056_vm9, %v12638_v42, -3e+38  ;;  %v14599_v42 = vld [vmem:[#allocation53_spill] sm:$0xff] }
 0x307   :  { %1159 = vmax.xlane.f32.xlu0 %v1077_v2  ;;  %906 = vadd.xlane.f32.xlu1 %v12688_v61  ;;  %v14573_v2 = vld [vmem:[#allocation43_spill] sm:$0xff] }
 0x308   :  { %v14593_v61 = vld [vmem:[#allocation55_spill] sm:$0xff] }
 0x30b   :  { %1147 = vmax.xlane.f32.xlu0 %v1071_v24  ;;  %934 = vadd.xlane.f32.xlu1 %v12695_v30  ;;  %v12775_v24 = vmul.f32 %v14573_v2, %v12763_v51  ;;  %v1340_v2 = vadd.s32 4294967264, %v12556_v9  ;;  %v14589_v30 = vld [vmem:[#allocation47_spill] sm:$0xff] }
 0x30d   :  { %14574 = vst [vmem:[#allocation43_spill] sm:$0xff] %v12775_v24 }
 0x30f   :  { %1189 = vmax.xlane.f32.xlu0 %v1092_v3  ;;  %908 = vadd.xlane.f32.xlu1 %v12702_v29  ;;  %v1080_v3 = vsel %vm1056_vm9, %v12674_v18, -3e+38 }
 0x313   :  { %1163 = vmax.xlane.f32.xlu0 %v1079_v54  ;;  %936 = vadd.xlane.f32.xlu1 %v12709_v31  ;;  %v14575_v54 = vld [vmem:[#allocation35_spill] sm:$0xff] }
 0x314   :  { %v12785_v15 = vmul.f32 %v14575_v54, %v12737_v14  ;;  %v14585_v54 = vld [vmem:[#allocation37_spill] sm:$0xff] }
 0x316   :  { %14576 = vst [vmem:[#allocation35_spill] sm:$0xff] %v12785_v15 }
 0x317   :  { %1191 = vmax.xlane.f32.xlu0 %v1093_v38  ;;  %940 = vadd.xlane.f32.xlu1 %v12716_v58  ;;  %v1094_v38 = vsel %vm1056_vm9, %v12681_v22, -3e+38  ;;  %v12854_v22 = vmul.f32 %v14589_v30, %v12763_v51  ;;  %v1361_v30 = vadd.s32 4294967240, %v12556_v9 }
 0x319   :  { %14590 = vst [vmem:[#allocation47_spill] sm:$0xff] %v12854_v22 }
 0x31b   :  { %1151 = vmax.xlane.f32.xlu0 %v1073_v37  ;;  %1139 = vmax.xlane.f32.xlu1 %v1067_v28  ;;  %v12792_v37 = vrot.slane %v755_v44, %v12529_v23  ;;  %v14577_v28 = vld [vmem:[#allocation45_spill] sm:$0xff] }
 0x31c   :  { %v12796_v35 = vmul.f32 %v14577_v28, %v12763_v51  ;;  %v1098_v28 = vsel %vm1056_vm9, %v12716_v58, -3e+38 }
 0x31d   :  { %v12875_v18 = vmul.f32 %v14593_v61, %v12792_v37  ;;  %v12890_v21 = vmul.f32 %v14599_v42, %v12792_v37  ;;  %v12907_v42 = vsub.s32 %v1361_v30, %v12525_v16  ;;  %v12919_v30 = vsub.s32 %v1713_v17, %v12525_v16 }
 0x31e   :  { %14578 = vst [vmem:[#allocation45_spill] sm:$0xff] %v12796_v35 }
 0x31f   :  { %1167 = vmax.xlane.f32.xlu0 %v1081_v20  ;;  %1155 = vmax.xlane.f32.xlu1 %v1075_v32  ;;  %v14579_v20 = vld [vmem:[#allocation52_spill] sm:$0xff]  ;;  %14594 = vst [vmem:[#allocation55_spill] sm:$0xff] %v12875_v18  ;;  %14600 = vst [vmem:[#allocation53_spill] sm:$0xff] %v12890_v21 }
 0x320   :  { %v12804_v32 = vmul.f32 %v14579_v20, %v12792_v37  ;;  %v1326_v20 = vadd.s32 4294967280, %v12556_v9  ;;  %14605 = vst [vmem:[#allocation87_spill] sm:$0xff] %v12907_v42 }
 0x322   :  { %14580 = vst [vmem:[#allocation52_spill] sm:$0xff] %v12804_v32 }
 0x323   :  { %1195 = vmax.xlane.f32.xlu0 %v1095_v10  ;;  %1145 = vmax.xlane.f32.xlu1 %v1070_v26  ;;  %v1082_v10 = vsel %vm1056_vm9, %v12702_v29, -3e+38  ;;  %v14581_v26 = vld [vmem:[#allocation36_spill] sm:$0xff] }
 0x324   :  { %v12812_v12 = vmul.f32 %v14581_v26, %v12737_v14 }
 0x326   :  { %14582 = vst [vmem:[#allocation36_spill] sm:$0xff] %v12812_v12 }
 0x327   :  { %912 = vadd.xlane.f32.xlu0 %v12747_v52  ;;  %1161 = vmax.xlane.f32.xlu1 %v1078_v49  ;;  %v1096_v49 = vsel %vm1056_vm9, %v12709_v31, -3e+38  ;;  %v12850_v31 = vmul.f32 %v14587_v59, %v12737_v14 }
 0x329   :  { %14588 = vst [vmem:[#allocation31_spill] sm:$0xff] %v12850_v31 }
 0x32b   :  { %914 = vadd.xlane.f32.xlu0 %v12755_v11  ;;  %1187 = vmax.xlane.f32.xlu1 %v1091_v62  ;;  %v12820_v62 = vmul.f32 %v14583_v45, %v12763_v51  ;;  %v12846_v45 = vsub.s32 %v1340_v2, %v12525_v16  ;;  %v1354_v2 = vadd.s32 4294967248, %v12556_v9 }
 0x32d   :  { %14584 = vst [vmem:[#allocation46_spill] sm:$0xff] %v12820_v62  ;;  %v12893_v61 = vsub.s32 %v1354_v2, %v12525_v16  ;;  %v1732_v2 = vadd.s32 4294967208, %v12556_v9 }
 0x32f   :  { %916 = vadd.xlane.f32.xlu0 %v12767_v60  ;;  %1149 = vmax.xlane.f32.xlu1 %v1072_v0  ;;  %v1319_v0 = vadd.s32 4294967288, %v12556_v9 }
 0x333   :  { %1165 = vmax.xlane.f32.xlu1 %v1080_v3  ;;  %942 = vadd.xlane.f32.xlu0 %v12775_v24 }
 0x337   :  { %1193 = vmax.xlane.f32.xlu1 %v1094_v38  ;;  %918 = vadd.xlane.f32.xlu0 %v12785_v15  ;;  %v12830_v38 = vmul.f32 %v14585_v54, %v12737_v14 }
 0x339   :  { %14586 = vst [vmem:[#allocation37_spill] sm:$0xff] %v12830_v38 }
 0x33b   :  { %1153 = vmax.xlane.f32.xlu1 %v1074_v25  ;;  %946 = vadd.xlane.f32.xlu0 %v12796_v35  ;;  %v1347_v25 = vadd.s32 4294967256, %v12556_v9 }
 0x33f   :  { %1169 = vmax.xlane.f32.xlu1 %v1082_v10  ;;  %960 = vadd.xlane.f32.xlu0 %v12804_v32  ;;  %v12839_v10 = vsub.s32 %v12556_v9, %v12525_v16 }
 0x343   :  { %1197 = vmax.xlane.f32.xlu1 %v1096_v49  ;;  %920 = vadd.xlane.f32.xlu0 %v12812_v12  ;;  %v12843_v49 = vsub.s32 %v1319_v0, %v12525_v16  ;;  %v12861_v0 = vsub.s32 %v1347_v25, %v12525_v16 }
 0x347   :  { %1199 = vmax.xlane.f32.xlu1 %v1097_v19  ;;  %948 = vadd.xlane.f32.xlu0 %v12820_v62 }
 0x348   :  { %v871_v3 = vpop.xlane.xlu1 %870  ;;  %v863_v44 = vpop.xlane.xlu0 %862 }
 0x349   :  { %v990_v26 = vmul.f32 0.03125, %v863_v44  ;;  %v14591_v44 = vld [vmem:[#allocation44_spill] sm:$0xff] }
 0x34b   :  { %1201 = vmax.xlane.f32.xlu1 %v1098_v28  ;;  %922 = vadd.xlane.f32.xlu0 %v12830_v38  ;;  %v12858_v28 = vmul.f32 %v14591_v44, %v12763_v51  ;;  %v1318_v59 = vrot.slane %v990_v26, %v12839_v10  ;;  %v1333_v44 = vadd.s32 4294967272, %v12556_v9 }
 0x34c   :  { %v873_v19 = vpop.xlane.xlu1 %872  ;;  %v865_v54 = vpop.xlane.xlu0 %864 }
 0x34d   :  { %v991_v58 = vmul.f32 0.03125, %v865_v54  ;;  %14592 = vst [vmem:[#allocation44_spill] sm:$0xff] %v12858_v28  ;;  %v12865_v54 = vsub.s32 %v1326_v20, %v12525_v16  ;;  %v14595_v20 = vld [vmem:[#allocation51_spill] sm:$0xff]  ;;  %v995_v27 = vmul.f32 0.03125, %v873_v19 }
 0x34e   :  { %v12879_v46 = vmul.f32 %v14595_v20, %v12792_v37  ;;  %v14601_v20 = vld [vmem:[#allocation57_spill] sm:$0xff] }
 0x34f   :  { %v1323_v29 = vrot.slane %v991_v58, %v12843_v49  ;;  %910 = vadd.xlane.f32.xlu1 %v12850_v31  ;;  %950 = vadd.xlane.f32.xlu0 %v12854_v22  ;;  %v14597_v58 = vld [vmem:[#allocation49_spill] sm:$0xff]  ;;  %v12897_v50 = vmul.f32 %v14601_v20, %v12792_v37 }
 0x350   :  { %v875_v25 = vpop.xlane.xlu1 %874  ;;  %v867_v34 = vpop.xlane.xlu0 %866  ;;  %14596 = vst [vmem:[#allocation51_spill] sm:$0xff] %v12879_v46  ;;  %v12883_v26 = vmul.f32 %v14597_v58, %v12763_v51  ;;  %v14603_v58 = vld [vmem:[#allocation54_spill] sm:$0xff] }
 0x351   :  { %v1325_v39 = vsel %vm1324_vm10, %v1323_v29, %v1318_v59  ;;  %v992_v1 = vmul.f32 0.03125, %v867_v34  ;;  %14602 = vst [vmem:[#allocation57_spill] sm:$0xff] %v12897_v50  ;;  %v12901_v43 = vmul.f32 %v14603_v58, %v12792_v37  ;;  %v12910_v29 = vsub.s32 %v1333_v44, %v12525_v16 }
 0x352   :  { %14598 = vst [vmem:[#allocation49_spill] sm:$0xff] %v12883_v26  ;;  %v994_v59 = vmul.f32 0.03125, %v871_v3  ;;  %v12914_v58 = vsub.s32 %v1718_v33, %v12525_v16  ;;  %v996_v44 = vmul.f32 0.03125, %v875_v25  ;;  %v1746_v3 = vadd.s32 4294967192, %v12556_v9 }
 0x353   :  { %14604 = vst [vmem:[#allocation54_spill] sm:$0xff] %v12901_v43  ;;  %v1330_v34 = vrot.slane %v992_v1, %v12865_v54  ;;  %944 = vadd.xlane.f32.xlu1 %v12858_v28  ;;  %966 = vadd.xlane.f32.xlu0 %v12875_v18  ;;  %v1725_v1 = vadd.s32 4294967216, %v12556_v9  ;;  %v12926_v33 = vsub.s32 %v1732_v2, %v12525_v16  ;;  %v1739_v25 = vadd.s32 4294967200, %v12556_v9 }
 0x354   :  { %v877_v20 = vpop.xlane.xlu1 %876  ;;  %v869_v55 = vpop.xlane.xlu0 %868  ;;  %v1358_v2 = vrot.slane %v996_v44, %v12893_v61  ;;  %v12940_v41 = vsub.s32 %v1746_v3, %v12525_v16  ;;  %v1760_v3 = vadd.s32 4294967176, %v12556_v9 }
 0x355   :  { %v1332_v47 = vsel %vm1331_vm11, %v1330_v34, %v1325_v39  ;;  %v993_v48 = vmul.f32 0.03125, %v869_v55  ;;  %v997_v56 = vmul.f32 0.03125, %v877_v20  ;;  %v1344_v55 = vrot.slane %v994_v59, %v12846_v45 }
 0x356   :  { %v12930_v19 = vsub.s32 %v1725_v1, %v12525_v16  ;;  %v12948_v44 = vsub.s32 %v1739_v25, %v12525_v16 }
 0x357   :  { %v1337_v63 = vrot.slane %v993_v48, %v12910_v29  ;;  %958 = vadd.xlane.f32.xlu1 %v12879_v46  ;;  %954 = vadd.xlane.f32.xlu0 %v12883_v26  ;;  %v1351_v48 = vrot.slane %v995_v27, %v12861_v0  ;;  %v1365_v1 = vrot.slane %v997_v56, %v12907_v42 }
 0x358   :  { %v1126_v17 = vpop.xlane.xlu0 %1125  ;;  %v1124_v39 = vpop.xlane.xlu1 %1123 }
 0x359   :  { %v1339_v34 = vsel %vm1338_vm12, %v1337_v63, %v1332_v47  ;;  %v1722_v20 = vrot.slane %v1126_v17, %v12914_v58  ;;  %v1717_v4 = vrot.slane %v1124_v39, %v12919_v30 }
 0x35a   :  { %v1346_v59 = vsel %vm1345_vm13, %v1344_v55, %v1339_v34 }
 0x35b   :  { %v1353_v53 = vsel %vm1352_vm14, %v1351_v48, %v1346_v59  ;;  %v1724_v27 = vsel %vm14397_vm15, %v1722_v20, %v1717_v4  ;;  %962 = vadd.xlane.f32.xlu1 %v12890_v21  ;;  %970 = vadd.xlane.f32.xlu0 %v12897_v50  ;;  %v1753_v4 = vadd.s32 4294967184, %v12556_v9  ;;  %v1084_v48 = vsel %vm1056_vm9, %v12747_v52, -3e+38 }
 0x35c   :  { %v1130_v63 = vpop.xlane.xlu0 %1129  ;;  %v1128_v47 = vpop.xlane.xlu1 %1127  ;;  %v1360_v55 = vsel %vm1359_vm7, %v1358_v2, %v1353_v53  ;;  %v14606_v2 = vld [vmem:[#allocation38_spill] sm:$0xff]  ;;  %vm1765_vm15 = vcmask 1048512   ;;  %v1086_v52 = vsel %vm1056_vm9, %v12767_v60, -3e+38 }
 0x35d   :  { %v1736_v56 = vrot.slane %v1130_v63, %v12926_v33  ;;  %v1729_v17 = vrot.slane %v1128_v47, %v12930_v19  ;;  %v12956_v39 = vsel %vm14442_vm8, %v1365_v1, %v1360_v55  ;;  %v12966_v59 = vmul.f32 %v14606_v2, %v12737_v14 }
 0x35e   :  { %v12969_v1 = vsub.s32 %v1760_v3, %v12525_v16  ;;  %v1085_v55 = vsel %vm1056_vm9, %v12755_v11, -3e+38 }
 0x35f   :  { %v1731_v25 = vsel %vm14395_vm6, %v1729_v17, %v1724_v27  ;;  %964 = vadd.xlane.f32.xlu1 %v12901_v43  ;;  %1173 = vmax.xlane.f32.xlu0 %v1084_v48  ;;  %14607 = vst [vmem:[#allocation38_spill] sm:$0xff] %v12966_v59  ;;  %vm1751_vm6 = vcmask 917312   ;;  %v12974_v27 = vsub.s32 %v1753_v4, %v12525_v16 }
 0x360   :  { %v1134_v34 = vpop.xlane.xlu0 %1133  ;;  %v1738_v53 = vsel %vm14396_vm5, %v1736_v56, %v1731_v25  ;;  %v1132_v20 = vpop.xlane.xlu1 %1131  ;;  %vm1758_vm5 = vcmask 982912   ;;  %v14608_v25 = vld [vmem:[#allocation48_spill] sm:$0xff] }
 0x361   :  { %v1750_v63 = vrot.slane %v1134_v34, %v12940_v41  ;;  %v1743_v47 = vrot.slane %v1132_v20, %v12948_v44  ;;  %v12986_v34 = vmul.f32 %v14608_v25, %v12763_v51 }
 0x363   :  { %v1745_v56 = vsel %vm1744_vm4, %v1743_v47, %v1738_v53  ;;  %924 = vadd.xlane.f32.xlu1 %v12966_v59  ;;  %1175 = vmax.xlane.f32.xlu0 %v1085_v55  ;;  %14609 = vst [vmem:[#allocation48_spill] sm:$0xff] %v12986_v34  ;;  %v1100_v53 = vsel %vm1056_vm9, %v12858_v28, -3e+38  ;;  %v14611_v55 = vld [vmem:[#allocation56_spill] sm:$0xff] }
 0x364   :  { %v1138_v14 = vpop.xlane.xlu0 %1137  ;;  %v1752_v3 = vsel %vm1751_vm6, %v1750_v63, %v1745_v56  ;;  %v1136_v17 = vpop.xlane.xlu1 %1135  ;;  %v12998_v56 = vmul.f32 %v14611_v55, %v12792_v37 }
 0x365   :  { %v1764_v48 = vrot.slane %v1138_v14, %v12969_v1  ;;  %v1757_v4 = vrot.slane %v1136_v17, %v12974_v27  ;;  %v1087_v14 = vsel %vm1056_vm9, %v12785_v15, -3e+38 }
 0x366   :  { %14612 = vst [vmem:[#allocation56_spill] sm:$0xff] %v12998_v56 }
 0x367   :  { %v1759_v20 = vsel %vm1758_vm5, %v1757_v4, %v1752_v3  ;;  %952 = vadd.xlane.f32.xlu1 %v12986_v34  ;;  %1205 = vmax.xlane.f32.xlu0 %v1100_v53 }
 0x368   :  { %v12994_v2 = vsel %vm1765_vm15, %v1764_v48, %v1759_v20  ;;  %v895_v63 = vpop.xlane.xlu0 %894  ;;  %v879_v47 = vpop.xlane.xlu1 %878  ;;  %v14613_v48 = vld [vmem:[#allocation50_spill] sm:$0xff]  ;;  %v1101_v20 = vsel %vm1056_vm9, %v12796_v35, -3e+38 }
 0x369   :  { %14610 = vst [vmem:[#allocation88_spill] sm:$0xff] %v12994_v2  ;;  %v998_v17 = vmul.f32 0.03125, %v879_v47  ;;  %v13006_v53 = vmul.f32 %v14613_v48, %v12763_v51  ;;  %v13017_v51 = vmul.f32 %v14529_v36, %v12792_v37  ;;  %v1108_v48 = vsel %vm1056_vm9, %v12804_v32, -3e+38 }
 0x36a   :  { %v1006_v35 = vmul.f32 0.03125, %v895_v63  ;;  %v1083_v36 = vsel %vm1056_vm9, %v12850_v31, -3e+38  ;;  %v1109_v37 = vsel %vm1056_vm9, %v12890_v21, -3e+38 }
 0x36b   :  { %968 = vadd.xlane.f32.xlu1 %v12998_v56  ;;  %1179 = vmax.xlane.f32.xlu0 %v1087_v14  ;;  %14614 = vst [vmem:[#allocation50_spill] sm:$0xff] %v13006_v53  ;;  %v1371_v55 = vrot.slane %v998_v17, %v12839_v10  ;;  %14615 = vst [vmem:[#allocation89_spill] sm:$0xff] %v13017_v51 }
 0x36c   :  { %v899_v3 = vpop.xlane.xlu0 %898  ;;  %v881_v4 = vpop.xlane.xlu1 %880  ;;  %v1410_v63 = vrot.slane %v1006_v35, %v12839_v10  ;;  %v1089_v35 = vsel %vm1056_vm9, %v12830_v38, -3e+38  ;;  %v14626_v38 = vld [vmem:[#allocation62_spill] sm:$0xff] }
 0x36d   :  { %v999_v25 = vmul.f32 0.03125, %v881_v4 }
 0x36f   :  { %v1375_v28 = vrot.slane %v999_v25, %v12843_v49  ;;  %956 = vadd.xlane.f32.xlu1 %v13006_v53  ;;  %1207 = vmax.xlane.f32.xlu0 %v1101_v20  ;;  %v1008_v25 = vmul.f32 0.03125, %v899_v3 }
 0x370   :  { %v887_v47 = vpop.xlane.xlu0 %886  ;;  %v883_v14 = vpop.xlane.xlu1 %882 }
 0x371   :  { %v1376_v15 = vsel %vm1324_vm10, %v1375_v28, %v1371_v55  ;;  %v1000_v4 = vmul.f32 0.03125, %v883_v14  ;;  %v1419_v3 = vrot.slane %v1008_v25, %v12865_v54 }
 0x373   :  { %v1380_v17 = vrot.slane %v1000_v4, %v12865_v54  ;;  %972 = vadd.xlane.f32.xlu1 %v13017_v51  ;;  %1221 = vmax.xlane.f32.xlu0 %v1108_v48  ;;  %v1002_v4 = vmul.f32 0.03125, %v887_v47 }
 0x374   :  { %v897_v20 = vpop.xlane.xlu1 %896  ;;  %v929_v11 = vpop.xlane.xlu0 %928 }
 0x375   :  { %v1381_v28 = vsel %vm1331_vm11, %v1380_v17, %v1376_v15  ;;  %v1007_v55 = vmul.f32 0.03125, %v897_v20  ;;  %v1390_v47 = vrot.slane %v1002_v4, %v12846_v45 }
 0x377   :  { %v1414_v14 = vrot.slane %v1007_v55, %v12843_v49  ;;  %1171 = vmax.xlane.f32.xlu1 %v1083_v36  ;;  %1223 = vmax.xlane.f32.xlu0 %v1109_v37 }
 0x378   :  { %v885_v48 = vpop.xlane.xlu1 %884  ;;  %v889_v15 = vpop.xlane.xlu0 %888 }
 0x379   :  { %v1415_v17 = vsel %vm1324_vm10, %v1414_v14, %v1410_v63  ;;  %v1001_v20 = vmul.f32 0.03125, %v885_v48  ;;  %v1003_v32 = vmul.f32 0.03125, %v889_v15 }
 0x37a   :  { %v1420_v55 = vsel %vm1331_vm11, %v1419_v3, %v1415_v17  ;;  %v1103_v3 = vsel %vm1056_vm9, %v12854_v22, -3e+38  ;;  %v1023_v17 = vmul.f32 0.03125, %v929_v11  ;;  %v1090_v11 = vsel %vm1056_vm9, %v12966_v59, -3e+38  ;;  %v14624_v22 = vld [vmem:[#allocation65_spill] sm:$0xff] }
 0x37b   :  { %v1385_v36 = vrot.slane %v1001_v20, %v12910_v29  ;;  %1177 = vmax.xlane.f32.xlu1 %v1086_v52  ;;  %1183 = vmax.xlane.f32.xlu0 %v1089_v35  ;;  %v1395_v14 = vrot.slane %v1003_v32, %v12861_v0  ;;  %v1099_v52 = vsel %vm1056_vm9, %v12775_v24, -3e+38 }
 0x37c   :  { %v901_v25 = vpop.xlane.xlu1 %900  ;;  %v891_v37 = vpop.xlane.xlu0 %890 }
 0x37d   :  { %v1386_v63 = vsel %vm1338_vm12, %v1385_v36, %v1381_v28  ;;  %v1009_v48 = vmul.f32 0.03125, %v901_v25  ;;  %v1004_v15 = vmul.f32 0.03125, %v891_v37 }
 0x37e   :  { %v1391_v21 = vsel %vm1345_vm13, %v1390_v47, %v1386_v63  ;;  %v1492_v63 = vrot.slane %v1023_v17, %v12843_v49  ;;  %v1104_v17 = vsel %vm1056_vm9, %v12986_v34, -3e+38 }
 0x37f   :  { %v1396_v4 = vsel %vm1352_vm14, %v1395_v14, %v1391_v21  ;;  %v1424_v20 = vrot.slane %v1009_v48, %v12910_v29  ;;  %v1400_v28 = vrot.slane %v1004_v15, %v12893_v61  ;;  %1211 = vmax.xlane.f32.xlu0 %v1103_v3  ;;  %1203 = vmax.xlane.f32.xlu1 %v1099_v52  ;;  %v1107_v21 = vsel %vm1056_vm9, %v12879_v46, -3e+38 }
 0x380   :  { %v893_v32 = vpop.xlane.xlu0 %892  ;;  %v927_v35 = vpop.xlane.xlu1 %926 }
 0x381   :  { %v13057_v36 = vsel %vm1338_vm12, %v1424_v20, %v1420_v55  ;;  %v1401_v47 = vsel %vm1359_vm7, %v1400_v28, %v1396_v4  ;;  %v1005_v25 = vmul.f32 0.03125, %v893_v32  ;;  %v1022_v37 = vmul.f32 0.03125, %v927_v35 }
 0x382   :  { %v1088_v20 = vsel %vm1056_vm9, %v12812_v12, -3e+38  ;;  %v757_v35 = vcombine.high %v12532_v57, %v12532_v57  ;;  %v1110_v57 = vsel %vm1056_vm9, %v12901_v43, -3e+38  ;;  %v14622_v43 = vld [vmem:[#allocation60_spill] sm:$0xff] }
 0x383   :  { %v1405_v14 = vrot.slane %v1005_v25, %v12907_v42  ;;  %v1488_v48 = vrot.slane %v1022_v37, %v12839_v10  ;;  %1185 = vmax.xlane.f32.xlu0 %v1090_v11  ;;  %1219 = vmax.xlane.f32.xlu1 %v1107_v21  ;;  %v1106_v21 = vsel %vm1056_vm9, %v13006_v53, -3e+38 }
 0x384   :  { %v13069_v55 = vpop.xlane.xlu0 %938  ;;  %v903_v15 = vpop.xlane.xlu1 %902  ;;  %v789_v11 = vrot.slane %v757_v35, %v12529_v23 }
 0x385   :  { %v1406_v3 = vsel %vm14442_vm8, %v1405_v14, %v1401_v47  ;;  %v13073_v52 = vsel %vm1324_vm10, %v1492_v63, %v1488_v48  ;;  %v1102_v47 = vsel %vm1056_vm9, %v12820_v62, -3e+38  ;;  %v14616_v48 = vld [vmem:[#allocation59_spill] sm:$0xff] }
 0x386   :  { %v1641_v4 = vsel %vm490_vm0, %v1406_v3, %v12956_v39  ;;  %v1105_v39 = vsel %vm1056_vm9, %v12883_v26, -3e+38  ;;  %v13109_v3 = vmul.f32 %v14616_v48, %v789_v11  ;;  %v14620_v26 = vld [vmem:[#allocation63_spill] sm:$0xff]  ;;  %v13159_v62 = vmul.f32 %v14626_v38, %v789_v11 }
 0x387   :  { %1213 = vmax.xlane.f32.xlu0 %v1104_v17  ;;  %1181 = vmax.xlane.f32.xlu1 %v1088_v20  ;;  %v1111_v17 = vsel %vm1056_vm9, %v12875_v18, -3e+38  ;;  %v13129_v59 = vmul.f32 %v14620_v26, %v789_v11  ;;  %v13141_v26 = vmul.f32 %v14622_v43, %v789_v11 }
 0x388   :  { %v13083_v28 = vpop.xlane.xlu0 %1141  ;;  %v13085_v32 = vpop.xlane.xlu1 %930  ;;  %14617 = vst [vmem:[#allocation59_spill] sm:$0xff] %v13109_v3  ;;  %14627 = vst [vmem:[#allocation62_spill] sm:$0xff] %v13159_v62 }
 0x389   :  { %14621 = vst [vmem:[#allocation63_spill] sm:$0xff] %v13129_v59  ;;  %14623 = vst [vmem:[#allocation60_spill] sm:$0xff] %v13141_v26 }
 0x38b   :  { %1215 = vmax.xlane.f32.xlu0 %v1105_v39  ;;  %1209 = vmax.xlane.f32.xlu1 %v1102_v47  ;;  %v14618_v39 = vld [vmem:[#allocation61_spill] sm:$0xff] }
 0x38c   :  { %v13095_v25 = vpop.xlane.xlu0 %1143  ;;  %v905_v37 = vpop.xlane.xlu1 %904  ;;  %v13118_v47 = vmul.f32 %v14618_v39, %v789_v11 }
 0x38d   :  { %v1011_v48 = vmul.f32 0.03125, %v905_v37 }
 0x38e   :  { %14619 = vst [vmem:[#allocation61_spill] sm:$0xff] %v13118_v47  ;;  %v1117_v38 = vsel %vm1056_vm9, %v13118_v47, -3e+38 }
 0x38f   :  { %1217 = vmax.xlane.f32.xlu0 %v1106_v21  ;;  %1225 = vmax.xlane.f32.xlu1 %v1110_v57  ;;  %v1010_v21 = vmul.f32 0.03125, %v903_v15  ;;  %v1112_v57 = vsel %vm1056_vm9, %v12998_v56, -3e+38  ;;  %v1113_v15 = vsel %vm1056_vm9, %v12897_v50, -3e+38  ;;  %v1434_v56 = vrot.slane %v1011_v48, %v12861_v0 }
 0x390   :  { %v13104_v63 = vpop.xlane.xlu0 %1157  ;;  %v13106_v14 = vpop.xlane.xlu1 %932 }
 0x391   :  { %v1429_v39 = vrot.slane %v1010_v21, %v12846_v45  ;;  %v13144_v21 = vmul.f32 %v14624_v22, %v789_v11 }
 0x393   :  { %1227 = vmax.xlane.f32.xlu1 %v1111_v17  ;;  %974 = vadd.xlane.f32.xlu0 %v13109_v3  ;;  %14625 = vst [vmem:[#allocation65_spill] sm:$0xff] %v13144_v21  ;;  %v1430_v50 = vsel %vm1345_vm13, %v1429_v39, %v13057_v36  ;;  %v14628_v39 = vld [vmem:[#allocation64_spill] sm:$0xff] }
 0x394   :  { %v13115_v20 = vpop.xlane.xlu0 %1159  ;;  %v907_v35 = vpop.xlane.xlu1 %906  ;;  %v1435_v48 = vsel %vm1352_vm14, %v1434_v56, %v1430_v50  ;;  %v1116_v50 = vsel %vm1056_vm9, %v13141_v26, -3e+38 }
 0x395   :  { %v1012_v53 = vmul.f32 0.03125, %v907_v35 }
 0x397   :  { %1229 = vmax.xlane.f32.xlu1 %v1112_v57  ;;  %978 = vadd.xlane.f32.xlu0 %v13118_v47  ;;  %v1439_v37 = vrot.slane %v1012_v53, %v12893_v61 }
 0x398   :  { %v13124_v18 = vpop.xlane.xlu0 %1147  ;;  %v13126_v17 = vpop.xlane.xlu1 %934 }
 0x399   :  { %v1440_v53 = vsel %vm1359_vm7, %v1439_v37, %v1435_v48  ;;  %v13173_v37 = vmul.f32 %v14628_v39, %v789_v11 }
 0x39b   :  { %1231 = vmax.xlane.f32.xlu1 %v1113_v15  ;;  %982 = vadd.xlane.f32.xlu0 %v13129_v59  ;;  %14629 = vst [vmem:[#allocation64_spill] sm:$0xff] %v13173_v37 }
 0x39c   :  { %v13138_v35 = vpop.xlane.xlu0 %1189  ;;  %v909_v57 = vpop.xlane.xlu1 %908 }
 0x39d   :  { %v1013_v34 = vmul.f32 0.03125, %v909_v57 }
 0x39f   :  { %v1444_v15 = vrot.slane %v1013_v34, %v12907_v42  ;;  %976 = vadd.xlane.f32.xlu1 %v13141_v26  ;;  %986 = vadd.xlane.f32.xlu0 %v13144_v21  ;;  %v2054_v26 = vld [vmem:[%s14290_s3 + $0x20] sm:$0xff] }
 0x3a0   :  { %v13153_v57 = vpop.xlane.xlu0 %1163  ;;  %v13155_v43 = vpop.xlane.xlu1 %936 }
 0x3a1   :  { %v1445_v22 = vsel %vm14442_vm8, %v1444_v15, %v1440_v53  ;;  %v13184_v15 = vmul.f32 %v14530_v13, %v789_v11  ;;  %v1118_v53 = vsel %vm1056_vm9, %v13159_v62, -3e+38  ;;  %v12016_v13 = vmov 0.0|0.0  }
 0x3a2   :  { %v13162_v36 = vsel %vm492_vm1, %v1445_v22, %v1641_v4  ;;  %v2050_v22 = vld [vmem:[%s14290_s3] sm:$0xff]  ;;  %10652 = vmatprep.subr.bf16.mxu1 %v12016_v13 }
 0x3a3   :  { %980 = vadd.xlane.f32.xlu1 %v13159_v62  ;;  %1237 = vmax.xlane.f32.xlu0 %v1116_v50  ;;  %14630 = vst [vmem:[#allocation90_spill] sm:$0xff] %v13184_v15  ;;  %v2051_v50 = vld [vmem:[%s14290_s3 + $0x8] sm:$0xff]  ;;  %v1119_v62 = vsel %vm1056_vm9, %v13129_v59, -3e+38  ;;  %v1120_v59 = vsel %vm1056_vm9, %v13173_v37, -3e+38 }
 0x3a4   :  { %v13168_v34 = vpop.xlane.xlu0 %1191  ;;  %v13170_v56 = vpop.xlane.xlu1 %940  ;;  %v10653_v11 = vpack.c.bf16 %v2051_v50, %v2050_v22  ;;  %v2052_v22 = vld [vmem:[%s14290_s3 + $0x10] sm:$0xff]  ;;  %v2053_v50 = vld [vmem:[%s14290_s3 + $0x18] sm:$0xff] }
 0x3a6   :  { %10654 = vmatpush3.bf16.msra.mxu1 %v10653_v11  ;;  %v10656_v11 = vpack.c.bf16 %v2053_v50, %v2052_v22 }
 0x3a7   :  { %984 = vadd.xlane.f32.xlu1 %v13173_v37  ;;  %1239 = vmax.xlane.f32.xlu0 %v1117_v38  ;;  %v2055_v37 = vld [vmem:[%s14290_s3 + $0x28] sm:$0xff] }
 0x3a8   :  { %v13179_v4 = vpop.xlane.xlu0 %1151  ;;  %v13181_v48 = vpop.xlane.xlu1 %1139  ;;  %10655 = vmatprep.subr.bf16.mxu1 %v12016_v13  ;;  %v10659_v22 = vpack.c.bf16 %v2055_v37, %v2054_v26  ;;  %v2059_v26 = vld [vmem:[%s14290_s3 + $0x48] sm:$0xff] }
 0x3aa   :  { %10657 = vmatpush3.bf16.msra.mxu1 %v10656_v11  ;;  %v2056_v11 = vld [vmem:[%s14290_s3 + $0x30] sm:$0xff] }
 0x3ab   :  { %988 = vadd.xlane.f32.xlu1 %v13184_v15  ;;  %1241 = vmax.xlane.f32.xlu0 %v1118_v53  ;;  %v1115_v53 = vsel %vm1056_vm9, %v13109_v3, -3e+38 }
 0x3ac   :  { %v13196_v39 = vpop.xlane.xlu0 %1167  ;;  %v13198_v38 = vpop.xlane.xlu1 %1155  ;;  %10658 = vmatprep.subr.bf16.mxu1 %v12016_v13 }
 0x3ae   :  { %10660 = vmatpush3.bf16.msra.mxu1 %v10659_v22 }
 0x3af   :  { %1243 = vmax.xlane.f32.xlu0 %v1119_v62  ;;  %1235 = vmax.xlane.f32.xlu1 %v1115_v53  ;;  %v1114_v62 = vsel %vm1056_vm9, %v13017_v51, -3e+38  ;;  %v1121_v51 = vsel %vm1056_vm9, %v13144_v21, -3e+38  ;;  %v2057_v21 = vld [vmem:[%s14290_s3 + $0x38] sm:$0xff] }
 0x3b0   :  { %v13206_v47 = vpop.xlane.xlu0 %1195  ;;  %v13208_v12 = vpop.xlane.xlu1 %1145  ;;  %10661 = vmatprep.subr.bf16.mxu1 %v12016_v13  ;;  %v10662_v60 = vpack.c.bf16 %v2057_v21, %v2056_v11  ;;  %v2060_v21 = vld [vmem:[%s14290_s3 + $0x50] sm:$0xff] }
 0x3b1   :  { %14631 = vst [vmem:[#allocation91_spill] sm:$0xff] %v13206_v47 }
 0x3b2   :  { %10663 = vmatpush3.bf16.msra.mxu1 %v10662_v60  ;;  %v2061_v60 = vld [vmem:[%s14290_s3 + $0x58] sm:$0xff] }
 0x3b3   :  { %1245 = vmax.xlane.f32.xlu0 %v1120_v59  ;;  %1233 = vmax.xlane.f32.xlu1 %v1114_v62  ;;  %v1122_v59 = vsel %vm1056_vm9, %v13184_v15, -3e+38  ;;  %v10668_v11 = vpack.c.bf16 %v2061_v60, %v2060_v21  ;;  %v2064_v21 = vld [vmem:[%s14290_s3 + $0x70] sm:$0xff]  ;;  %v2065_v60 = vld [vmem:[%s14290_s3 + $0x78] sm:$0xff]  ;;  %vm12017_vm9 = vmmov 0  }
 0x3b4   :  { %v913_v53 = vpop.xlane.xlu0 %912  ;;  %v13222_v3 = vpop.xlane.xlu1 %1161  ;;  %10664 = vmatprep.subr.bf16.mxu1 %v12016_v13  ;;  %10617 = vmatprep.mubr.msk.f32.mxu1 %vm12017_vm9, %v12018_v8  ;;  %vm14648_vm9 = vcmask 654912  }
 0x3b5   :  { %v1015_v8 = vmul.f32 0.03125, %v913_v53  ;;  %v1024_v53 = vmul.f32 0.03125, %v13085_v32 }
 0x3b7   :  { %1247 = vmax.xlane.f32.xlu0 %v1121_v51  ;;  %1249 = vmax.xlane.f32.xlu1 %v1122_v59  ;;  %v2058_v51 = vld [vmem:[%s14290_s3 + $0x40] sm:$0xff] }
 0x3b8   :  { %v915_v50 = vpop.xlane.xlu0 %914  ;;  %v13236_v62 = vpop.xlane.xlu1 %1187  ;;  %v10665_v37 = vpack.c.bf16 %v2059_v26, %v2058_v51  ;;  %v2062_v51 = vld [vmem:[%s14290_s3 + $0x60] sm:$0xff]  ;;  %v2063_v26 = vld [vmem:[%s14290_s3 + $0x68] sm:$0xff]  ;;  %s12021_s3 = smov [#allocation16]  }
 0x3b9   :  { %s9435_s16 = sshll.u32 %s12021_s3, 4  ;;  %s9436_s16 = int_to_ptr.vmem [resolvable:$true] %s9435_s16 }
 0x3ba   :  { %10666 = vmatpush3.bf16.msra.mxu1 %v10665_v37  ;;  %v10671_v37 = vpack.c.bf16 %v2063_v26, %v2062_v51  ;;  %s11968_s28 = scalar_lea.vmem %s9436_s16, 128  ;;  %p11973_p9 = scmp.lt.s32.totalorder %s9436_s16, %s9436_s16 }
 0x3bb   :  { %10667 = vmatprep.subr.bf16.mxu1 %v12016_v13  ;;  %p11969_p8 = scmp.ne.s32.totalorder %s9436_s16, %s11968_s28  ;;  %p11974_p10 = scmp.lt.s32.totalorder %s11968_s28, %s11968_s28 }
 0x3bc   :  { %v917_v46 = vpop.xlane.xlu0 %916  ;;  %v13244_v9 = vpop.xlane.xlu1 %1149 }
 0x3bd   :  { %p11975_p11 = por %p11974_p10, %p11973_p9 }
 0x3be   :  { %10669 = vmatpush3.bf16.msra.mxu1 %v10668_v11  ;;  %v10674_v11 = vpack.c.bf16 %v2065_v60, %v2064_v21 }
 0x3bf   :  { %10670 = vmatprep.subr.bf16.mxu1 %v12016_v13  ;;  %p11976_p12 = pnand %p11975_p11, %p11969_p8 }
 0x3c0   :  { %v13252_v59 = vpop.xlane.xlu1 %1165  ;;  %v13254_v22 = vpop.xlane.xlu0 %942 }
 0x3c2   :  { %10672 = vmatpush3.bf16.msra.mxu1 %v10671_v37 }
 0x3c3   :  { %10673 = vmatprep.subr.bf16.mxu1 %v12016_v13 }
 0x3c4   :  { %v13262_v15 = vpop.xlane.xlu1 %1193  ;;  %v919_v24 = vpop.xlane.xlu0 %918 }
 0x3c5   :  { %v1018_v47 = vmul.f32 0.03125, %v919_v24 }
 0x3c6   :  { %10675 = vmatpush3.bf16.msra.mxu1 %v10674_v11 }
 0x3c7   :  { %v1468_v24 = vrot.slane %v1018_v47, %v12846_v45 }
 0x3c8   :  { %v13270_v31 = vpop.xlane.xlu1 %1153  ;;  %v13272_v5 = vpop.xlane.xlu0 %946 }
 0x3c9   :  { %14632 = vst [vmem:[#allocation92_spill] sm:$0xff] %v13272_v5 }
 0x3cc   :  { %v13280_v40 = vpop.xlane.xlu1 %1169  ;;  %v13282_v51 = vpop.xlane.xlu0 %960 }
 0x3cd   :  { %14633 = vst [vmem:[#allocation93_spill] sm:$0xff] %v13280_v40  ;;  %14634 = vst [vmem:[#allocation94_spill] sm:$0xff] %v13282_v51  ;;  %v1016_v51 = vmul.f32 0.03125, %v915_v50 }
 0x3d0   :  { %v13284_v26 = vpop.xlane.xlu1 %1197  ;;  %v921_v37 = vpop.xlane.xlu0 %920 }
 0x3d1   :  { %14635 = vst [vmem:[#allocation95_spill] sm:$0xff] %v13284_v26  ;;  %v1453_v26 = vrot.slane %v1015_v8, %v12843_v49  ;;  %v1026_v8 = vmul.f32 0.03125, %v13126_v17 }
 0x3d4   :  { %v13286_v6 = vpop.xlane.xlu1 %1199  ;;  %v13288_v7 = vpop.xlane.xlu0 %948 }
 0x3d5   :  { %14636 = vst [vmem:[#allocation96_spill] sm:$0xff] %v13286_v6  ;;  %14637 = vst [vmem:[#allocation97_spill] sm:$0xff] %v13288_v7 }
 0x3d8   :  { %v13290_v16 = vpop.xlane.xlu1 %1201  ;;  %v923_v23 = vpop.xlane.xlu0 %922 }
 0x3d9   :  { %14638 = vst [vmem:[#allocation98_spill] sm:$0xff] %v13290_v16  ;;  %v1017_v16 = vmul.f32 0.03125, %v917_v46  ;;  %v1027_v46 = vmul.f32 0.03125, %v13155_v43  ;;  %v1020_v43 = vmul.f32 0.03125, %v923_v23 }
 0x3db   :  { %v1512_v17 = vrot.slane %v1027_v46, %v12861_v0 }
 0x3dc   :  { %v911_v13 = vpop.xlane.xlu1 %910  ;;  %v13292_v21 = vpop.xlane.xlu0 %950 }
 0x3dd   :  { %14639 = vst [vmem:[#allocation99_spill] sm:$0xff] %v13292_v21  ;;  %v1014_v60 = vmul.f32 0.03125, %v911_v13  ;;  %v1458_v21 = vrot.slane %v1016_v51, %v12865_v54  ;;  %v1025_v13 = vmul.f32 0.03125, %v13106_v14  ;;  %v1019_v51 = vmul.f32 0.03125, %v921_v37 }
 0x3de   :  { %v1028_v37 = vmul.f32 0.03125, %v13069_v55  ;;  %v1478_v55 = vrot.slane %v1020_v43, %v12893_v61 }
 0x3df   :  { %v1449_v11 = vrot.slane %v1014_v60, %v12839_v10  ;;  %v1502_v14 = vrot.slane %v1025_v13, %v12910_v29 }
 0x3e0   :  { %v13294_v2 = vpop.xlane.xlu1 %944  ;;  %v13296_v40 = vpop.xlane.xlu0 %966 }
 0x3e1   :  { %14640 = vst [vmem:[#allocation100_spill] sm:$0xff] %v13296_v40  ;;  %v1454_v5 = vsel %vm1324_vm10, %v1453_v26, %v1449_v11  ;;  %v1497_v26 = vrot.slane %v1024_v53, %v12865_v54  ;;  %v1507_v11 = vrot.slane %v1026_v8, %v12846_v45 }
 0x3e2   :  { %v1459_v40 = vsel %vm1331_vm11, %v1458_v21, %v1454_v5 }
 0x3e4   :  { %v13300_v6 = vpop.xlane.xlu1 %958  ;;  %v13302_v7 = vpop.xlane.xlu0 %954 }
 0x3e5   :  { %14641 = vst [vmem:[#allocation101_spill] sm:$0xff] %v13302_v7  ;;  %v1463_v7 = vrot.slane %v1017_v16, %v12910_v29  ;;  %v1029_v16 = vmul.f32 0.03125, %v13170_v56 }
 0x3e7   :  { %v1464_v32 = vsel %vm1338_vm12, %v1463_v7, %v1459_v40  ;;  %v1498_v7 = vsel %vm1331_vm11, %v1497_v26, %v13073_v52  ;;  %v1473_v40 = vrot.slane %v1019_v51, %v12861_v0  ;;  %v1517_v52 = vrot.slane %v1028_v37, %v12893_v61 }
 0x3e8   :  { %v13309_v60 = vpop.xlane.xlu1 %962  ;;  %v13311_v50 = vpop.xlane.xlu0 %970  ;;  %v1469_v53 = vsel %vm1345_vm13, %v1468_v24, %v1464_v32  ;;  %v1503_v47 = vsel %vm1338_vm12, %v1502_v14, %v1498_v7  ;;  %v1522_v32 = vrot.slane %v1029_v16, %v12907_v42 }
 0x3e9   :  { %14642 = vst [vmem:[#allocation102_spill] sm:$0xff] %v13311_v50  ;;  %v1508_v8 = vsel %vm1345_vm13, %v1507_v11, %v1503_v47  ;;  %v1474_v56 = vsel %vm1352_vm14, %v1473_v40, %v1469_v53 }
 0x3ea   :  { %v1513_v23 = vsel %vm1352_vm14, %v1512_v17, %v1508_v8  ;;  %v1479_v51 = vsel %vm1359_vm7, %v1478_v55, %v1474_v56 }
 0x3eb   :  { %v1518_v11 = vsel %vm1359_vm7, %v1517_v52, %v1513_v23 }
 0x3ec   :  { %v13320_v5 = vpop.xlane.xlu1 %964  ;;  %v13322_v21 = vpop.xlane.xlu0 %1173  ;;  %v1523_v17 = vsel %vm14442_vm8, %v1522_v32, %v1518_v11 }
 0x3f0   :  { %v925_v13 = vpop.xlane.xlu1 %924  ;;  %v13333_v50 = vpop.xlane.xlu0 %1175 }
 0x3f1   :  { %v1021_v46 = vmul.f32 0.03125, %v925_v13 }
 0x3f3   :  { %v1483_v26 = vrot.slane %v1021_v46, %v12907_v42  ;;  %v1779_v42 = vrot.slane %v13095_v25, %v12930_v19  ;;  %v1818_v25 = vrot.slane %v13115_v20, %v12930_v19 }
 0x3f4   :  { %v13343_v14 = vpop.xlane.xlu1 %952  ;;  %v13345_v24 = vpop.xlane.xlu0 %1205 }
 0x3f5   :  { %v1484_v53 = vsel %vm14442_vm8, %v1483_v26, %v1479_v51  ;;  %v1770_v51 = vrot.slane %v13181_v48, %v12919_v30  ;;  %v1813_v48 = vrot.slane %v13104_v63, %v12914_v58  ;;  %vm14650_vm8 = vcmask 720512  }
 0x3f6   :  { %v1643_v16 = vsel %vm14443_vm2, %v1484_v53, %v13162_v36  ;;  %v1794_v63 = vrot.slane %v13244_v9, %v12940_v41  ;;  %vm14654_vm2 = vcmask 654912  }
 0x3f7   :  { %v13353_v43 = vsel %vm14441_vm3, %v1523_v17, %v1643_v16  ;;  %v1774_v17 = vrot.slane %v13083_v28, %v12914_v58  ;;  %v1809_v16 = vrot.slane %v13198_v38, %v12919_v30  ;;  %vm14649_vm3 = vmmov %vm14648_vm9  ;;  %v1823_v38 = vrot.slane %v13222_v3, %v12926_v33 }
 0x3f8   :  { %14643 = vst [vmem:[#allocation103_spill] sm:$0xff] %v13353_v43  ;;  %v13355_v37 = vpop.xlane.xlu1 %968  ;;  %v13357_v7 = vpop.xlane.xlu0 %1179 }
 0x3f9   :  { %v1775_v43 = vsel %vm14648_vm9, %v1774_v17, %v1770_v51  ;;  %v1814_v28 = vsel %vm14649_vm3, %v1813_v48, %v1809_v16  ;;  %vm14651_vm9 = vcmask 786112   ;;  %v1789_v17 = vrot.slane %v13124_v18, %v12948_v44  ;;  %vm14652_vm3 = vmmov %vm14650_vm8 }
 0x3fa   :  { %v1833_v18 = vrot.slane %v13252_v59, %v12940_v41  ;;  %v1828_v48 = vrot.slane %v13153_v57, %v12948_v44  ;;  %v14656_v57 = vld [vmem:[#allocation91_spill] sm:$0xff] }
 0x3fc   :  { %v13359_v40 = vpop.xlane.xlu1 %956  ;;  %v13361_v47 = vpop.xlane.xlu0 %1207 }
 0x400   :  { %v13363_v13 = vpop.xlane.xlu1 %972  ;;  %v13365_v8 = vpop.xlane.xlu0 %1221 }
 0x404   :  { %v13367_v46 = vpop.xlane.xlu1 %1171  ;;  %v13369_v56 = vpop.xlane.xlu0 %1223 }
 0x405   :  { %14644 = vst [vmem:[#allocation104_spill] sm:$0xff] %v13369_v56  ;;  %v1780_v56 = vsel %vm14650_vm8, %v1779_v42, %v1775_v43  ;;  %v1891_v42 = vrot.slane %v13138_v35, %v12914_v58  ;;  %vm14653_vm8 = vmmov %vm14651_vm9  ;;  %v1901_v35 = vrot.slane %v13262_v15, %v12926_v33  ;;  %v1838_v15 = vrot.slane %v13196_v39, %v12974_v27 }
 0x408   :  { %v13371_v36 = vpop.xlane.xlu1 %1177  ;;  %v13373_v23 = vpop.xlane.xlu0 %1183 }
 0x40c   :  { %v13375_v32 = vpop.xlane.xlu0 %1211  ;;  %v13377_v55 = vpop.xlane.xlu1 %1203 }
 0x40d   :  { %14645 = vst [vmem:[#allocation105_spill] sm:$0xff] %v13375_v32 }
 0x410   :  { %v13379_v52 = vpop.xlane.xlu0 %1185  ;;  %v13381_v26 = vpop.xlane.xlu1 %1219 }
 0x411   :  { %14646 = vst [vmem:[#allocation106_spill] sm:$0xff] %v13379_v52  ;;  %v1784_v52 = vrot.slane %v13208_v12, %v12926_v33  ;;  %v1887_v12 = vrot.slane %v13236_v62, %v12919_v30  ;;  %v1819_v62 = vsel %vm14652_vm3, %v1818_v25, %v1814_v28  ;;  %v1896_v28 = vrot.slane %v13168_v34, %v12930_v19 }
 0x412   :  { %v1824_v16 = vsel %vm14653_vm8, %v1823_v38, %v1819_v62  ;;  %v1799_v38 = vrot.slane %v13179_v4, %v12974_v27 }
 0x413   :  { %v1785_v51 = vsel %vm14651_vm9, %v1784_v52, %v1780_v56  ;;  %v1892_v20 = vsel %vm14654_vm2, %v1891_v42, %v1887_v12  ;;  %v1031_v52 = vmul.f32 0.03125, %v13294_v2  ;;  %v1804_v12 = vrot.slane %v13270_v31, %v12969_v1  ;;  %vm14657_vm2 = vmmov %vm14652_vm3  ;;  %v14659_v42 = vld [vmem:[#allocation92_spill] sm:$0xff] }
 0x414   :  { %v13385_v11 = vpop.xlane.xlu0 %1213  ;;  %v13387_v53 = vpop.xlane.xlu1 %1181  ;;  %v1790_v56 = vsel %vm1744_vm4, %v1789_v17, %v1785_v51  ;;  %v1030_v2 = vmul.f32 0.03125, %v13254_v22  ;;  %v1906_v51 = vrot.slane %v14656_v57, %v12948_v44  ;;  %v1829_v34 = vsel %vm1744_vm4, %v1828_v48, %v1824_v16  ;;  %vm14658_vm9 = vmmov %vm14653_vm8  ;;  %v14660_v22 = vld [vmem:[#allocation93_spill] sm:$0xff]  ;;  %v14661_v57 = vld [vmem:[#allocation95_spill] sm:$0xff] }
 0x415   :  { %14647 = vst [vmem:[#allocation107_spill] sm:$0xff] %v13385_v11  ;;  %v1795_v9 = vsel %vm1751_vm6, %v1794_v63, %v1790_v56  ;;  %v1897_v63 = vsel %vm14657_vm2, %v1896_v28, %v1892_v20  ;;  %v1834_v31 = vsel %vm1751_vm6, %v1833_v18, %v1829_v34  ;;  %v1032_v62 = vmul.f32 0.03125, %v14659_v42  ;;  %vm14673_vm8 = vmmov %vm14657_vm2 }
 0x416   :  { %v1800_v4 = vsel %vm1758_vm5, %v1799_v38, %v1795_v9  ;;  %v1902_v17 = vsel %vm14658_vm9, %v1901_v35, %v1897_v63  ;;  %v1531_v56 = vrot.slane %v1031_v52, %v12843_v49  ;;  %v1911_v16 = vrot.slane %v14661_v57, %v12940_v41  ;;  %v14663_v35 = vld [vmem:[#allocation94_spill] sm:$0xff]  ;;  %v14664_v52 = vld [vmem:[#allocation96_spill] sm:$0xff]  ;;  %v14665_v63 = vld [vmem:[#allocation97_spill] sm:$0xff] }
 0x417   :  { %v1805_v39 = vsel %vm1765_vm15, %v1804_v12, %v1800_v4  ;;  %v1038_v20 = vmul.f32 0.03125, %v13300_v6  ;;  %v1527_v18 = vrot.slane %v1030_v2, %v12839_v10  ;;  %v1039_v28 = vmul.f32 0.03125, %v14663_v35  ;;  %v14666_v6 = vld [vmem:[#allocation88_spill] sm:$0xff]  ;;  %vm14674_vm2 = vmmov %vm14658_vm9 }
 0x418   :  { %v13400_v11 = vpop.xlane.xlu0 %1215  ;;  %v13402_v32 = vpop.xlane.xlu1 %1209  ;;  %v1916_v38 = vrot.slane %v14664_v52, %v12974_v27  ;;  %v1040_v12 = vmul.f32 0.03125, %v13309_v60  ;;  %v1839_v34 = vsel %vm1758_vm5, %v1838_v15, %v1834_v31  ;;  %v1033_v4 = vmul.f32 0.03125, %v14665_v63  ;;  %v14667_v60 = vld [vmem:[#allocation98_spill] sm:$0xff] }
 0x419   :  { %v1041_v42 = vmul.f32 0.03125, %v13320_v5  ;;  %v1536_v57 = vrot.slane %v1032_v62, %v12865_v54  ;;  %v1907_v2 = vsel %vm1744_vm4, %v1906_v51, %v1902_v17  ;;  %v1532_v35 = vsel %vm1324_vm10, %v1531_v56, %v1527_v18  ;;  %v14668_v56 = vld [vmem:[#allocation99_spill] sm:$0xff] }
 0x41a   :  { %v1912_v52 = vsel %vm1751_vm6, %v1911_v16, %v1907_v2  ;;  %v1921_v15 = vrot.slane %v14667_v60, %v12969_v1  ;;  %v1566_v31 = vrot.slane %v1038_v20, %v12839_v10  ;;  %v1575_v51 = vrot.slane %v1040_v12, %v12865_v54 }
 0x41b   :  { %v1917_v62 = vsel %vm1758_vm5, %v1916_v38, %v1912_v52  ;;  %v1541_v17 = vrot.slane %v1033_v4, %v12910_v29  ;;  %v1034_v16 = vmul.f32 0.03125, %v14668_v56  ;;  %v1537_v18 = vsel %vm1331_vm11, %v1536_v57, %v1532_v35  ;;  %v14670_v57 = vld [vmem:[#allocation101_spill] sm:$0xff] }
 0x41c   :  { %v13419_v43 = vpop.xlane.xlu0 %1217  ;;  %v13421_v3 = vpop.xlane.xlu1 %1225  ;;  %v1580_v20 = vrot.slane %v1041_v42, %v12910_v29  ;;  %v1035_v38 = vmul.f32 0.03125, %v13343_v14  ;;  %v1043_v12 = vmul.f32 0.03125, %v13355_v37  ;;  %v1036_v35 = vmul.f32 0.03125, %v14670_v57 }
 0x41d   :  { %vm14671_vm3 = vcmask 654912   ;;  %v1862_v37 = vrot.slane %v13371_v36, %v12926_v33 }
 0x41e   :  { %v1556_v36 = vrot.slane %v1036_v35, %v12893_v61  ;;  %vm14675_vm9 = vmmov %vm14671_vm3 }
 0x420   :  { %v13441_v25 = vpop.xlane.xlu1 %1227  ;;  %v13443_v59 = vpop.xlane.xlu0 %974 }
 0x421   :  { %14655 = vst [vmem:[#allocation108_spill] sm:$0xff] %v13441_v25  ;;  %v1843_v25 = vrot.slane %v14660_v22, %v12969_v1  ;;  %v2040_v22 = vsel %vm490_vm0, %v1805_v39, %v14666_v6  ;;  %v1570_v39 = vrot.slane %v1039_v28, %v12843_v49  ;;  %v1852_v28 = vrot.slane %v13322_v21, %v12914_v58 }
 0x422   :  { %v1542_v21 = vsel %vm1338_vm12, %v1541_v17, %v1537_v18  ;;  %v1551_v17 = vrot.slane %v1035_v38, %v12861_v0 }
 0x423   :  { %v1571_v4 = vsel %vm1324_vm10, %v1570_v39, %v1566_v31  ;;  %v1926_v31 = vrot.slane %v13377_v55, %v12919_v30 }
 0x424   :  { %v13463_v48 = vpop.xlane.xlu1 %1229  ;;  %v13465_v9 = vpop.xlane.xlu0 %978  ;;  %v1576_v60 = vsel %vm1331_vm11, %v1575_v51, %v1571_v4 }
 0x425   :  { %14662 = vst [vmem:[#allocation91_spill] sm:$0xff] %v13463_v48  ;;  %v1844_v48 = vsel %vm1765_vm15, %v1843_v25, %v1839_v34  ;;  %v1848_v25 = vrot.slane %v13367_v46, %v12919_v30  ;;  %v14669_v34 = vld [vmem:[#allocation100_spill] sm:$0xff]  ;;  %v13507_v46 = vsel %vm1765_vm15, %v1921_v15, %v1917_v62  ;;  %v1857_v15 = vrot.slane %v13333_v50, %v12930_v19  ;;  %v14672_v62 = vld [vmem:[#allocation102_spill] sm:$0xff] }
 0x426   :  { %v1042_v6 = vmul.f32 0.03125, %v14669_v34  ;;  %v13504_v2 = vsel %vm492_vm1, %v1844_v48, %v2040_v22  ;;  %v1546_v48 = vrot.slane %v1034_v16, %v12846_v45  ;;  %v1581_v22 = vsel %vm1338_vm12, %v1580_v20, %v1576_v60 }
 0x427   :  { %v1853_v14 = vsel %vm14671_vm3, %v1852_v28, %v1848_v25  ;;  %v1044_v51 = vmul.f32 0.03125, %v14672_v62  ;;  %v1590_v25 = vrot.slane %v1043_v12, %v12861_v0  ;;  %v1930_v16 = vrot.slane %v13345_v24, %v12914_v58  ;;  %vm14676_vm3 = vmmov %vm14673_vm8  ;;  %v14679_v62 = vld [vmem:[#allocation105_spill] sm:$0xff] }
 0x428   :  { %v13485_v63 = vpop.xlane.xlu1 %1231  ;;  %v13487_v5 = vpop.xlane.xlu0 %982  ;;  %v1585_v39 = vrot.slane %v1042_v6, %v12846_v45  ;;  %v1547_v56 = vsel %vm1345_vm13, %v1546_v48, %v1542_v21  ;;  %v1858_v50 = vsel %vm14673_vm8, %v1857_v15, %v1853_v14  ;;  %v1867_v34 = vrot.slane %v13357_v7, %v12948_v44  ;;  %vm14677_vm8 = vmmov %vm14675_vm9 }
 0x429   :  { %v1863_v6 = vsel %vm14674_vm2, %v1862_v37, %v1858_v50  ;;  %v1872_v28 = vrot.slane %v13387_v53, %v12940_v41  ;;  %v1931_v38 = vsel %vm14675_vm9, %v1930_v16, %v1926_v31  ;;  %v1965_v24 = vrot.slane %v13381_v26, %v12919_v30  ;;  %vm14682_vm9 = vmmov %vm14676_vm3 }
 0x42a   :  { %v1586_v55 = vsel %vm1345_vm13, %v1585_v39, %v1581_v22  ;;  %v1940_v12 = vrot.slane %v13402_v32, %v12926_v33  ;;  %v1595_v57 = vrot.slane %v1044_v51, %v12893_v61  ;;  %v1552_v35 = vsel %vm1352_vm14, %v1551_v17, %v1547_v56  ;;  %v14678_v39 = vld [vmem:[#allocation104_spill] sm:$0xff]  ;;  %v14680_v17 = vld [vmem:[#allocation87_spill] sm:$0xff] }
 0x42b   :  { %v1591_v7 = vsel %vm1352_vm14, %v1590_v25, %v1586_v55  ;;  %v1935_v60 = vrot.slane %v13361_v47, %v12930_v19  ;;  %v13552_v53 = vmul.f32 0.03125, %v13359_v40  ;;  %v1969_v21 = vrot.slane %v13365_v8, %v12914_v58  ;;  %v14681_v55 = vld [vmem:[#allocation106_spill] sm:$0xff] }
 0x42c   :  { %v977_v42 = vpop.xlane.xlu1 %976  ;;  %v13511_v52 = vpop.xlane.xlu0 %986  ;;  %v1868_v26 = vsel %vm1744_vm4, %v1867_v34, %v1863_v6  ;;  %v1046_v32 = vmul.f32 0.03125, %v13443_v59  ;;  %v13559_v37 = vmul.f32 0.03125, %v13363_v13  ;;  %v1877_v48 = vrot.slane %v13373_v23, %v12974_v27 }
 0x42d   :  { %v1047_v4 = vmul.f32 0.03125, %v977_v42  ;;  %v1873_v47 = vsel %vm1751_vm6, %v1872_v28, %v1868_v26  ;;  %v1936_v40 = vsel %vm14676_vm3, %v1935_v60, %v1931_v38  ;;  %v1970_v22 = vsel %vm14677_vm8, %v1969_v21, %v1965_v24  ;;  %v14683_v28 = vld [vmem:[#allocation107_spill] sm:$0xff] }
 0x42e   :  { %v1941_v8 = vsel %vm14674_vm2, %v1940_v12, %v1936_v40  ;;  %v1557_v59 = vsel %vm1359_vm7, %v1556_v36, %v1552_v35  ;;  %v1974_v13 = vrot.slane %v14678_v39, %v12930_v19  ;;  %v1945_v51 = vrot.slane %v14679_v62, %v12948_v44 }
 0x42f   :  { %v1609_v15 = vrot.slane %v1047_v4, %v12843_v49  ;;  %v1048_v23 = vmul.f32 0.03125, %v13465_v9  ;;  %v1561_v25 = vrot.slane %v13552_v53, %v14680_v17  ;;  %v1596_v56 = vsel %vm1359_vm7, %v1595_v57, %v1591_v7 }
 0x430   :  { %v981_v18 = vpop.xlane.xlu1 %980  ;;  %v13533_v20 = vpop.xlane.xlu0 %1237  ;;  %v1878_v16 = vsel %vm1758_vm5, %v1877_v48, %v1873_v47  ;;  %v1605_v49 = vrot.slane %v1046_v32, %v12839_v10  ;;  %v1600_v36 = vrot.slane %v13559_v37, %v14680_v17  ;;  %v1882_v34 = vrot.slane %v14681_v55, %v12969_v1  ;;  %v14685_v37 = vld [vmem:[#allocation91_spill] sm:$0xff] }
 0x431   :  { %v1049_v31 = vmul.f32 0.03125, %v981_v18  ;;  %v1946_v6 = vsel %vm1744_vm4, %v1945_v51, %v1941_v8  ;;  %v1975_v9 = vsel %vm14682_vm9, %v1974_v13, %v1970_v22  ;;  %v1950_v38 = vrot.slane %v14683_v28, %v12940_v41 }
 0x432   :  { %v1610_v24 = vsel %vm1324_vm10, %v1609_v15, %v1605_v49  ;;  %v1883_v4 = vsel %vm1765_vm15, %v1882_v34, %v1878_v16  ;;  %v1955_v57 = vrot.slane %v13400_v11, %v12974_v27  ;;  %v1614_v35 = vrot.slane %v1048_v23, %v12865_v54  ;;  %vm14686_vm10 = vmmov %vm14677_vm8 }
 0x433   :  { %v1619_v12 = vrot.slane %v1049_v31, %v12910_v29  ;;  %v1050_v7 = vmul.f32 0.03125, %v13487_v5  ;;  %v1951_v60 = vsel %vm1751_vm6, %v1950_v38, %v1946_v6  ;;  %v1960_v53 = vrot.slane %v13419_v43, %v12969_v1  ;;  %v14684_v29 = vld [vmem:[#allocation108_spill] sm:$0xff]  ;;  %v14696_v38 = vld [vmem:[#allocation103_spill] sm:$0xff] }
 0x434   :  { %v985_v42 = vpop.xlane.xlu1 %984  ;;  %v1240_v14 = vpop.xlane.xlu0 %1239  ;;  %v1979_v21 = vrot.slane %v13421_v3, %v12926_v33  ;;  %v1984_v26 = vrot.slane %v14684_v29, %v12948_v44  ;;  %v1989_v11 = vrot.slane %v14685_v37, %v12940_v41  ;;  %v1615_v54 = vsel %vm1331_vm11, %v1614_v35, %v1610_v24  ;;  %vm14687_vm11 = vmmov %vm14674_vm2  ;;  %v14702_v29 = vld [vmem:[#allocation25_spill] sm:$0xff] }
 0x435   :  { %v1051_v10 = vmul.f32 0.03125, %v985_v42  ;;  %v2008_v5 = vrot.slane %v13533_v20, %v12914_v58  ;;  %v1620_v43 = vsel %vm1338_vm12, %v1619_v12, %v1615_v54  ;;  %v2013_v3 = vrot.slane %v1240_v14, %v12930_v19  ;;  %vm14688_vm12 = vmmov %vm14676_vm3 }
 0x436   :  { %v1624_v22 = vrot.slane %v1050_v7, %v12846_v45  ;;  %v1052_v8 = vmul.f32 0.03125, %v13511_v52  ;;  %v1956_v39 = vsel %vm1758_vm5, %v1955_v57, %v1951_v60  ;;  %v1980_v58 = vsel %vm14687_vm11, %v1979_v21, %v1975_v9  ;;  %vm14689_vm3 = vmmov %vm14674_vm2 }
 0x437   :  { %v1629_v47 = vrot.slane %v1051_v10, %v12861_v0  ;;  %v1985_v13 = vsel %vm1744_vm4, %v1984_v26, %v1980_v58  ;;  %vm14690_vm8 = vcmask 1043459   ;;  %v1961_v55 = vsel %vm1765_vm15, %v1960_v53, %v1956_v39 }
 0x438   :  { %v989_v50 = vpop.xlane.xlu1 %988  ;;  %v1242_v18 = vpop.xlane.xlu0 %1241  ;;  %v1625_v14 = vsel %vm1345_vm13, %v1624_v22, %v1620_v43  ;;  %v2042_v23 = vsel %vm14690_vm8, %v1883_v4, %v13504_v2  ;;  %v1990_v16 = vsel %vm1751_vm6, %v1989_v11, %v1985_v13  ;;  %v1634_v49 = vrot.slane %v1052_v8, %v12893_v61 }
 0x439   :  { %v1053_v40 = vmul.f32 0.03125, %v989_v50  ;;  %v2018_v15 = vrot.slane %v1242_v18, %v12926_v33  ;;  %v1630_v62 = vsel %vm1352_vm14, %v1629_v47, %v1625_v14  ;;  %vm14691_vm13 = vcmask 523712  }
 0x43a   :  { %v1562_v50 = vsel %vm14691_vm13, %v1561_v25, %v1557_v59  ;;  %vm14692_vm2 = vmmov %vm14691_vm13  ;;  %vm14695_vm9 = vcmask 1045509   ;;  %vm14698_vm11 = vcmask 1046534  }
 0x43b   :  { %v1639_v51 = vrot.slane %v1053_v40, %v14680_v17  ;;  %v1601_v18 = vsel %vm14692_vm2, %v1600_v36, %v1596_v56  ;;  %vm14694_vm14 = vmmov %vm14692_vm2 }
 0x43c   :  { %v1244_v32 = vpop.xlane.xlu0 %1243  ;;  %v1236_v42 = vpop.xlane.xlu1 %1235 }
 0x43d   :  { %v2004_v48 = vrot.slane %v1236_v42, %v12919_v30  ;;  %v1994_v30 = vrot.slane %v13485_v63, %v12974_v27  ;;  %v2023_v45 = vrot.slane %v1244_v32, %v12948_v44  ;;  %v14703_v32 = vld [vmem:[#allocation23_spill] sm:$0xff] }
 0x43e   :  { %v13655_v42 = vsub.s32 1, %v14703_v32  ;;  %v13658_v37 = vsub.s32 2, %v14703_v32  ;;  %v13667_v43 = vsub.s32 4, %v14703_v32  ;;  %v13675_v22 = vsub.s32 6, %v14703_v32 }
 0x43f   :  { %v2009_v31 = vsel %vm14686_vm10, %v2008_v5, %v2004_v48  ;;  %v1995_v34 = vsel %vm1758_vm5, %v1994_v30, %v1990_v16  ;;  %vm14697_vm10 = vmmov %vm14695_vm9  ;;  %v13663_v5 = vsub.s32 3, %v14703_v32  ;;  %v14704_v30 = vld [vmem:[#allocation29_spill] sm:$0xff]  ;;  %v14708_v16 = vld [vmem:[#allocation24_spill] sm:$0xff] }
 0x440   :  { %v2014_v0 = vsel %vm14688_vm12, %v2013_v3, %v2009_v31  ;;  %v1246_v20 = vpop.xlane.xlu0 %1245  ;;  %v1234_v19 = vpop.xlane.xlu1 %1233  ;;  %v1645_v24 = vsel %vm14697_vm10, %v1562_v50, %v14696_v38  ;;  %vm14699_vm12 = vmmov %vm14698_vm11  ;;  %v13671_v3 = vsub.s32 5, %v14703_v32  ;;  %v2614_v38 = vld [vmem:[#allocation7 + $0x40] sm:$0xff] }
 0x441   :  { %v2019_v52 = vsel %vm14689_vm3, %v2018_v15, %v2014_v0  ;;  %v1999_v33 = vrot.slane %v1234_v19, %v12969_v1  ;;  %v2028_v63 = vrot.slane %v1246_v20, %v12940_v41  ;;  %v1635_v41 = vsel %vm1359_vm7, %v1634_v49, %v1630_v62  ;;  %v14705_v20 = vld [vmem:[#allocation39_spill] sm:$0xff]  ;;  %v14706_v62 = vld [vmem:[#allocation66_spill] sm:$0xff] }
 0x442   :  { %v2024_v44 = vsel %vm1744_vm4, %v2023_v45, %v2019_v52  ;;  %vm14693_vm4 = vcmask 1044484   ;;  %v1640_v59 = vsel %vm14694_vm14, %v1639_v51, %v1635_v41  ;;  %vm2048_vm7 = vcmask 523264  }
 0x443   :  { %v2000_v2 = vsel %vm1765_vm15, %v1999_v33, %v1995_v34  ;;  %v2043_v28 = vsel %vm14693_vm4, %v13507_v46, %v2042_v23  ;;  %v2029_v25 = vsel %vm1751_vm6, %v2028_v63, %v2024_v44  ;;  %vm14700_vm3 = vcmask 1047559   ;;  %v14707_v63 = vld [vmem:[#allocation68_spill] sm:$0xff]  ;;  %v14709_v34 = vld [vmem:[#allocation58_spill] sm:$0xff]  ;;  %vm14771_vm6 = vmmov %vm14698_vm11 }
 0x444   :  { %v1248_v17 = vpop.xlane.xlu0 %1247  ;;  %v1250_v6 = vpop.xlane.xlu1 %1249  ;;  %v2044_v56 = vsel %vm14695_vm9, %v1961_v55, %v2043_v28  ;;  %vm14701_vm8 = vmmov %vm14700_vm3  ;;  %v13679_v15 = vsub.s32 7, %v14703_v32  ;;  %v14711_v28 = vld [vmem:[#allocation70_spill] sm:$0xff] }
 0x445   :  { %v2033_v9 = vrot.slane %v1248_v17, %v12974_v27  ;;  %v2038_v61 = vrot.slane %v1250_v6, %v12969_v1  ;;  %v2045_v12 = vsel %vm14698_vm11, %v2000_v2, %v2044_v56  ;;  %v1646_v1 = vsel %vm14699_vm12, %v1601_v18, %v1645_v24  ;;  %v14710_v6 = vld [vmem:[#allocation71_spill] sm:$0xff]  ;;  %v2607_v24 = vld [vmem:[#allocation7 + $0x8] sm:$0xff] }
 0x446   :  { %v1647_v46 = vsel %vm14700_vm3, %v1640_v59, %v1646_v1 }
 0x447   :  { %v2034_v36 = vsel %vm1758_vm5, %v2033_v9, %v2029_v25  ;;  %v14712_v25 = vld [vmem:[#allocation67_spill] sm:$0xff]  ;;  %vm14770_vm5 = vmmov %vm14695_vm9 }
 0x448   :  { %v2039_v27 = vsel %vm1765_vm15, %v2038_v61, %v2034_v36  ;;  %v2606_v36 = vld [vmem:[#allocation7] sm:$0xff]  ;;  %vm14772_vm15 = vmmov %vm14700_vm3 }
 0x449   :  { %v2046_v10 = vsel %vm14701_vm8, %v2039_v27, %v2045_v12  ;;  %v9454_v12 = vcombine.high %v2606_v36, %v2614_v38  ;;  %v2615_v27 = vld [vmem:[#allocation7 + $0x48] sm:$0xff]  ;;  %v9453_v1 = vcombine.low %v2606_v36, %v2614_v38  ;;  %v14718_v36 = vld [vmem:[#allocation30_spill] sm:$0xff] }
 0x44a   :  { %v2049_v4 = vsel %vm2048_vm7, %v1647_v46, %v2046_v10  ;;  %v2622_v46 = vld [vmem:[#allocation7 + $0x80] sm:$0xff] }
 0x44b   :  { %10618 = vmatmul.mubr.f32.vlgmr.msra.gmra.mrb[4].mxu1 %v2049_v4  ;;  %v2630_v10 = vld [vmem:[#allocation7 + $0xc0] sm:$0xff]  ;;  %3483 = vmatprep.subr.bf16.mxu0 %v9454_v12 }
 0x44c   :  { %v9470_v32 = vcombine.high %v2622_v46, %v2630_v10  ;;  %3484 = vmatpush1.bf16.msra.mxu0 %v9453_v1  ;;  %v2686_v1 = vld [vmem:[#allocation7 + $0x280] sm:$0xff] }
 0x44e   :  { %3485 = vmatprep.subr.bf16.mxu0 %v9470_v32  ;;  %v13709_v32 = vld [vmem:[#allocation7 + $0x10] sm:$0xff] }
 0x51e   :  { %v2132_v57 = vpop.f32.mrb[4].mxu1 }
 0x51f   :  { %v9452_v35 = vmul.f32 -1.442695, %v2132_v57  ;;  %v10619_v7 = vpop.f32.mrb[5].mxu1 }
 0x520   :  { %v9456_v7 = vcombine.high %v2607_v24, %v2615_v27 }
 0x521   :  { %11708 = vpow2.f32 %v9452_v35  ;;  %v9455_v35 = vcombine.low %v2607_v24, %v2615_v27 }
 0x522   :  { %3524 = vmatprep.subr.bf16.mxu1 %v9456_v7  ;;  %v2695_v7 = vld [vmem:[#allocation7 + $0x2c8] sm:$0xff] }
 0x523   :  { %3525 = vmatpush1.bf16.msra.mxu1 %v9455_v35  ;;  %v2687_v35 = vld [vmem:[#allocation7 + $0x288] sm:$0xff] }
 0x52b   :  { %v11709_v60 = vpop.eup %11708 }
 0x52c   :  { %v2139_v53 = vadd.f32 1.0, %v11709_v60  ;;  %v2623_v60 = vld [vmem:[#allocation7 + $0x88] sm:$0xff] }
 0x52e   :  { %11710 = vrcp.f32 %v2139_v53  ;;  %v2631_v53 = vld [vmem:[#allocation7 + $0xc8] sm:$0xff] }
 0x538   :  { %v11711_v21 = vpop.eup %11710 }
 0x539   :  { %v2145_v26 = vrot.slane %v11711_v21, %v14702_v29  ;;  %v2180_v11 = vrot.slane %v11711_v21, %v13655_v42  ;;  %v2215_v54 = vrot.slane %v11711_v21, %v13658_v37  ;;  %v2250_v48 = vrot.slane %v11711_v21, %v13663_v5 }
 0x53a   :  { %v2285_v47 = vrot.slane %v11711_v21, %v13667_v43  ;;  %v2320_v40 = vrot.slane %v11711_v21, %v13671_v3  ;;  %v2355_v8 = vrot.slane %v11711_v21, %v13675_v22  ;;  %v2390_v31 = vrot.slane %v11711_v21, %v13679_v15 }
 0x53b   :  { %2151 = vbcast.lane.b32.xlu1 %v2145_v26, 264  ;;  %2147 = vbcast.lane.b32.xlu0 %v2145_v26, 256 }
 0x53f   :  { %2182 = vbcast.lane.b32.xlu1 %v2180_v11, 256  ;;  %2217 = vbcast.lane.b32.xlu0 %v2215_v54, 256 }
 0x543   :  { %2186 = vbcast.lane.b32.xlu1 %v2180_v11, 264  ;;  %2155 = vbcast.lane.b32.xlu0 %v2145_v26, 272 }
 0x547   :  { %2221 = vbcast.lane.b32.xlu1 %v2215_v54, 264  ;;  %2252 = vbcast.lane.b32.xlu0 %v2250_v48, 256 }
 0x54b   :  { %2190 = vbcast.lane.b32.xlu1 %v2180_v11, 272  ;;  %2225 = vbcast.lane.b32.xlu0 %v2215_v54, 272 }
 0x54f   :  { %2256 = vbcast.lane.b32.xlu1 %v2250_v48, 264  ;;  %2291 = vbcast.lane.b32.xlu0 %v2285_v47, 264 }
 0x553   :  { %2287 = vbcast.lane.b32.xlu1 %v2285_v47, 256  ;;  %2194 = vbcast.lane.b32.xlu0 %v2180_v11, 280 }
 0x557   :  { %2159 = vbcast.lane.b32.xlu1 %v2145_v26, 280  ;;  %2322 = vbcast.lane.b32.xlu0 %v2320_v40, 256 }
 0x55b   :  { %2260 = vbcast.lane.b32.xlu1 %v2250_v48, 272  ;;  %2229 = vbcast.lane.b32.xlu0 %v2215_v54, 280 }
 0x55f   :  { %2326 = vbcast.lane.b32.xlu1 %v2320_v40, 264  ;;  %2357 = vbcast.lane.b32.xlu0 %v2355_v8, 256 }
 0x563   :  { %2295 = vbcast.lane.b32.xlu1 %v2285_v47, 272  ;;  %2163 = vbcast.lane.b32.xlu0 %v2145_v26, 288 }
 0x567   :  { %2361 = vbcast.lane.b32.xlu1 %v2355_v8, 264  ;;  %2264 = vbcast.lane.b32.xlu0 %v2250_v48, 280 }
 0x56b   :  { %2198 = vbcast.lane.b32.xlu1 %v2180_v11, 288  ;;  %2392 = vbcast.lane.b32.xlu0 %v2390_v31, 256 }
 0x56f   :  { %2330 = vbcast.lane.b32.xlu1 %v2320_v40, 272  ;;  %2233 = vbcast.lane.b32.xlu0 %v2215_v54, 288 }
 0x573   :  { %2396 = vbcast.lane.b32.xlu1 %v2390_v31, 264  ;;  %2365 = vbcast.lane.b32.xlu0 %v2355_v8, 272 }
 0x577   :  { %2299 = vbcast.lane.b32.xlu1 %v2285_v47, 280  ;;  %2202 = vbcast.lane.b32.xlu0 %v2180_v11, 296 }
 0x57b   :  { %2167 = vbcast.lane.b32.xlu1 %v2145_v26, 296  ;;  %2334 = vbcast.lane.b32.xlu0 %v2320_v40, 280 }
 0x57f   :  { %2268 = vbcast.lane.b32.xlu1 %v2250_v48, 288  ;;  %2237 = vbcast.lane.b32.xlu0 %v2215_v54, 296 }
 0x583   :  { %2400 = vbcast.lane.b32.xlu1 %v2390_v31, 272  ;;  %2369 = vbcast.lane.b32.xlu0 %v2355_v8, 280 }
 0x587   :  { %2303 = vbcast.lane.b32.xlu1 %v2285_v47, 288  ;;  %2206 = vbcast.lane.b32.xlu0 %v2180_v11, 304 }
 0x58b   :  { %2171 = vbcast.lane.b32.xlu1 %v2145_v26, 304  ;;  %2338 = vbcast.lane.b32.xlu0 %v2320_v40, 288 }
 0x58f   :  { %2272 = vbcast.lane.b32.xlu1 %v2250_v48, 296  ;;  %2241 = vbcast.lane.b32.xlu0 %v2215_v54, 304 }
 0x593   :  { %2404 = vbcast.lane.b32.xlu1 %v2390_v31, 280  ;;  %2373 = vbcast.lane.b32.xlu0 %v2355_v8, 288 }
 0x597   :  { %2307 = vbcast.lane.b32.xlu1 %v2285_v47, 296  ;;  %2210 = vbcast.lane.b32.xlu0 %v2180_v11, 312  ;;  %v9472_v11 = vcombine.high %v2623_v60, %v2631_v53 }
 0x599   :  { %3526 = vmatprep.subr.bf16.mxu1 %v9472_v11  ;;  %v13711_v11 = vld [vmem:[#allocation7 + $0x50] sm:$0xff] }
 0x59b   :  { %2175 = vbcast.lane.b32.xlu1 %v2145_v26, 312  ;;  %2342 = vbcast.lane.b32.xlu0 %v2320_v40, 296 }
 0x59f   :  { %2276 = vbcast.lane.b32.xlu1 %v2250_v48, 304  ;;  %2245 = vbcast.lane.b32.xlu0 %v2215_v54, 312  ;;  %v14713_v54 = vld [vmem:[#allocation31_spill] sm:$0xff] }
 0x5a3   :  { %2408 = vbcast.lane.b32.xlu1 %v2390_v31, 288  ;;  %2377 = vbcast.lane.b32.xlu0 %v2355_v8, 296 }
 0x5a7   :  { %2311 = vbcast.lane.b32.xlu1 %v2285_v47, 304  ;;  %2346 = vbcast.lane.b32.xlu0 %v2320_v40, 304 }
 0x5ab   :  { %2280 = vbcast.lane.b32.xlu1 %v2250_v48, 312  ;;  %2315 = vbcast.lane.b32.xlu0 %v2285_v47, 312  ;;  %v14714_v47 = vld [vmem:[#allocation32_spill] sm:$0xff] }
 0x5ad   :  { %v2152_v39 = vpop.permute.xlu1 %2151  ;;  %v2148_v58 = vpop.permute.xlu0 %2147 }
 0x5ae   :  { %v2423_v0 = vmul.f32 %v2152_v39, %v14704_v30  ;;  %v2422_v19 = vmul.f32 %v2148_v58, %v14705_v20  ;;  %v14715_v58 = vld [vmem:[#allocation72_spill] sm:$0xff] }
 0x5af   :  { %2412 = vbcast.lane.b32.xlu1 %v2390_v31, 296  ;;  %2350 = vbcast.lane.b32.xlu0 %v2320_v40, 312 }
 0x5b0   :  { %v2486_v14 = vadd.f32 %v2423_v0, %v2422_v19  ;;  %v2638_v19 = vld [vmem:[#allocation7 + $0x100] sm:$0xff] }
 0x5b1   :  { %v2183_v45 = vpop.permute.xlu1 %2182  ;;  %v2218_v52 = vpop.permute.xlu0 %2217 }
 0x5b2   :  { %v2430_v51 = vmul.f32 %v2183_v45, %v14706_v62  ;;  %v2438_v17 = vmul.f32 %v2218_v52, %v14709_v34  ;;  %v2639_v45 = vld [vmem:[#allocation7 + $0x108] sm:$0xff]  ;;  %v14716_v52 = vld [vmem:[#allocation78_spill] sm:$0xff] }
 0x5b3   :  { %2381 = vbcast.lane.b32.xlu1 %v2355_v8, 304  ;;  %2385 = vbcast.lane.b32.xlu0 %v2355_v8, 312  ;;  %v9469_v8 = vcombine.low %v2622_v46, %v2630_v10  ;;  %v2655_v34 = vld [vmem:[#allocation7 + $0x188] sm:$0xff] }
 0x5b5   :  { %v2187_v33 = vpop.permute.xlu1 %2186  ;;  %v2156_v13 = vpop.permute.xlu0 %2155  ;;  %3486 = vmatpush1.bf16.msra.mxu0 %v9469_v8  ;;  %v9457_v8 = vcombine.low %v13709_v32, %v13711_v11 }
 0x5b6   :  { %v2431_v23 = vmul.f32 %v2187_v33, %v14707_v63  ;;  %v2424_v49 = vmul.f32 %v2156_v13, %v14708_v16  ;;  %v14717_v13 = vld [vmem:[#allocation73_spill] sm:$0xff]  ;;  %v2647_v63 = vld [vmem:[#allocation7 + $0x148] sm:$0xff]  ;;  %v2654_v16 = vld [vmem:[#allocation7 + $0x180] sm:$0xff] }
 0x5b7   :  { %2416 = vbcast.lane.b32.xlu1 %v2390_v31, 304 }
 0x5b8   :  { %v2499_v44 = vadd.f32 %v2431_v23, %v2430_v51  ;;  %v13687_v50 = vadd.f32 %v2486_v14, %v2424_v49  ;;  %v2646_v14 = vld [vmem:[#allocation7 + $0x140] sm:$0xff] }
 0x5b9   :  { %v2222_v18 = vpop.permute.xlu1 %2221  ;;  %v2253_v55 = vpop.permute.xlu0 %2252  ;;  %v9486_v51 = vcombine.high %v2638_v19, %v2646_v14  ;;  %v9485_v23 = vcombine.low %v2638_v19, %v2646_v14  ;;  %v2662_v49 = vld [vmem:[#allocation7 + $0x1c0] sm:$0xff]  ;;  %v9536_v14 = vcombine.high %v2687_v35, %v2695_v7 }
 0x5ba   :  { %v2439_v41 = vmul.f32 %v2222_v18, %v14710_v6  ;;  %v2446_v48 = vmul.f32 %v2253_v55, %v14713_v54  ;;  %v9488_v18 = vcombine.high %v2639_v45, %v2647_v63  ;;  %v9502_v55 = vcombine.high %v2654_v16, %v2662_v49  ;;  %v13713_v54 = vld [vmem:[#allocation7 + $0x18] sm:$0xff] }
 0x5bb   :  { %2420 = vbcast.lane.b32.xlu1 %v2390_v31, 312  ;;  %v9471_v31 = vcombine.low %v2623_v60, %v2631_v53  ;;  %3487 = vmatprep.subr.bf16.mxu0 %v9486_v51  ;;  %v9501_v24 = vcombine.low %v2654_v16, %v2662_v49  ;;  %v2711_v51 = vld [vmem:[#allocation7 + $0x348] sm:$0xff] }
 0x5bc   :  { %v2512_v2 = vadd.f32 %v2439_v41, %v2438_v17  ;;  %v2663_v17 = vld [vmem:[#allocation7 + $0x1c8] sm:$0xff]  ;;  %3488 = vmatpush1.bf16.msra.mxu0 %v9485_v23 }
 0x5bd   :  { %v2191_v9 = vpop.permute.xlu1 %2190  ;;  %v2226_v61 = vpop.permute.xlu0 %2225  ;;  %3527 = vmatpush1.bf16.msra.mxu1 %v9471_v31  ;;  %3489 = vmatprep.subr.bf16.mxu0 %v9502_v55  ;;  %v9503_v12 = vcombine.low %v2655_v34, %v2663_v17  ;;  %v13720_v31 = vld [vmem:[#allocation7 + $0x58] sm:$0xff]  ;;  %v14722_v16 = vld [vmem:[#allocation44_spill] sm:$0xff] }
 0x5be   :  { %v2432_v59 = vmul.f32 %v2191_v9, %v14711_v28  ;;  %v2440_v56 = vmul.f32 %v2226_v61, %v14712_v25  ;;  %v2670_v9 = vld [vmem:[#allocation7 + $0x200] sm:$0xff]  ;;  %3528 = vmatprep.subr.bf16.mxu1 %v9488_v18  ;;  %v2671_v25 = vld [vmem:[#allocation7 + $0x208] sm:$0xff] }
 0x5bf   :  { %v2678_v61 = vld [vmem:[#allocation7 + $0x240] sm:$0xff] }
 0x5c0   :  { %v2500_v4 = vadd.f32 %v2499_v44, %v2432_v59  ;;  %v13693_v57 = vadd.f32 %v2512_v2, %v2440_v56  ;;  %v9487_v44 = vcombine.low %v2639_v45, %v2647_v63  ;;  %v9504_v2 = vcombine.high %v2655_v34, %v2663_v17  ;;  %v2679_v56 = vld [vmem:[#allocation7 + $0x248] sm:$0xff]  ;;  %3490 = vmatpush1.bf16.msra.mxu0 %v9501_v24  ;;  %v2702_v45 = vld [vmem:[#allocation7 + $0x300] sm:$0xff] }
 0x5c1   :  { %v2257_v21 = vpop.permute.xlu1 %2256  ;;  %v2292_v26 = vpop.permute.xlu0 %2291  ;;  %v9518_v27 = vcombine.high %v2670_v9, %v2678_v61  ;;  %v9520_v10 = vcombine.high %v2671_v25, %v2679_v56  ;;  %v14721_v63 = vld [vmem:[#allocation43_spill] sm:$0xff] }
 0x5c2   :  { %v2447_v40 = vmul.f32 %v2257_v21, %v14714_v47  ;;  %v2455_v30 = vmul.f32 %v2292_v26, %v14715_v58  ;;  %3529 = vmatpush1.bf16.msra.mxu1 %v9487_v44  ;;  %v9517_v21 = vcombine.low %v2670_v9, %v2678_v61  ;;  %v12019_v26 = vmov 0   ;;  %v2718_v34 = vld [vmem:[#allocation7 + $0x380] sm:$0xff]  ;;  %v2719_v61 = vld [vmem:[#allocation7 + $0x388] sm:$0xff] }
 0x5c3   :  { %3530 = vmatprep.subr.bf16.mxu1 %v9504_v2  ;;  %3515 = vmatprep.mubr.bf16.mxu0 %v12019_v26  ;;  %v9519_v58 = vcombine.low %v2671_v25, %v2679_v56  ;;  %v2726_v17 = vld [vmem:[#allocation7 + $0x3c0] sm:$0xff]  ;;  %v14723_v25 = vld [vmem:[#allocation81_spill] sm:$0xff] }
 0x5c4   :  { %v13697_v39 = vadd.f32 %v2447_v40, %v2446_v48  ;;  %v14719_v48 = vld [vmem:[#allocation33_spill] sm:$0xff]  ;;  %3556 = vmatprep.mubr.bf16.mxu1 %v12019_v26  ;;  %3491 = vmatprep.subr.bf16.mxu0 %v9518_v27 }
 0x5c5   :  { %v2288_v0 = vpop.permute.xlu1 %2287  ;;  %v2195_v20 = vpop.permute.xlu0 %2194  ;;  %3492 = vmatpush1.bf16.msra.mxu0 %v9517_v21 }
 0x5c6   :  { %v2454_v33 = vmul.f32 %v2288_v0, %v14716_v52  ;;  %v2433_v62 = vmul.f32 %v2195_v20, %v14717_v13  ;;  %3531 = vmatpush1.bf16.msra.mxu1 %v9503_v12  ;;  %v9459_v0 = vcombine.low %v13713_v54, %v13720_v31  ;;  %v2710_v52 = vld [vmem:[#allocation7 + $0x340] sm:$0xff]  ;;  %v9566_v12 = vcombine.high %v2718_v34, %v2726_v17 }
 0x5c7   :  { %3532 = vmatprep.subr.bf16.mxu1 %v9520_v10  ;;  %v9550_v18 = vcombine.high %v2702_v45, %v2710_v52 }
 0x5c8   :  { %v13702_v6 = vadd.f32 %v2455_v30, %v2454_v33  ;;  %v13704_v41 = vadd.f32 %v2500_v4, %v2433_v62  ;;  %v2694_v4 = vld [vmem:[#allocation7 + $0x2c0] sm:$0xff]  ;;  %v2703_v62 = vld [vmem:[#allocation7 + $0x308] sm:$0xff] }
 0x5c9   :  { %v2160_v28 = vpop.permute.xlu1 %2159  ;;  %v2323_v59 = vpop.permute.xlu0 %2322  ;;  %v9534_v30 = vcombine.high %v2686_v1, %v2694_v4  ;;  %v9533_v44 = vcombine.low %v2686_v1, %v2694_v4  ;;  %v9552_v55 = vcombine.high %v2703_v62, %v2711_v51  ;;  %v9551_v24 = vcombine.low %v2703_v62, %v2711_v51 }
 0x5ca   :  { %v2425_v38 = vmul.f32 %v2160_v28, %v14718_v36  ;;  %v2462_v23 = vmul.f32 %v2323_v59, %v14721_v63  ;;  %3533 = vmatpush1.bf16.msra.mxu1 %v9519_v58  ;;  %v2727_v28 = vld [vmem:[#allocation7 + $0x3c8] sm:$0xff]  ;;  %v14729_v63 = vld [vmem:[#allocation45_spill] sm:$0xff] }
 0x5cb   :  { %3493 = vmatprep.subr.bf16.mxu0 %v9534_v30  ;;  %3534 = vmatprep.subr.bf16.mxu1 %v9536_v14  ;;  %v14724_v59 = vld [vmem:[#allocation28_spill] sm:$0xff]  ;;  %v9568_v10 = vcombine.high %v2719_v61, %v2727_v28  ;;  %v9460_v30 = vcombine.high %v13713_v54, %v13720_v31  ;;  %v2672_v31 = vld [vmem:[#allocation7 + $0x210] sm:$0xff] }
 0x5cc   :  { %v2488_v46 = vadd.f32 %v13687_v50, %v2425_v38  ;;  %v14720_v50 = vld [vmem:[#allocation75_spill] sm:$0xff]  ;;  %3494 = vmatpush1.bf16.msra.mxu0 %v9533_v44  ;;  %v9549_v38 = vcombine.low %v2702_v45, %v2710_v52  ;;  %v14728_v52 = vld [vmem:[#allocation69_spill] sm:$0xff] }
 0x5cd   :  { %v2261_v60 = vpop.permute.xlu1 %2260  ;;  %v2230_v53 = vpop.permute.xlu0 %2229  ;;  %3495 = vmatprep.subr.bf16.mxu0 %v9550_v18 }
 0x5ce   :  { %v2448_v47 = vmul.f32 %v2261_v60, %v14719_v48  ;;  %v2441_v40 = vmul.f32 %v2230_v53, %v14720_v50  ;;  %v14726_v53 = vld [vmem:[#allocation52_spill] sm:$0xff]  ;;  %v14727_v48 = vld [vmem:[#allocation34_spill] sm:$0xff]  ;;  %v9565_v50 = vcombine.low %v2718_v34, %v2726_v17 }
 0x5d0   :  { %v2526_v20 = vadd.f32 %v13697_v39, %v2448_v47  ;;  %v13726_v19 = vadd.f32 %v13693_v57, %v2441_v40  ;;  %v9535_v39 = vcombine.low %v2687_v35, %v2695_v7  ;;  %v14725_v7 = vld [vmem:[#allocation51_spill] sm:$0xff]  ;;  %3496 = vmatpush1.bf16.msra.mxu0 %v9549_v38  ;;  %v9567_v40 = vcombine.low %v2719_v61, %v2727_v28 }
 0x5d1   :  { %v2327_v33 = vpop.permute.xlu1 %2326  ;;  %v2358_v13 = vpop.permute.xlu0 %2357  ;;  %3497 = vmatprep.subr.bf16.mxu0 %v9566_v12  ;;  %v14731_v12 = vld [vmem:[#allocation76_spill] sm:$0xff] }
 0x5d2   :  { %v2463_v49 = vmul.f32 %v2327_v33, %v14722_v16  ;;  %3535 = vmatpush1.bf16.msra.mxu1 %v9535_v39  ;;  %v2470_v60 = vmul.f32 %v2358_v13, %v14725_v7 }
 0x5d3   :  { %3536 = vmatprep.subr.bf16.mxu1 %v9552_v55 }
 0x5d4   :  { %v2551_v57 = vadd.f32 %v2463_v49, %v2462_v23  ;;  %3498 = vmatpush1.bf16.msra.mxu0 %v9565_v50  ;;  %v14734_v50 = vld [vmem:[#allocation41_spill] sm:$0xff] }
 0x5d5   :  { %v2296_v2 = vpop.permute.xlu1 %2295  ;;  %v2164_v9 = vpop.permute.xlu0 %2163 }
 0x5d6   :  { %v2456_v56 = vmul.f32 %v2296_v2, %v14723_v25  ;;  %v2426_v36 = vmul.f32 %v2164_v9, %v14724_v59  ;;  %3537 = vmatpush1.bf16.msra.mxu1 %v9551_v24  ;;  %v14730_v59 = vld [vmem:[#allocation74_spill] sm:$0xff] }
 0x5d7   :  { %3538 = vmatprep.subr.bf16.mxu1 %v9568_v10 }
 0x5d8   :  { %v13733_v27 = vadd.f32 %v13702_v6, %v2456_v56  ;;  %v2489_v1 = vadd.f32 %v2488_v46, %v2426_v36  ;;  %v9458_v6 = vcombine.high %v13709_v32, %v13711_v11 }
 0x5d9   :  { %v2362_v4 = vpop.permute.xlu1 %2361  ;;  %v2265_v35 = vpop.permute.xlu0 %2264 }
 0x5da   :  { %v2471_v21 = vmul.f32 %v2362_v4, %v14726_v53  ;;  %v2449_v47 = vmul.f32 %v2265_v35, %v14727_v48  ;;  %3539 = vmatpush1.bf16.msra.mxu1 %v9567_v40  ;;  %3565 = vmatprep.subr.bf16.mxu0 %v9458_v6  ;;  %v14732_v35 = vld [vmem:[#allocation26_spill] sm:$0xff]  ;;  %v14735_v6 = vld [vmem:[#allocation77_spill] sm:$0xff] }
 0x5db   :  { %3606 = vmatprep.subr.bf16.mxu1 %v9460_v30 }
 0x5dc   :  { %v13740_v58 = vadd.f32 %v2471_v21, %v2470_v60  ;;  %v13742_v46 = vadd.f32 %v2526_v20, %v2449_v47  ;;  %v14733_v60 = vld [vmem:[#allocation80_spill] sm:$0xff] }
 0x5dd   :  { %v2199_v14 = vpop.permute.xlu1 %2198  ;;  %v2393_v45 = vpop.permute.xlu0 %2392 }
 0x5de   :  { %v2434_v33 = vmul.f32 %v2199_v14, %v14728_v52  ;;  %v14736_v52 = vld [vmem:[#allocation82_spill] sm:$0xff] }
 0x5e0   :  { %v2502_v13 = vadd.f32 %v13704_v41, %v2434_v33 }
 0x5e1   :  { %v2331_v62 = vpop.permute.xlu1 %2330  ;;  %v2234_v51 = vpop.permute.xlu0 %2233 }
 0x5e2   :  { %v2464_v23 = vmul.f32 %v2331_v62, %v14729_v63  ;;  %v2442_v53 = vmul.f32 %v2234_v51, %v14733_v60  ;;  %v14738_v51 = vld [vmem:[#allocation27_spill] sm:$0xff] }
 0x5e4   :  { %v13749_v20 = vadd.f32 %v2551_v57, %v2464_v23  ;;  %v2515_v63 = vadd.f32 %v13726_v19, %v2442_v53 }
 0x5e5   :  { %v2397_v16 = vpop.permute.xlu1 %2396  ;;  %v2366_v49 = vpop.permute.xlu0 %2365 }
 0x5e9   :  { %v2300_v44 = vpop.permute.xlu1 %2299  ;;  %v2203_v39 = vpop.permute.xlu0 %2202 }
 0x5ea   :  { %v2435_v36 = vmul.f32 %v2203_v39, %v14730_v59 }
 0x5ec   :  { %v2503_v4 = vadd.f32 %v2502_v13, %v2435_v36 }
 0x5ed   :  { %v2168_v18 = vpop.permute.xlu1 %2167  ;;  %v2335_v55 = vpop.permute.xlu0 %2334 }
 0x5ee   :  { %v2427_v7 = vmul.f32 %v2168_v18, %v14732_v35 }
 0x5f0   :  { %v2490_v14 = vadd.f32 %v2489_v1, %v2427_v7 }
 0x5f1   :  { %v2269_v34 = vpop.permute.xlu1 %2268  ;;  %v2238_v17 = vpop.permute.xlu0 %2237 }
 0x5f2   :  { %v2443_v33 = vmul.f32 %v2238_v17, %v14736_v52  ;;  %v14739_v17 = vld [vmem:[#allocation86_spill] sm:$0xff]  ;;  %v14743_v52 = vld [vmem:[#allocation35_spill] sm:$0xff] }
 0x5f5   :  { %v13751_v2 = vpop.permute.xlu1 %2400  ;;  %v13753_v9 = vpop.permute.xlu0 %2369 }
 0x5f9   :  { %v2304_v41 = vpop.permute.xlu1 %2303  ;;  %v2207_v61 = vpop.permute.xlu0 %2206 }
 0x5fa   :  { %v2436_v10 = vmul.f32 %v2207_v61, %v14731_v12  ;;  %v14737_v61 = vld [vmem:[#allocation84_spill] sm:$0xff]  ;;  %v2516_v12 = vadd.f32 %v2515_v63, %v2443_v33  ;;  %v2450_v33 = vmul.f32 %v2269_v34, %v14743_v52 }
 0x5fc   :  { %v2504_v47 = vadd.f32 %v2503_v4, %v2436_v10 }
 0x5fd   :  { %v2172_v28 = vpop.permute.xlu1 %2171  ;;  %v13755_v25 = vpop.permute.xlu0 %2338 }
 0x5fe   :  { %v2428_v40 = vmul.f32 %v2172_v28, %v14734_v50 }
 0x600   :  { %v2491_v13 = vadd.f32 %v2490_v14, %v2428_v40 }
 0x601   :  { %v2273_v56 = vpop.permute.xlu1 %2272  ;;  %v2242_v57 = vpop.permute.xlu0 %2241 }
 0x602   :  { %v2444_v18 = vmul.f32 %v2242_v57, %v14737_v61 }
 0x604   :  { %v2517_v60 = vadd.f32 %v2516_v12, %v2444_v18  ;;  %v14746_v12 = vld [vmem:[#allocation36_spill] sm:$0xff] }
 0x605   :  { %v13758_v38 = vpop.permute.xlu1 %2404  ;;  %v13760_v24 = vpop.permute.xlu0 %2373 }
 0x609   :  { %v2308_v21 = vpop.permute.xlu1 %2307  ;;  %v2211_v48 = vpop.permute.xlu0 %2210 }
 0x60a   :  { %v2437_v30 = vmul.f32 %v2211_v48, %v14735_v6  ;;  %v14741_v6 = vld [vmem:[#allocation59_spill] sm:$0xff] }
 0x60b   :  { %v2478_v57 = vmul.f32 %v2393_v45, %v14741_v6 }
 0x60c   :  { %v2505_v62 = vadd.f32 %v2504_v47, %v2437_v30  ;;  %v14740_v47 = vld [vmem:[#allocation60_spill] sm:$0xff]  ;;  %v14742_v30 = vld [vmem:[#allocation83_spill] sm:$0xff] }
 0x60d   :  { %v2176_v23 = vpop.permute.xlu1 %2175  ;;  %v2343_v39 = vpop.permute.xlu0 %2342  ;;  %v2479_v19 = vmul.f32 %v2397_v16, %v14740_v47  ;;  %v2457_v14 = vmul.f32 %v2300_v44, %v14742_v30 }
 0x60e   :  { %v2506_v59 = vrot.slane %v2505_v62, 4  ;;  %v2429_v36 = vmul.f32 %v2176_v23, %v14738_v51  ;;  %v14744_v23 = vld [vmem:[#allocation53_spill] sm:$0xff] }
 0x60f   :  { %v2577_v51 = vadd.f32 %v2479_v19, %v2478_v57  ;;  %v2540_v34 = vadd.f32 %v13733_v27, %v2457_v14  ;;  %v14752_v14 = vld [vmem:[#allocation61_spill] sm:$0xff] }
 0x610   :  { %v2507_v10 = vadd.f32 %v2506_v59, %v2505_v62  ;;  %v2492_v4 = vadd.f32 %v2491_v13, %v2429_v36  ;;  %v2472_v13 = vmul.f32 %v2366_v49, %v14744_v23  ;;  %v14745_v36 = vld [vmem:[#allocation85_spill] sm:$0xff] }
 0x611   :  { %v2277_v28 = vpop.permute.xlu1 %2276  ;;  %v2246_v35 = vpop.permute.xlu0 %2245  ;;  %v2458_v16 = vmul.f32 %v2304_v41, %v14745_v36  ;;  %v14749_v49 = vld [vmem:[#allocation37_spill] sm:$0xff] }
 0x612   :  { %v2508_v1 = vrot.slane %v2507_v10, 2  ;;  %v2493_v7 = vrot.slane %v2492_v4, 4  ;;  %v2445_v48 = vmul.f32 %v2246_v35, %v14739_v17  ;;  %v2565_v19 = vadd.f32 %v13740_v58, %v2472_v13  ;;  %v14754_v13 = vld [vmem:[#allocation48_spill] sm:$0xff] }
 0x613   :  { %v2541_v30 = vadd.f32 %v2540_v34, %v2458_v16  ;;  %v14758_v34 = vld [vmem:[#allocation55_spill] sm:$0xff] }
 0x614   :  { %v2509_v53 = vadd.f32 %v2508_v1, %v2507_v10  ;;  %v2494_v50 = vadd.f32 %v2493_v7, %v2492_v4  ;;  %v2518_v40 = vadd.f32 %v2517_v60, %v2445_v48  ;;  %v2451_v10 = vmul.f32 %v2273_v56, %v14746_v12  ;;  %v14747_v4 = vld [vmem:[#allocation46_spill] sm:$0xff]  ;;  %v14748_v7 = vld [vmem:[#allocation40_spill] sm:$0xff] }
 0x615   :  { %v13776_v62 = vpop.permute.xlu1 %2408  ;;  %v2378_v63 = vpop.permute.xlu0 %2377  ;;  %v2465_v35 = vmul.f32 %v2335_v55, %v14747_v4  ;;  %v2528_v1 = vadd.f32 %v13742_v46, %v2450_v33  ;;  %v2459_v17 = vmul.f32 %v2308_v21, %v14748_v7  ;;  %v2452_v48 = vmul.f32 %v2277_v28, %v14749_v49  ;;  %v14750_v55 = vld [vmem:[#allocation47_spill] sm:$0xff]  ;;  %v14753_v33 = vld [vmem:[#allocation54_spill] sm:$0xff] }
 0x616   :  { %v2510_v61 = vrot.slane %v2509_v53, 1  ;;  %v2495_v18 = vrot.slane %v2494_v50, 2  ;;  %v2519_v59 = vrot.slane %v2518_v40, 4  ;;  %v2480_v21 = vmul.f32 %v13751_v2, %v14752_v14 }
 0x617   :  { %v2553_v46 = vadd.f32 %v13749_v20, %v2465_v35  ;;  %v2473_v58 = vmul.f32 %v13753_v9, %v14753_v33  ;;  %v2542_v23 = vadd.f32 %v2541_v30, %v2459_v17  ;;  %v2474_v9 = vmul.f32 %v13760_v24, %v14758_v34  ;;  %v14761_v24 = vld [vmem:[#allocation50_spill] sm:$0xff] }
 0x618   :  { %v2511_v45 = vadd.f32 %v2510_v61, %v2509_v53  ;;  %v2496_v60 = vadd.f32 %v2495_v18, %v2494_v50  ;;  %v2520_v44 = vadd.f32 %v2519_v59, %v2518_v40  ;;  %v2466_v53 = vmul.f32 %v13755_v25, %v14750_v55  ;;  %v14751_v40 = vld [vmem:[#allocation79_spill] sm:$0xff] }
 0x619   :  { %v2312_v47 = vpop.permute.xlu1 %2311  ;;  %v2347_v6 = vpop.permute.xlu0 %2346  ;;  %v2529_v50 = vadd.f32 %v2528_v1, %v2451_v10  ;;  %v2467_v61 = vmul.f32 %v2343_v39, %v14754_v13  ;;  %v14755_v10 = vld [vmem:[#allocation38_spill] sm:$0xff]  ;;  %v2566_v17 = vadd.f32 %v2565_v19, %v2473_v58  ;;  %v14762_v58 = vld [vmem:[#allocation63_spill] sm:$0xff] }
 0x61a   :  { %v2591_v41 = vmul.f32 0.015625, %v2511_v45  ;;  %v2497_v57 = vrot.slane %v2496_v60, 1  ;;  %v2521_v56 = vrot.slane %v2520_v44, 2  ;;  %v2460_v27 = vmul.f32 %v2312_v47, %v14751_v40  ;;  %v14756_v45 = vld [vmem:[#allocation49_spill] sm:$0xff] }
 0x61b   :  { %v2530_v18 = vadd.f32 %v2529_v50, %v2452_v48  ;;  %v2554_v20 = vadd.f32 %v2553_v46, %v2466_v53  ;;  %v2468_v2 = vmul.f32 %v2347_v6, %v14756_v45  ;;  %v14759_v48 = vld [vmem:[#allocation56_spill] sm:$0xff]  ;;  %v14760_v6 = vld [vmem:[#allocation62_spill] sm:$0xff] }
 0x61c   :  { %v2498_v28 = vadd.f32 %v2497_v57, %v2496_v60  ;;  %v2522_v52 = vadd.f32 %v2521_v56, %v2520_v44  ;;  %v2599_v25 = vpack.c.bf16 %v2591_v41, %v2591_v41  ;;  %v2543_v35 = vadd.f32 %v2542_v23, %v2460_v27  ;;  %v14757_v60 = vld [vmem:[#allocation42_spill] sm:$0xff] }
 0x61d   :  { %v2281_v59 = vpop.permute.xlu1 %2280  ;;  %v2316_v36 = vpop.permute.xlu0 %2315  ;;  %v2555_v49 = vadd.f32 %v2554_v20, %v2467_v61  ;;  %v2475_v47 = vmul.f32 %v2378_v63, %v14759_v48  ;;  %v2481_v40 = vmul.f32 %v13758_v38, %v14760_v6  ;;  %v2578_v63 = vadd.f32 %v2577_v51, %v2480_v21  ;;  %v14764_v20 = vld [vmem:[#allocation64_spill] sm:$0xff] }
 0x61e   :  { %v2590_v16 = vmul.f32 0.015625, %v2498_v28  ;;  %v2523_v12 = vrot.slane %v2522_v52, 1  ;;  %v2453_v4 = vmul.f32 %v2281_v59, %v14755_v10  ;;  %v2461_v44 = vmul.f32 %v2316_v36, %v14757_v60  ;;  %v14765_v60 = vld [vmem:[#allocation89_spill] sm:$0xff] }
 0x61f   :  { %v2827_v30 = vunpack.c.l.b16 %v2599_v25  ;;  %v2556_v27 = vadd.f32 %v2555_v49, %v2468_v2  ;;  %v2567_v28 = vadd.f32 %v2566_v17, %v2474_v9  ;;  %v2482_v23 = vmul.f32 %v13776_v62, %v14762_v58  ;;  %v14766_v17 = vld [vmem:[#allocation65_spill] sm:$0xff] }
 0x620   :  { %v2598_v1 = vpack.c.bf16 %v2590_v16, %v2590_v16  ;;  %v2524_v7 = vadd.f32 %v2523_v12, %v2522_v52  ;;  %v2531_v39 = vadd.f32 %v2530_v18, %v2453_v4  ;;  %v2544_v41 = vadd.f32 %v2543_v35, %v2461_v44  ;;  %v14763_v16 = vld [vmem:[#allocation57_spill] sm:$0xff] }
 0x621   :  { %v2413_v57 = vpop.permute.xlu1 %2412  ;;  %v2351_v56 = vpop.permute.xlu0 %2350  ;;  %v2568_v25 = vadd.f32 %v2567_v28, %v2475_v47  ;;  %v2579_v10 = vadd.f32 %v2578_v63, %v2481_v40 }
 0x622   :  { %v2826_v55 = vunpack.c.l.b16 %v2598_v1  ;;  %v2592_v53 = vmul.f32 0.015625, %v2524_v7  ;;  %v2532_v50 = vrot.slane %v2531_v39, 4  ;;  %v2545_v46 = vrot.slane %v2544_v41, 4 }
 0x623   :  { %v2469_v14 = vmul.f32 %v2351_v56, %v14761_v24  ;;  %v2483_v35 = vmul.f32 %v2413_v57, %v14764_v20  ;;  %v2580_v1 = vadd.f32 %v2579_v10, %v2482_v23 }
 0x624   :  { %v2834_v19 = vsel %vm490_vm0, %v2827_v30, %v2826_v55  ;;  %v2600_v52 = vpack.c.bf16 %v2592_v53, %v2592_v53  ;;  %v2533_v33 = vadd.f32 %v2532_v50, %v2531_v39  ;;  %v2546_v13 = vadd.f32 %v2545_v46, %v2544_v41 }
 0x625   :  { %v2557_v61 = vadd.f32 %v2556_v27, %v2469_v14  ;;  %v2382_v18 = vpop.permute.xlu1 %2381  ;;  %v2386_v59 = vpop.permute.xlu0 %2385  ;;  %v2581_v56 = vadd.f32 %v2580_v1, %v2483_v35  ;;  %v14767_v27 = vld [vmem:[#allocation90_spill] sm:$0xff]  ;;  %vm14768_vm0 = vcmask 1043459  }
 0x626   :  { %v2828_v36 = vunpack.c.l.b16 %v2600_v52  ;;  %v2534_v38 = vrot.slane %v2533_v33, 2  ;;  %v2476_v12 = vmul.f32 %v2382_v18, %v14763_v16  ;;  %v2547_v4 = vrot.slane %v2546_v13, 2 }
 0x627   :  { %v2558_v45 = vrot.slane %v2557_v61, 4  ;;  %v2477_v62 = vmul.f32 %v2386_v59, %v14765_v60 }
 0x628   :  { %v2835_v2 = vsel %vm492_vm1, %v2828_v36, %v2834_v19  ;;  %v2535_v51 = vadd.f32 %v2534_v38, %v2533_v33  ;;  %v2569_v21 = vadd.f32 %v2568_v25, %v2476_v12  ;;  %v2548_v44 = vadd.f32 %v2547_v4, %v2546_v13  ;;  %vm14769_vm1 = vmmov %vm14693_vm4 }
 0x629   :  { %v2559_v34 = vadd.f32 %v2558_v45, %v2557_v61  ;;  %v2417_v9 = vpop.permute.xlu1 %2416 }
 0x62a   :  { %v2536_v7 = vrot.slane %v2535_v51, 1  ;;  %v2570_v39 = vadd.f32 %v2569_v21, %v2477_v62  ;;  %v2484_v49 = vmul.f32 %v2417_v9, %v14766_v17  ;;  %v2549_v48 = vrot.slane %v2548_v44, 1  ;;  %v2624_v9 = vld [vmem:[#allocation7 + $0x90] sm:$0xff]  ;;  %v2633_v17 = vld [vmem:[#allocation7 + $0xd8] sm:$0xff] }
 0x62b   :  { %v2560_v47 = vrot.slane %v2559_v34, 2 }
 0x62c   :  { %v2537_v41 = vadd.f32 %v2536_v7, %v2535_v51  ;;  %v2571_v57 = vrot.slane %v2570_v39, 4  ;;  %v2550_v30 = vadd.f32 %v2549_v48, %v2548_v44  ;;  %v2582_v40 = vadd.f32 %v2581_v56, %v2484_v49  ;;  %v2632_v7 = vld [vmem:[#allocation7 + $0xd0] sm:$0xff] }
 0x62d   :  { %v2561_v55 = vadd.f32 %v2560_v47, %v2559_v34  ;;  %v2421_v53 = vpop.permute.xlu1 %2420  ;;  %v9474_v47 = vcombine.high %v2624_v9, %v2632_v7  ;;  %v2640_v56 = vld [vmem:[#allocation7 + $0x110] sm:$0xff] }
 0x62e   :  { %v2593_v50 = vmul.f32 0.015625, %v2537_v41  ;;  %v2572_v6 = vadd.f32 %v2571_v57, %v2570_v39  ;;  %v2485_v46 = vmul.f32 %v2421_v53, %v14767_v27  ;;  %v2594_v24 = vmul.f32 0.015625, %v2550_v30  ;;  %v2625_v39 = vld [vmem:[#allocation7 + $0x98] sm:$0xff]  ;;  %v2648_v57 = vld [vmem:[#allocation7 + $0x150] sm:$0xff] }
 0x62f   :  { %v2562_v14 = vrot.slane %v2561_v55, 1  ;;  %v9476_v41 = vcombine.high %v2625_v39, %v2633_v17  ;;  %v2641_v30 = vld [vmem:[#allocation7 + $0x118] sm:$0xff]  ;;  %v9473_v53 = vcombine.low %v2624_v9, %v2632_v7  ;;  %v2656_v27 = vld [vmem:[#allocation7 + $0x190] sm:$0xff]  ;;  %v9489_v32 = vcombine.low %v2640_v56, %v2648_v57  ;;  %v2610_v7 = vld [vmem:[#allocation7 + $0x20] sm:$0xff] }
 0x630   :  { %v2601_v28 = vpack.c.bf16 %v2593_v50, %v2593_v50  ;;  %v2573_v19 = vrot.slane %v2572_v6, 2  ;;  %v2583_v52 = vadd.f32 %v2582_v40, %v2485_v46  ;;  %v2602_v33 = vpack.c.bf16 %v2594_v24, %v2594_v24  ;;  %v2664_v46 = vld [vmem:[#allocation7 + $0x1d0] sm:$0xff]  ;;  %v2657_v24 = vld [vmem:[#allocation7 + $0x198] sm:$0xff] }
 0x631   :  { %v2563_v63 = vadd.f32 %v2562_v14, %v2561_v55  ;;  %v2649_v55 = vld [vmem:[#allocation7 + $0x158] sm:$0xff]  ;;  %v9475_v50 = vcombine.low %v2625_v39, %v2633_v17  ;;  %v9506_v54 = vcombine.high %v2656_v27, %v2664_v46  ;;  %v2618_v39 = vld [vmem:[#allocation7 + $0x60] sm:$0xff]  ;;  %v2611_v17 = vld [vmem:[#allocation7 + $0x28] sm:$0xff] }
 0x632   :  { %v2829_v58 = vunpack.c.l.b16 %v2601_v28  ;;  %v2574_v23 = vadd.f32 %v2573_v19, %v2572_v6  ;;  %v2584_v13 = vrot.slane %v2583_v52, 4  ;;  %v2830_v61 = vunpack.c.l.b16 %v2602_v33  ;;  %v2665_v14 = vld [vmem:[#allocation7 + $0x1d8] sm:$0xff] }
 0x633   :  { %v2595_v18 = vmul.f32 0.015625, %v2563_v63  ;;  %v9490_v6 = vcombine.high %v2640_v56, %v2648_v57  ;;  %v9492_v40 = vcombine.high %v2641_v30, %v2649_v55  ;;  %v9491_v11 = vcombine.low %v2641_v30, %v2649_v55  ;;  %v2673_v28 = vld [vmem:[#allocation7 + $0x218] sm:$0xff]  ;;  %v2626_v30 = vld [vmem:[#allocation7 + $0xa0] sm:$0xff] }
 0x634   :  { %v2836_v59 = vsel %vm14768_vm0, %v2829_v58, %v2835_v2  ;;  %v2575_v36 = vrot.slane %v2574_v23, 1  ;;  %v2585_v25 = vadd.f32 %v2584_v13, %v2583_v52  ;;  %v2681_v19 = vld [vmem:[#allocation7 + $0x258] sm:$0xff]  ;;  %v9505_v52 = vcombine.low %v2656_v27, %v2664_v46  ;;  %v2696_v13 = vld [vmem:[#allocation7 + $0x2d0] sm:$0xff]  ;;  %v2634_v55 = vld [vmem:[#allocation7 + $0xe0] sm:$0xff] }
 0x635   :  { %v2837_v38 = vsel %vm14769_vm1, %v2830_v61, %v2836_v59  ;;  %v2603_v16 = vpack.c.bf16 %v2595_v18, %v2595_v18  ;;  %v9507_v33 = vcombine.low %v2657_v24, %v2665_v14  ;;  %v9524_v58 = vcombine.high %v2673_v28, %v2681_v19  ;;  %v2689_v61 = vld [vmem:[#allocation7 + $0x298] sm:$0xff] }
 0x636   :  { %v2576_v12 = vadd.f32 %v2575_v36, %v2574_v23  ;;  %v2586_v10 = vrot.slane %v2585_v25, 2  ;;  %v2688_v23 = vld [vmem:[#allocation7 + $0x290] sm:$0xff]  ;;  %v2697_v18 = vld [vmem:[#allocation7 + $0x2d8] sm:$0xff]  ;;  %v9523_v36 = vcombine.low %v2673_v28, %v2681_v19  ;;  %v9462_v56 = vcombine.high %v2610_v7, %v2618_v39  ;;  %v2658_v28 = vld [vmem:[#allocation7 + $0x1a0] sm:$0xff] }
 0x637   :  { %v2831_v4 = vunpack.c.l.b16 %v2603_v16  ;;  %v2704_v16 = vld [vmem:[#allocation7 + $0x310] sm:$0xff]  ;;  %v9478_v27 = vcombine.high %v2626_v30, %v2634_v55  ;;  %v2666_v19 = vld [vmem:[#allocation7 + $0x1e0] sm:$0xff] }
 0x638   :  { %v2596_v20 = vmul.f32 0.015625, %v2576_v12  ;;  %v2587_v35 = vadd.f32 %v2586_v10, %v2585_v25  ;;  %v9538_v25 = vcombine.high %v2688_v23, %v2696_v13  ;;  %v2712_v12 = vld [vmem:[#allocation7 + $0x350] sm:$0xff]  ;;  %v2705_v10 = vld [vmem:[#allocation7 + $0x318] sm:$0xff] }
 0x639   :  { %v2838_v45 = vsel %vm14770_vm5, %v2831_v4, %v2837_v38  ;;  %v9540_v38 = vcombine.high %v2689_v61, %v2697_v18  ;;  %v2713_v4 = vld [vmem:[#allocation7 + $0x358] sm:$0xff] }
 0x63a   :  { %v2604_v51 = vpack.c.bf16 %v2596_v20, %v2596_v20  ;;  %v2588_v21 = vrot.slane %v2587_v35, 1  ;;  %v9537_v20 = vcombine.low %v2688_v23, %v2696_v13  ;;  %v9510_v23 = vcombine.high %v2658_v28, %v2666_v19 }
 0x63c   :  { %v2832_v60 = vunpack.c.l.b16 %v2604_v51  ;;  %v2589_v62 = vadd.f32 %v2588_v21, %v2587_v35  ;;  %v9539_v35 = vcombine.low %v2689_v61, %v2697_v18  ;;  %v9556_v51 = vcombine.high %v2705_v10, %v2713_v4  ;;  %v2720_v21 = vld [vmem:[#allocation7 + $0x390] sm:$0xff]  ;;  %v2674_v61 = vld [vmem:[#allocation7 + $0x220] sm:$0xff] }
 0x63d   :  { %v2682_v18 = vld [vmem:[#allocation7 + $0x260] sm:$0xff] }
 0x63e   :  { %v2839_v44 = vsel %vm14771_vm6, %v2832_v60, %v2838_v45  ;;  %v2597_v34 = vmul.f32 0.015625, %v2589_v62  ;;  %v9554_v45 = vcombine.high %v2704_v16, %v2712_v12  ;;  %v2728_v60 = vld [vmem:[#allocation7 + $0x3d0] sm:$0xff]  ;;  %v2721_v62 = vld [vmem:[#allocation7 + $0x398] sm:$0xff] }
 0x63f   :  { %v9570_v9 = vcombine.high %v2720_v21, %v2728_v60 }
 0x640   :  { %v2605_v2 = vpack.c.bf16 %v2597_v34, %v2597_v34  ;;  %v9553_v34 = vcombine.low %v2704_v16, %v2712_v12  ;;  %v9526_v16 = vcombine.high %v2674_v61, %v2682_v18 }
 0x642   :  { %v2833_v1 = vunpack.c.l.b16 %v2605_v2  ;;  %v9555_v2 = vcombine.low %v2705_v10, %v2713_v4  ;;  %v2690_v10 = vld [vmem:[#allocation7 + $0x2a0] sm:$0xff] }
 0x643   :  { %v2698_v4 = vld [vmem:[#allocation7 + $0x2e0] sm:$0xff] }
 0x644   :  { %v2840_v49 = vsel %vm14772_vm15, %v2833_v1, %v2839_v44  ;;  %v2729_v44 = vld [vmem:[#allocation7 + $0x3d8] sm:$0xff] }
 0x645   :  { %v13819_v48 = vpack.c.b16 %v2840_v49, %v2840_v49  ;;  %v9572_v1 = vcombine.high %v2721_v62, %v2729_v44  ;;  %v2619_v49 = vld [vmem:[#allocation7 + $0x68] sm:$0xff] }
 0x646   :  { %v9464_v57 = vcombine.high %v2611_v17, %v2619_v49 }
 0x647   :  { %3516 = vmatmul.mubr.bf16.vlgmr.msra.gmra.mrb[0].mxu0 %v13819_v48  ;;  %3557 = vmatmul.mubr.bf16.vlgmr.msra.gmra.mrb[8].mxu1 %v13819_v48 }
 0x648   :  { %3566 = vmatpush1.bf16.msra.mxu0 %v9457_v8  ;;  %3607 = vmatpush1.bf16.msra.mxu1 %v9459_v0  ;;  %v9508_v8 = vcombine.high %v2657_v24, %v2665_v14  ;;  %v2680_v0 = vld [vmem:[#allocation7 + $0x250] sm:$0xff]  ;;  %v2642_v24 = vld [vmem:[#allocation7 + $0x120] sm:$0xff] }
 0x649   :  { %3567 = vmatprep.subr.bf16.mxu0 %v9474_v47  ;;  %3608 = vmatprep.subr.bf16.mxu1 %v9476_v41  ;;  %v9522_v63 = vcombine.high %v2672_v31, %v2680_v0  ;;  %v9521_v59 = vcombine.low %v2672_v31, %v2680_v0  ;;  %v9569_v47 = vcombine.low %v2720_v21, %v2728_v60  ;;  %v2650_v14 = vld [vmem:[#allocation7 + $0x160] sm:$0xff] }
 0x64a   :  { %3597 = vmatprep.mubr.bf16.mxu0 %v12019_v26  ;;  %3638 = vmatprep.mubr.bf16.mxu1 %v12019_v26  ;;  %v9571_v41 = vcombine.low %v2721_v62, %v2729_v44  ;;  %v9494_v31 = vcombine.high %v2642_v24, %v2650_v14  ;;  %v9542_v21 = vcombine.high %v2690_v10, %v2698_v4  ;;  %v2706_v62 = vld [vmem:[#allocation7 + $0x320] sm:$0xff] }
 0x64b   :  { %v2714_v44 = vld [vmem:[#allocation7 + $0x360] sm:$0xff] }
 0x64c   :  { %3568 = vmatpush1.bf16.msra.mxu0 %v9473_v53  ;;  %3609 = vmatpush1.bf16.msra.mxu1 %v9475_v50  ;;  %v2627_v53 = vld [vmem:[#allocation7 + $0xa8] sm:$0xff] }
 0x64d   :  { %3569 = vmatprep.subr.bf16.mxu0 %v9490_v6  ;;  %3610 = vmatprep.subr.bf16.mxu1 %v9492_v40  ;;  %v2635_v50 = vld [vmem:[#allocation7 + $0xe8] sm:$0xff]  ;;  %v9461_v6 = vcombine.low %v2610_v7, %v2618_v39  ;;  %v9463_v40 = vcombine.low %v2611_v17, %v2619_v49  ;;  %v9558_v7 = vcombine.high %v2706_v62, %v2714_v44  ;;  %v2722_v17 = vld [vmem:[#allocation7 + $0x3a0] sm:$0xff] }
 0x64e   :  { %v9480_v46 = vcombine.high %v2627_v53, %v2635_v50  ;;  %v2730_v49 = vld [vmem:[#allocation7 + $0x3e0] sm:$0xff] }
 0x650   :  { %3570 = vmatpush1.bf16.msra.mxu0 %v9489_v32  ;;  %3611 = vmatpush1.bf16.msra.mxu1 %v9491_v11  ;;  %v2643_v32 = vld [vmem:[#allocation7 + $0x128] sm:$0xff] }
 0x651   :  { %3571 = vmatprep.subr.bf16.mxu0 %v9506_v54  ;;  %3612 = vmatprep.subr.bf16.mxu1 %v9508_v8  ;;  %v2651_v11 = vld [vmem:[#allocation7 + $0x168] sm:$0xff]  ;;  %v9477_v54 = vcombine.low %v2626_v30, %v2634_v55  ;;  %v9479_v8 = vcombine.low %v2627_v53, %v2635_v50  ;;  %v9574_v30 = vcombine.high %v2722_v17, %v2730_v49  ;;  %v2612_v53 = vld [vmem:[#allocation7 + $0x30] sm:$0xff] }
 0x652   :  { %v9496_v0 = vcombine.high %v2643_v32, %v2651_v11  ;;  %v2620_v50 = vld [vmem:[#allocation7 + $0x70] sm:$0xff] }
 0x654   :  { %3572 = vmatpush1.bf16.msra.mxu0 %v9505_v52  ;;  %3613 = vmatpush1.bf16.msra.mxu1 %v9507_v33  ;;  %v2659_v52 = vld [vmem:[#allocation7 + $0x1a8] sm:$0xff] }
 0x655   :  { %3573 = vmatprep.subr.bf16.mxu0 %v9522_v63  ;;  %3614 = vmatprep.subr.bf16.mxu1 %v9524_v58  ;;  %v2667_v33 = vld [vmem:[#allocation7 + $0x1e8] sm:$0xff]  ;;  %v9493_v63 = vcombine.low %v2642_v24, %v2650_v14  ;;  %v9495_v58 = vcombine.low %v2643_v32, %v2651_v11  ;;  %v9466_v24 = vcombine.high %v2612_v53, %v2620_v50  ;;  %v2628_v32 = vld [vmem:[#allocation7 + $0xb0] sm:$0xff] }
 0x656   :  { %v9512_v13 = vcombine.high %v2659_v52, %v2667_v33  ;;  %v2636_v11 = vld [vmem:[#allocation7 + $0xf0] sm:$0xff] }
 0x658   :  { %3574 = vmatpush1.bf16.msra.mxu0 %v9521_v59  ;;  %3615 = vmatpush1.bf16.msra.mxu1 %v9523_v36  ;;  %v2675_v59 = vld [vmem:[#allocation7 + $0x228] sm:$0xff] }
 0x659   :  { %3575 = vmatprep.subr.bf16.mxu0 %v9538_v25  ;;  %3616 = vmatprep.subr.bf16.mxu1 %v9540_v38  ;;  %v2683_v36 = vld [vmem:[#allocation7 + $0x268] sm:$0xff]  ;;  %v9509_v25 = vcombine.low %v2658_v28, %v2666_v19  ;;  %v9511_v38 = vcombine.low %v2659_v52, %v2667_v33  ;;  %v9482_v28 = vcombine.high %v2628_v32, %v2636_v11  ;;  %v2644_v52 = vld [vmem:[#allocation7 + $0x130] sm:$0xff] }
 0x65a   :  { %v9528_v12 = vcombine.high %v2675_v59, %v2683_v36  ;;  %v2652_v33 = vld [vmem:[#allocation7 + $0x170] sm:$0xff] }
 0x65c   :  { %3576 = vmatpush1.bf16.msra.mxu0 %v9537_v20  ;;  %3617 = vmatpush1.bf16.msra.mxu1 %v9539_v35  ;;  %v2691_v20 = vld [vmem:[#allocation7 + $0x2a8] sm:$0xff] }
 0x65d   :  { %3577 = vmatprep.subr.bf16.mxu0 %v9554_v45  ;;  %3618 = vmatprep.subr.bf16.mxu1 %v9556_v51  ;;  %v2699_v35 = vld [vmem:[#allocation7 + $0x2e8] sm:$0xff]  ;;  %v9525_v45 = vcombine.low %v2674_v61, %v2682_v18  ;;  %v9527_v51 = vcombine.low %v2675_v59, %v2683_v36  ;;  %v9498_v61 = vcombine.high %v2644_v52, %v2652_v33  ;;  %v2660_v59 = vld [vmem:[#allocation7 + $0x1b0] sm:$0xff] }
 0x65e   :  { %v9544_v60 = vcombine.high %v2691_v20, %v2699_v35  ;;  %v2668_v36 = vld [vmem:[#allocation7 + $0x1f0] sm:$0xff] }
 0x660   :  { %3578 = vmatpush1.bf16.msra.mxu0 %v9553_v34  ;;  %3619 = vmatpush1.bf16.msra.mxu1 %v9555_v2  ;;  %v2707_v34 = vld [vmem:[#allocation7 + $0x328] sm:$0xff] }
 0x661   :  { %3579 = vmatprep.subr.bf16.mxu0 %v9570_v9  ;;  %3620 = vmatprep.subr.bf16.mxu1 %v9572_v1  ;;  %v2715_v2 = vld [vmem:[#allocation7 + $0x368] sm:$0xff]  ;;  %v9541_v9 = vcombine.low %v2690_v10, %v2698_v4  ;;  %v9543_v1 = vcombine.low %v2691_v20, %v2699_v35  ;;  %v9514_v10 = vcombine.high %v2660_v59, %v2668_v36  ;;  %v2676_v20 = vld [vmem:[#allocation7 + $0x230] sm:$0xff] }
 0x662   :  { %v9560_v39 = vcombine.high %v2707_v34, %v2715_v2  ;;  %v2684_v35 = vld [vmem:[#allocation7 + $0x270] sm:$0xff] }
 0x664   :  { %3580 = vmatpush1.bf16.msra.mxu0 %v9569_v47  ;;  %3621 = vmatpush1.bf16.msra.mxu1 %v9571_v41  ;;  %v2723_v47 = vld [vmem:[#allocation7 + $0x3a8] sm:$0xff] }
 0x665   :  { %3647 = vmatprep.subr.bf16.mxu0 %v9462_v56  ;;  %3688 = vmatprep.subr.bf16.mxu1 %v9464_v57  ;;  %v2731_v41 = vld [vmem:[#allocation7 + $0x3e8] sm:$0xff]  ;;  %v9557_v56 = vcombine.low %v2706_v62, %v2714_v44  ;;  %v9559_v57 = vcombine.low %v2707_v34, %v2715_v2  ;;  %v9530_v62 = vcombine.high %v2676_v20, %v2684_v35  ;;  %v2692_v44 = vld [vmem:[#allocation7 + $0x2b0] sm:$0xff]  ;;  %v2693_v2 = vld [vmem:[#allocation7 + $0x2b8] sm:$0xff] }
 0x666   :  { %v9576_v55 = vcombine.high %v2723_v47, %v2731_v41  ;;  %v2700_v34 = vld [vmem:[#allocation7 + $0x2f0] sm:$0xff] }
 0x667   :  { %3598 = vmatmul.mubr.bf16.vlgmr.msra.gmra.mrb[4].mxu0 %v13819_v48  ;;  %3639 = vmatmul.mubr.bf16.vlgmr.msra.gmra.mrb[12].mxu1 %v13819_v48 }
 0x668   :  { %3648 = vmatpush1.bf16.msra.mxu0 %v9461_v6  ;;  %3689 = vmatpush1.bf16.msra.mxu1 %v9463_v40  ;;  %v2613_v6 = vld [vmem:[#allocation7 + $0x38] sm:$0xff] }
 0x669   :  { %3649 = vmatprep.subr.bf16.mxu0 %v9478_v27  ;;  %3690 = vmatprep.subr.bf16.mxu1 %v9480_v46  ;;  %v2621_v40 = vld [vmem:[#allocation7 + $0x78] sm:$0xff]  ;;  %v9573_v27 = vcombine.low %v2722_v17, %v2730_v49  ;;  %v9575_v46 = vcombine.low %v2723_v47, %v2731_v41  ;;  %v2708_v49 = vld [vmem:[#allocation7 + $0x330] sm:$0xff] }
 0x66a   :  { %3679 = vmatprep.mubr.bf16.mxu0 %v12019_v26  ;;  %3720 = vmatprep.mubr.bf16.mxu1 %v12019_v26  ;;  %v9468_v14 = vcombine.high %v2613_v6, %v2621_v40  ;;  %v2716_v47 = vld [vmem:[#allocation7 + $0x370] sm:$0xff]  ;;  %v2709_v41 = vld [vmem:[#allocation7 + $0x338] sm:$0xff] }
 0x66c   :  { %3650 = vmatpush1.bf16.msra.mxu0 %v9477_v54  ;;  %3691 = vmatpush1.bf16.msra.mxu1 %v9479_v8  ;;  %v2629_v54 = vld [vmem:[#allocation7 + $0xb8] sm:$0xff] }
 0x66d   :  { %3651 = vmatprep.subr.bf16.mxu0 %v9494_v31  ;;  %3692 = vmatprep.subr.bf16.mxu1 %v9496_v0  ;;  %v2637_v8 = vld [vmem:[#allocation7 + $0xf8] sm:$0xff]  ;;  %v9465_v31 = vcombine.low %v2612_v53, %v2620_v50  ;;  %v9467_v0 = vcombine.low %v2613_v6, %v2621_v40  ;;  %v2724_v50 = vld [vmem:[#allocation7 + $0x3b0] sm:$0xff] }
 0x66e   :  { %v9484_v19 = vcombine.high %v2629_v54, %v2637_v8  ;;  %v2732_v6 = vld [vmem:[#allocation7 + $0x3f0] sm:$0xff]  ;;  %v2725_v40 = vld [vmem:[#allocation7 + $0x3b8] sm:$0xff] }
 0x670   :  { %3652 = vmatpush1.bf16.msra.mxu0 %v9493_v63  ;;  %3693 = vmatpush1.bf16.msra.mxu1 %v9495_v58  ;;  %v2645_v63 = vld [vmem:[#allocation7 + $0x138] sm:$0xff] }
 0x671   :  { %3653 = vmatprep.subr.bf16.mxu0 %v9510_v23  ;;  %3694 = vmatprep.subr.bf16.mxu1 %v9512_v13  ;;  %v2653_v58 = vld [vmem:[#allocation7 + $0x178] sm:$0xff]  ;;  %v9481_v23 = vcombine.low %v2628_v32, %v2636_v11  ;;  %v9483_v13 = vcombine.low %v2629_v54, %v2637_v8  ;;  %v9577_v11 = vcombine.low %v2724_v50, %v2732_v6  ;;  %v10762_v8 = vld [vmem:[#allocation10 + $0x4] ss:$24 sps:$4 sm:$0xff]  }
 0x672   :  { %v9500_v18 = vcombine.high %v2645_v63, %v2653_v58 }
 0x674   :  { %3654 = vmatpush1.bf16.msra.mxu0 %v9509_v25  ;;  %3695 = vmatpush1.bf16.msra.mxu1 %v9511_v38  ;;  %v2661_v25 = vld [vmem:[#allocation7 + $0x1b8] sm:$0xff] }
 0x675   :  { %3655 = vmatprep.subr.bf16.mxu0 %v9526_v16  ;;  %3696 = vmatprep.subr.bf16.mxu1 %v9528_v12  ;;  %v2669_v38 = vld [vmem:[#allocation7 + $0x1f8] sm:$0xff]  ;;  %v9497_v16 = vcombine.low %v2644_v52, %v2652_v33  ;;  %v9499_v12 = vcombine.low %v2645_v63, %v2653_v58  ;;  %v10774_v58 = vld [vmem:[#allocation10 + $0x64] ss:$24 sps:$4 sm:$0xff]  }
 0x676   :  { %v9516_v4 = vcombine.high %v2661_v25, %v2669_v38  ;;  %v10771_v52 = vld [vmem:[#allocation10 + $0x334] ss:$24 sps:$4 sm:$0xff]   ;;  %v10766_v33 = vld [vmem:[#allocation10 + $0x30] ss:$24 sps:$4 sm:$0xff]  }
 0x677   :  { %v10769_v63 = vld [vmem:[#allocation10 + $0x330] ss:$24 sps:$4 sm:$0xff]  }
 0x678   :  { %3656 = vmatpush1.bf16.msra.mxu0 %v9525_v45  ;;  %3697 = vmatpush1.bf16.msra.mxu1 %v9527_v51  ;;  %v2677_v45 = vld [vmem:[#allocation7 + $0x238] sm:$0xff] }
 0x679   :  { %3657 = vmatprep.subr.bf16.mxu0 %v9542_v21  ;;  %3698 = vmatprep.subr.bf16.mxu1 %v9544_v60  ;;  %v2685_v51 = vld [vmem:[#allocation7 + $0x278] sm:$0xff]  ;;  %v9513_v21 = vcombine.low %v2660_v59, %v2668_v36  ;;  %v9515_v60 = vcombine.low %v2661_v25, %v2669_v38  ;;  %v10786_v25 = vld [vmem:[#allocation10 + $0xc4] ss:$24 sps:$4 sm:$0xff]  }
 0x67a   :  { %v10783_v59 = vld [vmem:[#allocation10 + $0x394] ss:$24 sps:$4 sm:$0xff]   ;;  %v10778_v36 = vld [vmem:[#allocation10 + $0x90] ss:$24 sps:$4 sm:$0xff]   ;;  %v10789_v38 = vld [vmem:[#allocation10 + $0x3c4] ss:$24 sps:$4 sm:$0xff]  }
 0x67c   :  { %3658 = vmatpush1.bf16.msra.mxu0 %v9541_v9  ;;  %3699 = vmatpush1.bf16.msra.mxu1 %v9543_v1  ;;  %v2701_v9 = vld [vmem:[#allocation7 + $0x2f8] sm:$0xff]  ;;  %v9529_v1 = vcombine.low %v2676_v20, %v2684_v35 }
 0x67d   :  { %3659 = vmatprep.subr.bf16.mxu0 %v9558_v7  ;;  %3700 = vmatprep.subr.bf16.mxu1 %v9560_v39  ;;  %v9531_v7 = vcombine.low %v2677_v45, %v2685_v51  ;;  %v9546_v39 = vcombine.high %v2692_v44, %v2700_v34  ;;  %v9548_v17 = vcombine.high %v2693_v2, %v2701_v9  ;;  %v10790_v20 = vld [vmem:[#allocation10 + $0xf0] ss:$24 sps:$4 sm:$0xff]  }
 0x67e   :  { %v10793_v35 = vld [vmem:[#allocation10 + $0x3f0] ss:$24 sps:$4 sm:$0xff]  }
 0x680   :  { %3660 = vmatpush1.bf16.msra.mxu0 %v9557_v56  ;;  %3701 = vmatpush1.bf16.msra.mxu1 %v9559_v57  ;;  %v2717_v56 = vld [vmem:[#allocation7 + $0x378] sm:$0xff]  ;;  %v9545_v57 = vcombine.low %v2692_v44, %v2700_v34 }
 0x681   :  { %3661 = vmatprep.subr.bf16.mxu0 %v9574_v30  ;;  %3702 = vmatprep.subr.bf16.mxu1 %v9576_v55  ;;  %v9547_v30 = vcombine.low %v2693_v2, %v2701_v9  ;;  %v9562_v55 = vcombine.high %v2708_v49, %v2716_v47  ;;  %v9564_v53 = vcombine.high %v2709_v41, %v2717_v56  ;;  %v10805_v44 = vld [vmem:[#allocation10 + $0x450] ss:$24 sps:$4 sm:$0xff]   ;;  %v10807_v34 = vld [vmem:[#allocation10 + $0x454] ss:$24 sps:$4 sm:$0xff]   ;;  %v10810_v2 = vld [vmem:[#allocation10 + $0x184] ss:$24 sps:$4 sm:$0xff]  }
 0x682   :  { %v10813_v9 = vld [vmem:[#allocation10 + $0x484] ss:$24 sps:$4 sm:$0xff]  }
 0x684   :  { %3662 = vmatpush1.bf16.msra.mxu0 %v9573_v27  ;;  %3703 = vmatpush1.bf16.msra.mxu1 %v9575_v46  ;;  %v2733_v27 = vld [vmem:[#allocation7 + $0x3f8] sm:$0xff]  ;;  %v9561_v46 = vcombine.low %v2708_v49, %v2716_v47 }
 0x685   :  { %3729 = vmatprep.subr.bf16.mxu0 %v9466_v24  ;;  %3770 = vmatprep.subr.bf16.mxu1 %v9468_v14  ;;  %v9563_v24 = vcombine.low %v2709_v41, %v2717_v56  ;;  %v9578_v14 = vcombine.high %v2724_v50, %v2732_v6  ;;  %v9580_v32 = vcombine.high %v2725_v40, %v2733_v27  ;;  %v10814_v49 = vld [vmem:[#allocation10 + $0x1b0] ss:$24 sps:$4 sm:$0xff]   ;;  %v10822_v41 = vld [vmem:[#allocation10 + $0x1e4] ss:$24 sps:$4 sm:$0xff]  }
 0x686   :  { %v9579_v54 = vcombine.low %v2725_v40, %v2733_v27  ;;  %v10817_v47 = vld [vmem:[#allocation10 + $0x4b0] ss:$24 sps:$4 sm:$0xff]   ;;  %v10825_v56 = vld [vmem:[#allocation10 + $0x4e4] ss:$24 sps:$4 sm:$0xff]  }
 0x687   :  { %3680 = vmatmul.mubr.bf16.vlgmr.msra.gmra.mrb[8].mxu0 %v13819_v48  ;;  %3721 = vmatmul.mubr.bf16.vlgmr.msra.gmra.mrb[16].mxu1 %v13819_v48  ;;  %v10826_v50 = vld [vmem:[#allocation10 + $0x210] ss:$24 sps:$4 sm:$0xff]   ;;  %v10834_v40 = vld [vmem:[#allocation10 + $0x244] ss:$24 sps:$4 sm:$0xff]  }
 0x688   :  { %3730 = vmatpush1.bf16.msra.mxu0 %v9465_v31  ;;  %3771 = vmatpush1.bf16.msra.mxu1 %v9467_v0  ;;  %v10765_v31 = vld [vmem:[#allocation10 + $0x304] ss:$24 sps:$4 sm:$0xff]   ;;  %v10760_v0 = vld [vmem:[#allocation10] ss:$24 sps:$4 sm:$0xff]   ;;  %v10829_v6 = vld [vmem:[#allocation10 + $0x510] ss:$24 sps:$4 sm:$0xff]  }
 0x689   :  { %3731 = vmatprep.subr.bf16.mxu0 %v9482_v28  ;;  %3772 = vmatprep.subr.bf16.mxu1 %v9484_v19  ;;  %v10763_v28 = vld [vmem:[#allocation10 + $0x300] ss:$24 sps:$4 sm:$0xff]   ;;  %v10768_v19 = vld [vmem:[#allocation10 + $0x34] ss:$24 sps:$4 sm:$0xff]   ;;  %v10837_v27 = vld [vmem:[#allocation10 + $0x544] ss:$24 sps:$4 sm:$0xff]  }
 0x68a   :  { %3761 = vmatprep.mubr.bf16.mxu0 %v12019_v26  ;;  %3802 = vmatprep.mubr.bf16.mxu1 %v12019_v26  ;;  %v9532_v26 = vcombine.high %v2677_v45, %v2685_v51  ;;  %v10798_v45 = vld [vmem:[#allocation10 + $0x124] ss:$24 sps:$4 sm:$0xff]  }
 0x68b   :  { %v10801_v51 = vld [vmem:[#allocation10 + $0x424] ss:$24 sps:$4 sm:$0xff]  }
 0x68c   :  { %3732 = vmatpush1.bf16.msra.mxu0 %v9481_v23  ;;  %3773 = vmatpush1.bf16.msra.mxu1 %v9483_v13  ;;  %v10777_v23 = vld [vmem:[#allocation10 + $0x364] ss:$24 sps:$4 sm:$0xff]   ;;  %v10772_v13 = vld [vmem:[#allocation10 + $0x60] ss:$24 sps:$4 sm:$0xff]  }
 0x68d   :  { %3733 = vmatprep.subr.bf16.mxu0 %v9498_v61  ;;  %3774 = vmatprep.subr.bf16.mxu1 %v9500_v18  ;;  %v10775_v61 = vld [vmem:[#allocation10 + $0x360] ss:$24 sps:$4 sm:$0xff]   ;;  %v10780_v18 = vld [vmem:[#allocation10 + $0x94] ss:$24 sps:$4 sm:$0xff]  }
 0x690   :  { %3734 = vmatpush1.bf16.msra.mxu0 %v9497_v16  ;;  %3775 = vmatpush1.bf16.msra.mxu1 %v9499_v12  ;;  %v10784_v16 = vld [vmem:[#allocation10 + $0xc0] ss:$24 sps:$4 sm:$0xff]  }
 0x691   :  { %3735 = vmatprep.subr.bf16.mxu0 %v9514_v10  ;;  %3776 = vmatprep.subr.bf16.mxu1 %v9516_v4  ;;  %v10787_v12 = vld [vmem:[#allocation10 + $0x3c0] ss:$24 sps:$4 sm:$0xff]   ;;  %v10792_v10 = vld [vmem:[#allocation10 + $0xf4] ss:$24 sps:$4 sm:$0xff]  }
 0x692   :  { %v10795_v4 = vld [vmem:[#allocation10 + $0x3f4] ss:$24 sps:$4 sm:$0xff]  }
 0x694   :  { %3736 = vmatpush1.bf16.msra.mxu0 %v9513_v21  ;;  %3777 = vmatpush1.bf16.msra.mxu1 %v9515_v60  ;;  %v10796_v21 = vld [vmem:[#allocation10 + $0x120] ss:$24 sps:$4 sm:$0xff]  }
 0x695   :  { %3737 = vmatprep.subr.bf16.mxu0 %v9530_v62  ;;  %3778 = vmatprep.subr.bf16.mxu1 %v9532_v26  ;;  %v10799_v60 = vld [vmem:[#allocation10 + $0x420] ss:$24 sps:$4 sm:$0xff]   ;;  %v10802_v62 = vld [vmem:[#allocation10 + $0x150] ss:$24 sps:$4 sm:$0xff]   ;;  %v10804_v26 = vld [vmem:[#allocation10 + $0x154] ss:$24 sps:$4 sm:$0xff]  }
 0x698   :  { %3738 = vmatpush1.bf16.msra.mxu0 %v9529_v1  ;;  %3779 = vmatpush1.bf16.msra.mxu1 %v9531_v7  ;;  %v10808_v1 = vld [vmem:[#allocation10 + $0x180] ss:$24 sps:$4 sm:$0xff]  }
 0x699   :  { %3739 = vmatprep.subr.bf16.mxu0 %v9546_v39  ;;  %3780 = vmatprep.subr.bf16.mxu1 %v9548_v17  ;;  %v10811_v7 = vld [vmem:[#allocation10 + $0x480] ss:$24 sps:$4 sm:$0xff]   ;;  %v10816_v39 = vld [vmem:[#allocation10 + $0x1b4] ss:$24 sps:$4 sm:$0xff]  }
 0x69a   :  { %v10819_v17 = vld [vmem:[#allocation10 + $0x4b4] ss:$24 sps:$4 sm:$0xff]  }
 0x69c   :  { %3740 = vmatpush1.bf16.msra.mxu0 %v9545_v57  ;;  %3781 = vmatpush1.bf16.msra.mxu1 %v9547_v30  ;;  %v10820_v57 = vld [vmem:[#allocation10 + $0x1e0] ss:$24 sps:$4 sm:$0xff]  }
 0x69d   :  { %3741 = vmatprep.subr.bf16.mxu0 %v9562_v55  ;;  %3782 = vmatprep.subr.bf16.mxu1 %v9564_v53  ;;  %v10823_v30 = vld [vmem:[#allocation10 + $0x4e0] ss:$24 sps:$4 sm:$0xff]   ;;  %v10828_v55 = vld [vmem:[#allocation10 + $0x214] ss:$24 sps:$4 sm:$0xff]  }
 0x69e   :  { %v10831_v53 = vld [vmem:[#allocation10 + $0x514] ss:$24 sps:$4 sm:$0xff]  }
 0x6a0   :  { %3742 = vmatpush1.bf16.msra.mxu0 %v9561_v46  ;;  %3783 = vmatpush1.bf16.msra.mxu1 %v9563_v24  ;;  %v10832_v46 = vld [vmem:[#allocation10 + $0x240] ss:$24 sps:$4 sm:$0xff]  }
 0x6a1   :  { %3743 = vmatprep.subr.bf16.mxu0 %v9578_v14  ;;  %3784 = vmatprep.subr.bf16.mxu1 %v9580_v32  ;;  %v10835_v24 = vld [vmem:[#allocation10 + $0x540] ss:$24 sps:$4 sm:$0xff]   ;;  %v10840_v14 = vld [vmem:[#allocation10 + $0x274] ss:$24 sps:$4 sm:$0xff]  }
 0x6a2   :  { %v10843_v32 = vld [vmem:[#allocation10 + $0x574] ss:$24 sps:$4 sm:$0xff]  }
 0x6a4   :  { %3744 = vmatpush1.bf16.msra.mxu0 %v9577_v11  ;;  %3785 = vmatpush1.bf16.msra.mxu1 %v9579_v54  ;;  %v10838_v11 = vld [vmem:[#allocation10 + $0x270] ss:$24 sps:$4 sm:$0xff]  }
 0x6a5   :  { %7677 = vmatprep.subr.bf16.mxu1 %v10762_v8  ;;  %7718 = vmatprep.subr.bf16.mxu0 %v10765_v31  ;;  %v10841_v54 = vld [vmem:[#allocation10 + $0x570] ss:$24 sps:$4 sm:$0xff]   ;;  %v10846_v8 = vld [vmem:[#allocation10 + $0x2a4] ss:$24 sps:$4 sm:$0xff]  }
 0x6a6   :  { %v10849_v31 = vld [vmem:[#allocation10 + $0x5a4] ss:$24 sps:$4 sm:$0xff]  }
 0x6a7   :  { %3762 = vmatmul.mubr.bf16.vlgmr.msra.gmra.mrb[12].mxu0 %v13819_v48  ;;  %3803 = vmatmul.mubr.bf16.vlgmr.msra.gmra.mrb[20].mxu1 %v13819_v48  ;;  %v10781_v48 = vld [vmem:[#allocation10 + $0x390] ss:$24 sps:$4 sm:$0xff]  }
 0x6a8   :  { %7678 = vmatpush1.bf16.msra.mxu1 %v10760_v0  ;;  %7719 = vmatpush1.bf16.msra.mxu0 %v10763_v28  ;;  %v10844_v0 = vld [vmem:[#allocation10 + $0x2a0] ss:$24 sps:$4 sm:$0xff]  }
 0x6a9   :  { %7679 = vmatprep.subr.bf16.mxu1 %v10768_v19  ;;  %7720 = vmatprep.subr.bf16.mxu0 %v10771_v52  ;;  %v10847_v28 = vld [vmem:[#allocation10 + $0x5a0] ss:$24 sps:$4 sm:$0xff]   ;;  %v10852_v19 = vld [vmem:[#allocation10 + $0x2d4] ss:$24 sps:$4 sm:$0xff]  }
 0x6aa   :  { %v10855_v52 = vld [vmem:[#allocation10 + $0x5d4] ss:$24 sps:$4 sm:$0xff]  }
 0x6ac   :  { %7680 = vmatpush1.bf16.msra.mxu1 %v10766_v33  ;;  %7721 = vmatpush1.bf16.msra.mxu0 %v10769_v63  ;;  %v10850_v33 = vld [vmem:[#allocation10 + $0x2d0] ss:$24 sps:$4 sm:$0xff]  }
 0x6ad   :  { %7681 = vmatprep.subr.bf16.mxu1 %v10774_v58  ;;  %7722 = vmatprep.subr.bf16.mxu0 %v10777_v23  ;;  %v10853_v63 = vld [vmem:[#allocation10 + $0x5d0] ss:$24 sps:$4 sm:$0xff]   ;;  %v10858_v58 = vld [vmem:[#allocation10 + $0x604] ss:$24 sps:$4 sm:$0xff]  }
 0x6ae   :  { %v10861_v23 = vld [vmem:[#allocation10 + $0xc] ss:$24 sps:$4 sm:$0xff]  }
 0x6b0   :  { %7682 = vmatpush1.bf16.msra.mxu1 %v10772_v13  ;;  %7723 = vmatpush1.bf16.msra.mxu0 %v10775_v61  ;;  %v13841_v13 = vld [vmem:[#allocation8] sm:$0xff] }
 0x6b1   :  { %7683 = vmatprep.subr.bf16.mxu1 %v10780_v18  ;;  %7724 = vmatprep.subr.bf16.mxu0 %v10783_v59  ;;  %v2741_v61 = vrot.slane %v13841_v13, %v14702_v29  ;;  %v2749_v18 = vrot.slane %v13841_v13, %v13658_v37  ;;  %v2745_v59 = vrot.slane %v13841_v13, %v13655_v42 }
 0x6b4   :  { %7684 = vmatpush1.bf16.msra.mxu1 %v10778_v36  ;;  %7725 = vmatpush1.bf16.msra.mxu0 %v10781_v48  ;;  %v2753_v36 = vrot.slane %v13841_v13, %v13663_v5 }
 0x6b5   :  { %7685 = vmatprep.subr.bf16.mxu1 %v10786_v25  ;;  %7726 = vmatprep.subr.bf16.mxu0 %v10789_v38 }
 0x6b8   :  { %7686 = vmatpush1.bf16.msra.mxu1 %v10784_v16  ;;  %7727 = vmatpush1.bf16.msra.mxu0 %v10787_v12 }
 0x6b9   :  { %7687 = vmatprep.subr.bf16.mxu1 %v10792_v10  ;;  %7728 = vmatprep.subr.bf16.mxu0 %v10795_v4 }
 0x6bc   :  { %7688 = vmatpush1.bf16.msra.mxu1 %v10790_v20  ;;  %7729 = vmatpush1.bf16.msra.mxu0 %v10793_v35 }
 0x6bd   :  { %7689 = vmatprep.subr.bf16.mxu1 %v10798_v45  ;;  %7730 = vmatprep.subr.bf16.mxu0 %v10801_v51 }
 0x6c0   :  { %7690 = vmatpush1.bf16.msra.mxu1 %v10796_v21  ;;  %7731 = vmatpush1.bf16.msra.mxu0 %v10799_v60 }
 0x6c1   :  { %7691 = vmatprep.subr.bf16.mxu1 %v10804_v26  ;;  %7732 = vmatprep.subr.bf16.mxu0 %v10807_v34 }
 0x6c4   :  { %7692 = vmatpush1.bf16.msra.mxu1 %v10802_v62  ;;  %7733 = vmatpush1.bf16.msra.mxu0 %v10805_v44 }
 0x6c5   :  { %7693 = vmatprep.subr.bf16.mxu1 %v10810_v2  ;;  %7734 = vmatprep.subr.bf16.mxu0 %v10813_v9 }
 0x6c8   :  { %7694 = vmatpush1.bf16.msra.mxu1 %v10808_v1  ;;  %7735 = vmatpush1.bf16.msra.mxu0 %v10811_v7 }
 0x6c9   :  { %7695 = vmatprep.subr.bf16.mxu1 %v10816_v39  ;;  %7736 = vmatprep.subr.bf16.mxu0 %v10819_v17 }
 0x6cc   :  { %7696 = vmatpush1.bf16.msra.mxu1 %v10814_v49  ;;  %7737 = vmatpush1.bf16.msra.mxu0 %v10817_v47 }
 0x6cd   :  { %7697 = vmatprep.subr.bf16.mxu1 %v10822_v41  ;;  %7738 = vmatprep.subr.bf16.mxu0 %v10825_v56 }
 0x6d0   :  { %7698 = vmatpush1.bf16.msra.mxu1 %v10820_v57  ;;  %7739 = vmatpush1.bf16.msra.mxu0 %v10823_v30 }
 0x6d1   :  { %7699 = vmatprep.subr.bf16.mxu1 %v10828_v55  ;;  %7740 = vmatprep.subr.bf16.mxu0 %v10831_v53 }
 0x6d4   :  { %7700 = vmatpush1.bf16.msra.mxu1 %v10826_v50  ;;  %7741 = vmatpush1.bf16.msra.mxu0 %v10829_v6 }
 0x6d5   :  { %7701 = vmatprep.subr.bf16.mxu1 %v10834_v40  ;;  %7742 = vmatprep.subr.bf16.mxu0 %v10837_v27 }
 0x6d8   :  { %7702 = vmatpush1.bf16.msra.mxu1 %v10832_v46  ;;  %7743 = vmatpush1.bf16.msra.mxu0 %v10835_v24 }
 0x6d9   :  { %7703 = vmatprep.subr.bf16.mxu1 %v10840_v14  ;;  %7744 = vmatprep.subr.bf16.mxu0 %v10843_v32 }
 0x6dc   :  { %7704 = vmatpush1.bf16.msra.mxu1 %v10838_v11  ;;  %7745 = vmatpush1.bf16.msra.mxu0 %v10841_v54 }
 0x6dd   :  { %7705 = vmatprep.subr.bf16.mxu1 %v10846_v8  ;;  %7746 = vmatprep.subr.bf16.mxu0 %v10849_v31 }
 0x6e0   :  { %7706 = vmatpush1.bf16.msra.mxu1 %v10844_v0  ;;  %7747 = vmatpush1.bf16.msra.mxu0 %v10847_v28 }
 0x6e1   :  { %7707 = vmatprep.subr.bf16.mxu1 %v10852_v19  ;;  %7748 = vmatprep.subr.bf16.mxu0 %v10855_v52 }
 0x6e4   :  { %7708 = vmatpush1.bf16.msra.mxu1 %v10850_v33  ;;  %7749 = vmatpush1.bf16.msra.mxu0 %v10853_v63 }
 0x6e5   :  { %7759 = vmatprep.subr.bf16.mxu0 %v10858_v58  ;;  %7923 = vmatprep.subr.bf16.mxu1 %v10861_v23 }
 0x71a   :  { %v3517_v48 = vpop.f32.mrb[0].mxu0  ;;  %v3558_v25 = vpop.f32.mrb[8].mxu1 }
 0x71b   :  { %v13851_v38 = vadd.f32 %v3517_v48, %v2741_v61  ;;  %v13853_v16 = vadd.f32 %v3558_v25, %v2749_v18  ;;  %v3519_v12 = vpop.f32.mrb[1].mxu0  ;;  %v3560_v10 = vpop.f32.mrb[9].mxu1 }
 0x71c   :  { %v13855_v4 = vadd.f32 %v3519_v12, %v2745_v59  ;;  %v13857_v20 = vadd.f32 %v3560_v10, %v2753_v36  ;;  %v3521_v35 = vpop.f32.mrb[2].mxu0  ;;  %v3562_v45 = vpop.f32.mrb[10].mxu1  ;;  %v2757_v36 = vrot.slane %v13841_v13, %v13667_v43 }
 0x71d   :  { %v13860_v51 = vmul.f32 0.70710677, %v13851_v38  ;;  %v13863_v21 = vmul.f32 0.70710677, %v13853_v16  ;;  %v3522_v2 = vpop.f32.mrb[3].mxu0  ;;  %v3563_v39 = vpop.f32.mrb[11].mxu1 }
 0x71e   :  { %v13866_v60 = vmul.f32 0.70710677, %v13855_v4  ;;  %v13872_v34 = vmul.f32 0.70710677, %v13857_v20 }
 0x71f   :  { %v3867_v62 = vand.u32 2147483647, %v13860_v51  ;;  %v3869_v26 = vand.u32 2147483647, %v13863_v21  ;;  %vm3839_vm13 = vcmp.ge.f32.partialorder %v13860_v51, 0.0  ;;  %vm3841_vm2 = vcmp.ge.f32.partialorder %v13863_v21, 0.0 }
 0x720   :  { %v3868_v44 = vand.u32 2147483647, %v13866_v60  ;;  %v3870_v47 = vand.u32 2147483647, %v13872_v34  ;;  %v12020_v51 = vmov -1.0   ;;  %vm3840_vm4 = vcmp.ge.f32.partialorder %v13866_v60, 0.0 }
 0x721   :  { %v3881_v9 = vmul.f32 0.3275911, %v3867_v62  ;;  %v3883_v1 = vmul.f32 0.3275911, %v3869_v26  ;;  %v4049_v30 = vsub.f32 0.0, %v3867_v62  ;;  %v4051_v55 = vsub.f32 0.0, %v3869_v26 }
 0x722   :  { %v3882_v7 = vmul.f32 0.3275911, %v3868_v44  ;;  %v3884_v56 = vmul.f32 0.3275911, %v3870_v47  ;;  %v4050_v6 = vsub.f32 0.0, %v3868_v44  ;;  %v4052_v14 = vsub.f32 0.0, %v3870_v47 }
 0x723   :  { %v3895_v17 = vadd.f32 1.0, %v3881_v9  ;;  %v3897_v49 = vadd.f32 1.0, %v3883_v1  ;;  %v4063_v50 = vmul.f32 %v4049_v30, %v3867_v62  ;;  %v4065_v46 = vmul.f32 %v4051_v55, %v3869_v26 }
 0x724   :  { %v3896_v41 = vadd.f32 1.0, %v3882_v7  ;;  %v3898_v57 = vadd.f32 1.0, %v3884_v56  ;;  %v4064_v31 = vmul.f32 %v4050_v6, %v3868_v44  ;;  %v4066_v63 = vmul.f32 %v4052_v14, %v3870_v47 }
 0x725   :  { %11712 = vrcp.f32 %v3895_v17  ;;  %v4077_v54 = vmul.f32 1.442695, %v4063_v50  ;;  %v4081_v28 = vmul.f32 1.442695, %v4065_v46  ;;  %v2761_v30 = vrot.slane %v13841_v13, %v13671_v3 }
 0x726   :  { %11714 = vrcp.f32 %v3897_v49  ;;  %v4079_v59 = vmul.f32 1.442695, %v4064_v31  ;;  %v4083_v35 = vmul.f32 1.442695, %v4066_v63  ;;  %vm3842_vm14 = vcmp.ge.f32.partialorder %v13872_v34, 0.0 }
 0x727   :  { %11716 = vrcp.f32 %v3896_v41 }
 0x728   :  { %11718 = vrcp.f32 %v3898_v57 }
 0x729   :  { %11720 = vpow2.f32 %v4077_v54 }
 0x72a   :  { %11722 = vpow2.f32 %v4081_v28 }
 0x72b   :  { %11724 = vpow2.f32 %v4079_v59 }
 0x72c   :  { %11726 = vpow2.f32 %v4083_v35 }
 0x72f   :  { %v11713_v53 = vpop.eup %11712 }
 0x730   :  { %v11715_v40 = vpop.eup %11714  ;;  %v3923_v27 = vmul.f32 1.0614054, %v11713_v53 }
 0x731   :  { %v3925_v24 = vmul.f32 1.0614054, %v11715_v40  ;;  %v13875_v11 = vpop.eup %11716 }
 0x732   :  { %v3937_v32 = vadd.f32 -1.4531521, %v3923_v27  ;;  %v3924_v19 = vmul.f32 1.0614054, %v13875_v11  ;;  %v13878_v52 = vpop.eup %11718 }
 0x733   :  { %v3939_v8 = vadd.f32 -1.4531521, %v3925_v24  ;;  %v3926_v61 = vmul.f32 1.0614054, %v13878_v52  ;;  %v11721_v31 = vpop.eup %11720 }
 0x734   :  { %v3951_v0 = vmul.f32 %v11713_v53, %v3937_v32  ;;  %v3938_v23 = vadd.f32 -1.4531521, %v3924_v19  ;;  %v11723_v19 = vpop.eup %11722 }
 0x735   :  { %v3953_v33 = vmul.f32 %v11715_v40, %v3939_v8  ;;  %v3940_v12 = vadd.f32 -1.4531521, %v3926_v61 }
 0x736   :  { %v3965_v58 = vadd.f32 1.4214138, %v3951_v0  ;;  %v3952_v25 = vmul.f32 %v13875_v11, %v3938_v23 }
 0x737   :  { %v3967_v18 = vadd.f32 1.4214138, %v3953_v33  ;;  %v3954_v26 = vmul.f32 %v13878_v52, %v3940_v12 }
 0x738   :  { %v3979_v48 = vmul.f32 %v11713_v53, %v3965_v58  ;;  %v3966_v62 = vadd.f32 1.4214138, %v3952_v25 }
 0x739   :  { %v3981_v10 = vmul.f32 %v11715_v40, %v3967_v18  ;;  %v3968_v47 = vadd.f32 1.4214138, %v3954_v26 }
 0x73a   :  { %v3993_v45 = vadd.f32 -0.28449672, %v3979_v48  ;;  %v3599_v44 = vpop.f32.mrb[4].mxu0  ;;  %v13885_v2 = vpop.f32.mrb[12].mxu1  ;;  %v3980_v49 = vmul.f32 %v13875_v11, %v3966_v62  ;;  %v2769_v62 = vrot.slane %v13841_v13, %v13679_v15 }
 0x73b   :  { %v3995_v9 = vadd.f32 -0.28449672, %v3981_v10  ;;  %v13887_v1 = vadd.f32 %v3599_v44, %v2757_v36  ;;  %v3601_v7 = vpop.f32.mrb[5].mxu0  ;;  %v3642_v39 = vpop.f32.mrb[13].mxu1  ;;  %v3982_v46 = vmul.f32 %v13878_v52, %v3968_v47 }
 0x73c   :  { %v4007_v17 = vmul.f32 %v11713_v53, %v3993_v45  ;;  %v3603_v41 = vpop.f32.mrb[6].mxu0  ;;  %v3644_v56 = vpop.f32.mrb[14].mxu1  ;;  %v3994_v27 = vadd.f32 -0.28449672, %v3980_v49  ;;  %v13898_v28 = vadd.f32 %v3601_v7, %v2761_v30  ;;  %v3854_v7 = vsel %vm3840_vm4, 1.0, %v12020_v51 }
 0x73d   :  { %v4009_v57 = vmul.f32 %v11715_v40, %v3995_v9  ;;  %v3604_v55 = vpop.f32.mrb[7].mxu0  ;;  %v3645_v50 = vpop.f32.mrb[15].mxu1  ;;  %v13894_v24 = vmul.f32 0.70710677, %v13887_v1  ;;  %v3996_v8 = vadd.f32 -0.28449672, %v3982_v46  ;;  %v13921_v30 = vadd.f32 %v3642_v39, %v2769_v62 }
 0x73e   :  { %v4021_v6 = vadd.f32 0.2548296, %v4007_v17  ;;  %v4008_v54 = vmul.f32 %v13875_v11, %v3994_v27  ;;  %v11725_v36 = vpop.eup %11724  ;;  %v13909_v25 = vmul.f32 0.70710677, %v13898_v28  ;;  %v3811_v41 = vmul.f32 0.5, %v13851_v38 }
 0x73f   :  { %v4023_v14 = vadd.f32 0.2548296, %v4009_v57  ;;  %v4010_v58 = vmul.f32 %v13878_v52, %v3996_v8  ;;  %v13902_v23 = vand.u32 2147483647, %v13894_v24  ;;  %v11727_v21 = vpop.eup %11726  ;;  %v3856_v56 = vsel %vm3842_vm14, 1.0, %v12020_v51 }
 0x740   :  { %v4035_v32 = vmul.f32 %v11713_v53, %v4021_v6  ;;  %v4022_v63 = vadd.f32 0.2548296, %v4008_v54  ;;  %v3872_v17 = vand.u32 2147483647, %v13909_v25  ;;  %v3812_v50 = vmul.f32 0.5, %v13855_v4 }
 0x741   :  { %v4037_v0 = vmul.f32 %v11715_v40, %v4023_v14  ;;  %v4024_v59 = vadd.f32 0.2548296, %v4010_v58  ;;  %v3853_v40 = vsel %vm3839_vm13, 1.0, %v12020_v51  ;;  %v3885_v45 = vmul.f32 0.3275911, %v13902_v23 }
 0x742   :  { %v4105_v33 = vmul.f32 %v11721_v31, %v4035_v32  ;;  %v4036_v53 = vmul.f32 %v13875_v11, %v4022_v63  ;;  %v3855_v11 = vsel %vm3841_vm2, 1.0, %v12020_v51  ;;  %v3886_v57 = vmul.f32 0.3275911, %v3872_v17 }
 0x743   :  { %v4107_v61 = vmul.f32 %v11723_v19, %v4037_v0  ;;  %v4038_v35 = vmul.f32 %v13878_v52, %v4024_v59  ;;  %v3899_v47 = vadd.f32 1.0, %v3885_v45  ;;  %v3813_v46 = vmul.f32 0.5, %v13853_v16  ;;  %v10859_v0 = vld [vmem:[#allocation10 + $0x8] ss:$24 sps:$4 sm:$0xff]   ;;  %v10865_v59 = vld [vmem:[#allocation10 + $0x38] ss:$24 sps:$4 sm:$0xff]  }
 0x744   :  { %v4119_v18 = vsub.f32 1.0, %v4105_v33  ;;  %v4106_v10 = vmul.f32 %v11725_v36, %v4036_v53  ;;  %v3900_v14 = vadd.f32 1.0, %v3886_v57  ;;  %v13926_v32 = vmul.f32 0.70710677, %v13921_v30  ;;  %v10867_v33 = vld [vmem:[#allocation10 + $0x3c] ss:$24 sps:$4 sm:$0xff]  }
 0x745   :  { %v4121_v48 = vsub.f32 1.0, %v4107_v61  ;;  %v4108_v60 = vmul.f32 %v11727_v21, %v4038_v35  ;;  %11728 = vrcp.f32 %v3899_v47  ;;  %v3814_v8 = vmul.f32 0.5, %v13857_v20  ;;  %v10856_v61 = vld [vmem:[#allocation10 + $0x600] ss:$24 sps:$4 sm:$0xff]   ;;  %v10864_v53 = vld [vmem:[#allocation10 + $0x634] ss:$24 sps:$4 sm:$0xff]  }
 0x746   :  { %v4133_v12 = vmul.f32 %v4119_v18, %v3853_v40  ;;  %v4120_v44 = vsub.f32 1.0, %v4106_v10  ;;  %11730 = vrcp.f32 %v3900_v14  ;;  %v13930_v31 = vand.u32 2147483647, %v13926_v32  ;;  %v10873_v40 = vld [vmem:[#allocation10 + $0x6c] ss:$24 sps:$4 sm:$0xff]  }
 0x747   :  { %v4135_v26 = vmul.f32 %v4121_v48, %v3855_v11  ;;  %v4122_v52 = vsub.f32 1.0, %v4108_v60  ;;  %v4054_v36 = vsub.f32 0.0, %v3872_v17  ;;  %v13946_v48 = vld [vmem:[#allocation8 + $0x8] sm:$0xff]  ;;  %v10871_v45 = vld [vmem:[#allocation10 + $0x68] ss:$24 sps:$4 sm:$0xff]   ;;  %vm3844_vm9 = vcmp.ge.f32.partialorder %v13909_v25, 0.0 }
 0x748   :  { %v4147_v9 = vadd.f32 1.0, %v4133_v12  ;;  %v4134_v49 = vmul.f32 %v4120_v44, %v3854_v7  ;;  %v3888_v63 = vmul.f32 0.3275911, %v13930_v31  ;;  %v10862_v12 = vld [vmem:[#allocation10 + $0x630] ss:$24 sps:$4 sm:$0xff]   ;;  %v2781_v62 = vrot.slane %v13946_v48, %v13658_v37 }
 0x749   :  { %v4149_v55 = vadd.f32 1.0, %v4135_v26  ;;  %v4136_v34 = vmul.f32 %v4122_v52, %v3856_v56  ;;  %v10870_v35 = vld [vmem:[#allocation10 + $0x664] ss:$24 sps:$4 sm:$0xff]   ;;  %v4068_v11 = vmul.f32 %v4054_v36, %v3872_v17  ;;  %v2785_v26 = vrot.slane %v13946_v48, %v13663_v5  ;;  %v10876_v52 = vld [vmem:[#allocation10 + $0x694] ss:$24 sps:$4 sm:$0xff]  }
 0x74a   :  { %v4148_v6 = vadd.f32 1.0, %v4134_v49  ;;  %v4161_v27 = vmul.f32 %v4147_v9, %v3811_v41  ;;  %v3902_v18 = vadd.f32 1.0, %v3888_v63  ;;  %v10879_v44 = vld [vmem:[#allocation10 + $0x9c] ss:$24 sps:$4 sm:$0xff]   ;;  %v10868_v9 = vld [vmem:[#allocation10 + $0x660] ss:$24 sps:$4 sm:$0xff]  }
 0x74b   :  { %v4150_v38 = vadd.f32 1.0, %v4136_v34  ;;  %v4163_v39 = vmul.f32 %v4149_v55, %v3813_v46  ;;  %v10877_v47 = vld [vmem:[#allocation10 + $0x98] ss:$24 sps:$4 sm:$0xff]   ;;  %v4087_v55 = vmul.f32 1.442695, %v4068_v11  ;;  %vm3843_vm10 = vcmp.ge.f32.partialorder %v13894_v24, 0.0 }
 0x74c   :  { %v4162_v54 = vmul.f32 %v4148_v6, %v3812_v50  ;;  %v13934_v19 = vpack.c.bf16 %v4161_v27, %v4161_v27  ;;  %11732 = vrcp.f32 %v3902_v18  ;;  %v10885_v46 = vld [vmem:[#allocation10 + $0xcc] ss:$24 sps:$4 sm:$0xff]   ;;  %v10891_v18 = vld [vmem:[#allocation10 + $0xfc] ss:$24 sps:$4 sm:$0xff]   ;;  %v10880_v36 = vld [vmem:[#allocation10 + $0x6c0] ss:$24 sps:$4 sm:$0xff]  }
 0x74d   :  { %v4164_v16 = vmul.f32 %v4150_v38, %v3814_v8  ;;  %v13941_v20 = vpack.c.bf16 %v4163_v39, %v4163_v39  ;;  %v10874_v38 = vld [vmem:[#allocation10 + $0x690] ss:$24 sps:$4 sm:$0xff]   ;;  %v10882_v8 = vld [vmem:[#allocation10 + $0x6c4] ss:$24 sps:$4 sm:$0xff]   ;;  %11734 = vpow2.f32 %v4087_v55  ;;  %v4056_v55 = vsub.f32 0.0, %v13930_v31 }
 0x74e   :  { %v13932_v4 = vpack.c.bf16 %v4162_v54, %v4162_v54  ;;  %v10883_v39 = vld [vmem:[#allocation10 + $0xc8] ss:$24 sps:$4 sm:$0xff]   ;;  %vm3846_vm7 = vcmp.ge.f32.partialorder %v13926_v32, 0.0 }
 0x74f   :  { %v13938_v58 = vpack.c.bf16 %v4164_v16, %v4164_v16  ;;  %v13948_v10 = vpop.eup %11728  ;;  %v10943_v32 = vld [vmem:[#allocation10 + $0x2a8] ss:$24 sps:$4 sm:$0xff]  }
 0x750   :  { %7709 = vmatprep.mubr.bf16.mxu1 %v13932_v4  ;;  %v13950_v21 = vpop.eup %11730  ;;  %v3927_v41 = vmul.f32 1.0614054, %v13948_v10 }
 0x751   :  { %7710 = vmatmul.mubr.bf16.vlgmr.msra.gmra.mrb[24].mxu1 %v13934_v19  ;;  %7750 = vmatprep.mubr.bf16.mxu0 %v13938_v58  ;;  %v3928_v60 = vmul.f32 1.0614054, %v13950_v21 }
 0x752   :  { %7924 = vmatpush1.bf16.msra.mxu1 %v10859_v0  ;;  %7955 = vmatprep.mubr.bf16.mxu1 %v13932_v4  ;;  %v3941_v16 = vadd.f32 -1.4531521, %v3927_v41 }
 0x753   :  { %7925 = vmatprep.subr.bf16.mxu1 %v10867_v33  ;;  %7751 = vmatmul.mubr.bf16.vlgmr.msra.gmra.mrb[16].mxu0 %v13941_v20  ;;  %v3942_v17 = vadd.f32 -1.4531521, %v3928_v60  ;;  %v10894_v60 = vld [vmem:[#allocation10 + $0x724] ss:$24 sps:$4 sm:$0xff]  }
 0x754   :  { %7760 = vmatpush1.bf16.msra.mxu0 %v10856_v61 }
 0x755   :  { %7761 = vmatprep.subr.bf16.mxu0 %v10864_v53  ;;  %v3956_v14 = vmul.f32 %v13950_v21, %v3942_v17  ;;  %v10903_v17 = vld [vmem:[#allocation10 + $0x15c] ss:$24 sps:$4 sm:$0xff]  }
 0x756   :  { %7926 = vmatpush1.bf16.msra.mxu1 %v10865_v59  ;;  %v13967_v0 = vpop.eup %11732 }
 0x757   :  { %7927 = vmatprep.subr.bf16.mxu1 %v10873_v40  ;;  %v3970_v33 = vadd.f32 1.4214138, %v3956_v14  ;;  %v3930_v61 = vmul.f32 1.0614054, %v13967_v0  ;;  %v3955_v40 = vmul.f32 %v13948_v10, %v3941_v16 }
 0x758   :  { %7762 = vmatpush1.bf16.msra.mxu0 %v10862_v12 }
 0x759   :  { %7763 = vmatprep.subr.bf16.mxu0 %v10870_v35  ;;  %v3984_v53 = vmul.f32 %v13950_v21, %v3970_v33  ;;  %v3944_v59 = vadd.f32 -1.4531521, %v3930_v61  ;;  %v10888_v35 = vld [vmem:[#allocation10 + $0x6f4] ss:$24 sps:$4 sm:$0xff]   ;;  %v4070_v33 = vmul.f32 %v4056_v55, %v13930_v31  ;;  %v10898_v61 = vld [vmem:[#allocation10 + $0x750] ss:$24 sps:$4 sm:$0xff]  }
 0x75a   :  { %v13957_v7 = vpop.f32.mrb[8].mxu0  ;;  %v3722_v49 = vpop.f32.mrb[16].mxu1  ;;  %7928 = vmatpush1.bf16.msra.mxu1 %v10871_v45  ;;  %v10889_v45 = vld [vmem:[#allocation10 + $0xf8] ss:$24 sps:$4 sm:$0xff]   ;;  %v10918_v55 = vld [vmem:[#allocation10 + $0x7e4] ss:$24 sps:$4 sm:$0xff]  }
 0x75b   :  { %v13960_v56 = vpop.f32.mrb[9].mxu0  ;;  %v3724_v57 = vpop.f32.mrb[17].mxu1  ;;  %v13962_v50 = vadd.f32 %v3722_v49, %v2781_v62  ;;  %7929 = vmatprep.subr.bf16.mxu1 %v10879_v44  ;;  %v3998_v12 = vadd.f32 -0.28449672, %v3984_v53  ;;  %v3958_v11 = vmul.f32 %v13967_v0, %v3944_v59  ;;  %v10897_v62 = vld [vmem:[#allocation10 + $0x12c] ss:$24 sps:$4 sm:$0xff]  }
 0x75c   :  { %v13964_v34 = vadd.f32 %v3724_v57, %v2785_v26  ;;  %v3685_v6 = vpop.f32.mrb[10].mxu0  ;;  %v3726_v27 = vpop.f32.mrb[18].mxu1  ;;  %7764 = vmatpush1.bf16.msra.mxu0 %v10868_v9  ;;  %v10886_v44 = vld [vmem:[#allocation10 + $0x6f0] ss:$24 sps:$4 sm:$0xff]   ;;  %v3969_v9 = vadd.f32 1.4214138, %v3955_v40 }
 0x75d   :  { %v3686_v54 = vpop.f32.mrb[11].mxu0  ;;  %7765 = vmatprep.subr.bf16.mxu0 %v10876_v52  ;;  %v3727_v63 = vpop.f32.mrb[19].mxu1  ;;  %v4012_v26 = vmul.f32 %v13950_v21, %v3998_v12  ;;  %v10895_v52 = vld [vmem:[#allocation10 + $0x128] ss:$24 sps:$4 sm:$0xff]   ;;  %v3972_v41 = vadd.f32 1.4214138, %v3958_v11 }
 0x75e   :  { %7930 = vmatpush1.bf16.msra.mxu1 %v10877_v47  ;;  %v4053_v47 = vsub.f32 0.0, %v13902_v23  ;;  %v11735_v6 = vpop.eup %11734  ;;  %v10892_v27 = vld [vmem:[#allocation10 + $0x720] ss:$24 sps:$4 sm:$0xff]   ;;  %v10900_v54 = vld [vmem:[#allocation10 + $0x754] ss:$24 sps:$4 sm:$0xff]   ;;  %v3858_v63 = vsel %vm3844_vm9, 1.0, %v12020_v51 }
 0x75f   :  { %7931 = vmatprep.subr.bf16.mxu1 %v10885_v46  ;;  %v4026_v49 = vadd.f32 0.2548296, %v4012_v26  ;;  %v3983_v46 = vmul.f32 %v13948_v10, %v3969_v9  ;;  %v10906_v53 = vld [vmem:[#allocation10 + $0x784] ss:$24 sps:$4 sm:$0xff]   ;;  %v10907_v59 = vld [vmem:[#allocation10 + $0x188] ss:$24 sps:$4 sm:$0xff]  }
 0x760   :  { %7766 = vmatpush1.bf16.msra.mxu0 %v10874_v38  ;;  %v10901_v38 = vld [vmem:[#allocation10 + $0x158] ss:$24 sps:$4 sm:$0xff]   ;;  %v3816_v12 = vmul.f32 0.5, %v13898_v28  ;;  %v10912_v26 = vld [vmem:[#allocation10 + $0x7b4] ss:$24 sps:$4 sm:$0xff]   ;;  %v2765_v28 = vrot.slane %v13841_v13, %v13675_v22  ;;  %v2801_v13 = vrot.slane %v13946_v48, %v13679_v15 }
 0x761   :  { %7767 = vmatprep.subr.bf16.mxu0 %v10882_v8  ;;  %v4040_v57 = vmul.f32 %v13950_v21, %v4026_v49  ;;  %v4067_v8 = vmul.f32 %v4053_v47, %v13902_v23  ;;  %v10909_v21 = vld [vmem:[#allocation10 + $0x18c] ss:$24 sps:$4 sm:$0xff]   ;;  %v10915_v23 = vld [vmem:[#allocation10 + $0x1bc] ss:$24 sps:$4 sm:$0xff]   ;;  %v10904_v31 = vld [vmem:[#allocation10 + $0x780] ss:$24 sps:$4 sm:$0xff]   ;;  %v2789_v47 = vrot.slane %v13946_v48, %v13667_v43 }
 0x762   :  { %7932 = vmatpush1.bf16.msra.mxu1 %v10883_v39  ;;  %v3986_v39 = vmul.f32 %v13967_v0, %v3972_v41  ;;  %v10921_v49 = vld [vmem:[#allocation10 + $0x1ec] ss:$24 sps:$4 sm:$0xff]   ;;  %v2797_v41 = vrot.slane %v13946_v48, %v13675_v22 }
 0x763   :  { %7933 = vmatprep.subr.bf16.mxu1 %v10891_v18  ;;  %v4110_v14 = vmul.f32 %v11735_v6, %v4040_v57  ;;  %v3997_v18 = vadd.f32 -0.28449672, %v3983_v46  ;;  %v2777_v57 = vrot.slane %v13946_v48, %v13655_v42  ;;  %v2793_v6 = vrot.slane %v13946_v48, %v13671_v3  ;;  %v10919_v46 = vld [vmem:[#allocation10 + $0x1e8] ss:$24 sps:$4 sm:$0xff]  }
 0x764   :  { %7768 = vmatpush1.bf16.msra.mxu0 %v10880_v36  ;;  %v4085_v36 = vmul.f32 1.442695, %v4067_v8  ;;  %v4000_v40 = vadd.f32 -0.28449672, %v3986_v39  ;;  %v10916_v8 = vld [vmem:[#allocation10 + $0x7e0] ss:$24 sps:$4 sm:$0xff]  }
 0x765   :  { %7769 = vmatprep.subr.bf16.mxu0 %v10888_v35  ;;  %v4124_v16 = vsub.f32 1.0, %v4110_v14  ;;  %v4091_v35 = vmul.f32 1.442695, %v4070_v33  ;;  %v4011_v11 = vmul.f32 %v13948_v10, %v3997_v18 }
 0x766   :  { %7934 = vmatpush1.bf16.msra.mxu1 %v10889_v45  ;;  %11736 = vpow2.f32 %v4085_v36  ;;  %v10925_v36 = vld [vmem:[#allocation10 + $0x218] ss:$24 sps:$4 sm:$0xff]  }
 0x767   :  { %7935 = vmatprep.subr.bf16.mxu1 %v10897_v62  ;;  %v4138_v25 = vmul.f32 %v4124_v16, %v3858_v63  ;;  %11738 = vpow2.f32 %v4091_v35  ;;  %v14010_v63 = vadd.f32 %v13960_v56, %v2777_v57  ;;  %v10922_v35 = vld [vmem:[#allocation10 + $0x810] ss:$24 sps:$4 sm:$0xff]   ;;  %v10945_v57 = vld [vmem:[#allocation10 + $0x2ac] ss:$24 sps:$4 sm:$0xff]  }
 0x768   :  { %7770 = vmatpush1.bf16.msra.mxu0 %v10886_v44  ;;  %v4014_v44 = vmul.f32 %v13967_v0, %v4000_v40 }
 0x769   :  { %7771 = vmatprep.subr.bf16.mxu0 %v10894_v60  ;;  %v4152_v45 = vadd.f32 1.0, %v4138_v25  ;;  %v10913_v60 = vld [vmem:[#allocation10 + $0x1b8] ss:$24 sps:$4 sm:$0xff]  }
 0x76a   :  { %7936 = vmatpush1.bf16.msra.mxu1 %v10895_v52  ;;  %v10910_v52 = vld [vmem:[#allocation10 + $0x7b0] ss:$24 sps:$4 sm:$0xff]  }
 0x76b   :  { %7937 = vmatprep.subr.bf16.mxu1 %v10903_v17  ;;  %v4166_v62 = vmul.f32 %v4152_v45, %v3816_v12  ;;  %v4025_v17 = vadd.f32 0.2548296, %v4011_v11  ;;  %v10933_v12 = vld [vmem:[#allocation10 + $0x24c] ss:$24 sps:$4 sm:$0xff]   ;;  %v14021_v11 = vmul.f32 0.70710677, %v14010_v63 }
 0x76c   :  { %7772 = vmatpush1.bf16.msra.mxu0 %v10892_v27  ;;  %v4028_v27 = vadd.f32 0.2548296, %v4014_v44  ;;  %v10939_v44 = vld [vmem:[#allocation10 + $0x27c] ss:$24 sps:$4 sm:$0xff]  }
 0x76d   :  { %7773 = vmatprep.subr.bf16.mxu0 %v10900_v54  ;;  %v13986_v9 = vpack.c.bf16 %v4166_v62, %v4166_v62  ;;  %v10927_v54 = vld [vmem:[#allocation10 + $0x21c] ss:$24 sps:$4 sm:$0xff]   ;;  %v4039_v15 = vmul.f32 %v13948_v10, %v4025_v17  ;;  %v10937_v17 = vld [vmem:[#allocation10 + $0x278] ss:$24 sps:$4 sm:$0xff]   ;;  %vm3848_vm12 = vcmp.ge.f32.partialorder %v14021_v11, 0.0 }
 0x76e   :  { %7938 = vmatpush1.bf16.msra.mxu1 %v10901_v38  ;;  %v14002_v38 = vadd.f32 %v13885_v2, %v2765_v28  ;;  %v10930_v62 = vld [vmem:[#allocation10 + $0x844] ss:$24 sps:$4 sm:$0xff]  }
 0x76f   :  { %7939 = vmatprep.subr.bf16.mxu1 %v10909_v21  ;;  %7791 = vmatprep.mubr.bf16.mxu0 %v13986_v9 }
 0x770   :  { %7774 = vmatpush1.bf16.msra.mxu0 %v10898_v61  ;;  %v11737_v10 = vpop.eup %11736  ;;  %v14018_v56 = vmul.f32 0.70710677, %v14002_v38 }
 0x771   :  { %7775 = vmatprep.subr.bf16.mxu0 %v10906_v53  ;;  %v10924_v53 = vld [vmem:[#allocation10 + $0x814] ss:$24 sps:$4 sm:$0xff]   ;;  %v11739_v45 = vpop.eup %11738 }
 0x772   :  { %7940 = vmatpush1.bf16.msra.mxu1 %v10907_v59  ;;  %v4042_v59 = vmul.f32 %v13967_v0, %v4028_v27  ;;  %v3860_v27 = vsel %vm3846_vm7, 1.0, %v12020_v51  ;;  %vm3845_vm11 = vcmp.ge.f32.partialorder %v14018_v56, 0.0 }
 0x773   :  { %7941 = vmatprep.subr.bf16.mxu1 %v10915_v23 }
 0x774   :  { %7776 = vmatpush1.bf16.msra.mxu0 %v10904_v31  ;;  %v4109_v31 = vmul.f32 %v11737_v10, %v4039_v15  ;;  %v4112_v0 = vmul.f32 %v11739_v45, %v4042_v59  ;;  %v3815_v59 = vmul.f32 0.5, %v13887_v1  ;;  %v10954_v10 = vld [vmem:[#allocation10 + $0x904] ss:$24 sps:$4 sm:$0xff]   ;;  %v10960_v1 = vld [vmem:[#allocation10 + $0x934] ss:$24 sps:$4 sm:$0xff]  }
 0x775   :  { %7777 = vmatprep.subr.bf16.mxu0 %v10912_v26  ;;  %v10931_v26 = vld [vmem:[#allocation10 + $0x248] ss:$24 sps:$4 sm:$0xff]  }
 0x776   :  { %7942 = vmatpush1.bf16.msra.mxu1 %v10913_v60  ;;  %v14024_v60 = vand.u32 2147483647, %v14018_v56  ;;  %v4123_v28 = vsub.f32 1.0, %v4109_v31  ;;  %v10963_v31 = vld [vmem:[#allocation10 + $0x33c] ss:$24 sps:$4 sm:$0xff]  }
 0x777   :  { %7943 = vmatprep.subr.bf16.mxu1 %v10921_v49  ;;  %v10928_v49 = vld [vmem:[#allocation10 + $0x840] ss:$24 sps:$4 sm:$0xff]  }
 0x778   :  { %7778 = vmatpush1.bf16.msra.mxu0 %v10910_v52  ;;  %v14028_v52 = vand.u32 2147483647, %v14021_v11  ;;  %v11039_v11 = vld [vmem:[#allocation10 + $0x5a8] ss:$24 sps:$4 sm:$0xff]  }
 0x779   :  { %7779 = vmatprep.subr.bf16.mxu0 %v10918_v55  ;;  %v3857_v55 = vsel %vm3843_vm10, 1.0, %v12020_v51 }
 0x77a   :  { %v3763_v14 = vpop.f32.mrb[12].mxu0  ;;  %v3804_v22 = vpop.f32.mrb[20].mxu1  ;;  %7944 = vmatpush1.bf16.msra.mxu1 %v10919_v46  ;;  %v4137_v24 = vmul.f32 %v4123_v28, %v3857_v55  ;;  %v3890_v46 = vmul.f32 0.3275911, %v14028_v52  ;;  %v10966_v28 = vld [vmem:[#allocation10 + $0x964] ss:$24 sps:$4 sm:$0xff]  }
 0x77b   :  { %v14004_v39 = vadd.f32 %v3763_v14, %v2789_v47  ;;  %v14006_v21 = vadd.f32 %v3804_v22, %v2797_v41  ;;  %v3765_v16 = vpop.f32.mrb[13].mxu0  ;;  %v3806_v33 = vpop.f32.mrb[21].mxu1  ;;  %7945 = vmatprep.subr.bf16.mxu1 %v10927_v54  ;;  %v10936_v47 = vld [vmem:[#allocation10 + $0x874] ss:$24 sps:$4 sm:$0xff]   ;;  %v4126_v41 = vsub.f32 1.0, %v4112_v0 }
 0x77c   :  { %v14012_v61 = vadd.f32 %v3765_v16, %v2793_v6  ;;  %v14014_v18 = vadd.f32 %v3806_v33, %v2801_v13  ;;  %v3767_v2 = vpop.f32.mrb[14].mxu0  ;;  %v3808_v25 = vpop.f32.mrb[22].mxu1  ;;  %7780 = vmatpush1.bf16.msra.mxu0 %v10916_v8  ;;  %v3887_v6 = vmul.f32 0.3275911, %v14024_v60  ;;  %v10934_v13 = vld [vmem:[#allocation10 + $0x870] ss:$24 sps:$4 sm:$0xff]  }
 0x77d   :  { %v3768_v40 = vpop.f32.mrb[15].mxu0  ;;  %v3809_v23 = vpop.f32.mrb[23].mxu1  ;;  %7781 = vmatprep.subr.bf16.mxu0 %v10924_v53  ;;  %v10942_v14 = vld [vmem:[#allocation10 + $0x8a4] ss:$24 sps:$4 sm:$0xff]   ;;  %v4140_v22 = vmul.f32 %v4126_v41, %v3860_v27  ;;  %v10940_v16 = vld [vmem:[#allocation10 + $0x8a0] ss:$24 sps:$4 sm:$0xff]  }
 0x77e   :  { %7946 = vmatpush1.bf16.msra.mxu1 %v10925_v36  ;;  %v10951_v54 = vld [vmem:[#allocation10 + $0x2dc] ss:$24 sps:$4 sm:$0xff]   ;;  %v3901_v8 = vadd.f32 1.0, %v3887_v6  ;;  %v4151_v33 = vadd.f32 1.0, %v4137_v24  ;;  %v3904_v15 = vadd.f32 1.0, %v3890_v46  ;;  %v3818_v40 = vmul.f32 0.5, %v13921_v30 }
 0x77f   :  { %7947 = vmatprep.subr.bf16.mxu1 %v10933_v12  ;;  %v10948_v2 = vld [vmem:[#allocation10 + $0x8d4] ss:$24 sps:$4 sm:$0xff]   ;;  %v10949_v25 = vld [vmem:[#allocation10 + $0x2d8] ss:$24 sps:$4 sm:$0xff]   ;;  %v4154_v53 = vadd.f32 1.0, %v4140_v22 }
 0x780   :  { %7782 = vmatpush1.bf16.msra.mxu0 %v10922_v35  ;;  %v10957_v36 = vld [vmem:[#allocation10 + $0x30c] ss:$24 sps:$4 sm:$0xff]   ;;  %11740 = vrcp.f32 %v3901_v8  ;;  %v10946_v23 = vld [vmem:[#allocation10 + $0x8d0] ss:$24 sps:$4 sm:$0xff]   ;;  %v4165_v12 = vmul.f32 %v4151_v33, %v3815_v59  ;;  %v10964_v55 = vld [vmem:[#allocation10 + $0x960] ss:$24 sps:$4 sm:$0xff]  }
 0x781   :  { %7783 = vmatprep.subr.bf16.mxu0 %v10930_v62  ;;  %11742 = vrcp.f32 %v3904_v15  ;;  %v10955_v35 = vld [vmem:[#allocation10 + $0x308] ss:$24 sps:$4 sm:$0xff]   ;;  %v4168_v45 = vmul.f32 %v4154_v53, %v3818_v40  ;;  %v10973_v27 = vld [vmem:[#allocation10 + $0x398] ss:$24 sps:$4 sm:$0xff]   ;;  %v10981_v46 = vld [vmem:[#allocation10 + $0x3cc] ss:$24 sps:$4 sm:$0xff]  }
 0x782   :  { %7948 = vmatpush1.bf16.msra.mxu1 %v10931_v26  ;;  %v10952_v62 = vld [vmem:[#allocation10 + $0x900] ss:$24 sps:$4 sm:$0xff]   ;;  %v14037_v0 = vpack.c.bf16 %v4165_v12, %v4165_v12  ;;  %v10993_v59 = vld [vmem:[#allocation10 + $0x42c] ss:$24 sps:$4 sm:$0xff]   ;;  %v4055_v12 = vsub.f32 0.0, %v14024_v60 }
 0x783   :  { %7949 = vmatprep.subr.bf16.mxu1 %v10939_v44  ;;  %v14040_v30 = vpack.c.bf16 %v4168_v45, %v4168_v45  ;;  %v10961_v26 = vld [vmem:[#allocation10 + $0x338] ss:$24 sps:$4 sm:$0xff]   ;;  %v10969_v44 = vld [vmem:[#allocation10 + $0x36c] ss:$24 sps:$4 sm:$0xff]   ;;  %v10967_v41 = vld [vmem:[#allocation10 + $0x368] ss:$24 sps:$4 sm:$0xff]  }
 0x784   :  { %7784 = vmatpush1.bf16.msra.mxu0 %v10928_v49  ;;  %v10958_v49 = vld [vmem:[#allocation10 + $0x930] ss:$24 sps:$4 sm:$0xff]   ;;  %v10976_v33 = vld [vmem:[#allocation10 + $0x9c0] ss:$24 sps:$4 sm:$0xff]   ;;  %v4058_v45 = vsub.f32 0.0, %v14028_v52 }
 0x785   :  { %7785 = vmatprep.subr.bf16.mxu0 %v10936_v47  ;;  %v10979_v8 = vld [vmem:[#allocation10 + $0x3c8] ss:$24 sps:$4 sm:$0xff]   ;;  %v10985_v53 = vld [vmem:[#allocation10 + $0x3f8] ss:$24 sps:$4 sm:$0xff]  }
 0x786   :  { %7950 = vmatpush1.bf16.msra.mxu1 %v10937_v17 }
 0x787   :  { %7951 = vmatprep.subr.bf16.mxu1 %v10945_v57  ;;  %v10975_v57 = vld [vmem:[#allocation10 + $0x39c] ss:$24 sps:$4 sm:$0xff]  }
 0x788   :  { %7786 = vmatpush1.bf16.msra.mxu0 %v10934_v13  ;;  %v10972_v13 = vld [vmem:[#allocation10 + $0x994] ss:$24 sps:$4 sm:$0xff]  }
 0x789   :  { %7787 = vmatprep.subr.bf16.mxu0 %v10942_v14  ;;  %v10970_v14 = vld [vmem:[#allocation10 + $0x990] ss:$24 sps:$4 sm:$0xff]  }
 0x78a   :  { %7952 = vmatpush1.bf16.msra.mxu1 %v10943_v32  ;;  %v14045_v47 = vpop.eup %11740  ;;  %v10978_v32 = vld [vmem:[#allocation10 + $0x9c4] ss:$24 sps:$4 sm:$0xff]  }
 0x78b   :  { %7953 = vmatprep.subr.bf16.mxu1 %v10951_v54  ;;  %v14047_v17 = vpop.eup %11742  ;;  %v3929_v6 = vmul.f32 1.0614054, %v14045_v47 }
 0x78c   :  { %7788 = vmatpush1.bf16.msra.mxu0 %v10940_v16  ;;  %v3932_v24 = vmul.f32 1.0614054, %v14047_v17  ;;  %v10987_v16 = vld [vmem:[#allocation10 + $0x3fc] ss:$24 sps:$4 sm:$0xff]  }
 0x78d   :  { %7789 = vmatprep.subr.bf16.mxu0 %v10948_v2  ;;  %v3943_v22 = vadd.f32 -1.4531521, %v3929_v6  ;;  %v10984_v2 = vld [vmem:[#allocation10 + $0x9f4] ss:$24 sps:$4 sm:$0xff]  }
 0x78e   :  { %7954 = vmatpush1.bf16.msra.mxu1 %v10949_v25  ;;  %v3946_v54 = vadd.f32 -1.4531521, %v3932_v24 }
 0x78f   :  { %7964 = vmatprep.subr.bf16.mxu1 %v10957_v36  ;;  %v3957_v15 = vmul.f32 %v14045_v47, %v3943_v22  ;;  %v10982_v36 = vld [vmem:[#allocation10 + $0x9f0] ss:$24 sps:$4 sm:$0xff]   ;;  %v11000_v22 = vld [vmem:[#allocation10 + $0xa80] ss:$24 sps:$4 sm:$0xff]  }
 0x790   :  { %7790 = vmatpush1.bf16.msra.mxu0 %v10946_v23  ;;  %v3960_v25 = vmul.f32 %v14047_v17, %v3946_v54  ;;  %v10990_v23 = vld [vmem:[#allocation10 + $0xa24] ss:$24 sps:$4 sm:$0xff]  }
 0x791   :  { %7800 = vmatprep.subr.bf16.mxu0 %v10954_v10  ;;  %7956 = vmatmul.mubr.bf16.vlgmr.msra.gmra.mrb[28].mxu1 %v13934_v19  ;;  %v3971_v40 = vadd.f32 1.4214138, %v3957_v15  ;;  %v11006_v15 = vld [vmem:[#allocation10 + $0xab0] ss:$24 sps:$4 sm:$0xff]  }
 0x792   :  { %7965 = vmatpush1.bf16.msra.mxu1 %v10955_v35  ;;  %7996 = vmatprep.mubr.bf16.mxu1 %v13938_v58  ;;  %v3974_v10 = vadd.f32 1.4214138, %v3960_v25  ;;  %v10991_v35 = vld [vmem:[#allocation10 + $0x428] ss:$24 sps:$4 sm:$0xff]   ;;  %v11014_v25 = vld [vmem:[#allocation10 + $0xae4] ss:$24 sps:$4 sm:$0xff]  }
 0x793   :  { %7792 = vmatmul.mubr.bf16.vlgmr.msra.gmra.mrb[16].mxu0 %v14037_v0  ;;  %7966 = vmatprep.subr.bf16.mxu1 %v10963_v31  ;;  %v10999_v31 = vld [vmem:[#allocation10 + $0x45c] ss:$24 sps:$4 sm:$0xff]  }
 0x794   :  { %7801 = vmatpush1.bf16.msra.mxu0 %v10952_v62  ;;  %7832 = vmatprep.mubr.bf16.mxu0 %v14040_v30  ;;  %v10988_v62 = vld [vmem:[#allocation10 + $0xa20] ss:$24 sps:$4 sm:$0xff]  }
 0x795   :  { %7802 = vmatprep.subr.bf16.mxu0 %v10960_v1  ;;  %v3985_v1 = vmul.f32 %v14045_v47, %v3971_v40 }
 0x796   :  { %7967 = vmatpush1.bf16.msra.mxu1 %v10961_v26  ;;  %v10996_v26 = vld [vmem:[#allocation10 + $0xa54] ss:$24 sps:$4 sm:$0xff]  }
 0x797   :  { %7968 = vmatprep.subr.bf16.mxu1 %v10969_v44  ;;  %v4069_v44 = vmul.f32 %v4055_v12, %v14024_v60  ;;  %v3999_v6 = vadd.f32 -0.28449672, %v3985_v1  ;;  %v11011_v60 = vld [vmem:[#allocation10 + $0x4bc] ss:$24 sps:$4 sm:$0xff]   ;;  %v11018_v1 = vld [vmem:[#allocation10 + $0xb10] ss:$24 sps:$4 sm:$0xff]  }
 0x798   :  { %7803 = vmatpush1.bf16.msra.mxu0 %v10958_v49  ;;  %v3988_v49 = vmul.f32 %v14047_v17, %v3974_v10  ;;  %v11020_v10 = vld [vmem:[#allocation10 + $0xb14] ss:$24 sps:$4 sm:$0xff]  }
 0x799   :  { %7804 = vmatprep.subr.bf16.mxu0 %v10966_v28  ;;  %v10997_v28 = vld [vmem:[#allocation10 + $0x458] ss:$24 sps:$4 sm:$0xff]   ;;  %v4089_v24 = vmul.f32 1.442695, %v4069_v44  ;;  %v14072_v44 = vmul.f32 0.70710677, %v13964_v34 }
 0x79a   :  { %7969 = vmatpush1.bf16.msra.mxu1 %v10967_v41  ;;  %v4072_v41 = vmul.f32 %v4058_v45, %v14028_v52  ;;  %v11008_v52 = vld [vmem:[#allocation10 + $0xab4] ss:$24 sps:$4 sm:$0xff]  }
 0x79b   :  { %7970 = vmatprep.subr.bf16.mxu1 %v10975_v57  ;;  %v11005_v57 = vld [vmem:[#allocation10 + $0x48c] ss:$24 sps:$4 sm:$0xff]   ;;  %11744 = vpow2.f32 %v4089_v24  ;;  %vm3850_vm8 = vcmp.ge.f32.partialorder %v14072_v44, 0.0 }
 0x79c   :  { %7805 = vmatpush1.bf16.msra.mxu0 %v10964_v55  ;;  %v10994_v55 = vld [vmem:[#allocation10 + $0xa50] ss:$24 sps:$4 sm:$0xff]   ;;  %v11029_v45 = vld [vmem:[#allocation10 + $0x54c] ss:$24 sps:$4 sm:$0xff]  }
 0x79d   :  { %7806 = vmatprep.subr.bf16.mxu0 %v10972_v13  ;;  %v11002_v13 = vld [vmem:[#allocation10 + $0xa84] ss:$24 sps:$4 sm:$0xff]  }
 0x79e   :  { %7971 = vmatpush1.bf16.msra.mxu1 %v10973_v27  ;;  %v4002_v27 = vadd.f32 -0.28449672, %v3988_v49 }
 0x79f   :  { %7972 = vmatprep.subr.bf16.mxu1 %v10981_v46  ;;  %v11003_v46 = vld [vmem:[#allocation10 + $0x488] ss:$24 sps:$4 sm:$0xff]  }
 0x7a0   :  { %7807 = vmatpush1.bf16.msra.mxu0 %v10970_v14  ;;  %v4095_v14 = vmul.f32 1.442695, %v4072_v41  ;;  %v4016_v54 = vmul.f32 %v14047_v17, %v4002_v27  ;;  %v11033_v27 = vld [vmem:[#allocation10 + $0x578] ss:$24 sps:$4 sm:$0xff]  }
 0x7a1   :  { %7808 = vmatprep.subr.bf16.mxu0 %v10978_v32  ;;  %v4013_v32 = vmul.f32 %v14045_v47, %v3999_v6  ;;  %v14079_v6 = vand.u32 2147483647, %v14072_v44  ;;  %v11143_v44 = vld [vmem:[#allocation10 + $0x8dc] ss:$24 sps:$4 sm:$0xff]  }
 0x7a2   :  { %7973 = vmatpush1.bf16.msra.mxu1 %v10979_v8  ;;  %v11009_v8 = vld [vmem:[#allocation10 + $0x4b8] ss:$24 sps:$4 sm:$0xff]   ;;  %11746 = vpow2.f32 %v4095_v14  ;;  %v3859_v14 = vsel %vm3845_vm11, 1.0, %v12020_v51 }
 0x7a3   :  { %7974 = vmatprep.subr.bf16.mxu1 %v10987_v16  ;;  %v11017_v16 = vld [vmem:[#allocation10 + $0x4ec] ss:$24 sps:$4 sm:$0xff]  }
 0x7a4   :  { %7809 = vmatpush1.bf16.msra.mxu0 %v10976_v33  ;;  %v2773_v33 = vrot.slane %v13946_v48, %v14702_v29 }
 0x7a5   :  { %7810 = vmatprep.subr.bf16.mxu0 %v10984_v2  ;;  %v4027_v2 = vadd.f32 0.2548296, %v4013_v32  ;;  %v3862_v32 = vsel %vm3848_vm12, 1.0, %v12020_v51 }
 0x7a6   :  { %7975 = vmatpush1.bf16.msra.mxu1 %v10985_v53  ;;  %v4030_v53 = vadd.f32 0.2548296, %v4016_v54  ;;  %v14064_v40 = vadd.f32 %v13957_v7, %v2773_v33  ;;  %v11038_v54 = vld [vmem:[#allocation10 + $0xba4] ss:$24 sps:$4 sm:$0xff]  }
 0x7a7   :  { %7976 = vmatprep.subr.bf16.mxu1 %v10993_v59  ;;  %v11015_v59 = vld [vmem:[#allocation10 + $0x4e8] ss:$24 sps:$4 sm:$0xff]   ;;  %v4041_v12 = vmul.f32 %v14045_v47, %v4027_v2  ;;  %v11026_v47 = vld [vmem:[#allocation10 + $0xb44] ss:$24 sps:$4 sm:$0xff]  }
 0x7a8   :  { %7811 = vmatpush1.bf16.msra.mxu0 %v10982_v36  ;;  %v11023_v36 = vld [vmem:[#allocation10 + $0x51c] ss:$24 sps:$4 sm:$0xff]   ;;  %v4044_v48 = vmul.f32 %v14047_v17, %v4030_v53  ;;  %v11027_v17 = vld [vmem:[#allocation10 + $0x548] ss:$24 sps:$4 sm:$0xff]  }
 0x7a9   :  { %7812 = vmatprep.subr.bf16.mxu0 %v10990_v23  ;;  %v11012_v23 = vld [vmem:[#allocation10 + $0xae0] ss:$24 sps:$4 sm:$0xff]   ;;  %v11044_v53 = vld [vmem:[#allocation10 + $0xbd4] ss:$24 sps:$4 sm:$0xff]  }
 0x7aa   :  { %7977 = vmatpush1.bf16.msra.mxu1 %v10991_v35  ;;  %v11021_v35 = vld [vmem:[#allocation10 + $0x518] ss:$24 sps:$4 sm:$0xff]  }
 0x7ab   :  { %7978 = vmatprep.subr.bf16.mxu1 %v10999_v31  ;;  %v11745_v31 = vpop.eup %11744 }
 0x7ac   :  { %7813 = vmatpush1.bf16.msra.mxu0 %v10988_v62  ;;  %v14069_v62 = vmul.f32 0.70710677, %v14064_v40  ;;  %v11747_v7 = vpop.eup %11746 }
 0x7ad   :  { %7814 = vmatprep.subr.bf16.mxu0 %v10996_v26  ;;  %v4111_v26 = vmul.f32 %v11745_v31, %v4041_v12  ;;  %v4114_v49 = vmul.f32 %v11747_v7, %v4044_v48  ;;  %v11053_v12 = vld [vmem:[#allocation10 + $0x60c] ss:$24 sps:$4 sm:$0xff]   ;;  %v11042_v48 = vld [vmem:[#allocation10 + $0xbd0] ss:$24 sps:$4 sm:$0xff]   ;;  %v11059_v7 = vld [vmem:[#allocation10 + $0x63c] ss:$24 sps:$4 sm:$0xff]  }
 0x7ae   :  { %7979 = vmatpush1.bf16.msra.mxu1 %v10997_v28  ;;  %v11035_v28 = vld [vmem:[#allocation10 + $0x57c] ss:$24 sps:$4 sm:$0xff]   ;;  %v14075_v41 = vand.u32 2147483647, %v14069_v62  ;;  %v11051_v31 = vld [vmem:[#allocation10 + $0x608] ss:$24 sps:$4 sm:$0xff]  }
 0x7af   :  { %7980 = vmatprep.subr.bf16.mxu1 %v11005_v57  ;;  %v11024_v57 = vld [vmem:[#allocation10 + $0xb40] ss:$24 sps:$4 sm:$0xff]   ;;  %v4128_v24 = vsub.f32 1.0, %v4114_v49  ;;  %vm3847_vm3 = vcmp.ge.f32.partialorder %v14069_v62, 0.0  ;;  %v11134_v62 = vld [vmem:[#allocation10 + $0xea4] ss:$24 sps:$4 sm:$0xff]  }
 0x7b0   :  { %7815 = vmatpush1.bf16.msra.mxu0 %v10994_v55  ;;  %v4125_v55 = vsub.f32 1.0, %v4111_v26  ;;  %v11048_v26 = vld [vmem:[#allocation10 + $0xc00] ss:$24 sps:$4 sm:$0xff]  }
 0x7b1   :  { %7816 = vmatprep.subr.bf16.mxu0 %v11002_v13  ;;  %v11032_v13 = vld [vmem:[#allocation10 + $0xb74] ss:$24 sps:$4 sm:$0xff]   ;;  %v11057_v49 = vld [vmem:[#allocation10 + $0x638] ss:$24 sps:$4 sm:$0xff]  }
 0x7b2   :  { %7981 = vmatpush1.bf16.msra.mxu1 %v11003_v46  ;;  %v11041_v46 = vld [vmem:[#allocation10 + $0x5ac] ss:$24 sps:$4 sm:$0xff]   ;;  %v4139_v56 = vmul.f32 %v4125_v55, %v3859_v14 }
 0x7b3   :  { %7982 = vmatprep.subr.bf16.mxu1 %v11011_v60  ;;  %v3889_v60 = vmul.f32 0.3275911, %v14075_v41 }
 0x7b4   :  { %7817 = vmatpush1.bf16.msra.mxu0 %v11000_v22  ;;  %v11030_v22 = vld [vmem:[#allocation10 + $0xb70] ss:$24 sps:$4 sm:$0xff]   ;;  %v4153_v2 = vadd.f32 1.0, %v4139_v56 }
 0x7b5   :  { %7818 = vmatprep.subr.bf16.mxu0 %v11008_v52  ;;  %v3892_v52 = vmul.f32 0.3275911, %v14079_v6  ;;  %v3903_v33 = vadd.f32 1.0, %v3889_v60  ;;  %v11068_v60 = vld [vmem:[#allocation10 + $0xc94] ss:$24 sps:$4 sm:$0xff]  }
 0x7b6   :  { %7983 = vmatpush1.bf16.msra.mxu1 %v11009_v8  ;;  %v4142_v8 = vmul.f32 %v4128_v24, %v3862_v32  ;;  %v11069_v56 = vld [vmem:[#allocation10 + $0x698] ss:$24 sps:$4 sm:$0xff]   ;;  %v11077_v32 = vld [vmem:[#allocation10 + $0x6cc] ss:$24 sps:$4 sm:$0xff]  }
 0x7b7   :  { %7984 = vmatprep.subr.bf16.mxu1 %v11017_v16  ;;  %v11047_v16 = vld [vmem:[#allocation10 + $0x5dc] ss:$24 sps:$4 sm:$0xff]   ;;  %11748 = vrcp.f32 %v3903_v33 }
 0x7b8   :  { %7819 = vmatpush1.bf16.msra.mxu0 %v11006_v15  ;;  %v11036_v15 = vld [vmem:[#allocation10 + $0xba0] ss:$24 sps:$4 sm:$0xff]   ;;  %v11083_v33 = vld [vmem:[#allocation10 + $0x6fc] ss:$24 sps:$4 sm:$0xff]  }
 0x7b9   :  { %7820 = vmatprep.subr.bf16.mxu0 %v11014_v25  ;;  %v3906_v25 = vadd.f32 1.0, %v3892_v52  ;;  %v11066_v52 = vld [vmem:[#allocation10 + $0xc90] ss:$24 sps:$4 sm:$0xff]  }
 0x7ba   :  { %7985 = vmatpush1.bf16.msra.mxu1 %v11015_v59  ;;  %v11045_v59 = vld [vmem:[#allocation10 + $0x5d8] ss:$24 sps:$4 sm:$0xff]  }
 0x7bb   :  { %7986 = vmatprep.subr.bf16.mxu1 %v11023_v36  ;;  %v4156_v36 = vadd.f32 1.0, %v4142_v8  ;;  %11750 = vrcp.f32 %v3906_v25  ;;  %v11074_v8 = vld [vmem:[#allocation10 + $0xcc4] ss:$24 sps:$4 sm:$0xff]   ;;  %v11080_v25 = vld [vmem:[#allocation10 + $0xcf4] ss:$24 sps:$4 sm:$0xff]  }
 0x7bc   :  { %7821 = vmatpush1.bf16.msra.mxu0 %v11012_v23  ;;  %v3817_v23 = vmul.f32 0.5, %v14002_v38  ;;  %v11056_v38 = vld [vmem:[#allocation10 + $0xc34] ss:$24 sps:$4 sm:$0xff]  }
 0x7bd   :  { %7822 = vmatprep.subr.bf16.mxu0 %v11020_v10  ;;  %v3820_v10 = vmul.f32 0.5, %v14010_v63 }
 0x7be   :  { %7987 = vmatpush1.bf16.msra.mxu1 %v11021_v35  ;;  %v4167_v35 = vmul.f32 %v4153_v2, %v3817_v23  ;;  %v11078_v23 = vld [vmem:[#allocation10 + $0xcf0] ss:$24 sps:$4 sm:$0xff]  }
 0x7bf   :  { %7988 = vmatprep.subr.bf16.mxu1 %v11029_v45  ;;  %v11050_v45 = vld [vmem:[#allocation10 + $0xc04] ss:$24 sps:$4 sm:$0xff]  }
 0x7c0   :  { %7823 = vmatpush1.bf16.msra.mxu0 %v11018_v1  ;;  %v4170_v1 = vmul.f32 %v4156_v36, %v3820_v10  ;;  %v11089_v36 = vld [vmem:[#allocation10 + $0x72c] ss:$24 sps:$4 sm:$0xff]  }
 0x7c1   :  { %7824 = vmatprep.subr.bf16.mxu0 %v11026_v47  ;;  %v14088_v47 = vpack.c.bf16 %v4167_v35, %v4167_v35  ;;  %v14096_v55 = vpop.eup %11748  ;;  %v11086_v10 = vld [vmem:[#allocation10 + $0xd24] ss:$24 sps:$4 sm:$0xff]  }
 0x7c2   :  { %7989 = vmatpush1.bf16.msra.mxu1 %v11027_v17  ;;  %v14091_v63 = vpack.c.bf16 %v4170_v1, %v4170_v1  ;;  %v11065_v17 = vld [vmem:[#allocation10 + $0x66c] ss:$24 sps:$4 sm:$0xff]   ;;  %v3931_v14 = vmul.f32 1.0614054, %v14096_v55  ;;  %v11095_v1 = vld [vmem:[#allocation10 + $0x75c] ss:$24 sps:$4 sm:$0xff]  }
 0x7c3   :  { %7990 = vmatprep.subr.bf16.mxu1 %v11035_v28  ;;  %v11054_v28 = vld [vmem:[#allocation10 + $0xc30] ss:$24 sps:$4 sm:$0xff]  }
 0x7c4   :  { %7825 = vmatpush1.bf16.msra.mxu0 %v11024_v57  ;;  %v11062_v57 = vld [vmem:[#allocation10 + $0xc64] ss:$24 sps:$4 sm:$0xff]  }
 0x7c5   :  { %7826 = vmatprep.subr.bf16.mxu0 %v11032_v13  ;;  %v11063_v13 = vld [vmem:[#allocation10 + $0x668] ss:$24 sps:$4 sm:$0xff]   ;;  %v14098_v24 = vpop.eup %11750 }
 0x7c6   :  { %7991 = vmatpush1.bf16.msra.mxu1 %v11033_v27  ;;  %v11071_v27 = vld [vmem:[#allocation10 + $0x69c] ss:$24 sps:$4 sm:$0xff]  }
 0x7c7   :  { %7992 = vmatprep.subr.bf16.mxu1 %v11041_v46  ;;  %v11060_v46 = vld [vmem:[#allocation10 + $0xc60] ss:$24 sps:$4 sm:$0xff]  }
 0x7c8   :  { %7827 = vmatpush1.bf16.msra.mxu0 %v11030_v22  ;;  %v3934_v22 = vmul.f32 1.0614054, %v14098_v24 }
 0x7c9   :  { %7828 = vmatprep.subr.bf16.mxu0 %v11038_v54  ;;  %v3945_v54 = vadd.f32 -1.4531521, %v3931_v14  ;;  %v11098_v14 = vld [vmem:[#allocation10 + $0xd84] ss:$24 sps:$4 sm:$0xff]  }
 0x7ca   :  { %7993 = vmatpush1.bf16.msra.mxu1 %v11039_v11  ;;  %v3948_v11 = vadd.f32 -1.4531521, %v3934_v22 }
 0x7cb   :  { %7994 = vmatprep.subr.bf16.mxu1 %v11047_v16  ;;  %v11075_v16 = vld [vmem:[#allocation10 + $0x6c8] ss:$24 sps:$4 sm:$0xff]   ;;  %v3959_v2 = vmul.f32 %v14096_v55, %v3945_v54 }
 0x7cc   :  { %7829 = vmatpush1.bf16.msra.mxu0 %v11036_v15  ;;  %v11072_v15 = vld [vmem:[#allocation10 + $0xcc0] ss:$24 sps:$4 sm:$0xff]  }
 0x7cd   :  { %7830 = vmatprep.subr.bf16.mxu0 %v11044_v53  ;;  %v3962_v53 = vmul.f32 %v14098_v24, %v3948_v11  ;;  %v11105_v11 = vld [vmem:[#allocation10 + $0x7b8] ss:$24 sps:$4 sm:$0xff]  }
 0x7ce   :  { %7995 = vmatpush1.bf16.msra.mxu1 %v11045_v59  ;;  %v11081_v59 = vld [vmem:[#allocation10 + $0x6f8] ss:$24 sps:$4 sm:$0xff]  }
 0x7cf   :  { %8005 = vmatprep.subr.bf16.mxu1 %v11053_v12  ;;  %v3973_v12 = vadd.f32 1.4214138, %v3959_v2  ;;  %v3976_v35 = vadd.f32 1.4214138, %v3962_v53  ;;  %v11110_v2 = vld [vmem:[#allocation10 + $0xde4] ss:$24 sps:$4 sm:$0xff]  }
 0x7d0   :  { %7831 = vmatpush1.bf16.msra.mxu0 %v11042_v48  ;;  %v4057_v48 = vsub.f32 0.0, %v14075_v41  ;;  %v11111_v53 = vld [vmem:[#allocation10 + $0x7e8] ss:$24 sps:$4 sm:$0xff]  }
 0x7d1   :  { %7841 = vmatprep.subr.bf16.mxu0 %v11050_v45  ;;  %7997 = vmatmul.mubr.bf16.vlgmr.msra.gmra.mrb[28].mxu1 %v13941_v20  ;;  %v11087_v45 = vld [vmem:[#allocation10 + $0x728] ss:$24 sps:$4 sm:$0xff]  }
 0x7d2   :  { %8006 = vmatpush1.bf16.msra.mxu1 %v11051_v31  ;;  %8037 = vmatprep.mubr.bf16.mxu1 %v13986_v9  ;;  %v4060_v31 = vsub.f32 0.0, %v14079_v6 }
 0x7d3   :  { %7833 = vmatmul.mubr.bf16.vlgmr.msra.gmra.mrb[16].mxu0 %v14088_v47  ;;  %8007 = vmatprep.subr.bf16.mxu1 %v11059_v7  ;;  %v11084_v7 = vld [vmem:[#allocation10 + $0xd20] ss:$24 sps:$4 sm:$0xff]  }
 0x7d4   :  { %7842 = vmatpush1.bf16.msra.mxu0 %v11048_v26  ;;  %7873 = vmatprep.mubr.bf16.mxu0 %v14091_v63  ;;  %v3987_v26 = vmul.f32 %v14096_v55, %v3973_v12  ;;  %v11116_v12 = vld [vmem:[#allocation10 + $0xe14] ss:$24 sps:$4 sm:$0xff]  }
 0x7d5   :  { %7843 = vmatprep.subr.bf16.mxu0 %v11056_v38  ;;  %v11092_v38 = vld [vmem:[#allocation10 + $0xd54] ss:$24 sps:$4 sm:$0xff]  }
 0x7d6   :  { %8008 = vmatpush1.bf16.msra.mxu1 %v11057_v49  ;;  %v4071_v49 = vmul.f32 %v4057_v48, %v14075_v41  ;;  %v11107_v41 = vld [vmem:[#allocation10 + $0x7bc] ss:$24 sps:$4 sm:$0xff]   ;;  %v11117_v48 = vld [vmem:[#allocation10 + $0x818] ss:$24 sps:$4 sm:$0xff]  }
 0x7d7   :  { %8009 = vmatprep.subr.bf16.mxu1 %v11065_v17  ;;  %v3990_v17 = vmul.f32 %v14098_v24, %v3976_v35  ;;  %v11125_v35 = vld [vmem:[#allocation10 + $0x84c] ss:$24 sps:$4 sm:$0xff]  }
 0x7d8   :  { %7844 = vmatpush1.bf16.msra.mxu0 %v11054_v28  ;;  %v11093_v28 = vld [vmem:[#allocation10 + $0x758] ss:$24 sps:$4 sm:$0xff]  }
 0x7d9   :  { %7845 = vmatprep.subr.bf16.mxu0 %v11062_v57  ;;  %v4074_v57 = vmul.f32 %v4060_v31, %v14079_v6  ;;  %v4004_v22 = vadd.f32 -0.28449672, %v3990_v17  ;;  %v11104_v6 = vld [vmem:[#allocation10 + $0xdb4] ss:$24 sps:$4 sm:$0xff]   ;;  %v14115_v31 = vmul.f32 0.70710677, %v13962_v50 }
 0x7da   :  { %8010 = vmatpush1.bf16.msra.mxu1 %v11063_v13  ;;  %v11101_v13 = vld [vmem:[#allocation10 + $0x78c] ss:$24 sps:$4 sm:$0xff]   ;;  %v11131_v17 = vld [vmem:[#allocation10 + $0x87c] ss:$24 sps:$4 sm:$0xff]  }
 0x7db   :  { %8011 = vmatprep.subr.bf16.mxu1 %v11071_v27  ;;  %v11090_v27 = vld [vmem:[#allocation10 + $0xd50] ss:$24 sps:$4 sm:$0xff]   ;;  %vm3849_vm0 = vcmp.ge.f32.partialorder %v14115_v31, 0.0 }
 0x7dc   :  { %7846 = vmatpush1.bf16.msra.mxu0 %v11060_v46  ;;  %v4001_v46 = vadd.f32 -0.28449672, %v3987_v26 }
 0x7dd   :  { %7847 = vmatprep.subr.bf16.mxu0 %v11068_v60  ;;  %v4093_v60 = vmul.f32 1.442695, %v4071_v49 }
 0x7de   :  { %8012 = vmatpush1.bf16.msra.mxu1 %v11069_v56  ;;  %v11099_v56 = vld [vmem:[#allocation10 + $0x788] ss:$24 sps:$4 sm:$0xff]   ;;  %v4015_v54 = vmul.f32 %v14096_v55, %v4001_v46  ;;  %v11129_v46 = vld [vmem:[#allocation10 + $0x878] ss:$24 sps:$4 sm:$0xff]  }
 0x7df   :  { %8013 = vmatprep.subr.bf16.mxu1 %v11077_v32  ;;  %v4099_v32 = vmul.f32 1.442695, %v4074_v57  ;;  %11752 = vpow2.f32 %v4093_v60  ;;  %v3861_v60 = vsel %vm3847_vm3, 1.0, %v12020_v51 }
 0x7e0   :  { %7848 = vmatpush1.bf16.msra.mxu0 %v11066_v52  ;;  %v11096_v52 = vld [vmem:[#allocation10 + $0xd80] ss:$24 sps:$4 sm:$0xff]  }
 0x7e1   :  { %7849 = vmatprep.subr.bf16.mxu0 %v11074_v8  ;;  %v4018_v8 = vmul.f32 %v14098_v24, %v4004_v22  ;;  %11754 = vpow2.f32 %v4099_v32 }
 0x7e2   :  { %8014 = vmatpush1.bf16.msra.mxu1 %v11075_v16  ;;  %v11113_v16 = vld [vmem:[#allocation10 + $0x7ec] ss:$24 sps:$4 sm:$0xff]  }
 0x7e3   :  { %8015 = vmatprep.subr.bf16.mxu1 %v11083_v33  ;;  %v11102_v33 = vld [vmem:[#allocation10 + $0xdb0] ss:$24 sps:$4 sm:$0xff]  }
 0x7e4   :  { %7850 = vmatpush1.bf16.msra.mxu0 %v11072_v15  ;;  %v4029_v15 = vadd.f32 0.2548296, %v4015_v54  ;;  %v11135_v54 = vld [vmem:[#allocation10 + $0x8a8] ss:$24 sps:$4 sm:$0xff]  }
 0x7e5   :  { %7851 = vmatprep.subr.bf16.mxu0 %v11080_v25  ;;  %v4032_v25 = vadd.f32 0.2548296, %v4018_v8  ;;  %v11132_v8 = vld [vmem:[#allocation10 + $0xea0] ss:$24 sps:$4 sm:$0xff]  }
 0x7e6   :  { %8016 = vmatpush1.bf16.msra.mxu1 %v11081_v59  ;;  %v11119_v59 = vld [vmem:[#allocation10 + $0x81c] ss:$24 sps:$4 sm:$0xff]  }
 0x7e7   :  { %8017 = vmatprep.subr.bf16.mxu1 %v11089_v36  ;;  %v11108_v36 = vld [vmem:[#allocation10 + $0xde0] ss:$24 sps:$4 sm:$0xff]  }
 0x7e8   :  { %7852 = vmatpush1.bf16.msra.mxu0 %v11078_v23  ;;  %v4043_v23 = vmul.f32 %v14096_v55, %v4029_v15  ;;  %v11123_v55 = vld [vmem:[#allocation10 + $0x848] ss:$24 sps:$4 sm:$0xff]  }
 0x7e9   :  { %7853 = vmatprep.subr.bf16.mxu0 %v11086_v10  ;;  %v4046_v10 = vmul.f32 %v14098_v24, %v4032_v25  ;;  %v14118_v24 = vand.u32 2147483647, %v14115_v31  ;;  %v11149_v25 = vld [vmem:[#allocation10 + $0x90c] ss:$24 sps:$4 sm:$0xff]   ;;  %v11228_v31 = vld [vmem:[#allocation10 + $0x11a0] ss:$24 sps:$4 sm:$0xff]  }
 0x7ea   :  { %8018 = vmatpush1.bf16.msra.mxu1 %v11087_v45  ;;  %v11753_v45 = vpop.eup %11752 }
 0x7eb   :  { %8019 = vmatprep.subr.bf16.mxu1 %v11095_v1  ;;  %v11114_v1 = vld [vmem:[#allocation10 + $0xe10] ss:$24 sps:$4 sm:$0xff]   ;;  %v4113_v26 = vmul.f32 %v11753_v45, %v4043_v23  ;;  %v3891_v22 = vmul.f32 0.3275911, %v14118_v24  ;;  %v11146_v23 = vld [vmem:[#allocation10 + $0xf04] ss:$24 sps:$4 sm:$0xff]  }
 0x7ec   :  { %7854 = vmatpush1.bf16.msra.mxu0 %v11084_v7  ;;  %v11755_v7 = vpop.eup %11754 }
 0x7ed   :  { %7855 = vmatprep.subr.bf16.mxu0 %v11092_v38  ;;  %v11122_v38 = vld [vmem:[#allocation10 + $0xe44] ss:$24 sps:$4 sm:$0xff]   ;;  %v4116_v49 = vmul.f32 %v11755_v7, %v4046_v10  ;;  %v4127_v57 = vsub.f32 1.0, %v4113_v26  ;;  %v11150_v26 = vld [vmem:[#allocation10 + $0xf30] ss:$24 sps:$4 sm:$0xff]  }
 0x7ee   :  { %8020 = vmatpush1.bf16.msra.mxu1 %v11093_v28  ;;  %v11120_v28 = vld [vmem:[#allocation10 + $0xe40] ss:$24 sps:$4 sm:$0xff]   ;;  %v11161_v7 = vld [vmem:[#allocation10 + $0x96c] ss:$24 sps:$4 sm:$0xff]  }
 0x7ef   :  { %8021 = vmatprep.subr.bf16.mxu1 %v11101_v13  ;;  %v11128_v13 = vld [vmem:[#allocation10 + $0xe74] ss:$24 sps:$4 sm:$0xff]   ;;  %v4141_v32 = vmul.f32 %v4127_v57, %v3861_v60 }
 0x7f0   :  { %7856 = vmatpush1.bf16.msra.mxu0 %v11090_v27  ;;  %v4130_v27 = vsub.f32 1.0, %v4116_v49 }
 0x7f1   :  { %7857 = vmatprep.subr.bf16.mxu0 %v11098_v14  ;;  %v11137_v14 = vld [vmem:[#allocation10 + $0x8ac] ss:$24 sps:$4 sm:$0xff]  }
 0x7f2   :  { %8022 = vmatpush1.bf16.msra.mxu1 %v11099_v56  ;;  %v11126_v56 = vld [vmem:[#allocation10 + $0xe70] ss:$24 sps:$4 sm:$0xff]  }
 0x7f3   :  { %8023 = vmatprep.subr.bf16.mxu1 %v11107_v41  ;;  %v3864_v41 = vsel %vm3850_vm8, 1.0, %v12020_v51 }
 0x7f4   :  { %7858 = vmatpush1.bf16.msra.mxu0 %v11096_v52  ;;  %v4144_v52 = vmul.f32 %v4130_v27, %v3864_v41  ;;  %v11165_v27 = vld [vmem:[#allocation10 + $0x998] ss:$24 sps:$4 sm:$0xff]  }
 0x7f5   :  { %7859 = vmatprep.subr.bf16.mxu0 %v11104_v6  ;;  %v3905_v6 = vadd.f32 1.0, %v3891_v22  ;;  %v11170_v22 = vld [vmem:[#allocation10 + $0xfc4] ss:$24 sps:$4 sm:$0xff]   ;;  %v11168_v41 = vld [vmem:[#allocation10 + $0xfc0] ss:$24 sps:$4 sm:$0xff]  }
 0x7f6   :  { %8024 = vmatpush1.bf16.msra.mxu1 %v11105_v11  ;;  %v4155_v11 = vadd.f32 1.0, %v4141_v32  ;;  %v4158_v15 = vadd.f32 1.0, %v4144_v52  ;;  %v11179_v32 = vld [vmem:[#allocation10 + $0x9fc] ss:$24 sps:$4 sm:$0xff]  }
 0x7f7   :  { %8025 = vmatprep.subr.bf16.mxu1 %v11113_v16  ;;  %v11140_v16 = vld [vmem:[#allocation10 + $0xed4] ss:$24 sps:$4 sm:$0xff]   ;;  %11756 = vrcp.f32 %v3905_v6 }
 0x7f8   :  { %7860 = vmatpush1.bf16.msra.mxu0 %v11102_v33  ;;  %v11141_v33 = vld [vmem:[#allocation10 + $0x8d8] ss:$24 sps:$4 sm:$0xff]   ;;  %v11176_v52 = vld [vmem:[#allocation10 + $0xff4] ss:$24 sps:$4 sm:$0xff]  }
 0x7f9   :  { %7861 = vmatprep.subr.bf16.mxu0 %v11110_v2  ;;  %v3819_v2 = vmul.f32 0.5, %v14064_v40  ;;  %v11152_v40 = vld [vmem:[#allocation10 + $0xf34] ss:$24 sps:$4 sm:$0xff]  }
 0x7fa   :  { %8026 = vmatpush1.bf16.msra.mxu1 %v11111_v53  ;;  %v3822_v53 = vmul.f32 0.5, %v13964_v34  ;;  %v11153_v34 = vld [vmem:[#allocation10 + $0x938] ss:$24 sps:$4 sm:$0xff]   ;;  %v11185_v6 = vld [vmem:[#allocation10 + $0xa2c] ss:$24 sps:$4 sm:$0xff]  }
 0x7fb   :  { %8027 = vmatprep.subr.bf16.mxu1 %v11119_v59  ;;  %v11138_v59 = vld [vmem:[#allocation10 + $0xed0] ss:$24 sps:$4 sm:$0xff]  }
 0x7fc   :  { %7862 = vmatpush1.bf16.msra.mxu0 %v11108_v36  ;;  %v4169_v36 = vmul.f32 %v4155_v11, %v3819_v2  ;;  %v4172_v10 = vmul.f32 %v4158_v15, %v3822_v53  ;;  %v11182_v15 = vld [vmem:[#allocation10 + $0x1024] ss:$24 sps:$4 sm:$0xff]   ;;  %v4059_v2 = vsub.f32 0.0, %v14118_v24  ;;  %v11183_v53 = vld [vmem:[#allocation10 + $0xa28] ss:$24 sps:$4 sm:$0xff]  }
 0x7fd   :  { %7863 = vmatprep.subr.bf16.mxu0 %v11116_v12  ;;  %v11147_v12 = vld [vmem:[#allocation10 + $0x908] ss:$24 sps:$4 sm:$0xff]  }
 0x7fe   :  { %8028 = vmatpush1.bf16.msra.mxu1 %v11117_v48  ;;  %v11155_v48 = vld [vmem:[#allocation10 + $0x93c] ss:$24 sps:$4 sm:$0xff]   ;;  %v14127_v45 = vpack.c.bf16 %v4169_v36, %v4169_v36  ;;  %v11180_v36 = vld [vmem:[#allocation10 + $0x1020] ss:$24 sps:$4 sm:$0xff]  }
 0x7ff   :  { %8029 = vmatprep.subr.bf16.mxu1 %v11125_v35  ;;  %v11144_v35 = vld [vmem:[#allocation10 + $0xf00] ss:$24 sps:$4 sm:$0xff]  }
 0x800   :  { %7864 = vmatpush1.bf16.msra.mxu0 %v11114_v1  ;;  %v14130_v1 = vpack.c.bf16 %v4172_v10, %v4172_v10  ;;  %v4073_v10 = vmul.f32 %v4059_v2, %v14118_v24  ;;  %v11200_v24 = vld [vmem:[#allocation10 + $0x10b4] ss:$24 sps:$4 sm:$0xff]   ;;  %v11216_v2 = vld [vmem:[#allocation10 + $0x1140] ss:$24 sps:$4 sm:$0xff]  }
 0x801   :  { %7865 = vmatprep.subr.bf16.mxu0 %v11122_v38  ;;  %v11158_v38 = vld [vmem:[#allocation10 + $0xf64] ss:$24 sps:$4 sm:$0xff]   ;;  %v14135_v49 = vpop.eup %11756 }
 0x802   :  { %8030 = vmatpush1.bf16.msra.mxu1 %v11123_v55  ;;  %v11159_v55 = vld [vmem:[#allocation10 + $0x968] ss:$24 sps:$4 sm:$0xff]   ;;  %v3933_v57 = vmul.f32 1.0614054, %v14135_v49 }
 0x803   :  { %8031 = vmatprep.subr.bf16.mxu1 %v11131_v17  ;;  %v11167_v17 = vld [vmem:[#allocation10 + $0x99c] ss:$24 sps:$4 sm:$0xff]  }
 0x804   :  { %7866 = vmatpush1.bf16.msra.mxu0 %v11120_v28  ;;  %v11156_v28 = vld [vmem:[#allocation10 + $0xf60] ss:$24 sps:$4 sm:$0xff]   ;;  %v3947_v60 = vadd.f32 -1.4531521, %v3933_v57 }
 0x805   :  { %7867 = vmatprep.subr.bf16.mxu0 %v11128_v13  ;;  %v11164_v13 = vld [vmem:[#allocation10 + $0xf94] ss:$24 sps:$4 sm:$0xff]   ;;  %v11201_v57 = vld [vmem:[#allocation10 + $0xab8] ss:$24 sps:$4 sm:$0xff]  }
 0x806   :  { %8032 = vmatpush1.bf16.msra.mxu1 %v11129_v46  ;;  %v11173_v46 = vld [vmem:[#allocation10 + $0x9cc] ss:$24 sps:$4 sm:$0xff]  }
 0x807   :  { %8033 = vmatprep.subr.bf16.mxu1 %v11137_v14  ;;  %v11162_v14 = vld [vmem:[#allocation10 + $0xf90] ss:$24 sps:$4 sm:$0xff]  }
 0x808   :  { %7868 = vmatpush1.bf16.msra.mxu0 %v11126_v56  ;;  %v11171_v56 = vld [vmem:[#allocation10 + $0x9c8] ss:$24 sps:$4 sm:$0xff]  }
 0x809   :  { %7869 = vmatprep.subr.bf16.mxu0 %v11134_v62  ;;  %v3961_v62 = vmul.f32 %v14135_v49, %v3947_v60  ;;  %v11207_v60 = vld [vmem:[#allocation10 + $0xae8] ss:$24 sps:$4 sm:$0xff]  }
 0x80a   :  { %8034 = vmatpush1.bf16.msra.mxu1 %v11135_v54  ;;  %v11177_v54 = vld [vmem:[#allocation10 + $0x9f8] ss:$24 sps:$4 sm:$0xff]  }
 0x80b   :  { %8035 = vmatprep.subr.bf16.mxu1 %v11143_v44 }
 0x80c   :  { %7870 = vmatpush1.bf16.msra.mxu0 %v11132_v8  ;;  %v11174_v8 = vld [vmem:[#allocation10 + $0xff0] ss:$24 sps:$4 sm:$0xff]  }
 0x80d   :  { %7871 = vmatprep.subr.bf16.mxu0 %v11140_v16  ;;  %v3975_v16 = vadd.f32 1.4214138, %v3961_v62  ;;  %v11213_v62 = vld [vmem:[#allocation10 + $0xb18] ss:$24 sps:$4 sm:$0xff]  }
 0x80e   :  { %8036 = vmatpush1.bf16.msra.mxu1 %v11141_v33 }
 0x80f   :  { %8046 = vmatprep.subr.bf16.mxu1 %v11149_v25 }
 0x810   :  { %7872 = vmatpush1.bf16.msra.mxu0 %v11138_v59  ;;  %v11191_v59 = vld [vmem:[#allocation10 + $0xa5c] ss:$24 sps:$4 sm:$0xff]  }
 0x811   :  { %7882 = vmatprep.subr.bf16.mxu0 %v11146_v23  ;;  %8038 = vmatmul.mubr.bf16.vlgmr.msra.gmra.mrb[28].mxu1 %v14037_v0  ;;  %v3989_v23 = vmul.f32 %v14135_v49, %v3975_v16  ;;  %v11218_v16 = vld [vmem:[#allocation10 + $0x1144] ss:$24 sps:$4 sm:$0xff]  }
 0x812   :  { %8047 = vmatpush1.bf16.msra.mxu1 %v11147_v12  ;;  %8078 = vmatprep.mubr.bf16.mxu1 %v14040_v30  ;;  %v11188_v12 = vld [vmem:[#allocation10 + $0x1054] ss:$24 sps:$4 sm:$0xff]  }
 0x813   :  { %7874 = vmatmul.mubr.bf16.vlgmr.msra.gmra.mrb[16].mxu0 %v14127_v45  ;;  %8048 = vmatprep.subr.bf16.mxu1 %v11155_v48  ;;  %v11189_v48 = vld [vmem:[#allocation10 + $0xa58] ss:$24 sps:$4 sm:$0xff]  }
 0x814   :  { %7883 = vmatpush1.bf16.msra.mxu0 %v11144_v35  ;;  %7914 = vmatprep.mubr.bf16.mxu0 %v14130_v1  ;;  %v11197_v35 = vld [vmem:[#allocation10 + $0xa8c] ss:$24 sps:$4 sm:$0xff]  }
 0x815   :  { %7884 = vmatprep.subr.bf16.mxu0 %v11152_v40  ;;  %v11186_v40 = vld [vmem:[#allocation10 + $0x1050] ss:$24 sps:$4 sm:$0xff]  }
 0x816   :  { %8049 = vmatpush1.bf16.msra.mxu1 %v11153_v34  ;;  %v4003_v34 = vadd.f32 -0.28449672, %v3989_v23  ;;  %v11222_v23 = vld [vmem:[#allocation10 + $0x1170] ss:$24 sps:$4 sm:$0xff]  }
 0x817   :  { %8050 = vmatprep.subr.bf16.mxu1 %v11161_v7  ;;  %v11194_v7 = vld [vmem:[#allocation10 + $0x1084] ss:$24 sps:$4 sm:$0xff]  }
 0x818   :  { %7885 = vmatpush1.bf16.msra.mxu0 %v11150_v26  ;;  %v4097_v26 = vmul.f32 1.442695, %v4073_v10  ;;  %v11230_v10 = vld [vmem:[#allocation10 + $0x11a4] ss:$24 sps:$4 sm:$0xff]  }
 0x819   :  { %7886 = vmatprep.subr.bf16.mxu0 %v11158_v38  ;;  %v11195_v38 = vld [vmem:[#allocation10 + $0xa88] ss:$24 sps:$4 sm:$0xff]  }
 0x81a   :  { %8051 = vmatpush1.bf16.msra.mxu1 %v11159_v55  ;;  %v11203_v55 = vld [vmem:[#allocation10 + $0xabc] ss:$24 sps:$4 sm:$0xff]   ;;  %11758 = vpow2.f32 %v4097_v26  ;;  %v3821_v26 = vmul.f32 0.5, %v13962_v50  ;;  %v11246_v50 = vld [vmem:[#allocation10 + $0xc38] ss:$24 sps:$4 sm:$0xff]  }
 0x81b   :  { %8052 = vmatprep.subr.bf16.mxu1 %v11167_v17  ;;  %v11192_v17 = vld [vmem:[#allocation10 + $0x1080] ss:$24 sps:$4 sm:$0xff]  }
 0x81c   :  { %7887 = vmatpush1.bf16.msra.mxu0 %v11156_v28  ;;  %v4017_v28 = vmul.f32 %v14135_v49, %v4003_v34  ;;  %v11236_v34 = vld [vmem:[#allocation10 + $0x11d4] ss:$24 sps:$4 sm:$0xff]  }
 0x81d   :  { %7888 = vmatprep.subr.bf16.mxu0 %v11164_v13  ;;  %v11209_v13 = vld [vmem:[#allocation10 + $0xaec] ss:$24 sps:$4 sm:$0xff]  }
 0x81e   :  { %8053 = vmatpush1.bf16.msra.mxu1 %v11165_v27  ;;  %v11198_v27 = vld [vmem:[#allocation10 + $0x10b0] ss:$24 sps:$4 sm:$0xff]  }
 0x81f   :  { %8054 = vmatprep.subr.bf16.mxu1 %v11173_v46  ;;  %v4031_v46 = vadd.f32 0.2548296, %v4017_v28  ;;  %v11245_v28 = vld [vmem:[#allocation10 + $0x14] ss:$24 sps:$4 sm:$0xff]  }
 0x820   :  { %7889 = vmatpush1.bf16.msra.mxu0 %v11162_v14  ;;  %v11206_v14 = vld [vmem:[#allocation10 + $0x10e4] ss:$24 sps:$4 sm:$0xff]  }
 0x821   :  { %7890 = vmatprep.subr.bf16.mxu0 %v11170_v22  ;;  %v11215_v22 = vld [vmem:[#allocation10 + $0xb1c] ss:$24 sps:$4 sm:$0xff]  }
 0x822   :  { %8055 = vmatpush1.bf16.msra.mxu1 %v11171_v56  ;;  %v11204_v56 = vld [vmem:[#allocation10 + $0x10e0] ss:$24 sps:$4 sm:$0xff]  }
 0x823   :  { %8056 = vmatprep.subr.bf16.mxu1 %v11179_v32  ;;  %v4045_v32 = vmul.f32 %v14135_v49, %v4031_v46  ;;  %v11251_v46 = vld [vmem:[#allocation10 + $0x44] ss:$24 sps:$4 sm:$0xff]  }
 0x824   :  { %v14139_v44 = vpop.f32.mrb[24].mxu1  ;;  %7891 = vmatpush1.bf16.msra.mxu0 %v11168_v41  ;;  %v11212_v41 = vld [vmem:[#allocation10 + $0x1114] ss:$24 sps:$4 sm:$0xff]  }
 0x825   :  { %v14141_v11 = vpop.f32.mrb[25].mxu1  ;;  %7892 = vmatprep.subr.bf16.mxu0 %v11176_v52  ;;  %v11221_v52 = vld [vmem:[#allocation10 + $0xb4c] ss:$24 sps:$4 sm:$0xff]  }
 0x826   :  { %v7715_v33 = vpop.f32.mrb[26].mxu1  ;;  %8057 = vmatpush1.bf16.msra.mxu1 %v11177_v54  ;;  %v11759_v54 = vpop.eup %11758 }
 0x827   :  { %v7716_v25 = vpop.f32.mrb[27].mxu1  ;;  %8058 = vmatprep.subr.bf16.mxu1 %v11185_v6  ;;  %v11210_v6 = vld [vmem:[#allocation10 + $0x1110] ss:$24 sps:$4 sm:$0xff]  }
 0x828   :  { %7893 = vmatpush1.bf16.msra.mxu0 %v11174_v8  ;;  %v4115_v8 = vmul.f32 %v11759_v54, %v4045_v32  ;;  %v11219_v33 = vld [vmem:[#allocation10 + $0xb48] ss:$24 sps:$4 sm:$0xff]   ;;  %v11224_v25 = vld [vmem:[#allocation10 + $0x1174] ss:$24 sps:$4 sm:$0xff]  }
 0x829   :  { %7894 = vmatprep.subr.bf16.mxu0 %v11182_v15  ;;  %v11227_v15 = vld [vmem:[#allocation10 + $0xb7c] ss:$24 sps:$4 sm:$0xff]   ;;  %v11266_v54 = vld [vmem:[#allocation10 + $0xccc] ss:$24 sps:$4 sm:$0xff]  }
 0x82a   :  { %8059 = vmatpush1.bf16.msra.mxu1 %v11183_v53  ;;  %v4129_v49 = vsub.f32 1.0, %v4115_v8  ;;  %v11225_v53 = vld [vmem:[#allocation10 + $0xb78] ss:$24 sps:$4 sm:$0xff]   ;;  %v11260_v32 = vld [vmem:[#allocation10 + $0xc9c] ss:$24 sps:$4 sm:$0xff]  }
 0x82b   :  { %8060 = vmatprep.subr.bf16.mxu1 %v11191_v59  ;;  %v11233_v59 = vld [vmem:[#allocation10 + $0xbac] ss:$24 sps:$4 sm:$0xff]  }
 0x82c   :  { %7895 = vmatpush1.bf16.msra.mxu0 %v11180_v36  ;;  %v3863_v36 = vsel %vm3849_vm0, 1.0, %v12020_v51  ;;  %v11269_v8 = vld [vmem:[#allocation10 + $0xd4] ss:$24 sps:$4 sm:$0xff]  }
 0x82d   :  { %7896 = vmatprep.subr.bf16.mxu0 %v11188_v12  ;;  %v4143_v12 = vmul.f32 %v4129_v49, %v3863_v36  ;;  %v11278_v49 = vld [vmem:[#allocation10 + $0xd2c] ss:$24 sps:$4 sm:$0xff]   ;;  %v11284_v36 = vld [vmem:[#allocation10 + $0xd5c] ss:$24 sps:$4 sm:$0xff]  }
 0x82e   :  { %8061 = vmatpush1.bf16.msra.mxu1 %v11189_v48  ;;  %v11231_v48 = vld [vmem:[#allocation10 + $0xba8] ss:$24 sps:$4 sm:$0xff]  }
 0x82f   :  { %8062 = vmatprep.subr.bf16.mxu1 %v11197_v35  ;;  %v11239_v35 = vld [vmem:[#allocation10 + $0xbdc] ss:$24 sps:$4 sm:$0xff]  }
 0x830   :  { %7897 = vmatpush1.bf16.msra.mxu0 %v11186_v40  ;;  %v4157_v40 = vadd.f32 1.0, %v4143_v12  ;;  %v11287_v12 = vld [vmem:[#allocation10 + $0x164] ss:$24 sps:$4 sm:$0xff]  }
 0x831   :  { %7898 = vmatprep.subr.bf16.mxu0 %v11194_v7  ;;  %v11237_v7 = vld [vmem:[#allocation10 + $0xbd8] ss:$24 sps:$4 sm:$0xff]  }
 0x832   :  { %8063 = vmatpush1.bf16.msra.mxu1 %v11195_v38  ;;  %v11242_v38 = vld [vmem:[#allocation10 + $0xc0c] ss:$24 sps:$4 sm:$0xff]  }
 0x833   :  { %8064 = vmatprep.subr.bf16.mxu1 %v11203_v55  ;;  %v11234_v55 = vld [vmem:[#allocation10 + $0x11d0] ss:$24 sps:$4 sm:$0xff]  }
 0x834   :  { %7899 = vmatpush1.bf16.msra.mxu0 %v11192_v17  ;;  %v4171_v17 = vmul.f32 %v4157_v40, %v3821_v26  ;;  %v11288_v40 = vld [vmem:[#allocation10 + $0xd88] ss:$24 sps:$4 sm:$0xff]   ;;  %v11299_v26 = vld [vmem:[#allocation10 + $0x1c4] ss:$24 sps:$4 sm:$0xff]  }
 0x835   :  { %7900 = vmatprep.subr.bf16.mxu0 %v11200_v24  ;;  %v11240_v24 = vld [vmem:[#allocation10 + $0xc08] ss:$24 sps:$4 sm:$0xff]  }
 0x836   :  { %8065 = vmatpush1.bf16.msra.mxu1 %v11201_v57  ;;  %v11248_v57 = vld [vmem:[#allocation10 + $0xc3c] ss:$24 sps:$4 sm:$0xff]  }
 0x837   :  { %8066 = vmatprep.subr.bf16.mxu1 %v11209_v13  ;;  %v11243_v13 = vld [vmem:[#allocation10 + $0x10] ss:$24 sps:$4 sm:$0xff]  }
 0x838   :  { %7901 = vmatpush1.bf16.msra.mxu0 %v11198_v27  ;;  %v14151_v27 = vpack.c.bf16 %v4171_v17, %v4171_v17  ;;  %v11297_v17 = vld [vmem:[#allocation10 + $0x1c0] ss:$24 sps:$4 sm:$0xff]  }
 0x839   :  { %7902 = vmatprep.subr.bf16.mxu0 %v11206_v14  ;;  %v11254_v14 = vld [vmem:[#allocation10 + $0xc6c] ss:$24 sps:$4 sm:$0xff]  }
 0x83a   :  { %8067 = vmatpush1.bf16.msra.mxu1 %v11207_v60  ;;  %v11249_v60 = vld [vmem:[#allocation10 + $0x40] ss:$24 sps:$4 sm:$0xff]  }
 0x83b   :  { %8068 = vmatprep.subr.bf16.mxu1 %v11215_v22  ;;  %v11257_v22 = vld [vmem:[#allocation10 + $0x74] ss:$24 sps:$4 sm:$0xff]  }
 0x83c   :  { %7903 = vmatpush1.bf16.msra.mxu0 %v11204_v56  ;;  %v11252_v56 = vld [vmem:[#allocation10 + $0xc68] ss:$24 sps:$4 sm:$0xff]  }
 0x83d   :  { %7904 = vmatprep.subr.bf16.mxu0 %v11212_v41  ;;  %v11255_v41 = vld [vmem:[#allocation10 + $0x70] ss:$24 sps:$4 sm:$0xff]  }
 0x83e   :  { %8069 = vmatpush1.bf16.msra.mxu1 %v11213_v62  ;;  %v11263_v62 = vld [vmem:[#allocation10 + $0xa4] ss:$24 sps:$4 sm:$0xff]  }
 0x83f   :  { %8070 = vmatprep.subr.bf16.mxu1 %v11221_v52  ;;  %v11258_v52 = vld [vmem:[#allocation10 + $0xc98] ss:$24 sps:$4 sm:$0xff]  }
 0x840   :  { %7905 = vmatpush1.bf16.msra.mxu0 %v11210_v6  ;;  %v11261_v6 = vld [vmem:[#allocation10 + $0xa0] ss:$24 sps:$4 sm:$0xff]  }
 0x841   :  { %7906 = vmatprep.subr.bf16.mxu0 %v11218_v16  ;;  %v11272_v16 = vld [vmem:[#allocation10 + $0xcfc] ss:$24 sps:$4 sm:$0xff]  }
 0x842   :  { %8071 = vmatpush1.bf16.msra.mxu1 %v11219_v33  ;;  %v11267_v33 = vld [vmem:[#allocation10 + $0xd0] ss:$24 sps:$4 sm:$0xff]  }
 0x843   :  { %8072 = vmatprep.subr.bf16.mxu1 %v11227_v15  ;;  %v11275_v15 = vld [vmem:[#allocation10 + $0x104] ss:$24 sps:$4 sm:$0xff]  }
 0x844   :  { %7907 = vmatpush1.bf16.msra.mxu0 %v11216_v2  ;;  %v11270_v2 = vld [vmem:[#allocation10 + $0xcf8] ss:$24 sps:$4 sm:$0xff]  }
 0x845   :  { %7908 = vmatprep.subr.bf16.mxu0 %v11224_v25  ;;  %v11273_v25 = vld [vmem:[#allocation10 + $0x100] ss:$24 sps:$4 sm:$0xff]  }
 0x846   :  { %8073 = vmatpush1.bf16.msra.mxu1 %v11225_v53  ;;  %v11281_v53 = vld [vmem:[#allocation10 + $0x134] ss:$24 sps:$4 sm:$0xff]  }
 0x847   :  { %8074 = vmatprep.subr.bf16.mxu1 %v11233_v59  ;;  %v11276_v59 = vld [vmem:[#allocation10 + $0xd28] ss:$24 sps:$4 sm:$0xff]  }
 0x848   :  { %7909 = vmatpush1.bf16.msra.mxu0 %v11222_v23  ;;  %v11279_v23 = vld [vmem:[#allocation10 + $0x130] ss:$24 sps:$4 sm:$0xff]  }
 0x849   :  { %7910 = vmatprep.subr.bf16.mxu0 %v11230_v10  ;;  %v11282_v10 = vld [vmem:[#allocation10 + $0xd58] ss:$24 sps:$4 sm:$0xff]  }
 0x84a   :  { %8075 = vmatpush1.bf16.msra.mxu1 %v11231_v48  ;;  %v11290_v48 = vld [vmem:[#allocation10 + $0xd8c] ss:$24 sps:$4 sm:$0xff]  }
 0x84b   :  { %8076 = vmatprep.subr.bf16.mxu1 %v11239_v35  ;;  %v11285_v35 = vld [vmem:[#allocation10 + $0x160] ss:$24 sps:$4 sm:$0xff]  }
 0x84c   :  { %7911 = vmatpush1.bf16.msra.mxu0 %v11228_v31  ;;  %v11293_v31 = vld [vmem:[#allocation10 + $0x194] ss:$24 sps:$4 sm:$0xff]  }
 0x84d   :  { %7912 = vmatprep.subr.bf16.mxu0 %v11236_v34  ;;  %v11296_v34 = vld [vmem:[#allocation10 + $0xdbc] ss:$24 sps:$4 sm:$0xff]  }
 0x84e   :  { %8077 = vmatpush1.bf16.msra.mxu1 %v11237_v7  ;;  %v11291_v7 = vld [vmem:[#allocation10 + $0x190] ss:$24 sps:$4 sm:$0xff]  }
 0x84f   :  { %8087 = vmatprep.subr.bf16.mxu1 %v11242_v38  ;;  %v11294_v38 = vld [vmem:[#allocation10 + $0xdb8] ss:$24 sps:$4 sm:$0xff]  }
 0x850   :  { %7913 = vmatpush1.bf16.msra.mxu0 %v11234_v55  ;;  %v11302_v55 = vld [vmem:[#allocation10 + $0xdec] ss:$24 sps:$4 sm:$0xff]  }
 0x851   :  { %8079 = vmatmul.mubr.bf16.vlgmr.msra.gmra.mrb[28].mxu1 %v14088_v47  ;;  %8169 = vmatprep.subr.bf16.mxu0 %v11245_v28  ;;  %v11305_v28 = vld [vmem:[#allocation10 + $0x1f4] ss:$24 sps:$4 sm:$0xff]  }
 0x852   :  { %8088 = vmatpush1.bf16.msra.mxu1 %v11240_v24  ;;  %8119 = vmatprep.mubr.bf16.mxu1 %v14091_v63  ;;  %v11300_v24 = vld [vmem:[#allocation10 + $0xde8] ss:$24 sps:$4 sm:$0xff]  }
 0x853   :  { %7915 = vmatmul.mubr.bf16.vlgmr.msra.gmra.mrb[16].mxu0 %v14151_v27  ;;  %8089 = vmatprep.subr.bf16.mxu1 %v11248_v57  ;;  %v11308_v57 = vld [vmem:[#allocation10 + $0xe1c] ss:$24 sps:$4 sm:$0xff]  }
 0x854   :  { %8170 = vmatpush1.bf16.msra.mxu0 %v11243_v13  ;;  %8201 = vmatprep.mubr.bf16.mxu0 %v13932_v4  ;;  %v11264_v4 = vld [vmem:[#allocation10 + $0xcc8] ss:$24 sps:$4 sm:$0xff]  }
 0x855   :  { %8171 = vmatprep.subr.bf16.mxu0 %v11251_v46  ;;  %v11303_v13 = vld [vmem:[#allocation10 + $0x1f0] ss:$24 sps:$4 sm:$0xff]   ;;  %v11311_v46 = vld [vmem:[#allocation10 + $0x224] ss:$24 sps:$4 sm:$0xff]  }
 0x856   :  { %8090 = vmatpush1.bf16.msra.mxu1 %v11246_v50  ;;  %v11306_v50 = vld [vmem:[#allocation10 + $0xe18] ss:$24 sps:$4 sm:$0xff]  }
 0x857   :  { %8091 = vmatprep.subr.bf16.mxu1 %v11254_v14  ;;  %v11314_v14 = vld [vmem:[#allocation10 + $0xe4c] ss:$24 sps:$4 sm:$0xff]  }
 0x858   :  { %8172 = vmatpush1.bf16.msra.mxu0 %v11249_v60  ;;  %v11309_v60 = vld [vmem:[#allocation10 + $0x220] ss:$24 sps:$4 sm:$0xff]  }
 0x859   :  { %8173 = vmatprep.subr.bf16.mxu0 %v11257_v22  ;;  %v11317_v22 = vld [vmem:[#allocation10 + $0x254] ss:$24 sps:$4 sm:$0xff]  }
 0x85a   :  { %8092 = vmatpush1.bf16.msra.mxu1 %v11252_v56  ;;  %v11312_v56 = vld [vmem:[#allocation10 + $0xe48] ss:$24 sps:$4 sm:$0xff]  }
 0x85b   :  { %8093 = vmatprep.subr.bf16.mxu1 %v11260_v32  ;;  %v11320_v32 = vld [vmem:[#allocation10 + $0xe7c] ss:$24 sps:$4 sm:$0xff]  }
 0x85c   :  { %8174 = vmatpush1.bf16.msra.mxu0 %v11255_v41  ;;  %v11315_v41 = vld [vmem:[#allocation10 + $0x250] ss:$24 sps:$4 sm:$0xff]  }
 0x85d   :  { %8175 = vmatprep.subr.bf16.mxu0 %v11263_v62  ;;  %v11323_v62 = vld [vmem:[#allocation10 + $0x284] ss:$24 sps:$4 sm:$0xff]  }
 0x85e   :  { %8094 = vmatpush1.bf16.msra.mxu1 %v11258_v52  ;;  %v11318_v52 = vld [vmem:[#allocation10 + $0xe78] ss:$24 sps:$4 sm:$0xff]  }
 0x85f   :  { %8095 = vmatprep.subr.bf16.mxu1 %v11266_v54  ;;  %v11326_v54 = vld [vmem:[#allocation10 + $0xeac] ss:$24 sps:$4 sm:$0xff]  }
 0x860   :  { %8176 = vmatpush1.bf16.msra.mxu0 %v11261_v6  ;;  %v11321_v6 = vld [vmem:[#allocation10 + $0x280] ss:$24 sps:$4 sm:$0xff]  }
 0x861   :  { %8177 = vmatprep.subr.bf16.mxu0 %v11269_v8  ;;  %v11329_v8 = vld [vmem:[#allocation10 + $0x2b4] ss:$24 sps:$4 sm:$0xff]  }
 0x862   :  { %8096 = vmatpush1.bf16.msra.mxu1 %v11264_v4  ;;  %v11324_v4 = vld [vmem:[#allocation10 + $0xea8] ss:$24 sps:$4 sm:$0xff]  }
 0x863   :  { %8097 = vmatprep.subr.bf16.mxu1 %v11272_v16  ;;  %v11332_v16 = vld [vmem:[#allocation10 + $0xedc] ss:$24 sps:$4 sm:$0xff]  }
 0x864   :  { %8178 = vmatpush1.bf16.msra.mxu0 %v11267_v33  ;;  %v11327_v33 = vld [vmem:[#allocation10 + $0x2b0] ss:$24 sps:$4 sm:$0xff]  }
 0x865   :  { %8179 = vmatprep.subr.bf16.mxu0 %v11275_v15  ;;  %v11335_v15 = vld [vmem:[#allocation10 + $0x2e4] ss:$24 sps:$4 sm:$0xff]  }
 0x866   :  { %8098 = vmatpush1.bf16.msra.mxu1 %v11270_v2  ;;  %v11330_v2 = vld [vmem:[#allocation10 + $0xed8] ss:$24 sps:$4 sm:$0xff]  }
 0x867   :  { %8099 = vmatprep.subr.bf16.mxu1 %v11278_v49  ;;  %v11338_v49 = vld [vmem:[#allocation10 + $0xf0c] ss:$24 sps:$4 sm:$0xff]  }
 0x868   :  { %8180 = vmatpush1.bf16.msra.mxu0 %v11273_v25  ;;  %v11333_v25 = vld [vmem:[#allocation10 + $0x2e0] ss:$24 sps:$4 sm:$0xff]  }
 0x869   :  { %8181 = vmatprep.subr.bf16.mxu0 %v11281_v53  ;;  %v11341_v53 = vld [vmem:[#allocation10 + $0x314] ss:$24 sps:$4 sm:$0xff]  }
 0x86a   :  { %8100 = vmatpush1.bf16.msra.mxu1 %v11276_v59  ;;  %v11336_v59 = vld [vmem:[#allocation10 + $0xf08] ss:$24 sps:$4 sm:$0xff]  }
 0x86b   :  { %8101 = vmatprep.subr.bf16.mxu1 %v11284_v36  ;;  %v11344_v36 = vld [vmem:[#allocation10 + $0xf3c] ss:$24 sps:$4 sm:$0xff]  }
 0x86c   :  { %8182 = vmatpush1.bf16.msra.mxu0 %v11279_v23  ;;  %v11339_v23 = vld [vmem:[#allocation10 + $0x310] ss:$24 sps:$4 sm:$0xff]  }
 0x86d   :  { %8183 = vmatprep.subr.bf16.mxu0 %v11287_v12  ;;  %v11347_v12 = vld [vmem:[#allocation10 + $0x344] ss:$24 sps:$4 sm:$0xff]  }
 0x86e   :  { %8102 = vmatpush1.bf16.msra.mxu1 %v11282_v10  ;;  %v11342_v10 = vld [vmem:[#allocation10 + $0xf38] ss:$24 sps:$4 sm:$0xff]  }
 0x86f   :  { %8103 = vmatprep.subr.bf16.mxu1 %v11290_v48  ;;  %v11350_v48 = vld [vmem:[#allocation10 + $0xf6c] ss:$24 sps:$4 sm:$0xff]  }
 0x870   :  { %8184 = vmatpush1.bf16.msra.mxu0 %v11285_v35  ;;  %v11345_v35 = vld [vmem:[#allocation10 + $0x340] ss:$24 sps:$4 sm:$0xff]  }
 0x871   :  { %8185 = vmatprep.subr.bf16.mxu0 %v11293_v31  ;;  %v11353_v31 = vld [vmem:[#allocation10 + $0x374] ss:$24 sps:$4 sm:$0xff]  }
 0x872   :  { %8104 = vmatpush1.bf16.msra.mxu1 %v11288_v40  ;;  %v11348_v40 = vld [vmem:[#allocation10 + $0xf68] ss:$24 sps:$4 sm:$0xff]  }
 0x873   :  { %8105 = vmatprep.subr.bf16.mxu1 %v11296_v34  ;;  %v11356_v34 = vld [vmem:[#allocation10 + $0xf9c] ss:$24 sps:$4 sm:$0xff]  }
 0x874   :  { %8186 = vmatpush1.bf16.msra.mxu0 %v11291_v7  ;;  %v11351_v7 = vld [vmem:[#allocation10 + $0x370] ss:$24 sps:$4 sm:$0xff]  }
 0x875   :  { %8187 = vmatprep.subr.bf16.mxu0 %v11299_v26  ;;  %v11359_v26 = vld [vmem:[#allocation10 + $0x3a4] ss:$24 sps:$4 sm:$0xff]  }
 0x876   :  { %8106 = vmatpush1.bf16.msra.mxu1 %v11294_v38  ;;  %v11354_v38 = vld [vmem:[#allocation10 + $0xf98] ss:$24 sps:$4 sm:$0xff]  }
 0x877   :  { %8107 = vmatprep.subr.bf16.mxu1 %v11302_v55  ;;  %v11357_v55 = vld [vmem:[#allocation10 + $0x3a0] ss:$24 sps:$4 sm:$0xff]  }
 0x878   :  { %8188 = vmatpush1.bf16.msra.mxu0 %v11297_v17  ;;  %v11365_v17 = vld [vmem:[#allocation10 + $0x3d4] ss:$24 sps:$4 sm:$0xff]  }
 0x879   :  { %8189 = vmatprep.subr.bf16.mxu0 %v11305_v28  ;;  %v11368_v28 = vld [vmem:[#allocation10 + $0xffc] ss:$24 sps:$4 sm:$0xff]  }
 0x87a   :  { %8108 = vmatpush1.bf16.msra.mxu1 %v11300_v24  ;;  %v11363_v24 = vld [vmem:[#allocation10 + $0x3d0] ss:$24 sps:$4 sm:$0xff]  }
 0x87b   :  { %8109 = vmatprep.subr.bf16.mxu1 %v11308_v57  ;;  %v11371_v57 = vld [vmem:[#allocation10 + $0x404] ss:$24 sps:$4 sm:$0xff]  }
 0x87c   :  { %8190 = vmatpush1.bf16.msra.mxu0 %v11303_v13  ;;  %v11366_v13 = vld [vmem:[#allocation10 + $0xff8] ss:$24 sps:$4 sm:$0xff]  }
 0x87d   :  { %8191 = vmatprep.subr.bf16.mxu0 %v11311_v46  ;;  %v11374_v46 = vld [vmem:[#allocation10 + $0x102c] ss:$24 sps:$4 sm:$0xff]  }
 0x87e   :  { %8110 = vmatpush1.bf16.msra.mxu1 %v11306_v50  ;;  %v11369_v50 = vld [vmem:[#allocation10 + $0x400] ss:$24 sps:$4 sm:$0xff]  }
 0x87f   :  { %8111 = vmatprep.subr.bf16.mxu1 %v11314_v14  ;;  %v11377_v14 = vld [vmem:[#allocation10 + $0x434] ss:$24 sps:$4 sm:$0xff]  }
 0x880   :  { %8192 = vmatpush1.bf16.msra.mxu0 %v11309_v60  ;;  %v11372_v60 = vld [vmem:[#allocation10 + $0x1028] ss:$24 sps:$4 sm:$0xff]  }
 0x881   :  { %8193 = vmatprep.subr.bf16.mxu0 %v11317_v22  ;;  %v11380_v22 = vld [vmem:[#allocation10 + $0x105c] ss:$24 sps:$4 sm:$0xff]  }
 0x882   :  { %8112 = vmatpush1.bf16.msra.mxu1 %v11312_v56  ;;  %v11375_v56 = vld [vmem:[#allocation10 + $0x430] ss:$24 sps:$4 sm:$0xff]  }
 0x883   :  { %8113 = vmatprep.subr.bf16.mxu1 %v11320_v32  ;;  %v11383_v32 = vld [vmem:[#allocation10 + $0x464] ss:$24 sps:$4 sm:$0xff]  }
 0x884   :  { %8194 = vmatpush1.bf16.msra.mxu0 %v11315_v41  ;;  %v11378_v41 = vld [vmem:[#allocation10 + $0x1058] ss:$24 sps:$4 sm:$0xff]  }
 0x885   :  { %8195 = vmatprep.subr.bf16.mxu0 %v11323_v62  ;;  %v11386_v62 = vld [vmem:[#allocation10 + $0x108c] ss:$24 sps:$4 sm:$0xff]  }
 0x886   :  { %8114 = vmatpush1.bf16.msra.mxu1 %v11318_v52  ;;  %v11381_v52 = vld [vmem:[#allocation10 + $0x460] ss:$24 sps:$4 sm:$0xff]  }
 0x887   :  { %8115 = vmatprep.subr.bf16.mxu1 %v11326_v54  ;;  %v11389_v54 = vld [vmem:[#allocation10 + $0x494] ss:$24 sps:$4 sm:$0xff]  }
 0x888   :  { %8196 = vmatpush1.bf16.msra.mxu0 %v11321_v6  ;;  %v11384_v6 = vld [vmem:[#allocation10 + $0x1088] ss:$24 sps:$4 sm:$0xff]  }
 0x889   :  { %8197 = vmatprep.subr.bf16.mxu0 %v11329_v8  ;;  %v11392_v8 = vld [vmem:[#allocation10 + $0x10bc] ss:$24 sps:$4 sm:$0xff]  }
 0x88a   :  { %8116 = vmatpush1.bf16.msra.mxu1 %v11324_v4  ;;  %v11387_v4 = vld [vmem:[#allocation10 + $0x490] ss:$24 sps:$4 sm:$0xff]  }
 0x88b   :  { %8117 = vmatprep.subr.bf16.mxu1 %v11332_v16  ;;  %v11395_v16 = vld [vmem:[#allocation10 + $0x4c4] ss:$24 sps:$4 sm:$0xff]  }
 0x88c   :  { %8198 = vmatpush1.bf16.msra.mxu0 %v11327_v33  ;;  %v11390_v33 = vld [vmem:[#allocation10 + $0x10b8] ss:$24 sps:$4 sm:$0xff]  }
 0x88d   :  { %8199 = vmatprep.subr.bf16.mxu0 %v11335_v15  ;;  %v11398_v15 = vld [vmem:[#allocation10 + $0x10ec] ss:$24 sps:$4 sm:$0xff]  }
 0x88e   :  { %8118 = vmatpush1.bf16.msra.mxu1 %v11330_v2  ;;  %v11393_v2 = vld [vmem:[#allocation10 + $0x4c0] ss:$24 sps:$4 sm:$0xff]  }
 0x88f   :  { %8128 = vmatprep.subr.bf16.mxu1 %v11338_v49  ;;  %v11401_v49 = vld [vmem:[#allocation10 + $0x4f4] ss:$24 sps:$4 sm:$0xff]  }
 0x890   :  { %8200 = vmatpush1.bf16.msra.mxu0 %v11333_v25  ;;  %v11396_v25 = vld [vmem:[#allocation10 + $0x10e8] ss:$24 sps:$4 sm:$0xff]  }
 0x891   :  { %8120 = vmatmul.mubr.bf16.vlgmr.msra.gmra.mrb[28].mxu1 %v14127_v45  ;;  %8210 = vmatprep.subr.bf16.mxu0 %v11341_v53  ;;  %v11404_v53 = vld [vmem:[#allocation10 + $0x111c] ss:$24 sps:$4 sm:$0xff]  }
 0x892   :  { %8129 = vmatpush1.bf16.msra.mxu1 %v11336_v59  ;;  %8160 = vmatprep.mubr.bf16.mxu1 %v14130_v1  ;;  %v11399_v59 = vld [vmem:[#allocation10 + $0x4f0] ss:$24 sps:$4 sm:$0xff]  }
 0x893   :  { %8202 = vmatmul.mubr.bf16.vlgmr.msra.gmra.mrb[20].mxu0 %v13934_v19  ;;  %8130 = vmatprep.subr.bf16.mxu1 %v11344_v36  ;;  %v11362_v19 = vld [vmem:[#allocation10 + $0xfcc] ss:$24 sps:$4 sm:$0xff]  }
 0x894   :  { %8211 = vmatpush1.bf16.msra.mxu0 %v11339_v23  ;;  %8242 = vmatprep.mubr.bf16.mxu0 %v13938_v58  ;;  %v11360_v58 = vld [vmem:[#allocation10 + $0xfc8] ss:$24 sps:$4 sm:$0xff]   ;;  %v11407_v36 = vld [vmem:[#allocation10 + $0x524] ss:$24 sps:$4 sm:$0xff]   ;;  %v11402_v23 = vld [vmem:[#allocation10 + $0x1118] ss:$24 sps:$4 sm:$0xff]  }
 0x895   :  { %8212 = vmatprep.subr.bf16.mxu0 %v11347_v12  ;;  %v11410_v12 = vld [vmem:[#allocation10 + $0x114c] ss:$24 sps:$4 sm:$0xff]  }
 0x896   :  { %8131 = vmatpush1.bf16.msra.mxu1 %v11342_v10  ;;  %v11405_v10 = vld [vmem:[#allocation10 + $0x520] ss:$24 sps:$4 sm:$0xff]  }
 0x897   :  { %8132 = vmatprep.subr.bf16.mxu1 %v11350_v48  ;;  %v11413_v48 = vld [vmem:[#allocation10 + $0x554] ss:$24 sps:$4 sm:$0xff]  }
 0x898   :  { %8213 = vmatpush1.bf16.msra.mxu0 %v11345_v35  ;;  %v11408_v35 = vld [vmem:[#allocation10 + $0x1148] ss:$24 sps:$4 sm:$0xff]  }
 0x899   :  { %8214 = vmatprep.subr.bf16.mxu0 %v11353_v31  ;;  %v11416_v31 = vld [vmem:[#allocation10 + $0x117c] ss:$24 sps:$4 sm:$0xff]  }
 0x89a   :  { %8133 = vmatpush1.bf16.msra.mxu1 %v11348_v40  ;;  %v11411_v40 = vld [vmem:[#allocation10 + $0x550] ss:$24 sps:$4 sm:$0xff]  }
 0x89b   :  { %8134 = vmatprep.subr.bf16.mxu1 %v11356_v34  ;;  %v11419_v34 = vld [vmem:[#allocation10 + $0x584] ss:$24 sps:$4 sm:$0xff]  }
 0x89c   :  { %8215 = vmatpush1.bf16.msra.mxu0 %v11351_v7  ;;  %v11414_v7 = vld [vmem:[#allocation10 + $0x1178] ss:$24 sps:$4 sm:$0xff]  }
 0x89d   :  { %8216 = vmatprep.subr.bf16.mxu0 %v11359_v26  ;;  %v11422_v26 = vld [vmem:[#allocation10 + $0x11ac] ss:$24 sps:$4 sm:$0xff]  }
 0x89e   :  { %8135 = vmatpush1.bf16.msra.mxu1 %v11354_v38  ;;  %v11417_v38 = vld [vmem:[#allocation10 + $0x580] ss:$24 sps:$4 sm:$0xff]  }
 0x89f   :  { %8136 = vmatprep.subr.bf16.mxu1 %v11362_v19  ;;  %v11425_v19 = vld [vmem:[#allocation10 + $0x5b4] ss:$24 sps:$4 sm:$0xff]  }
 0x8a0   :  { %8217 = vmatpush1.bf16.msra.mxu0 %v11357_v55  ;;  %v11420_v55 = vld [vmem:[#allocation10 + $0x11a8] ss:$24 sps:$4 sm:$0xff]  }
 0x8a1   :  { %8218 = vmatprep.subr.bf16.mxu0 %v11365_v17  ;;  %v11428_v17 = vld [vmem:[#allocation10 + $0x11dc] ss:$24 sps:$4 sm:$0xff]  }
 0x8a2   :  { %8137 = vmatpush1.bf16.msra.mxu1 %v11360_v58  ;;  %v11423_v58 = vld [vmem:[#allocation10 + $0x5b0] ss:$24 sps:$4 sm:$0xff]  }
 0x8a3   :  { %8138 = vmatprep.subr.bf16.mxu1 %v11368_v28  ;;  %v11431_v28 = vld [vmem:[#allocation10 + $0x5e4] ss:$24 sps:$4 sm:$0xff]  }
 0x8a4   :  { %8219 = vmatpush1.bf16.msra.mxu0 %v11363_v24  ;;  %v11426_v24 = vld [vmem:[#allocation10 + $0x11d8] ss:$24 sps:$4 sm:$0xff]  }
 0x8a5   :  { %8220 = vmatprep.subr.bf16.mxu0 %v11371_v57  ;;  %v11429_v57 = vld [vmem:[#allocation10 + $0x5e0] ss:$24 sps:$4 sm:$0xff]  }
 0x8a6   :  { %8139 = vmatpush1.bf16.msra.mxu1 %v11366_v13  ;;  %v11434_v13 = vld [vmem:[#allocation10 + $0x614] ss:$24 sps:$4 sm:$0xff]  }
 0x8a7   :  { %8140 = vmatprep.subr.bf16.mxu1 %v11374_v46  ;;  %v11432_v46 = vld [vmem:[#allocation10 + $0x610] ss:$24 sps:$4 sm:$0xff]  }
 0x8a8   :  { %8221 = vmatpush1.bf16.msra.mxu0 %v11369_v50  ;;  %v11437_v50 = vld [vmem:[#allocation10 + $0x644] ss:$24 sps:$4 sm:$0xff]  }
 0x8a9   :  { %8222 = vmatprep.subr.bf16.mxu0 %v11377_v14  ;;  %v11435_v14 = vld [vmem:[#allocation10 + $0x640] ss:$24 sps:$4 sm:$0xff]  }
 0x8aa   :  { %8141 = vmatpush1.bf16.msra.mxu1 %v11372_v60  ;;  %v11440_v60 = vld [vmem:[#allocation10 + $0x674] ss:$24 sps:$4 sm:$0xff]  }
 0x8ab   :  { %8142 = vmatprep.subr.bf16.mxu1 %v11380_v22  ;;  %v11513_v22 = vld [vmem:[#allocation13 + $0x40] sm:$0xff]  }
 0x8ac   :  { %8223 = vmatpush1.bf16.msra.mxu0 %v11375_v56  ;;  %v11438_v56 = vld [vmem:[#allocation10 + $0x670] ss:$24 sps:$4 sm:$0xff]  }
 0x8ad   :  { %8224 = vmatprep.subr.bf16.mxu0 %v11383_v32  ;;  %v11514_v32 = vld [vmem:[#allocation13] sm:$0xff]  }
 0x8ae   :  { %8143 = vmatpush1.bf16.msra.mxu1 %v11378_v41  ;;  %v11443_v41 = vld [vmem:[#allocation10 + $0x6a4] ss:$24 sps:$4 sm:$0xff]  }
 0x8af   :  { %8144 = vmatprep.subr.bf16.mxu1 %v11386_v62  ;;  %v11518_v62 = vld [vmem:[#allocation13 + $0x48] sm:$0xff]  }
 0x8b0   :  { %8225 = vmatpush1.bf16.msra.mxu0 %v11381_v52  ;;  %v11519_v52 = vld [vmem:[#allocation13 + $0x8] sm:$0xff]  }
 0x8b1   :  { %8226 = vmatprep.subr.bf16.mxu0 %v11389_v54  ;;  %v11523_v54 = vld [vmem:[#allocation13 + $0x50] sm:$0xff]  }
 0x8b2   :  { %8145 = vmatpush1.bf16.msra.mxu1 %v11384_v6  ;;  %v11446_v6 = vld [vmem:[#allocation10 + $0x6d4] ss:$24 sps:$4 sm:$0xff]  }
 0x8b3   :  { %8146 = vmatprep.subr.bf16.mxu1 %v11392_v8  ;;  %v11528_v8 = vld [vmem:[#allocation13 + $0x58] sm:$0xff]  }
 0x8b4   :  { %8227 = vmatpush1.bf16.msra.mxu0 %v11387_v4  ;;  %v11444_v4 = vld [vmem:[#allocation10 + $0x6d0] ss:$24 sps:$4 sm:$0xff]  }
 0x8b5   :  { %8228 = vmatprep.subr.bf16.mxu0 %v11395_v16  ;;  %v11449_v16 = vld [vmem:[#allocation10 + $0x704] ss:$24 sps:$4 sm:$0xff]  }
 0x8b6   :  { %8147 = vmatpush1.bf16.msra.mxu1 %v11390_v33  ;;  %v11529_v33 = vld [vmem:[#allocation13 + $0x18] sm:$0xff]  }
 0x8b7   :  { %8148 = vmatprep.subr.bf16.mxu1 %v11398_v15  ;;  %v11533_v15 = vld [vmem:[#allocation13 + $0x60] sm:$0xff]  }
 0x8b8   :  { %8229 = vmatpush1.bf16.msra.mxu0 %v11393_v2  ;;  %v11447_v2 = vld [vmem:[#allocation10 + $0x700] ss:$24 sps:$4 sm:$0xff]  }
 0x8b9   :  { %8230 = vmatprep.subr.bf16.mxu0 %v11401_v49  ;;  %v11452_v49 = vld [vmem:[#allocation10 + $0x734] ss:$24 sps:$4 sm:$0xff]  }
 0x8ba   :  { %8149 = vmatpush1.bf16.msra.mxu1 %v11396_v25  ;;  %v11534_v25 = vld [vmem:[#allocation13 + $0x20] sm:$0xff]  }
 0x8bb   :  { %8150 = vmatprep.subr.bf16.mxu1 %v11404_v53  ;;  %v11538_v53 = vld [vmem:[#allocation13 + $0x68] sm:$0xff]  }
 0x8bc   :  { %8231 = vmatpush1.bf16.msra.mxu0 %v11399_v59  ;;  %v11450_v59 = vld [vmem:[#allocation10 + $0x730] ss:$24 sps:$4 sm:$0xff]  }
 0x8bd   :  { %8232 = vmatprep.subr.bf16.mxu0 %v11407_v36  ;;  %v11455_v36 = vld [vmem:[#allocation10 + $0x764] ss:$24 sps:$4 sm:$0xff]  }
 0x8be   :  { %8151 = vmatpush1.bf16.msra.mxu1 %v11402_v23  ;;  %v11539_v23 = vld [vmem:[#allocation13 + $0x28] sm:$0xff]  }
 0x8bf   :  { %8152 = vmatprep.subr.bf16.mxu1 %v11410_v12  ;;  %v11543_v12 = vld [vmem:[#allocation13 + $0x70] sm:$0xff]  }
 0x8c0   :  { %8233 = vmatpush1.bf16.msra.mxu0 %v11405_v10  ;;  %v11453_v10 = vld [vmem:[#allocation10 + $0x760] ss:$24 sps:$4 sm:$0xff]  }
 0x8c1   :  { %8234 = vmatprep.subr.bf16.mxu0 %v11413_v48  ;;  %v11458_v48 = vld [vmem:[#allocation10 + $0x794] ss:$24 sps:$4 sm:$0xff]  }
 0x8c2   :  { %8153 = vmatpush1.bf16.msra.mxu1 %v11408_v35  ;;  %v11544_v35 = vld [vmem:[#allocation13 + $0x30] sm:$0xff]  }
 0x8c3   :  { %8154 = vmatprep.subr.bf16.mxu1 %v11416_v31  ;;  %v11548_v31 = vld [vmem:[#allocation13 + $0x78] sm:$0xff]  }
 0x8c4   :  { %8235 = vmatpush1.bf16.msra.mxu0 %v11411_v40  ;;  %v11456_v40 = vld [vmem:[#allocation10 + $0x790] ss:$24 sps:$4 sm:$0xff]  }
 0x8c5   :  { %8236 = vmatprep.subr.bf16.mxu0 %v11419_v34  ;;  %v11461_v34 = vld [vmem:[#allocation10 + $0x7c4] ss:$24 sps:$4 sm:$0xff]  }
 0x8c6   :  { %8155 = vmatpush1.bf16.msra.mxu1 %v11414_v7  ;;  %v11549_v7 = vld [vmem:[#allocation13 + $0x38] sm:$0xff]  }
 0x8c7   :  { %8156 = vmatprep.subr.bf16.mxu1 %v11422_v26  ;;  %v11459_v26 = vld [vmem:[#allocation10 + $0x7c0] ss:$24 sps:$4 sm:$0xff]  }
 0x8c8   :  { %8237 = vmatpush1.bf16.msra.mxu0 %v11417_v38  ;;  %v11464_v38 = vld [vmem:[#allocation10 + $0x7f4] ss:$24 sps:$4 sm:$0xff]  }
 0x8c9   :  { %8238 = vmatprep.subr.bf16.mxu0 %v11425_v19  ;;  %v11462_v19 = vld [vmem:[#allocation10 + $0x7f0] ss:$24 sps:$4 sm:$0xff]  }
 0x8ca   :  { %8157 = vmatpush1.bf16.msra.mxu1 %v11420_v55  ;;  %v11467_v55 = vld [vmem:[#allocation10 + $0x824] ss:$24 sps:$4 sm:$0xff]  }
 0x8cb   :  { %8158 = vmatprep.subr.bf16.mxu1 %v11428_v17  ;;  %v11465_v17 = vld [vmem:[#allocation10 + $0x820] ss:$24 sps:$4 sm:$0xff]  }
 0x8cc   :  { %8239 = vmatpush1.bf16.msra.mxu0 %v11423_v58  ;;  %v11470_v58 = vld [vmem:[#allocation10 + $0x854] ss:$24 sps:$4 sm:$0xff]  }
 0x8cd   :  { %8240 = vmatprep.subr.bf16.mxu0 %v11431_v28  ;;  %v11468_v28 = vld [vmem:[#allocation10 + $0x850] ss:$24 sps:$4 sm:$0xff]  }
 0x8ce   :  { %8159 = vmatpush1.bf16.msra.mxu1 %v11426_v24  ;;  %v11473_v24 = vld [vmem:[#allocation10 + $0x884] ss:$24 sps:$4 sm:$0xff]  }
 0x8cf   :  { %10435 = vmatprep.subr.bf16.mxu1 %v11513_v22  ;;  %v11480_v22 = vld [vmem:[#allocation10 + $0x910] ss:$24 sps:$4 sm:$0xff]  }
 0x8d0   :  { %8241 = vmatpush1.bf16.msra.mxu0 %v11429_v57  ;;  %v11471_v57 = vld [vmem:[#allocation10 + $0x880] ss:$24 sps:$4 sm:$0xff]  }
 0x8d1   :  { %8161 = vmatmul.mubr.bf16.vlgmr.msra.gmra.mrb[28].mxu1 %v14151_v27  ;;  %8251 = vmatprep.subr.bf16.mxu0 %v11434_v13  ;;  %v11476_v13 = vld [vmem:[#allocation10 + $0x8b4] ss:$24 sps:$4 sm:$0xff]  }
 0x8d2   :  { %10436 = vmatpush3.bf16.msra.mxu1 %v11514_v32  ;;  %v11483_v32 = vld [vmem:[#allocation10 + $0x940] ss:$24 sps:$4 sm:$0xff]  }
 0x8d3   :  { %8243 = vmatmul.mubr.bf16.vlgmr.msra.gmra.mrb[20].mxu0 %v13941_v20  ;;  %10437 = vmatprep.subr.bf16.mxu1 %v11518_v62  ;;  %v11441_v20 = vld [vmem:[#allocation10 + $0x6a0] ss:$24 sps:$4 sm:$0xff]   ;;  %v11486_v62 = vld [vmem:[#allocation10 + $0x970] ss:$24 sps:$4 sm:$0xff]  }
 0x8d4   :  { %8252 = vmatpush1.bf16.msra.mxu0 %v11432_v46  ;;  %8283 = vmatprep.mubr.bf16.mxu0 %v13986_v9  ;;  %v11524_v9 = vld [vmem:[#allocation13 + $0x10] sm:$0xff]   ;;  %v11474_v46 = vld [vmem:[#allocation10 + $0x8b0] ss:$24 sps:$4 sm:$0xff]  }
 0x8d5   :  { %8253 = vmatprep.subr.bf16.mxu0 %v11437_v50  ;;  %v11479_v50 = vld [vmem:[#allocation10 + $0x8e4] ss:$24 sps:$4 sm:$0xff]  }
 0x8d6   :  { %10438 = vmatpush3.bf16.msra.mxu1 %v11519_v52  ;;  %v11491_v52 = vld [vmem:[#allocation10 + $0x9a4] ss:$24 sps:$4 sm:$0xff]  }
 0x8d7   :  { %10439 = vmatprep.subr.bf16.mxu1 %v11523_v54  ;;  %v11489_v54 = vld [vmem:[#allocation10 + $0x9a0] ss:$24 sps:$4 sm:$0xff]  }
 0x8d8   :  { %8254 = vmatpush1.bf16.msra.mxu0 %v11435_v14  ;;  %v11477_v14 = vld [vmem:[#allocation10 + $0x8e0] ss:$24 sps:$4 sm:$0xff]  }
 0x8d9   :  { %8255 = vmatprep.subr.bf16.mxu0 %v11440_v60  ;;  %v11482_v60 = vld [vmem:[#allocation10 + $0x914] ss:$24 sps:$4 sm:$0xff]  }
 0x8da   :  { %10440 = vmatpush3.bf16.msra.mxu1 %v11524_v9  ;;  %v11492_v9 = vld [vmem:[#allocation10 + $0x9d0] ss:$24 sps:$4 sm:$0xff]  }
 0x8db   :  { %10441 = vmatprep.subr.bf16.mxu1 %v11528_v8 }
 0x8dc   :  { %8256 = vmatpush1.bf16.msra.mxu0 %v11438_v56  ;;  %v11485_v56 = vld [vmem:[#allocation10 + $0x944] ss:$24 sps:$4 sm:$0xff]  }
 0x8dd   :  { %8257 = vmatprep.subr.bf16.mxu0 %v11443_v41  ;;  %v11488_v41 = vld [vmem:[#allocation10 + $0x974] ss:$24 sps:$4 sm:$0xff]  }
 0x8de   :  { %10442 = vmatpush3.bf16.msra.mxu1 %v11529_v33  ;;  %v11500_v33 = vld [vmem:[#allocation10 + $0xa34] ss:$24 sps:$4 sm:$0xff]  }
 0x8df   :  { %10443 = vmatprep.subr.bf16.mxu1 %v11533_v15 }
 0x8e0   :  { %8258 = vmatpush1.bf16.msra.mxu0 %v11441_v20  ;;  %v11494_v20 = vld [vmem:[#allocation10 + $0x9d4] ss:$24 sps:$4 sm:$0xff]  }
 0x8e1   :  { %8259 = vmatprep.subr.bf16.mxu0 %v11446_v6  ;;  %v14166_v6 = vld [vmem:[#allocation11] sm:$0x3f] }
 0x8e2   :  { %10444 = vmatpush3.bf16.msra.mxu1 %v11534_v25  ;;  %v4774_v8 = vrot.slane %v14166_v6, %v13655_v42 }
 0x8e3   :  { %10445 = vmatprep.subr.bf16.mxu1 %v11538_v53 }
 0x8e4   :  { %8260 = vmatpush1.bf16.msra.mxu0 %v11444_v4  ;;  %v11495_v4 = vld [vmem:[#allocation10 + $0xa00] ss:$24 sps:$4 sm:$0xff]   ;;  %v7714_v15 = vadd.f32 %v14141_v11, %v4774_v8 }
 0x8e5   :  { %8261 = vmatprep.subr.bf16.mxu0 %v11449_v16 }
 0x8e6   :  { %10446 = vmatpush3.bf16.msra.mxu1 %v11539_v23  ;;  %v11503_v23 = vld [vmem:[#allocation10 + $0xa64] ss:$24 sps:$4 sm:$0xff]  }
 0x8e7   :  { %10447 = vmatprep.subr.bf16.mxu1 %v11543_v12 }
 0x8e8   :  { %8262 = vmatpush1.bf16.msra.mxu0 %v11447_v2 }
 0x8e9   :  { %8263 = vmatprep.subr.bf16.mxu0 %v11452_v49 }
 0x8ea   :  { %10448 = vmatpush3.bf16.msra.mxu1 %v11544_v35  ;;  %v11506_v35 = vld [vmem:[#allocation10 + $0xa94] ss:$24 sps:$4 sm:$0xff]  }
 0x8eb   :  { %10449 = vmatprep.subr.bf16.mxu1 %v11548_v31 }
 0x8ec   :  { %8264 = vmatpush1.bf16.msra.mxu0 %v11450_v59  ;;  %v11498_v59 = vld [vmem:[#allocation10 + $0xa30] ss:$24 sps:$4 sm:$0xff]  }
 0x8ed   :  { %8265 = vmatprep.subr.bf16.mxu0 %v11455_v36 }
 0x8ee   :  { %10450 = vmatpush3.bf16.msra.mxu1 %v11549_v7  ;;  %v11504_v7 = vld [vmem:[#allocation10 + $0xa90] ss:$24 sps:$4 sm:$0xff]  }
 0x8f0   :  { %8266 = vmatpush1.bf16.msra.mxu0 %v11453_v10  ;;  %v11501_v10 = vld [vmem:[#allocation10 + $0xa60] ss:$24 sps:$4 sm:$0xff]  }
 0x8f1   :  { %8267 = vmatprep.subr.bf16.mxu0 %v11458_v48 }
 0x8f4   :  { %8268 = vmatpush1.bf16.msra.mxu0 %v11456_v40 }
 0x8f5   :  { %8269 = vmatprep.subr.bf16.mxu0 %v11461_v34 }
 0x8f8   :  { %8270 = vmatpush1.bf16.msra.mxu0 %v11459_v26  ;;  %v11509_v26 = vld [vmem:[#allocation10 + $0xac4] ss:$24 sps:$4 sm:$0xff]  }
 0x8f9   :  { %8271 = vmatprep.subr.bf16.mxu0 %v11464_v38  ;;  %v11507_v38 = vld [vmem:[#allocation10 + $0xac0] ss:$24 sps:$4 sm:$0xff]  }
 0x8fc   :  { %8272 = vmatpush1.bf16.msra.mxu0 %v11462_v19  ;;  %v11512_v19 = vld [vmem:[#allocation10 + $0xaf4] ss:$24 sps:$4 sm:$0xff]  }
 0x8fd   :  { %8273 = vmatprep.subr.bf16.mxu0 %v11467_v55 }
 0x900   :  { %8274 = vmatpush1.bf16.msra.mxu0 %v11465_v17 }
 0x901   :  { %8275 = vmatprep.subr.bf16.mxu0 %v11470_v58  ;;  %v11510_v58 = vld [vmem:[#allocation10 + $0xaf0] ss:$24 sps:$4 sm:$0xff]  }
 0x904   :  { %8276 = vmatpush1.bf16.msra.mxu0 %v11468_v28  ;;  %v11517_v28 = vld [vmem:[#allocation10 + $0xb24] ss:$24 sps:$4 sm:$0xff]  }
 0x905   :  { %8277 = vmatprep.subr.bf16.mxu0 %v11473_v24 }
 0x908   :  { %8278 = vmatpush1.bf16.msra.mxu0 %v11471_v57 }
 0x909   :  { %8279 = vmatprep.subr.bf16.mxu0 %v11476_v13 }
 0x90c   :  { %8280 = vmatpush1.bf16.msra.mxu0 %v11474_v46 }
 0x90d   :  { %8281 = vmatprep.subr.bf16.mxu0 %v11479_v50 }
 0x910   :  { %8282 = vmatpush1.bf16.msra.mxu0 %v11477_v14  ;;  %v11515_v14 = vld [vmem:[#allocation10 + $0xb20] ss:$24 sps:$4 sm:$0xff]  }
 0x911   :  { %8292 = vmatprep.subr.bf16.mxu0 %v11482_v60 }
 0x913   :  { %8284 = vmatmul.mubr.bf16.vlgmr.msra.gmra.mrb[20].mxu0 %v14037_v0  ;;  %v4770_v0 = vrot.slane %v14166_v6, %v14702_v29 }
 0x914   :  { %8293 = vmatpush1.bf16.msra.mxu0 %v11480_v22  ;;  %8324 = vmatprep.mubr.bf16.mxu0 %v14040_v30  ;;  %v11497_v30 = vld [vmem:[#allocation10 + $0xa04] ss:$24 sps:$4 sm:$0xff]   ;;  %v11522_v22 = vld [vmem:[#allocation10 + $0xb54] ss:$24 sps:$4 sm:$0xff]  }
 0x915   :  { %8294 = vmatprep.subr.bf16.mxu0 %v11485_v56  ;;  %v7712_v16 = vadd.f32 %v14139_v44, %v4770_v0 }
 0x918   :  { %8295 = vmatpush1.bf16.msra.mxu0 %v11483_v32 }
 0x919   :  { %8296 = vmatprep.subr.bf16.mxu0 %v11488_v41 }
 0x91c   :  { %8297 = vmatpush1.bf16.msra.mxu0 %v11486_v62 }
 0x91d   :  { %8298 = vmatprep.subr.bf16.mxu0 %v11491_v52 }
 0x920   :  { %8299 = vmatpush1.bf16.msra.mxu0 %v11489_v54  ;;  %v11520_v54 = vld [vmem:[#allocation10 + $0xb50] ss:$24 sps:$4 sm:$0xff]  }
 0x921   :  { %8300 = vmatprep.subr.bf16.mxu0 %v11494_v20 }
 0x924   :  { %8301 = vmatpush1.bf16.msra.mxu0 %v11492_v9  ;;  %v11527_v9 = vld [vmem:[#allocation10 + $0xb84] ss:$24 sps:$4 sm:$0xff]  }
 0x925   :  { %8302 = vmatprep.subr.bf16.mxu0 %v11497_v30 }
 0x926   :  { %v7916_v2 = vpop.f32.mrb[16].mxu0 }
 0x927   :  { %v14174_v49 = vadd.f32 %v7916_v2, %v7712_v16  ;;  %v7918_v25 = vpop.f32.mrb[17].mxu0 }
 0x928   :  { %v14176_v53 = vadd.f32 %v7918_v25, %v7714_v15  ;;  %v7920_v29 = vpop.f32.mrb[18].mxu0  ;;  %8303 = vmatpush1.bf16.msra.mxu0 %v11495_v4  ;;  %v11525_v4 = vld [vmem:[#allocation10 + $0xb80] ss:$24 sps:$4 sm:$0xff]  }
 0x929   :  { %v14179_v36 = vmul.f32 0.70710677, %v14174_v49  ;;  %v7921_v42 = vpop.f32.mrb[19].mxu0  ;;  %8304 = vmatprep.subr.bf16.mxu0 %v11500_v33  ;;  %v11532_v33 = vld [vmem:[#allocation10 + $0xbb4] ss:$24 sps:$4 sm:$0xff]  }
 0x92a   :  { %v14182_v44 = vmul.f32 0.70710677, %v14176_v53  ;;  %v11530_v29 = vld [vmem:[#allocation10 + $0xbb0] ss:$24 sps:$4 sm:$0xff]   ;;  %v11537_v42 = vld [vmem:[#allocation10 + $0xbe4] ss:$24 sps:$4 sm:$0xff]  }
 0x92b   :  { %v8439_v11 = vand.u32 2147483647, %v14179_v36  ;;  %vm8427_vm1 = vcmp.ge.f32.partialorder %v14179_v36, 0.0  ;;  %v8415_v36 = vmul.f32 0.5, %v14174_v49  ;;  %v11626_v49 = vld [vmem:[#allocation13 + $0x80] sm:$0xff]  }
 0x92c   :  { %v8440_v12 = vand.u32 2147483647, %v14182_v44  ;;  %8305 = vmatpush1.bf16.msra.mxu0 %v11498_v59  ;;  %vm8428_vm5 = vcmp.ge.f32.partialorder %v14182_v44, 0.0  ;;  %v11545_v44 = vld [vmem:[#allocation10 + $0xc40] ss:$24 sps:$4 sm:$0xff]  }
 0x92d   :  { %v8445_v48 = vmul.f32 0.3275911, %v8439_v11  ;;  %8306 = vmatprep.subr.bf16.mxu0 %v11503_v23  ;;  %v8517_v55 = vsub.f32 0.0, %v8439_v11 }
 0x92e   :  { %v8446_v31 = vmul.f32 0.3275911, %v8440_v12  ;;  %v8518_v17 = vsub.f32 0.0, %v8440_v12 }
 0x92f   :  { %v8451_v40 = vadd.f32 1.0, %v8445_v48  ;;  %v8523_v57 = vmul.f32 %v8517_v55, %v8439_v11 }
 0x930   :  { %v8452_v34 = vadd.f32 1.0, %v8446_v31  ;;  %8307 = vmatpush1.bf16.msra.mxu0 %v11501_v10  ;;  %v8524_v50 = vmul.f32 %v8518_v17, %v8440_v12  ;;  %v11535_v10 = vld [vmem:[#allocation10 + $0xbe0] ss:$24 sps:$4 sm:$0xff]   ;;  %v11542_v31 = vld [vmem:[#allocation10 + $0xc14] ss:$24 sps:$4 sm:$0xff]  }
 0x931   :  { %11760 = vrcp.f32 %v8451_v40  ;;  %8308 = vmatprep.subr.bf16.mxu0 %v11506_v35  ;;  %v8529_v32 = vmul.f32 1.442695, %v8523_v57  ;;  %v11547_v17 = vld [vmem:[#allocation10 + $0xc44] ss:$24 sps:$4 sm:$0xff]  }
 0x932   :  { %11762 = vrcp.f32 %v8452_v34  ;;  %v8531_v52 = vmul.f32 1.442695, %v8524_v50 }
 0x933   :  { %11764 = vpow2.f32 %v8529_v32  ;;  %v11555_v32 = vld [vmem:[#allocation10 + $0xca4] ss:$24 sps:$4 sm:$0xff]  }
 0x934   :  { %8309 = vmatpush1.bf16.msra.mxu0 %v11504_v7  ;;  %11766 = vpow2.f32 %v8531_v52  ;;  %v11631_v52 = vld [vmem:[#allocation13 + $0x88] sm:$0xff]  }
 0x935   :  { %8310 = vmatprep.subr.bf16.mxu0 %v11509_v26 }
 0x938   :  { %8311 = vmatpush1.bf16.msra.mxu0 %v11507_v38  ;;  %v11540_v38 = vld [vmem:[#allocation10 + $0xc10] ss:$24 sps:$4 sm:$0xff]  }
 0x939   :  { %8312 = vmatprep.subr.bf16.mxu0 %v11512_v19  ;;  %v8433_v19 = vsel %vm8427_vm1, 1.0, %v12020_v51 }
 0x93b   :  { %v11761_v24 = vpop.eup %11760 }
 0x93c   :  { %v11763_v13 = vpop.eup %11762  ;;  %v8463_v46 = vmul.f32 1.0614054, %v11761_v24  ;;  %8313 = vmatpush1.bf16.msra.mxu0 %v11510_v58 }
 0x93d   :  { %v8464_v60 = vmul.f32 1.0614054, %v11763_v13  ;;  %8314 = vmatprep.subr.bf16.mxu0 %v11517_v28  ;;  %v11765_v48 = vpop.eup %11764  ;;  %v8434_v28 = vsel %vm8428_vm5, 1.0, %v12020_v51 }
 0x93e   :  { %v8469_v56 = vadd.f32 -1.4531521, %v8463_v46  ;;  %v11767_v40 = vpop.eup %11766  ;;  %v11552_v46 = vld [vmem:[#allocation10 + $0xc74] ss:$24 sps:$4 sm:$0xff]  }
 0x93f   :  { %v8470_v41 = vadd.f32 -1.4531521, %v8464_v60  ;;  %v11625_v60 = vld [vmem:[#allocation13 + $0xc0] sm:$0xff]  }
 0x940   :  { %v8475_v62 = vmul.f32 %v11761_v24, %v8469_v56  ;;  %8315 = vmatpush1.bf16.msra.mxu0 %v11515_v14  ;;  %v11550_v56 = vld [vmem:[#allocation10 + $0xc70] ss:$24 sps:$4 sm:$0xff]   ;;  %10457 = vmatprep.subr.bf16.mxu1 %v11625_v60 }
 0x941   :  { %v8476_v20 = vmul.f32 %v11763_v13, %v8470_v41  ;;  %8316 = vmatprep.subr.bf16.mxu0 %v11522_v22  ;;  %v11598_v60 = vld [vmem:[#allocation10 + $0xf70] ss:$24 sps:$4 sm:$0xff]  }
 0x942   :  { %v8481_v0 = vadd.f32 1.4214138, %v8475_v62  ;;  %v11630_v62 = vld [vmem:[#allocation13 + $0xc8] sm:$0xff]  }
 0x943   :  { %v8482_v30 = vadd.f32 1.4214138, %v8476_v20  ;;  %v11556_v20 = vld [vmem:[#allocation10 + $0xcd0] ss:$24 sps:$4 sm:$0xff]  }
 0x944   :  { %v8487_v8 = vmul.f32 %v11761_v24, %v8481_v0  ;;  %8317 = vmatpush1.bf16.msra.mxu0 %v11520_v54  ;;  %v11635_v54 = vld [vmem:[#allocation13 + $0xd0] sm:$0xff]  }
 0x945   :  { %v8488_v16 = vmul.f32 %v11763_v13, %v8482_v30  ;;  %8318 = vmatprep.subr.bf16.mxu0 %v11527_v9  ;;  %v11561_v9 = vld [vmem:[#allocation10 + $0xd04] ss:$24 sps:$4 sm:$0xff]  }
 0x946   :  { %v8493_v15 = vadd.f32 -0.28449672, %v8487_v8  ;;  %v11636_v0 = vld [vmem:[#allocation13 + $0x90] sm:$0xff]   ;;  %v11640_v30 = vld [vmem:[#allocation13 + $0xd8] sm:$0xff]  }
 0x947   :  { %v8494_v2 = vadd.f32 -0.28449672, %v8488_v16  ;;  %v11559_v8 = vld [vmem:[#allocation10 + $0xd00] ss:$24 sps:$4 sm:$0xff]  }
 0x948   :  { %v8499_v25 = vmul.f32 %v11761_v24, %v8493_v15  ;;  %8319 = vmatpush1.bf16.msra.mxu0 %v11525_v4  ;;  %v11564_v4 = vld [vmem:[#allocation10 + $0xd34] ss:$24 sps:$4 sm:$0xff]   ;;  %v11641_v16 = vld [vmem:[#allocation13 + $0x98] sm:$0xff]   ;;  %v11562_v15 = vld [vmem:[#allocation10 + $0xd30] ss:$24 sps:$4 sm:$0xff]  }
 0x949   :  { %v8500_v59 = vmul.f32 %v11763_v13, %v8494_v2  ;;  %8320 = vmatprep.subr.bf16.mxu0 %v11532_v33  ;;  %v11645_v33 = vld [vmem:[#allocation13 + $0xe0] sm:$0xff]  }
 0x94a   :  { %v8505_v23 = vadd.f32 0.2548296, %v8499_v25  ;;  %v11567_v2 = vld [vmem:[#allocation10 + $0xd64] ss:$24 sps:$4 sm:$0xff]  }
 0x94b   :  { %v8506_v11 = vadd.f32 0.2548296, %v8500_v59  ;;  %v11646_v25 = vld [vmem:[#allocation13 + $0xa0] sm:$0xff]   ;;  %v11565_v59 = vld [vmem:[#allocation10 + $0xd60] ss:$24 sps:$4 sm:$0xff]  }
 0x94c   :  { %v8511_v12 = vmul.f32 %v11761_v24, %v8505_v23  ;;  %8321 = vmatpush1.bf16.msra.mxu0 %v11530_v29  ;;  %v11650_v29 = vld [vmem:[#allocation13 + $0xe8] sm:$0xff]  }
 0x94d   :  { %v8512_v35 = vmul.f32 %v11763_v13, %v8506_v11  ;;  %8322 = vmatprep.subr.bf16.mxu0 %v11537_v42  ;;  %v8416_v13 = vmul.f32 0.5, %v14176_v53  ;;  %v11558_v53 = vld [vmem:[#allocation10 + $0xcd4] ss:$24 sps:$4 sm:$0xff]  }
 0x94e   :  { %v8541_v34 = vmul.f32 %v11765_v48, %v8511_v12  ;;  %v11570_v42 = vld [vmem:[#allocation10 + $0xd94] ss:$24 sps:$4 sm:$0xff]   ;;  %v11568_v12 = vld [vmem:[#allocation10 + $0xd90] ss:$24 sps:$4 sm:$0xff]  }
 0x94f   :  { %v8542_v7 = vmul.f32 %v11767_v40, %v8512_v35  ;;  %v11651_v23 = vld [vmem:[#allocation13 + $0xa8] sm:$0xff]   ;;  %v11652_v11 = vld [vmem:[#allocation13 + $0xf0] sm:$0xff]   ;;  %v11654_v35 = vld [vmem:[#allocation13 + $0xf8] sm:$0xff]  }
 0x950   :  { %v8547_v26 = vsub.f32 1.0, %v8541_v34  ;;  %8323 = vmatpush1.bf16.msra.mxu0 %v11535_v10  ;;  %v11573_v10 = vld [vmem:[#allocation10 + $0xdc4] ss:$24 sps:$4 sm:$0xff]   ;;  %v11576_v40 = vld [vmem:[#allocation10 + $0xdf4] ss:$24 sps:$4 sm:$0xff]  }
 0x951   :  { %v8548_v55 = vsub.f32 1.0, %v8542_v7  ;;  %8333 = vmatprep.subr.bf16.mxu0 %v11542_v31  ;;  %v11653_v48 = vld [vmem:[#allocation13 + $0xb0] sm:$0xff]   ;;  %v11655_v34 = vld [vmem:[#allocation13 + $0xb8] sm:$0xff]   ;;  %v11574_v7 = vld [vmem:[#allocation10 + $0xdf0] ss:$24 sps:$4 sm:$0xff]  }
 0x952   :  { %v8553_v58 = vmul.f32 %v8547_v26, %v8433_v19  ;;  %v11571_v31 = vld [vmem:[#allocation10 + $0xdc0] ss:$24 sps:$4 sm:$0xff]   ;;  %v11579_v26 = vld [vmem:[#allocation10 + $0xe24] ss:$24 sps:$4 sm:$0xff]   ;;  %v11582_v19 = vld [vmem:[#allocation10 + $0xe54] ss:$24 sps:$4 sm:$0xff]  }
 0x953   :  { %v8554_v24 = vmul.f32 %v8548_v55, %v8434_v28  ;;  %8325 = vmatmul.mubr.bf16.vlgmr.msra.gmra.mrb[20].mxu0 %v14088_v47  ;;  %v11580_v55 = vld [vmem:[#allocation10 + $0xe50] ss:$24 sps:$4 sm:$0xff]   ;;  %v11588_v28 = vld [vmem:[#allocation10 + $0xeb4] ss:$24 sps:$4 sm:$0xff]  }
 0x954   :  { %v8559_v57 = vadd.f32 1.0, %v8553_v58  ;;  %8334 = vmatpush1.bf16.msra.mxu0 %v11540_v38  ;;  %8365 = vmatprep.mubr.bf16.mxu0 %v14091_v63  ;;  %v11553_v63 = vld [vmem:[#allocation10 + $0xca0] ss:$24 sps:$4 sm:$0xff]  }
 0x955   :  { %8335 = vmatprep.subr.bf16.mxu0 %v11547_v17  ;;  %v8560_v50 = vadd.f32 1.0, %v8554_v24  ;;  %v11577_v38 = vld [vmem:[#allocation10 + $0xe20] ss:$24 sps:$4 sm:$0xff]   ;;  %v11585_v17 = vld [vmem:[#allocation10 + $0xe84] ss:$24 sps:$4 sm:$0xff]  }
 0x956   :  { %v8565_v14 = vmul.f32 %v8559_v57, %v8415_v36  ;;  %v11583_v58 = vld [vmem:[#allocation10 + $0xe80] ss:$24 sps:$4 sm:$0xff]   ;;  %v11586_v24 = vld [vmem:[#allocation10 + $0xeb0] ss:$24 sps:$4 sm:$0xff]   ;;  %v11591_v36 = vld [vmem:[#allocation10 + $0xee4] ss:$24 sps:$4 sm:$0xff]  }
 0x957   :  { %v8566_v22 = vmul.f32 %v8560_v50, %v8416_v13  ;;  %v11589_v57 = vld [vmem:[#allocation10 + $0xee0] ss:$24 sps:$4 sm:$0xff]   ;;  %v11592_v13 = vld [vmem:[#allocation10 + $0xf10] ss:$24 sps:$4 sm:$0xff]  }
 0x958   :  { %8336 = vmatpush1.bf16.msra.mxu0 %v11545_v44  ;;  %v8571_v41 = vpack.c.bf16 %v8565_v14, %v8565_v14  ;;  %v11594_v44 = vld [vmem:[#allocation10 + $0xf14] ss:$24 sps:$4 sm:$0xff]   ;;  %v11595_v50 = vld [vmem:[#allocation10 + $0xf40] ss:$24 sps:$4 sm:$0xff]  }
 0x959   :  { %8337 = vmatprep.subr.bf16.mxu0 %v11552_v46  ;;  %v8572_v47 = vpack.c.bf16 %v8566_v22, %v8566_v22  ;;  %v11597_v46 = vld [vmem:[#allocation10 + $0xf44] ss:$24 sps:$4 sm:$0xff]   ;;  %v11600_v14 = vld [vmem:[#allocation10 + $0xf74] ss:$24 sps:$4 sm:$0xff]  }
 0x95a   :  { %v11603_v22 = vld [vmem:[#allocation10 + $0xfa4] ss:$24 sps:$4 sm:$0xff]  }
 0x95b   :  { %9260 = vmatprep.mubr.bf16.mxu1 %v8572_v47  ;;  %v11606_v47 = vld [vmem:[#allocation10 + $0xfd4] ss:$24 sps:$4 sm:$0xff]  }
 0x95c   :  { %8338 = vmatpush1.bf16.msra.mxu0 %v11550_v56  ;;  %9261 = vmatmul.mubr.bf16.vlgmr.msra.gmra.mrb[32].mxu1 %v8571_v41  ;;  %v11601_v56 = vld [vmem:[#allocation10 + $0xfa0] ss:$24 sps:$4 sm:$0xff]  }
 0x95d   :  { %8339 = vmatprep.subr.bf16.mxu0 %v11555_v32  ;;  %10458 = vmatpush3.bf16.msra.mxu1 %v11626_v49  ;;  %v11604_v32 = vld [vmem:[#allocation10 + $0xfd0] ss:$24 sps:$4 sm:$0xff]   ;;  %v11609_v49 = vld [vmem:[#allocation10 + $0x1004] ss:$24 sps:$4 sm:$0xff]  }
 0x95e   :  { %10459 = vmatprep.subr.bf16.mxu1 %v11630_v62  ;;  %v11607_v62 = vld [vmem:[#allocation10 + $0x1000] ss:$24 sps:$4 sm:$0xff]  }
 0x960   :  { %8340 = vmatpush1.bf16.msra.mxu0 %v11553_v63 }
 0x961   :  { %8341 = vmatprep.subr.bf16.mxu0 %v11558_v53  ;;  %10460 = vmatpush3.bf16.msra.mxu1 %v11631_v52  ;;  %v11612_v52 = vld [vmem:[#allocation10 + $0x1034] ss:$24 sps:$4 sm:$0xff]  }
 0x962   :  { %10461 = vmatprep.subr.bf16.mxu1 %v11635_v54 }
 0x964   :  { %8342 = vmatpush1.bf16.msra.mxu0 %v11556_v20 }
 0x965   :  { %8343 = vmatprep.subr.bf16.mxu0 %v11561_v9  ;;  %10462 = vmatpush3.bf16.msra.mxu1 %v11636_v0 }
 0x966   :  { %10463 = vmatprep.subr.bf16.mxu1 %v11640_v30 }
 0x968   :  { %8344 = vmatpush1.bf16.msra.mxu0 %v11559_v8  ;;  %v11615_v8 = vld [vmem:[#allocation10 + $0x1064] ss:$24 sps:$4 sm:$0xff]  }
 0x969   :  { %8345 = vmatprep.subr.bf16.mxu0 %v11564_v4  ;;  %10464 = vmatpush3.bf16.msra.mxu1 %v11641_v16 }
 0x96a   :  { %10465 = vmatprep.subr.bf16.mxu1 %v11645_v33 }
 0x96c   :  { %8346 = vmatpush1.bf16.msra.mxu0 %v11562_v15  ;;  %v11613_v15 = vld [vmem:[#allocation10 + $0x1060] ss:$24 sps:$4 sm:$0xff]  }
 0x96d   :  { %8347 = vmatprep.subr.bf16.mxu0 %v11567_v2  ;;  %10466 = vmatpush3.bf16.msra.mxu1 %v11646_v25  ;;  %v11618_v25 = vld [vmem:[#allocation10 + $0x1094] ss:$24 sps:$4 sm:$0xff]  }
 0x96e   :  { %10467 = vmatprep.subr.bf16.mxu1 %v11650_v29 }
 0x970   :  { %8348 = vmatpush1.bf16.msra.mxu0 %v11565_v59  ;;  %v11616_v59 = vld [vmem:[#allocation10 + $0x1090] ss:$24 sps:$4 sm:$0xff]  }
 0x971   :  { %8349 = vmatprep.subr.bf16.mxu0 %v11570_v42  ;;  %10468 = vmatpush3.bf16.msra.mxu1 %v11651_v23  ;;  %v11621_v42 = vld [vmem:[#allocation10 + $0x10c4] ss:$24 sps:$4 sm:$0xff]   ;;  %v11619_v23 = vld [vmem:[#allocation10 + $0x10c0] ss:$24 sps:$4 sm:$0xff]  }
 0x972   :  { %10469 = vmatprep.subr.bf16.mxu1 %v11652_v11 }
 0x974   :  { %8350 = vmatpush1.bf16.msra.mxu0 %v11568_v12  ;;  %v11624_v12 = vld [vmem:[#allocation10 + $0x10f4] ss:$24 sps:$4 sm:$0xff]  }
 0x975   :  { %8351 = vmatprep.subr.bf16.mxu0 %v11573_v10  ;;  %10470 = vmatpush3.bf16.msra.mxu1 %v11653_v48  ;;  %v11622_v48 = vld [vmem:[#allocation10 + $0x10f0] ss:$24 sps:$4 sm:$0xff]  }
 0x976   :  { %10471 = vmatprep.subr.bf16.mxu1 %v11654_v35 }
 0x978   :  { %8352 = vmatpush1.bf16.msra.mxu0 %v11571_v31 }
 0x979   :  { %8353 = vmatprep.subr.bf16.mxu0 %v11576_v40  ;;  %10472 = vmatpush3.bf16.msra.mxu1 %v11655_v34  ;;  %v11629_v40 = vld [vmem:[#allocation10 + $0x1124] ss:$24 sps:$4 sm:$0xff]  }
 0x97c   :  { %8354 = vmatpush1.bf16.msra.mxu0 %v11574_v7 }
 0x97d   :  { %8355 = vmatprep.subr.bf16.mxu0 %v11579_v26 }
 0x980   :  { %8356 = vmatpush1.bf16.msra.mxu0 %v11577_v38 }
 0x981   :  { %8357 = vmatprep.subr.bf16.mxu0 %v11582_v19 }
 0x984   :  { %8358 = vmatpush1.bf16.msra.mxu0 %v11580_v55  ;;  %v11627_v55 = vld [vmem:[#allocation10 + $0x1120] ss:$24 sps:$4 sm:$0xff]  }
 0x985   :  { %8359 = vmatprep.subr.bf16.mxu0 %v11585_v17 }
 0x988   :  { %8360 = vmatpush1.bf16.msra.mxu0 %v11583_v58 }
 0x989   :  { %8361 = vmatprep.subr.bf16.mxu0 %v11588_v28  ;;  %v11634_v28 = vld [vmem:[#allocation10 + $0x1154] ss:$24 sps:$4 sm:$0xff]  }
 0x98c   :  { %8362 = vmatpush1.bf16.msra.mxu0 %v11586_v24 }
 0x98d   :  { %8363 = vmatprep.subr.bf16.mxu0 %v11591_v36 }
 0x990   :  { %8364 = vmatpush1.bf16.msra.mxu0 %v11589_v57 }
 0x991   :  { %8374 = vmatprep.subr.bf16.mxu0 %v11594_v44 }
 0x993   :  { %8366 = vmatmul.mubr.bf16.vlgmr.msra.gmra.mrb[20].mxu0 %v14127_v45  ;;  %v4778_v45 = vrot.slane %v14166_v6, %v13658_v37 }
 0x994   :  { %8375 = vmatpush1.bf16.msra.mxu0 %v11592_v13  ;;  %8406 = vmatprep.mubr.bf16.mxu0 %v14130_v1  ;;  %v4782_v1 = vrot.slane %v14166_v6, %v13663_v5  ;;  %v11610_v5 = vld [vmem:[#allocation10 + $0x1030] ss:$24 sps:$4 sm:$0xff]  }
 0x995   :  { %8376 = vmatprep.subr.bf16.mxu0 %v11597_v46  ;;  %v11632_v13 = vld [vmem:[#allocation10 + $0x1150] ss:$24 sps:$4 sm:$0xff]  }
 0x998   :  { %8377 = vmatpush1.bf16.msra.mxu0 %v11595_v50  ;;  %v11639_v50 = vld [vmem:[#allocation10 + $0x1184] ss:$24 sps:$4 sm:$0xff]  }
 0x999   :  { %8378 = vmatprep.subr.bf16.mxu0 %v11600_v14 }
 0x99c   :  { %8379 = vmatpush1.bf16.msra.mxu0 %v11598_v60 }
 0x99d   :  { %8380 = vmatprep.subr.bf16.mxu0 %v11603_v22 }
 0x9a0   :  { %8381 = vmatpush1.bf16.msra.mxu0 %v11601_v56  ;;  %v11637_v56 = vld [vmem:[#allocation10 + $0x1180] ss:$24 sps:$4 sm:$0xff]  }
 0x9a1   :  { %8382 = vmatprep.subr.bf16.mxu0 %v11606_v47 }
 0x9a4   :  { %8383 = vmatpush1.bf16.msra.mxu0 %v11604_v32  ;;  %v8162_v41 = vpop.f32.mrb[28].mxu1  ;;  %v11644_v32 = vld [vmem:[#allocation10 + $0x11b4] ss:$24 sps:$4 sm:$0xff]  }
 0x9a5   :  { %v14200_v63 = vadd.f32 %v8162_v41, %v4778_v45  ;;  %v8164_v53 = vpop.f32.mrb[29].mxu1  ;;  %8384 = vmatprep.subr.bf16.mxu0 %v11609_v49  ;;  %v11642_v41 = vld [vmem:[#allocation10 + $0x11b0] ss:$24 sps:$4 sm:$0xff]  }
 0x9a6   :  { %v14202_v54 = vadd.f32 %v8164_v53, %v4782_v1  ;;  %v8166_v20 = vpop.f32.mrb[30].mxu1  ;;  %v11649_v53 = vld [vmem:[#allocation10 + $0x11e4] ss:$24 sps:$4 sm:$0xff]  }
 0x9a7   :  { %v14205_v9 = vmul.f32 0.70710677, %v14200_v63  ;;  %v8167_v0 = vpop.f32.mrb[31].mxu1 }
 0x9a8   :  { %v14208_v37 = vmul.f32 0.70710677, %v14202_v54  ;;  %8385 = vmatpush1.bf16.msra.mxu0 %v11607_v62 }
 0x9a9   :  { %v8441_v30 = vand.u32 2147483647, %v14205_v9  ;;  %8386 = vmatprep.subr.bf16.mxu0 %v11612_v52  ;;  %vm8429_vm6 = vcmp.ge.f32.partialorder %v14205_v9, 0.0  ;;  %v8418_v9 = vmul.f32 0.5, %v14202_v54  ;;  %v11659_v54 = vld [vmem:[#allocation13 + $0x108] sm:$0xff]  }
 0x9aa   :  { %v8442_v4 = vand.u32 2147483647, %v14208_v37  ;;  %vm8430_vm15 = vcmp.ge.f32.partialorder %v14208_v37, 0.0 }
 0x9ab   :  { %v8447_v16 = vmul.f32 0.3275911, %v8441_v30  ;;  %v8519_v11 = vsub.f32 0.0, %v8441_v30 }
 0x9ac   :  { %v8448_v33 = vmul.f32 0.3275911, %v8442_v4  ;;  %8387 = vmatpush1.bf16.msra.mxu0 %v11610_v5  ;;  %v8520_v10 = vsub.f32 0.0, %v8442_v4 }
 0x9ad   :  { %v8453_v2 = vadd.f32 1.0, %v8447_v16  ;;  %8388 = vmatprep.subr.bf16.mxu0 %v11615_v8  ;;  %v8525_v31 = vmul.f32 %v8519_v11, %v8441_v30  ;;  %v11647_v8 = vld [vmem:[#allocation10 + $0x11e0] ss:$24 sps:$4 sm:$0xff]  }
 0x9ae   :  { %v8454_v29 = vadd.f32 1.0, %v8448_v33  ;;  %v8526_v26 = vmul.f32 %v8520_v10, %v8442_v4  ;;  %v8435_v33 = vsel %vm8429_vm6, 1.0, %v12020_v51 }
 0x9af   :  { %11768 = vrcp.f32 %v8453_v2  ;;  %v8533_v17 = vmul.f32 1.442695, %v8525_v31 }
 0x9b0   :  { %11770 = vrcp.f32 %v8454_v29  ;;  %8389 = vmatpush1.bf16.msra.mxu0 %v11613_v15  ;;  %v8535_v36 = vmul.f32 1.442695, %v8526_v26  ;;  %v11658_v26 = vld [vmem:[#allocation13 + $0x148] sm:$0xff]  }
 0x9b1   :  { %8390 = vmatprep.subr.bf16.mxu0 %v11618_v25  ;;  %11772 = vpow2.f32 %v8533_v17  ;;  %v8436_v25 = vsel %vm8430_vm15, 1.0, %v12020_v51  ;;  %v11664_v17 = vld [vmem:[#allocation13 + $0x160] sm:$0xff]  }
 0x9b2   :  { %11774 = vpow2.f32 %v8535_v36  ;;  %v11668_v36 = vld [vmem:[#allocation13 + $0x170] sm:$0xff]  }
 0x9b4   :  { %8391 = vmatpush1.bf16.msra.mxu0 %v11616_v59  ;;  %v8417_v59 = vmul.f32 0.5, %v14200_v63  ;;  %v11657_v63 = vld [vmem:[#allocation13 + $0x100] sm:$0xff]  }
 0x9b5   :  { %8392 = vmatprep.subr.bf16.mxu0 %v11621_v42 }
 0x9b8   :  { %8393 = vmatpush1.bf16.msra.mxu0 %v11619_v23 }
 0x9b9   :  { %v11769_v35 = vpop.eup %11768  ;;  %8394 = vmatprep.subr.bf16.mxu0 %v11624_v12 }
 0x9ba   :  { %v11771_v34 = vpop.eup %11770  ;;  %v8465_v7 = vmul.f32 1.0614054, %v11769_v35 }
 0x9bb   :  { %v8466_v38 = vmul.f32 1.0614054, %v11771_v34  ;;  %v11773_v20 = vpop.eup %11772 }
 0x9bc   :  { %v8471_v19 = vadd.f32 -1.4531521, %v8465_v7  ;;  %8395 = vmatpush1.bf16.msra.mxu0 %v11622_v48  ;;  %v11775_v5 = vpop.eup %11774  ;;  %v11656_v7 = vld [vmem:[#allocation13 + $0x140] sm:$0xff]  }
 0x9bd   :  { %v8472_v58 = vadd.f32 -1.4531521, %v8466_v38  ;;  %8396 = vmatprep.subr.bf16.mxu0 %v11629_v40  ;;  %10479 = vmatprep.subr.bf16.mxu1 %v11656_v7  ;;  %v11661_v38 = vld [vmem:[#allocation13 + $0x110] sm:$0xff]  }
 0x9be   :  { %v8477_v24 = vmul.f32 %v11769_v35, %v8471_v19  ;;  %v11662_v19 = vld [vmem:[#allocation13 + $0x158] sm:$0xff]  }
 0x9bf   :  { %v8478_v57 = vmul.f32 %v11771_v34, %v8472_v58  ;;  %v11665_v58 = vld [vmem:[#allocation13 + $0x120] sm:$0xff]  }
 0x9c0   :  { %v8483_v44 = vadd.f32 1.4214138, %v8477_v24  ;;  %8397 = vmatpush1.bf16.msra.mxu0 %v11627_v55  ;;  %v11663_v55 = vld [vmem:[#allocation13 + $0x118] sm:$0xff]   ;;  %v11667_v24 = vld [vmem:[#allocation13 + $0x128] sm:$0xff]  }
 0x9c1   :  { %v8484_v46 = vadd.f32 1.4214138, %v8478_v57  ;;  %8398 = vmatprep.subr.bf16.mxu0 %v11634_v28  ;;  %v11666_v28 = vld [vmem:[#allocation13 + $0x168] sm:$0xff]   ;;  %v11669_v57 = vld [vmem:[#allocation13 + $0x130] sm:$0xff]  }
 0x9c2   :  { %v8489_v14 = vmul.f32 %v11769_v35, %v8483_v44  ;;  %v11670_v44 = vld [vmem:[#allocation13 + $0x178] sm:$0xff]  }
 0x9c3   :  { %v8490_v60 = vmul.f32 %v11771_v34, %v8484_v46  ;;  %v11672_v46 = vld [vmem:[#allocation13 + $0x1c0] sm:$0xff]  }
 0x9c4   :  { %v8495_v22 = vadd.f32 -0.28449672, %v8489_v14  ;;  %8399 = vmatpush1.bf16.msra.mxu0 %v11632_v13  ;;  %v11671_v13 = vld [vmem:[#allocation13 + $0x138] sm:$0xff]  }
 0x9c5   :  { %v8496_v47 = vadd.f32 -0.28449672, %v8490_v60  ;;  %8400 = vmatprep.subr.bf16.mxu0 %v11639_v50  ;;  %v14222_v50 = vmul.f32 0.70710677, %v14012_v61 }
 0x9c6   :  { %v8501_v45 = vmul.f32 %v11769_v35, %v8495_v22 }
 0x9c7   :  { %v8502_v49 = vmul.f32 %v11771_v34, %v8496_v47  ;;  %v3880_v14 = vand.u32 2147483647, %v14222_v50  ;;  %vm3852_vm13 = vcmp.ge.f32.partialorder %v14222_v50, 0.0 }
 0x9c8   :  { %v8507_v1 = vadd.f32 0.2548296, %v8501_v45  ;;  %8401 = vmatpush1.bf16.msra.mxu0 %v11637_v56  ;;  %v4790_v45 = vrot.slane %v14166_v6, %v13671_v3 }
 0x9c9   :  { %v8508_v62 = vadd.f32 0.2548296, %v8502_v49  ;;  %8402 = vmatprep.subr.bf16.mxu0 %v11644_v32  ;;  %v3894_v60 = vmul.f32 0.3275911, %v3880_v14  ;;  %v4786_v32 = vrot.slane %v14166_v6, %v13667_v43  ;;  %v14230_v49 = vmul.f32 0.70710677, %v14004_v39 }
 0x9ca   :  { %v8513_v52 = vmul.f32 %v11769_v35, %v8507_v1 }
 0x9cb   :  { %v8514_v0 = vmul.f32 %v11771_v34, %v8508_v62  ;;  %v3908_v22 = vadd.f32 1.0, %v3894_v60  ;;  %vm3851_vm14 = vcmp.ge.f32.partialorder %v14230_v49, 0.0 }
 0x9cc   :  { %v8543_v30 = vmul.f32 %v11773_v20, %v8513_v52  ;;  %8403 = vmatpush1.bf16.msra.mxu0 %v11642_v41 }
 0x9cd   :  { %v8544_v4 = vmul.f32 %v11775_v5, %v8514_v0  ;;  %8404 = vmatprep.subr.bf16.mxu0 %v11649_v53  ;;  %11776 = vrcp.f32 %v3908_v22  ;;  %v14237_v0 = vand.u32 2147483647, %v14230_v49 }
 0x9ce   :  { %v8549_v16 = vsub.f32 1.0, %v8543_v30 }
 0x9cf   :  { %v8550_v15 = vsub.f32 1.0, %v8544_v4 }
 0x9d0   :  { %v8555_v2 = vmul.f32 %v8549_v16, %v8435_v33  ;;  %8405 = vmatpush1.bf16.msra.mxu0 %v11647_v8  ;;  %v10157_v8 = vld [vmem:[#allocation14] ss:$0 sm:$0xff]  ;;  %v3893_v16 = vmul.f32 0.3275911, %v14237_v0 }
 0x9d1   :  { %v8556_v29 = vmul.f32 %v8550_v15, %v8436_v25 }
 0x9d2   :  { %v8561_v42 = vadd.f32 1.0, %v8555_v2 }
 0x9d3   :  { %8407 = vmatmul.mubr.bf16.vlgmr.msra.gmra.mrb[20].mxu0 %v14151_v27  ;;  %v8562_v23 = vadd.f32 1.0, %v8556_v29  ;;  %v11660_v27 = vld [vmem:[#allocation13 + $0x150] sm:$0xff]  }
 0x9d4   :  { %v8567_v37 = vmul.f32 %v8561_v42, %v8417_v59 }
 0x9d5   :  { %v8568_v11 = vmul.f32 %v8562_v23, %v8418_v9 }
 0x9d6   :  { %v8573_v10 = vpack.c.bf16 %v8567_v37, %v8567_v37  ;;  %v4062_v37 = vsub.f32 0.0, %v3880_v14 }
 0x9d7   :  { %v8574_v12 = vpack.c.bf16 %v8568_v11, %v8568_v11  ;;  %v11777_v56 = vpop.eup %11776 }
 0x9d8   :  { %v3936_v47 = vmul.f32 1.0614054, %v11777_v56 }
 0x9d9   :  { %9300 = vmatprep.mubr.bf16.mxu1 %v8574_v12 }
 0x9da   :  { %9301 = vmatmul.mubr.bf16.vlgmr.msra.gmra.mrb[36].mxu1 %v8573_v10  ;;  %v3950_v41 = vadd.f32 -1.4531521, %v3936_v47  ;;  %v3907_v10 = vadd.f32 1.0, %v3893_v16 }
 0x9db   :  { %10480 = vmatpush3.bf16.msra.mxu1 %v11657_v63 }
 0x9dc   :  { %10481 = vmatprep.subr.bf16.mxu1 %v11658_v26  ;;  %v3964_v6 = vmul.f32 %v11777_v56, %v3950_v41 }
 0x9de   :  { %v3978_v29 = vadd.f32 1.4214138, %v3964_v6 }
 0x9df   :  { %10482 = vmatpush3.bf16.msra.mxu1 %v11659_v54 }
 0x9e0   :  { %10483 = vmatprep.subr.bf16.mxu1 %v11660_v27 }
 0x9e3   :  { %10484 = vmatpush3.bf16.msra.mxu1 %v11661_v38 }
 0x9e4   :  { %10485 = vmatprep.subr.bf16.mxu1 %v11662_v19 }
 0x9e7   :  { %10486 = vmatpush3.bf16.msra.mxu1 %v11663_v55 }
 0x9e8   :  { %10487 = vmatprep.subr.bf16.mxu1 %v11664_v17 }
 0x9eb   :  { %10488 = vmatpush3.bf16.msra.mxu1 %v11665_v58 }
 0x9ec   :  { %10489 = vmatprep.subr.bf16.mxu1 %v11666_v28 }
 0x9ef   :  { %10490 = vmatpush3.bf16.msra.mxu1 %v11667_v24 }
 0x9f0   :  { %10491 = vmatprep.subr.bf16.mxu1 %v11668_v36 }
 0x9f3   :  { %10492 = vmatpush3.bf16.msra.mxu1 %v11669_v57 }
 0x9f4   :  { %10493 = vmatprep.subr.bf16.mxu1 %v11670_v44 }
 0x9f7   :  { %10494 = vmatpush3.bf16.msra.mxu1 %v11671_v13 }
 0x9f8   :  { %10501 = vmatprep.subr.bf16.mxu1 %v11672_v46 }
 0xa2f   :  { %v10451_v48 = vpop.f32.mrb[32].mxu1 }
 0xa30   :  { %v10452_v35 = vpop.f32.mrb[33].mxu1 }
 0xa31   :  { %v14219_v31 = vadd.f32 %v10452_v35, %v10451_v48  ;;  %v10454_v40 = vpop.f32.mrb[34].mxu1  ;;  %v3992_v35 = vmul.f32 %v11777_v56, %v3978_v29 }
 0xa32   :  { %v10455_v34 = vpop.f32.mrb[35].mxu1  ;;  %v4076_v40 = vmul.f32 %v4062_v37, %v3880_v14 }
 0xa33   :  { %v9263_v59 = vadd.f32 %v14219_v31, %v10157_v8  ;;  %v4006_v34 = vadd.f32 -0.28449672, %v3992_v35 }
 0xa34   :  { %v4103_v63 = vmul.f32 1.442695, %v4076_v40 }
 0xa35   :  { %v4020_v31 = vmul.f32 %v11777_v56, %v4006_v34 }
 0xa37   :  { %v4034_v24 = vadd.f32 0.2548296, %v4020_v31 }
 0xa39   :  { %v4048_v22 = vmul.f32 %v11777_v56, %v4034_v24  ;;  %v11673_v24 = vld [vmem:[#allocation13 + $0x180] sm:$0xff]  }
 0xaa6   :  { %v8408_v1 = vpop.f32.mrb[20].mxu0 }
 0xaa7   :  { %v14232_v62 = vadd.f32 %v8408_v1, %v4786_v32  ;;  %v8410_v53 = vpop.f32.mrb[21].mxu0 }
 0xaa8   :  { %v14234_v52 = vadd.f32 %v8410_v53, %v4790_v45  ;;  %v8412_v20 = vpop.f32.mrb[22].mxu0 }
 0xaa9   :  { %v14240_v5 = vmul.f32 0.70710677, %v14232_v62  ;;  %v8413_v43 = vpop.f32.mrb[23].mxu0 }
 0xaaa   :  { %v14243_v3 = vmul.f32 0.70710677, %v14234_v52 }
 0xaab   :  { %v8443_v30 = vand.u32 2147483647, %v14240_v5  ;;  %vm8431_vm2 = vcmp.ge.f32.partialorder %v14240_v5, 0.0 }
 0xaac   :  { %v8444_v4 = vand.u32 2147483647, %v14243_v3  ;;  %vm8432_vm4 = vcmp.ge.f32.partialorder %v14243_v3, 0.0  ;;  %v8437_v50 = vsel %vm8431_vm2, 1.0, %v12020_v51  ;;  %v8420_v3 = vmul.f32 0.5, %v14234_v52 }
 0xaad   :  { %v8449_v33 = vmul.f32 0.3275911, %v8443_v30  ;;  %v10473_v15 = vpop.f32.mrb[36].mxu1  ;;  %v8521_v7 = vsub.f32 0.0, %v8443_v30  ;;  %v8438_v40 = vsel %vm8432_vm4, 1.0, %v12020_v51 }
 0xaae   :  { %v8450_v2 = vmul.f32 0.3275911, %v8444_v4  ;;  %v10474_v25 = vpop.f32.mrb[37].mxu1  ;;  %v8522_v26 = vsub.f32 0.0, %v8444_v4 }
 0xaaf   :  { %v8455_v42 = vadd.f32 1.0, %v8449_v33  ;;  %v10475_v9 = vadd.f32 %v10474_v25, %v10473_v15  ;;  %v10476_v23 = vpop.f32.mrb[38].mxu1  ;;  %v8527_v27 = vmul.f32 %v8521_v7, %v8443_v30 }
 0xab0   :  { %v8456_v11 = vadd.f32 1.0, %v8450_v2  ;;  %v10477_v12 = vpop.f32.mrb[39].mxu1  ;;  %v8528_v55 = vmul.f32 %v8522_v26, %v8444_v4 }
 0xab1   :  { %11778 = vrcp.f32 %v8455_v42  ;;  %v14249_v48 = vadd.f32 %v10475_v9, %v9263_v59  ;;  %v8537_v36 = vmul.f32 1.442695, %v8527_v27  ;;  %v3866_v59 = vsel %vm3852_vm13, 1.0, %v12020_v51 }
 0xab2   :  { %11780 = vrcp.f32 %v8456_v11  ;;  %v8539_v13 = vmul.f32 1.442695, %v8528_v55  ;;  %v4061_v9 = vsub.f32 0.0, %v14237_v0 }
 0xab3   :  { %11782 = vrcp.f32 %v3907_v10 }
 0xab4   :  { %11784 = vpow2.f32 %v4103_v63  ;;  %v4075_v34 = vmul.f32 %v4061_v9, %v14237_v0  ;;  %v8419_v63 = vmul.f32 0.5, %v14232_v62  ;;  %v11695_v9 = vld [vmem:[#allocation13 + $0x218] sm:$0xff]  }
 0xab5   :  { %11786 = vpow2.f32 %v8537_v36 }
 0xab6   :  { %11788 = vpow2.f32 %v8539_v13  ;;  %v11677_v13 = vld [vmem:[#allocation13 + $0x190] sm:$0xff]  }
 0xabb   :  { %v11779_v54 = vpop.eup %11778 }
 0xabc   :  { %v11781_v38 = vpop.eup %11780  ;;  %v8467_v19 = vmul.f32 1.0614054, %v11779_v54 }
 0xabd   :  { %v8468_v17 = vmul.f32 1.0614054, %v11781_v38  ;;  %v14251_v28 = vpop.eup %11782 }
 0xabe   :  { %v8473_v58 = vadd.f32 -1.4531521, %v8467_v19  ;;  %v3935_v14 = vmul.f32 1.0614054, %v14251_v28  ;;  %v11785_v1 = vpop.eup %11784  ;;  %v4101_v19 = vmul.f32 1.442695, %v4075_v34 }
 0xabf   :  { %v8474_v57 = vadd.f32 -1.4531521, %v8468_v17  ;;  %v4118_v20 = vmul.f32 %v11785_v1, %v4048_v22  ;;  %v11787_v15 = vpop.eup %11786  ;;  %v11679_v22 = vld [vmem:[#allocation13 + $0x198] sm:$0xff]  }
 0xac0   :  { %v8479_v44 = vmul.f32 %v11779_v54, %v8473_v58  ;;  %v3949_v41 = vadd.f32 -1.4531521, %v3935_v14  ;;  %v11789_v25 = vpop.eup %11788  ;;  %11790 = vpow2.f32 %v4101_v19  ;;  %v11678_v14 = vld [vmem:[#allocation13 + $0x1d8] sm:$0xff]  }
 0xac1   :  { %v8480_v46 = vmul.f32 %v11781_v38, %v8474_v57  ;;  %v4132_v16 = vsub.f32 1.0, %v4118_v20  ;;  %v11674_v57 = vld [vmem:[#allocation13 + $0x1c8] sm:$0xff]  }
 0xac2   :  { %v8485_v60 = vadd.f32 1.4214138, %v8479_v44  ;;  %v3963_v8 = vmul.f32 %v14251_v28, %v3949_v41  ;;  %v11676_v44 = vld [vmem:[#allocation13 + $0x1d0] sm:$0xff]   ;;  %v11682_v41 = vld [vmem:[#allocation13 + $0x1e8] sm:$0xff]  }
 0xac3   :  { %v8486_v47 = vadd.f32 1.4214138, %v8480_v46  ;;  %v4146_v23 = vmul.f32 %v4132_v16, %v3866_v59  ;;  %v11683_v20 = vld [vmem:[#allocation13 + $0x1a8] sm:$0xff]   ;;  %v11687_v16 = vld [vmem:[#allocation13 + $0x1b8] sm:$0xff]   ;;  %v11692_v59 = vld [vmem:[#allocation13 + $0x250] sm:$0xff]  }
 0xac4   :  { %v8491_v32 = vmul.f32 %v11779_v54, %v8485_v60  ;;  %v3977_v29 = vadd.f32 1.4214138, %v3963_v8  ;;  %v11686_v8 = vld [vmem:[#allocation13 + $0x1f8] sm:$0xff]  }
 0xac5   :  { %v8492_v45 = vmul.f32 %v11781_v38, %v8486_v47  ;;  %v4160_v5 = vadd.f32 1.0, %v4146_v23  ;;  %v11697_v23 = vld [vmem:[#allocation13 + $0x220] sm:$0xff]  }
 0xac6   :  { %v8497_v53 = vadd.f32 -0.28449672, %v8491_v32  ;;  %v3991_v10 = vmul.f32 %v14251_v28, %v3977_v29  ;;  %v11680_v32 = vld [vmem:[#allocation13 + $0x1e0] sm:$0xff]   ;;  %v11691_v29 = vld [vmem:[#allocation13 + $0x208] sm:$0xff]  }
 0xac7   :  { %v8498_v43 = vadd.f32 -0.28449672, %v8492_v45  ;;  %v11681_v45 = vld [vmem:[#allocation13 + $0x1a0] sm:$0xff]  }
 0xac8   :  { %v8503_v6 = vmul.f32 %v11779_v54, %v8497_v53  ;;  %v4005_v27 = vadd.f32 -0.28449672, %v3991_v10  ;;  %v3865_v53 = vsel %vm3851_vm14, 1.0, %v12020_v51  ;;  %v11689_v51 = vld [vmem:[#allocation13 + $0x200] sm:$0xff]   ;;  %v11702_v10 = vld [vmem:[#allocation13 + $0x278] sm:$0xff]  }
 0xac9   :  { %v8504_v30 = vmul.f32 %v11781_v38, %v8498_v43  ;;  %v11684_v43 = vld [vmem:[#allocation13 + $0x1f0] sm:$0xff]  }
 0xaca   :  { %v8509_v4 = vadd.f32 0.2548296, %v8503_v6  ;;  %v4019_v36 = vmul.f32 %v14251_v28, %v4005_v27  ;;  %v11791_v60 = vpop.eup %11790  ;;  %v11685_v6 = vld [vmem:[#allocation13 + $0x1b0] sm:$0xff]  }
 0xacb   :  { %v8510_v33 = vadd.f32 0.2548296, %v8504_v30 }
 0xacc   :  { %v8515_v56 = vmul.f32 %v11779_v54, %v8509_v4  ;;  %v3824_v54 = vmul.f32 0.5, %v14012_v61  ;;  %v11675_v61 = vld [vmem:[#allocation13 + $0x188] sm:$0xff]   ;;  %v4033_v52 = vadd.f32 0.2548296, %v4019_v36  ;;  %v3823_v4 = vmul.f32 0.5, %v14004_v39  ;;  %v11693_v39 = vld [vmem:[#allocation13 + $0x210] sm:$0xff]  }
 0xacd   :  { %v8516_v2 = vmul.f32 %v11781_v38, %v8510_v33  ;;  %v11688_v33 = vld [vmem:[#allocation13 + $0x240] sm:$0xff]  }
 0xace   :  { %v8545_v42 = vmul.f32 %v11787_v15, %v8515_v56  ;;  %v4174_v17 = vmul.f32 %v4160_v5, %v3824_v54  ;;  %v4047_v46 = vmul.f32 %v14251_v28, %v4033_v52  ;;  %v4176_v56 = vmax.f32 %v14014_v18, 0.0  ;;  %v11696_v18 = vld [vmem:[#allocation13 + $0x260] sm:$0xff]  }
 0xacf   :  { %v8546_v37 = vmul.f32 %v11789_v25, %v8516_v2  ;;  %v11690_v2 = vld [vmem:[#allocation13 + $0x248] sm:$0xff]  }
 0xad0   :  { %v8551_v11 = vsub.f32 1.0, %v8545_v42  ;;  %v8578_v62 = vpack.c.bf16 %v4174_v17, %v4174_v17  ;;  %v4117_v47 = vmul.f32 %v11791_v60, %v4047_v46  ;;  %v8580_v25 = vpack.c.bf16 %v4176_v56, %v4176_v56  ;;  %v11694_v42 = vld [vmem:[#allocation13 + $0x258] sm:$0xff]  }
 0xad1   :  { %v8552_v12 = vsub.f32 1.0, %v8546_v37  ;;  %v11698_v37 = vld [vmem:[#allocation13 + $0x268] sm:$0xff]  }
 0xad2   :  { %v8557_v35 = vmul.f32 %v8551_v11, %v8437_v50  ;;  %v4131_v1 = vsub.f32 1.0, %v4117_v47  ;;  %v11699_v11 = vld [vmem:[#allocation13 + $0x228] sm:$0xff]   ;;  %v11700_v50 = vld [vmem:[#allocation13 + $0x270] sm:$0xff]  }
 0xad3   :  { %v8558_v7 = vmul.f32 %v8552_v12, %v8438_v40  ;;  %v11701_v12 = vld [vmem:[#allocation13 + $0x230] sm:$0xff]   ;;  %v4175_v40 = vmax.f32 %v14006_v21, 0.0 }
 0xad4   :  { %v8563_v26 = vadd.f32 1.0, %v8557_v35  ;;  %v4145_v28 = vmul.f32 %v4131_v1, %v3865_v53  ;;  %v11703_v35 = vld [vmem:[#allocation13 + $0x238] sm:$0xff]  }
 0xad5   :  { %v8564_v31 = vadd.f32 1.0, %v8558_v7  ;;  %v8579_v34 = vpack.c.bf16 %v4175_v40, %v4175_v40 }
 0xad6   :  { %v8569_v38 = vmul.f32 %v8563_v26, %v8419_v63  ;;  %v4159_v30 = vadd.f32 1.0, %v4145_v28 }
 0xad7   :  { %v8570_v55 = vmul.f32 %v8564_v31, %v8420_v3 }
 0xad8   :  { %v8575_v0 = vpack.c.bf16 %v8569_v38, %v8569_v38  ;;  %v4173_v49 = vmul.f32 %v4159_v30, %v3823_v4 }
 0xad9   :  { %v8576_v58 = vpack.c.bf16 %v8570_v55, %v8570_v55 }
 0xada   :  { %v8577_v15 = vpack.c.bf16 %v4173_v49, %v4173_v49 }
 0xadb   :  { %9340 = vmatprep.mubr.bf16.mxu1 %v8576_v58 }
 0xadc   :  { %9341 = vmatmul.mubr.bf16.vlgmr.msra.gmra.mrb[40].mxu1 %v8575_v0 }
 0xadd   :  { %10502 = vmatpush3.bf16.msra.mxu1 %v11673_v24  ;;  %9380 = vmatprep.mubr.bf16.mxu1 %v8578_v62 }
 0xade   :  { %10503 = vmatprep.subr.bf16.mxu1 %v11674_v57 }
 0xae1   :  { %10504 = vmatpush3.bf16.msra.mxu1 %v11675_v61 }
 0xae2   :  { %10505 = vmatprep.subr.bf16.mxu1 %v11676_v44 }
 0xae5   :  { %10506 = vmatpush3.bf16.msra.mxu1 %v11677_v13 }
 0xae6   :  { %10507 = vmatprep.subr.bf16.mxu1 %v11678_v14 }
 0xae9   :  { %10508 = vmatpush3.bf16.msra.mxu1 %v11679_v22 }
 0xaea   :  { %10509 = vmatprep.subr.bf16.mxu1 %v11680_v32 }
 0xaed   :  { %10510 = vmatpush3.bf16.msra.mxu1 %v11681_v45 }
 0xaee   :  { %10511 = vmatprep.subr.bf16.mxu1 %v11682_v41 }
 0xaf1   :  { %10512 = vmatpush3.bf16.msra.mxu1 %v11683_v20 }
 0xaf2   :  { %10513 = vmatprep.subr.bf16.mxu1 %v11684_v43 }
 0xaf5   :  { %10514 = vmatpush3.bf16.msra.mxu1 %v11685_v6 }
 0xaf6   :  { %10515 = vmatprep.subr.bf16.mxu1 %v11686_v8 }
 0xaf9   :  { %10516 = vmatpush3.bf16.msra.mxu1 %v11687_v16 }
 0xafa   :  { %10523 = vmatprep.subr.bf16.mxu1 %v11688_v33 }
 0xafc   :  { %9381 = vmatmul.mubr.bf16.vlgmr.msra.gmra.mrb[44].mxu1 %v8577_v15 }
 0xafd   :  { %10524 = vmatpush3.bf16.msra.mxu1 %v11689_v51  ;;  %9420 = vmatprep.mubr.bf16.mxu1 %v8580_v25 }
 0xafe   :  { %10525 = vmatprep.subr.bf16.mxu1 %v11690_v2 }
 0xb01   :  { %10526 = vmatpush3.bf16.msra.mxu1 %v11691_v29 }
 0xb02   :  { %10527 = vmatprep.subr.bf16.mxu1 %v11692_v59 }
 0xb05   :  { %10528 = vmatpush3.bf16.msra.mxu1 %v11693_v39 }
 0xb06   :  { %10529 = vmatprep.subr.bf16.mxu1 %v11694_v42 }
 0xb09   :  { %10530 = vmatpush3.bf16.msra.mxu1 %v11695_v9 }
 0xb0a   :  { %10531 = vmatprep.subr.bf16.mxu1 %v11696_v18 }
 0xb0d   :  { %10532 = vmatpush3.bf16.msra.mxu1 %v11697_v23 }
 0xb0e   :  { %10533 = vmatprep.subr.bf16.mxu1 %v11698_v37 }
 0xb11   :  { %10534 = vmatpush3.bf16.msra.mxu1 %v11699_v11 }
 0xb12   :  { %10535 = vmatprep.subr.bf16.mxu1 %v11700_v50 }
 0xb15   :  { %10536 = vmatpush3.bf16.msra.mxu1 %v11701_v12 }
 0xb16   :  { %10537 = vmatprep.subr.bf16.mxu1 %v11702_v10 }
 0xb19   :  { %10538 = vmatpush3.bf16.msra.mxu1 %v11703_v35 }
 0xb1c   :  { %9421 = vmatmul.mubr.bf16.vlgmr.msra.gmra.mrb[48].mxu1 %v8579_v34 }
 0xbaf   :  { %v10495_v7 = vpop.f32.mrb[40].mxu1 }
 0xbb0   :  { %v10496_v5 = vpop.f32.mrb[41].mxu1 }
 0xbb1   :  { %v10497_v63 = vadd.f32 %v10496_v5, %v10495_v7  ;;  %v10498_v26 = vpop.f32.mrb[42].mxu1 }
 0xbb2   :  { %v10499_v54 = vpop.f32.mrb[43].mxu1 }
 0xbb3   :  { %v9343_v3 = vadd.f32 %v10497_v63, %v14249_v48 }
 0xbcf   :  { %v10517_v31 = vpop.f32.mrb[44].mxu1 }
 0xbd0   :  { %v10518_v27 = vpop.f32.mrb[45].mxu1 }
 0xbd1   :  { %v10519_v38 = vadd.f32 %v10518_v27, %v10517_v31  ;;  %v10520_v19 = vpop.f32.mrb[46].mxu1 }
 0xbd2   :  { %v10521_v55 = vpop.f32.mrb[47].mxu1 }
 0xbd3   :  { %v9383_v17 = vadd.f32 %v10519_v38, %v9343_v3 }
 0xbef   :  { %v10539_v58 = vpop.f32.mrb[48].mxu1 }
 0xbf0   :  { %v10540_v24 = vpop.f32.mrb[49].mxu1 }
 0xbf1   :  { %v10541_v21 = vadd.f32 %v10540_v24, %v10539_v58  ;;  %v10542_v36 = vpop.f32.mrb[50].mxu1 }
 0xbf2   :  { %v10543_v0 = vpop.f32.mrb[51].mxu1 }
 0xbf3   :  { %v9423_v57 = vadd.f32 %v10541_v21, %v9383_v17 }
 0xbf5   :  { %9428 = vst [vmem:[#allocation16] sm:$0xff] %v9423_v57 }
 0xbf6   :  { %11979 = shalt.err (!%p11976_p12)
}
 0xbf7   :  { %s11980_s20 = scalar_lea.hbm %s14297_s10, 128 }
 0xbf8   :  { %p11981_p13 = scmp.ne.s32.totalorder %s14297_s10, %s11980_s20  ;;  %p11984_p0 = scmp.lt.u32.totalorder %s11980_s20, %s14297_s10 }
 0xbfa   :  { %p11986_p1 = pnand %p11984_p0, %p11981_p13 }
 0xbfc   :  { %11989 = shalt.err (!%p11986_p1)
}
 0xbfd   :  { %9438 = dma.vmem_to_hbm [thread:$0]  %s9436_s16, 128, %s14297_s10, [#allocation4]  }
 0xbfe   :  { %12000 = dma.done.wait [#allocation4], 128  }
 0xbff   :  { %12001 = vsyncadd [#allocation4], 4294967168 }
 0xc00   :  { %9442 = vsyncpa [#allocation3], 1 }
 0xc01   :  { %9443 = vsyncpa [#allocation6], 1 }
 0xc02   :  { %9444 = vsyncpa [#allocation9], 1 }
 0xc03   :  { %9445 = vsyncpa [#allocation12], 1 }
 0xc04   :  { %9446 = vsyncpa [#allocation15], 1 }
 0xc05   :  { %9447 = vsyncpa [#allocation4], 1 }

</bundles_post_ra>
